<compile_context>
chip_gen: v7x
topology: tpu7x:2x2x1
jax: 0.10.0
libtpu: 0.0.40
codegen_flags: <defaults>
</compile_context>

<pallas_src>
import functools

import jax
import jax.numpy as jnp
import numpy as np
from jax import lax
from jax.experimental import pallas as pl
from jax.experimental.pallas import tpu as pltpu

KSIZE = 5
PAD = 2
LANES = 128


def _sigmoid(t):
    # Exact sigmoid via tanh: one EUP op, no VPU divide / reciprocal.
    return 0.5 * jnp.tanh(0.5 * t) + 0.5


# ----------------------- kernel: one directional GRU pass --------------------
def _gru_pass_kernel(conv_axis, h_ref, x_ref, wf_ref, wq_ref, b_ref, out_ref):
    """One GRU half-step with a separable 5-tap conv along `conv_axis` (1=H, 2=W).

    h block: (bb, hs, ws, Chp) f32; x block: (bb, hs, ws, Cx).
    wf: (5, Chp+Cx, 3*Chp) bf16 (fused z|r|q_x), wq: (5, Chp, Chp) bf16,
    b: (1, 3*Chp) f32.
    """
    hb = h_ref[...]                                    # f32; the only live f32 copy
    bb, hs, ws, Chp = hb.shape
    M = bb * hs * ws
    h2 = hb.reshape(M, Chp)                            # gate-math operand (f32)

    hx = jnp.concatenate(
        [hb.astype(jnp.bfloat16), x_ref[...].astype(jnp.bfloat16)], axis=-1)

    n = hx.shape[conv_axis]

    def taps(a4):
        # Zero-pad ONCE along the conv axis, then yield the 5 shifted slabs.
        zshape = list(a4.shape)
        zshape[conv_axis] = PAD
        zeros = jnp.zeros(zshape, a4.dtype)
        ap = jnp.concatenate([zeros, a4, zeros], axis=conv_axis)
        for k in range(KSIZE):
            sl = [slice(None)] * 4
            sl[conv_axis] = slice(k, k + n)
            yield ap[tuple(sl)].reshape(M, a4.shape[-1])

    # Fused z | r | q_x pre-activations: 5 accumulating MXU matmuls, K = Cin.
    # No (M, 5*Cin) im2col buffer is ever materialized.
    pre = b_ref[...]                                   # (1, 3*Chp) f32, broadcasts
    for k, tap in enumerate(taps(hx)):
        pre = pre + jnp.dot(tap, wf_ref[k], preferred_element_type=jnp.float32)

    z = _sigmoid(pre[:, :Chp])                         # 128-lane aligned slices
    r = _sigmoid(pre[:, Chp:2 * Chp])
    qh = pre[:, 2 * Chp:]                              # q's x contribution (+ bias)

    rh4 = (r * h2).reshape(bb, hs, ws, Chp).astype(jnp.bfloat16)
    for k, tap in enumerate(taps(rh4)):
        qh = qh + jnp.dot(tap, wq_ref[k], preferred_element_type=jnp.float32)
    q = jnp.tanh(qh)

    hnew = (1.0 - z) * h2 + z * q
    out_ref[...] = hnew.reshape(bb, hs, ws, Chp).astype(out_ref.dtype)


# ------------------------------ weight plumbing -------------------------------
def _fuse_weights(wz, wr, wq, bz, br, bq, Ch, Cx, Chp):
    """Fuse z/r/q weights for one pass; lane-pad hidden channels to Chp.

    Inputs are tap-major: w*: (5, Cin, Ch) with Cin == Ch + Cx and the h
    channels FIRST -- must match jnp.concatenate([h, x], -1) in the kernel.
    """
    K, Cin, Cout = wz.shape
    assert (K, Cin, Cout) == (KSIZE, Ch + Cx, Ch), \
        "hx channel split must be [h, x] with Cin == Ch + Cx"
    po = Chp - Ch

    def pad_out(w):                                    # (5, c, Ch) -> (5, c, Chp)
        return jnp.pad(w, ((0, 0), (0, 0), (0, po)))

    def pad_hin(w):                                    # (5, Ch, Chp) -> (5, Chp, Chp)
        return jnp.pad(w, ((0, 0), (0, po), (0, 0)))

    def split_pad(w):                                  # (5, Cin, Ch) -> (5, Chp+Cx, Chp)
        return jnp.concatenate(
            [pad_hin(pad_out(w[:, :Ch, :])), pad_out(w[:, Ch:, :])], axis=1)

    wf = jnp.concatenate(
        [split_pad(wz), split_pad(wr),
         split_pad(wq.at[:, :Ch, :].set(0.0))],        # x-only part of convq
        axis=-1)                                       # (5, Chp+Cx, 3*Chp)
    wqh = pad_hin(pad_out(wq[:, :Ch, :]))              # (5, Chp, Chp) h-part of convq

    def pad_b(b):                                      # (1, Ch) -> (1, Chp)
        return jnp.pad(b, ((0, 0), (0, po)))

    bf = jnp.concatenate([pad_b(bz), pad_b(br), pad_b(bq)], axis=-1)
    return (wf.astype(jnp.bfloat16), wqh.astype(jnp.bfloat16),
            bf.astype(jnp.float32))


# ------------------------- generation-aware tiling ----------------------------
def _device_info():
    """(TensorCores per chip, physical VMEM bytes per core) -- best effort."""
    n_tc, vmem = 1, 128 * 1024 * 1024
    try:
        if "v7" in jax.devices()[0].device_kind.lower():
            n_tc, vmem = 2, 64 * 1024 * 1024
    except Exception:
        pass
    try:
        cap = getattr(pltpu.get_tpu_info(), "vmem_capacity_bytes", None)
        if cap:
            vmem = int(cap)
    except Exception:
        pass
    return n_tc, vmem


def _largest_divisor_leq(n, cap, multiple=1):
    cap = max(1, min(n, cap))
    for d in range(cap, 0, -1):
        if n % d == 0 and (d % multiple == 0 or d == n):
            return d
    return n


def _step_bytes(m, Chp, Cx):
    """Rough per-grid-step VMEM working set (double-buffered I/O + temporaries)."""
    cin = Chp + Cx
    io = 2 * m * 4 * (Chp + Cx + Chp)                        # h, x, out tiles
    tmp = 2 * m * cin * 2 + m * 3 * Chp * 4 + 4 * m * Chp * 4  # hx(+pad), pre, gates
    return io + tmp


def _pick_tiles(B, free_extent, fixed_extent, Chp, Cx, n_steps, budget, free_mult):
    """Pick batch block `bb` and conv-free-axis block `sb` for one pass."""
    bb, sb = B, free_extent
    # >= n_steps "parallel" grid steps (2 keeps both v7x TCs busy; 1 on v5e/v6e).
    while (B // bb) * (free_extent // sb) < n_steps:
        if bb > 1:
            bb = _largest_divisor_leq(B, bb // 2)
        else:
            nsb = _largest_divisor_leq(free_extent, max(free_mult, sb // 2), free_mult)
            if nsb == sb:
                break
            sb = nsb
    # Shrink until the estimated working set fits the VMEM budget.
    while _step_bytes(bb * sb * fixed_extent, Chp, Cx) > budget:
        nsb = _largest_divisor_leq(free_extent, max(free_mult, sb // 2), free_mult)
        if nsb != sb:
            sb = nsb
        elif bb > 1:
            bb = _largest_divisor_leq(B, bb // 2)
        else:
            # TODO(synk): if a single row-tile still overflows (extreme shapes),
            # additionally tile the conv axis with a 2-row halo.
            break
    return bb, sb


# ------------------------------- pass wrapper ---------------------------------
def _run_pass(h_p, x, wf, wqh, bias, conv_axis, bb, sb, vmem_limit):
    B, H, W, Chp = h_p.shape
    Cx = x.shape[-1]
    if conv_axis == 2:          # (1,5) conv along W -> tile over (batch, H)
        grid = (B // bb, H // sb)
        hblk, xblk = (bb, sb, W, Chp), (bb, sb, W, Cx)
        imap = lambda b, i: (b, i, 0, 0)
    else:                       # (5,1) conv along H -> tile over (batch, W)
        grid = (B // bb, W // sb)
        hblk, xblk = (bb, H, sb, Chp), (bb, H, sb, Cx)
        imap = lambda b, j: (b, 0, j, 0)

    def wspec(arr):
        return pl.BlockSpec(arr.shape, lambda b, i, _nd=arr.ndim: (0,) * _nd)

    m_tot = B * H * W
    cin = Chp + Cx
    cost = pl.CostEstimate(
        flops=2 * m_tot * KSIZE * (cin * 3 * Chp + Chp * Chp) + 12 * m_tot * Chp,
        transcendentals=3 * m_tot * Chp,
        bytes_accessed=4 * m_tot * (2 * Chp + Cx) + 2 * (wf.size + wqh.size)
                       + 4 * bias.size,
    )

    return pl.pallas_call(
        functools.partial(_gru_pass_kernel, conv_axis),
        out_shape=jax.ShapeDtypeStruct((B, H, W, Chp), h_p.dtype),
        grid=grid,
        in_specs=[pl.BlockSpec(hblk, imap), pl.BlockSpec(xblk, imap),
                  wspec(wf), wspec(wqh), wspec(bias)],
        out_specs=pl.BlockSpec(hblk, imap),
        compiler_params=pltpu.CompilerParams(
            dimension_semantics=("parallel", "parallel"),
            vmem_limit_bytes=vmem_limit),
        cost_estimate=cost,
    )(h_p, x, wf, wqh, bias)


def sepconv_gru(h_nhwc, x_nhwc, params):
    """SepConvGRU forward.  h/x are NHWC; returns the new h (NHWC, f32)."""
    B, H, W, Ch = h_nhwc.shape
    Cx = x_nhwc.shape[-1]
    Chp = ((Ch + LANES - 1) // LANES) * LANES          # lane-pad hidden channels

    w1f, w1q, b1 = _fuse_weights(params["wz1"], params["wr1"], params["wq1"],
                                 params["bz1"], params["br1"], params["bq1"],
                                 Ch, Cx, Chp)
    w2f, w2q, b2 = _fuse_weights(params["wz2"], params["wr2"], params["wq2"],
                                 params["bz2"], params["br2"], params["bq2"],
                                 Ch, Cx, Chp)

    n_tc, vmem_cap = _device_info()
    vmem_limit = int(min(vmem_cap // 2, 64 * 1024 * 1024))
    budget = vmem_limit // 2

    h_p = h_nhwc
    if Chp != Ch:
        h_p = jnp.pad(h_nhwc, ((0, 0), (0, 0), (0, 0), (0, Chp - Ch)))

    # Pass 1: (1,5) conv along W -> no dependency across H, tile (batch, H).
    bb1, hb1 = _pick_tiles(B, H, W, Chp, Cx, n_tc, budget, 1)
    h_p = _run_pass(h_p, x_nhwc, w1f, w1q, b1, 2, bb1, hb1, vmem_limit)

    # Pass 2: (5,1) conv along H -> no dependency across W, tile (batch, W).
    bb2, wb2 = _pick_tiles(B, W, H, Chp, Cx, n_tc, budget, 8)
    h_p = _run_pass(h_p, x_nhwc, w2f, w2q, b2, 1, bb2, wb2, vmem_limit)

    return h_p[..., :Ch] if Chp != Ch else h_p


# ---------------- pure-JAX f32 reference (mirrors the PyTorch module) --------
def _conv_ref(inp, w, b, orient):
    # inp: (B, H, W, Cin), w: (5, Cin, Cout) tap-major, b: (1, Cout)
    if orient == "w":                       # (1, 5) kernel, padding (0, 2)
        wk, pad = w[None], ((0, 0), (PAD, PAD))
    else:                                   # (5, 1) kernel, padding (2, 0)
        wk, pad = w[:, None], ((PAD, PAD), (0, 0))
    y = lax.conv_general_dilated(
        inp, wk, (1, 1), pad,
        dimension_numbers=("NHWC", "HWIO", "NHWC"),
        precision=lax.Precision.HIGHEST)
    return y + b[None]


def sepconv_gru_ref(h, x, p):
    hx = jnp.concatenate([h, x], axis=-1)
    z = jax.nn.sigmoid(_conv_ref(hx, p["wz1"], p["bz1"], "w"))
    r = jax.nn.sigmoid(_conv_ref(hx, p["wr1"], p["br1"], "w"))
    q = jnp.tanh(_conv_ref(jnp.concatenate([r * h, x], -1), p["wq1"], p["bq1"], "w"))
    h = (1 - z) * h + z * q
    hx = jnp.concatenate([h, x], axis=-1)
    z = jax.nn.sigmoid(_conv_ref(hx, p["wz2"], p["bz2"], "h"))
    r = jax.nn.sigmoid(_conv_ref(hx, p["wr2"], p["br2"], "h"))
    q = jnp.tanh(_conv_ref(jnp.concatenate([r * h, x], -1), p["wq2"], p["bq2"], "h"))
    h = (1 - z) * h + z * q
    return h


if __name__ == "__main__":
    # Small synthetic shapes consistent with the module's forward
    # (hidden_dim=32, input_dim=32 -> Cin=64); PyTorch NCHW inputs -> NHWC.
    B, HID, INP, H, W = 2, 32, 32, 8, 8
    CIN = HID + INP

    key = jax.random.PRNGKey(0)
    ks = jax.random.split(key, 16)

    def mkw(k):   # tap-major (5, Cin, Cout) == PyTorch (Cout, Cin, kh, kw) reordered
        return jax.random.normal(k, (KSIZE, CIN, HID), jnp.float32) * 0.05

    def mkb(k):
        return jax.random.normal(k, (1, HID), jnp.float32) * 0.05

    params = {
        "wz1": mkw(ks[0]), "wr1": mkw(ks[1]), "wq1": mkw(ks[2]),
        "bz1": mkb(ks[3]), "br1": mkb(ks[4]), "bq1": mkb(ks[5]),
        "wz2": mkw(ks[6]), "wr2": mkw(ks[7]), "wq2": mkw(ks[8]),
        "bz2": mkb(ks[9]), "br2": mkb(ks[10]), "bq2": mkb(ks[11]),
    }

    h_nchw = jax.random.normal(ks[12], (B, HID, H, W), jnp.float32)
    x_nchw = jax.random.normal(ks[13], (B, INP, H, W), jnp.float32)
    h_nhwc = jnp.transpose(h_nchw, (0, 2, 3, 1))
    x_nhwc = jnp.transpose(x_nchw, (0, 2, 3, 1))

    out = jax.jit(sepconv_gru)(h_nhwc, x_nhwc, params)
    out = jax.block_until_ready(out)

    ref = sepconv_gru_ref(h_nhwc, x_nhwc, params)
    # Kernel matmuls run with bf16 operands (f32 accumulation) per the perf
    # review; tolerance is loosened accordingly vs. the pure-f32 reference.
    # TODO(synk): validate recurrent (12-32 GRU iteration) bf16 drift end-to-end.
    np.testing.assert_allclose(np.asarray(out), np.asarray(ref),
                               rtol=5e-2, atol=5e-2)
    print("KERNEL_OK")
</pallas_src>

<mosaic_0001>
module attributes {stable_mosaic.version = 11 : i64} {
  func.func @_gru_pass_kernel(%arg0: i32, %arg1: i32, %arg2: memref<2x8x8x128xf32, #tpu.memory_space<vmem>>, %arg3: memref<2x8x8x32xf32, #tpu.memory_space<vmem>>, %arg4: memref<5x160x384xbf16, #tpu.memory_space<vmem>>, %arg5: memref<5x128x128xbf16, #tpu.memory_space<vmem>>, %arg6: memref<1x384xf32, #tpu.memory_space<vmem>>, %arg7: memref<2x8x8x128xf32, #tpu.memory_space<vmem>>) attributes {dimension_semantics = [#tpu.dimension_semantics<parallel>, #tpu.dimension_semantics<parallel>], iteration_bounds = array<i64: 1, 1>, scalar_prefetch = 0 : i64, scratch_operands = 0 : i64, tpu.core_type = #tpu.core_type<tc>, window_params = [{transform_indices = @transform_0, window_bounds = array<i64: 2, 8, 8, 128>}, {transform_indices = @transform_1, window_bounds = array<i64: 2, 8, 8, 32>}, {pipeline_mode = #tpu.pipeline_mode<synchronous>, transform_indices = @transform_2, window_bounds = array<i64: 5, 160, 384>}, {pipeline_mode = #tpu.pipeline_mode<synchronous>, transform_indices = @transform_3, window_bounds = array<i64: 5, 128, 128>}, {pipeline_mode = #tpu.pipeline_mode<synchronous>, transform_indices = @transform_4, window_bounds = array<i64: 1, 384>}, {transform_indices = @transform_5, window_bounds = array<i64: 2, 8, 8, 128>}]} {
    %c0 = arith.constant 0 : index
    %c0_0 = arith.constant 0 : index
    %c0_1 = arith.constant 0 : index
    %c0_2 = arith.constant 0 : index
    %0 = vector.load %arg2[%c0, %c0_0, %c0_1, %c0_2] : memref<2x8x8x128xf32, #tpu.memory_space<vmem>>, vector<2x8x8x128xf32>
    %1 = vector.shape_cast %0 : vector<2x8x8x128xf32> to vector<128x128xf32>
    %2 = arith.truncf %0 : vector<2x8x8x128xf32> to vector<2x8x8x128xbf16>
    %c0_3 = arith.constant 0 : index
    %c0_4 = arith.constant 0 : index
    %c0_5 = arith.constant 0 : index
    %c0_6 = arith.constant 0 : index
    %3 = vector.load %arg3[%c0_3, %c0_4, %c0_5, %c0_6] : memref<2x8x8x32xf32, #tpu.memory_space<vmem>>, vector<2x8x8x32xf32>
    %4 = arith.truncf %3 : vector<2x8x8x32xf32> to vector<2x8x8x32xbf16>
    %5 = tpu.concatenate %2, %4 in 3 : vector<2x8x8x128xbf16>, vector<2x8x8x32xbf16> -> vector<2x8x8x160xbf16>
    %c0_7 = arith.constant 0 : index
    %c0_8 = arith.constant 0 : index
    %6 = vector.load %arg6[%c0_7, %c0_8] : memref<1x384xf32, #tpu.memory_space<vmem>>, vector<1x384xf32>
    %cst = arith.constant 0.000000e+00 : bf16
    %7 = vector.broadcast %cst : bf16 to vector<2x8x2x160xbf16>
    %8 = tpu.concatenate %7, %5, %7 in 2 : vector<2x8x2x160xbf16>, vector<2x8x8x160xbf16>, vector<2x8x2x160xbf16> -> vector<2x8x12x160xbf16>
    %9 = vector.extract_strided_slice %8 {offsets = [0, 0, 0, 0], sizes = [2, 8, 8, 160], strides = [1, 1, 1, 1]} : vector<2x8x12x160xbf16> to vector<2x8x8x160xbf16>
    %10 = vector.shape_cast %9 : vector<2x8x8x160xbf16> to vector<128x160xbf16>
    %c0_9 = arith.constant 0 : index
    %c0_10 = arith.constant 0 : index
    %c0_11 = arith.constant 0 : index
    %11 = vector.load %arg4[%c0_9, %c0_10, %c0_11] : memref<5x160x384xbf16, #tpu.memory_space<vmem>>, vector<1x160x384xbf16>
    %12 = vector.shape_cast %11 : vector<1x160x384xbf16> to vector<160x384xbf16>
    %cst_12 = arith.constant dense<0.000000e+00> : vector<128x384xf32>
    %13 = tpu.matmul %10, %12, %cst_12 {dimension_numbers = #tpu.dot_dimension_numbers<[1], [0], [0], [1], [0, 0, 1, 1], [], []>} : vector<128x160xbf16>, vector<160x384xbf16>, vector<128x384xf32> -> vector<128x384xf32>
    %14 = vector.broadcast %6 : vector<1x384xf32> to vector<128x384xf32>
    %15 = arith.addf %14, %13 : vector<128x384xf32>
    %16 = vector.extract_strided_slice %8 {offsets = [0, 0, 1, 0], sizes = [2, 8, 8, 160], strides = [1, 1, 1, 1]} : vector<2x8x12x160xbf16> to vector<2x8x8x160xbf16>
    %17 = vector.shape_cast %16 : vector<2x8x8x160xbf16> to vector<128x160xbf16>
    %c1 = arith.constant 1 : index
    %c0_13 = arith.constant 0 : index
    %c0_14 = arith.constant 0 : index
    %18 = vector.load %arg4[%c1, %c0_13, %c0_14] : memref<5x160x384xbf16, #tpu.memory_space<vmem>>, vector<1x160x384xbf16>
    %19 = vector.shape_cast %18 : vector<1x160x384xbf16> to vector<160x384xbf16>
    %cst_15 = arith.constant dense<0.000000e+00> : vector<128x384xf32>
    %20 = tpu.matmul %17, %19, %cst_15 {dimension_numbers = #tpu.dot_dimension_numbers<[1], [0], [0], [1], [0, 0, 1, 1], [], []>} : vector<128x160xbf16>, vector<160x384xbf16>, vector<128x384xf32> -> vector<128x384xf32>
    %21 = arith.addf %15, %20 : vector<128x384xf32>
    %22 = vector.extract_strided_slice %8 {offsets = [0, 0, 2, 0], sizes = [2, 8, 8, 160], strides = [1, 1, 1, 1]} : vector<2x8x12x160xbf16> to vector<2x8x8x160xbf16>
    %23 = vector.shape_cast %22 : vector<2x8x8x160xbf16> to vector<128x160xbf16>
    %c2 = arith.constant 2 : index
    %c0_16 = arith.constant 0 : index
    %c0_17 = arith.constant 0 : index
    %24 = vector.load %arg4[%c2, %c0_16, %c0_17] : memref<5x160x384xbf16, #tpu.memory_space<vmem>>, vector<1x160x384xbf16>
    %25 = vector.shape_cast %24 : vector<1x160x384xbf16> to vector<160x384xbf16>
    %cst_18 = arith.constant dense<0.000000e+00> : vector<128x384xf32>
    %26 = tpu.matmul %23, %25, %cst_18 {dimension_numbers = #tpu.dot_dimension_numbers<[1], [0], [0], [1], [0, 0, 1, 1], [], []>} : vector<128x160xbf16>, vector<160x384xbf16>, vector<128x384xf32> -> vector<128x384xf32>
    %27 = arith.addf %21, %26 : vector<128x384xf32>
    %28 = vector.extract_strided_slice %8 {offsets = [0, 0, 3, 0], sizes = [2, 8, 8, 160], strides = [1, 1, 1, 1]} : vector<2x8x12x160xbf16> to vector<2x8x8x160xbf16>
    %29 = vector.shape_cast %28 : vector<2x8x8x160xbf16> to vector<128x160xbf16>
    %c3 = arith.constant 3 : index
    %c0_19 = arith.constant 0 : index
    %c0_20 = arith.constant 0 : index
    %30 = vector.load %arg4[%c3, %c0_19, %c0_20] : memref<5x160x384xbf16, #tpu.memory_space<vmem>>, vector<1x160x384xbf16>
    %31 = vector.shape_cast %30 : vector<1x160x384xbf16> to vector<160x384xbf16>
    %cst_21 = arith.constant dense<0.000000e+00> : vector<128x384xf32>
    %32 = tpu.matmul %29, %31, %cst_21 {dimension_numbers = #tpu.dot_dimension_numbers<[1], [0], [0], [1], [0, 0, 1, 1], [], []>} : vector<128x160xbf16>, vector<160x384xbf16>, vector<128x384xf32> -> vector<128x384xf32>
    %33 = arith.addf %27, %32 : vector<128x384xf32>
    %34 = vector.extract_strided_slice %8 {offsets = [0, 0, 4, 0], sizes = [2, 8, 8, 160], strides = [1, 1, 1, 1]} : vector<2x8x12x160xbf16> to vector<2x8x8x160xbf16>
    %35 = vector.shape_cast %34 : vector<2x8x8x160xbf16> to vector<128x160xbf16>
    %c4 = arith.constant 4 : index
    %c0_22 = arith.constant 0 : index
    %c0_23 = arith.constant 0 : index
    %36 = vector.load %arg4[%c4, %c0_22, %c0_23] : memref<5x160x384xbf16, #tpu.memory_space<vmem>>, vector<1x160x384xbf16>
    %37 = vector.shape_cast %36 : vector<1x160x384xbf16> to vector<160x384xbf16>
    %cst_24 = arith.constant dense<0.000000e+00> : vector<128x384xf32>
    %38 = tpu.matmul %35, %37, %cst_24 {dimension_numbers = #tpu.dot_dimension_numbers<[1], [0], [0], [1], [0, 0, 1, 1], [], []>} : vector<128x160xbf16>, vector<160x384xbf16>, vector<128x384xf32> -> vector<128x384xf32>
    %39 = arith.addf %33, %38 : vector<128x384xf32>
    %40 = vector.extract_strided_slice %39 {offsets = [0, 0], sizes = [128, 128], strides = [1, 1]} : vector<128x384xf32> to vector<128x128xf32>
    %cst_25 = arith.constant 5.000000e-01 : f32
    %41 = vector.broadcast %cst_25 : f32 to vector<128x128xf32>
    %42 = arith.mulf %41, %40 : vector<128x128xf32>
    %43 = math.tanh %42 : vector<128x128xf32>
    %cst_26 = arith.constant 5.000000e-01 : f32
    %44 = vector.broadcast %cst_26 : f32 to vector<128x128xf32>
    %45 = arith.mulf %44, %43 : vector<128x128xf32>
    %cst_27 = arith.constant 5.000000e-01 : f32
    %46 = vector.broadcast %cst_27 : f32 to vector<128x128xf32>
    %47 = arith.addf %45, %46 : vector<128x128xf32>
    %48 = vector.extract_strided_slice %39 {offsets = [0, 128], sizes = [128, 128], strides = [1, 1]} : vector<128x384xf32> to vector<128x128xf32>
    %cst_28 = arith.constant 5.000000e-01 : f32
    %49 = vector.broadcast %cst_28 : f32 to vector<128x128xf32>
    %50 = arith.mulf %49, %48 : vector<128x128xf32>
    %51 = math.tanh %50 : vector<128x128xf32>
    %cst_29 = arith.constant 5.000000e-01 : f32
    %52 = vector.broadcast %cst_29 : f32 to vector<128x128xf32>
    %53 = arith.mulf %52, %51 : vector<128x128xf32>
    %cst_30 = arith.constant 5.000000e-01 : f32
    %54 = vector.broadcast %cst_30 : f32 to vector<128x128xf32>
    %55 = arith.addf %53, %54 : vector<128x128xf32>
    %56 = vector.extract_strided_slice %39 {offsets = [0, 256], sizes = [128, 128], strides = [1, 1]} : vector<128x384xf32> to vector<128x128xf32>
    %57 = arith.mulf %55, %1 : vector<128x128xf32>
    %58 = vector.shape_cast %57 : vector<128x128xf32> to vector<2x8x8x128xf32>
    %59 = arith.truncf %58 : vector<2x8x8x128xf32> to vector<2x8x8x128xbf16>
    %cst_31 = arith.constant 0.000000e+00 : bf16
    %60 = vector.broadcast %cst_31 : bf16 to vector<2x8x2x128xbf16>
    %61 = tpu.concatenate %60, %59, %60 in 2 : vector<2x8x2x128xbf16>, vector<2x8x8x128xbf16>, vector<2x8x2x128xbf16> -> vector<2x8x12x128xbf16>
    %62 = vector.extract_strided_slice %61 {offsets = [0, 0, 0, 0], sizes = [2, 8, 8, 128], strides = [1, 1, 1, 1]} : vector<2x8x12x128xbf16> to vector<2x8x8x128xbf16>
    %63 = vector.shape_cast %62 : vector<2x8x8x128xbf16> to vector<128x128xbf16>
    %c0_32 = arith.constant 0 : index
    %c0_33 = arith.constant 0 : index
    %c0_34 = arith.constant 0 : index
    %64 = vector.load %arg5[%c0_32, %c0_33, %c0_34] : memref<5x128x128xbf16, #tpu.memory_space<vmem>>, vector<1x128x128xbf16>
    %65 = vector.shape_cast %64 : vector<1x128x128xbf16> to vector<128x128xbf16>
    %cst_35 = arith.constant dense<0.000000e+00> : vector<128x128xf32>
    %66 = tpu.matmul %63, %65, %cst_35 {dimension_numbers = #tpu.dot_dimension_numbers<[1], [0], [0], [1], [0, 0, 1, 1], [], []>} : vector<128x128xbf16>, vector<128x128xbf16>, vector<128x128xf32> -> vector<128x128xf32>
    %67 = arith.addf %56, %66 : vector<128x128xf32>
    %68 = vector.extract_strided_slice %61 {offsets = [0, 0, 1, 0], sizes = [2, 8, 8, 128], strides = [1, 1, 1, 1]} : vector<2x8x12x128xbf16> to vector<2x8x8x128xbf16>
    %69 = vector.shape_cast %68 : vector<2x8x8x128xbf16> to vector<128x128xbf16>
    %c1_36 = arith.constant 1 : index
    %c0_37 = arith.constant 0 : index
    %c0_38 = arith.constant 0 : index
    %70 = vector.load %arg5[%c1_36, %c0_37, %c0_38] : memref<5x128x128xbf16, #tpu.memory_space<vmem>>, vector<1x128x128xbf16>
    %71 = vector.shape_cast %70 : vector<1x128x128xbf16> to vector<128x128xbf16>
    %cst_39 = arith.constant dense<0.000000e+00> : vector<128x128xf32>
    %72 = tpu.matmul %69, %71, %cst_39 {dimension_numbers = #tpu.dot_dimension_numbers<[1], [0], [0], [1], [0, 0, 1, 1], [], []>} : vector<128x128xbf16>, vector<128x128xbf16>, vector<128x128xf32> -> vector<128x128xf32>
    %73 = arith.addf %67, %72 : vector<128x128xf32>
    %74 = vector.extract_strided_slice %61 {offsets = [0, 0, 2, 0], sizes = [2, 8, 8, 128], strides = [1, 1, 1, 1]} : vector<2x8x12x128xbf16> to vector<2x8x8x128xbf16>
    %75 = vector.shape_cast %74 : vector<2x8x8x128xbf16> to vector<128x128xbf16>
    %c2_40 = arith.constant 2 : index
    %c0_41 = arith.constant 0 : index
    %c0_42 = arith.constant 0 : index
    %76 = vector.load %arg5[%c2_40, %c0_41, %c0_42] : memref<5x128x128xbf16, #tpu.memory_space<vmem>>, vector<1x128x128xbf16>
    %77 = vector.shape_cast %76 : vector<1x128x128xbf16> to vector<128x128xbf16>
    %cst_43 = arith.constant dense<0.000000e+00> : vector<128x128xf32>
    %78 = tpu.matmul %75, %77, %cst_43 {dimension_numbers = #tpu.dot_dimension_numbers<[1], [0], [0], [1], [0, 0, 1, 1], [], []>} : vector<128x128xbf16>, vector<128x128xbf16>, vector<128x128xf32> -> vector<128x128xf32>
    %79 = arith.addf %73, %78 : vector<128x128xf32>
    %80 = vector.extract_strided_slice %61 {offsets = [0, 0, 3, 0], sizes = [2, 8, 8, 128], strides = [1, 1, 1, 1]} : vector<2x8x12x128xbf16> to vector<2x8x8x128xbf16>
    %81 = vector.shape_cast %80 : vector<2x8x8x128xbf16> to vector<128x128xbf16>
    %c3_44 = arith.constant 3 : index
    %c0_45 = arith.constant 0 : index
    %c0_46 = arith.constant 0 : index
    %82 = vector.load %arg5[%c3_44, %c0_45, %c0_46] : memref<5x128x128xbf16, #tpu.memory_space<vmem>>, vector<1x128x128xbf16>
    %83 = vector.shape_cast %82 : vector<1x128x128xbf16> to vector<128x128xbf16>
    %cst_47 = arith.constant dense<0.000000e+00> : vector<128x128xf32>
    %84 = tpu.matmul %81, %83, %cst_47 {dimension_numbers = #tpu.dot_dimension_numbers<[1], [0], [0], [1], [0, 0, 1, 1], [], []>} : vector<128x128xbf16>, vector<128x128xbf16>, vector<128x128xf32> -> vector<128x128xf32>
    %85 = arith.addf %79, %84 : vector<128x128xf32>
    %86 = vector.extract_strided_slice %61 {offsets = [0, 0, 4, 0], sizes = [2, 8, 8, 128], strides = [1, 1, 1, 1]} : vector<2x8x12x128xbf16> to vector<2x8x8x128xbf16>
    %87 = vector.shape_cast %86 : vector<2x8x8x128xbf16> to vector<128x128xbf16>
    %c4_48 = arith.constant 4 : index
    %c0_49 = arith.constant 0 : index
    %c0_50 = arith.constant 0 : index
    %88 = vector.load %arg5[%c4_48, %c0_49, %c0_50] : memref<5x128x128xbf16, #tpu.memory_space<vmem>>, vector<1x128x128xbf16>
    %89 = vector.shape_cast %88 : vector<1x128x128xbf16> to vector<128x128xbf16>
    %cst_51 = arith.constant dense<0.000000e+00> : vector<128x128xf32>
    %90 = tpu.matmul %87, %89, %cst_51 {dimension_numbers = #tpu.dot_dimension_numbers<[1], [0], [0], [1], [0, 0, 1, 1], [], []>} : vector<128x128xbf16>, vector<128x128xbf16>, vector<128x128xf32> -> vector<128x128xf32>
    %91 = arith.addf %85, %90 : vector<128x128xf32>
    %92 = math.tanh %91 : vector<128x128xf32>
    %cst_52 = arith.constant 1.000000e+00 : f32
    %93 = vector.broadcast %cst_52 : f32 to vector<128x128xf32>
    %94 = arith.subf %93, %47 : vector<128x128xf32>
    %95 = arith.mulf %94, %1 : vector<128x128xf32>
    %96 = arith.mulf %47, %92 : vector<128x128xf32>
    %97 = arith.addf %95, %96 : vector<128x128xf32>
    %98 = vector.shape_cast %97 : vector<128x128xf32> to vector<2x8x8x128xf32>
    %c0_53 = arith.constant 0 : index
    %c0_54 = arith.constant 0 : index
    %c0_55 = arith.constant 0 : index
    %c0_56 = arith.constant 0 : index
    %99 = vector.load %arg7[%c0_53, %c0_54, %c0_55, %c0_56] : memref<2x8x8x128xf32, #tpu.memory_space<vmem>>, vector<2x8x8x128xf32>
    tpu.vector_store %arg7[%c0_53, %c0_54, %c0_55, %c0_56], %98 {strides = array<i32>} : memref<2x8x8x128xf32, #tpu.memory_space<vmem>>, vector<2x8x8x128xf32>,
    return
  }
  func.func @transform_0(%arg0: i32, %arg1: i32) -> (i32, i32, i32, i32) {
    %c0_i32 = arith.constant 0 : i32
    %c0_i32_0 = arith.constant 0 : i32
    %c0_i32_1 = arith.constant 0 : i32
    return %arg0, %arg1, %c0_i32, %c0_i32_0 : i32, i32, i32, i32
  }
  func.func @transform_1(%arg0: i32, %arg1: i32) -> (i32, i32, i32, i32) {
    %c0_i32 = arith.constant 0 : i32
    %c0_i32_0 = arith.constant 0 : i32
    %c0_i32_1 = arith.constant 0 : i32
    return %arg0, %arg1, %c0_i32, %c0_i32_0 : i32, i32, i32, i32
  }
  func.func @transform_2(%arg0: i32, %arg1: i32) -> (i32, i32, i32) {
    %c0_i32 = arith.constant 0 : i32
    %c0_i32_0 = arith.constant 0 : i32
    %c0_i32_1 = arith.constant 0 : i32
    %c0_i32_2 = arith.constant 0 : i32
    return %c0_i32, %c0_i32_0, %c0_i32_1 : i32, i32, i32
  }
  func.func @transform_3(%arg0: i32, %arg1: i32) -> (i32, i32, i32) {
    %c0_i32 = arith.constant 0 : i32
    %c0_i32_0 = arith.constant 0 : i32
    %c0_i32_1 = arith.constant 0 : i32
    %c0_i32_2 = arith.constant 0 : i32
    return %c0_i32, %c0_i32_0, %c0_i32_1 : i32, i32, i32
  }
  func.func @transform_4(%arg0: i32, %arg1: i32) -> (i32, i32) {
    %c0_i32 = arith.constant 0 : i32
    %c0_i32_0 = arith.constant 0 : i32
    %c0_i32_1 = arith.constant 0 : i32
    return %c0_i32, %c0_i32_0 : i32, i32
  }
  func.func @transform_5(%arg0: i32, %arg1: i32) -> (i32, i32, i32, i32) {
    %c0_i32 = arith.constant 0 : i32
    %c0_i32_0 = arith.constant 0 : i32
    %c0_i32_1 = arith.constant 0 : i32
    return %arg0, %arg1, %c0_i32, %c0_i32_0 : i32, i32, i32, i32
  }
}

module attributes {stable_mosaic.version = 11 : i64} {
  func.func @_gru_pass_kernel(%arg0: i32, %arg1: i32, %arg2: memref<2x8x8x128xf32, #tpu.memory_space<vmem>>, %arg3: memref<2x8x8x32xf32, #tpu.memory_space<vmem>>, %arg4: memref<5x160x384xbf16, #tpu.memory_space<vmem>>, %arg5: memref<5x128x128xbf16, #tpu.memory_space<vmem>>, %arg6: memref<1x384xf32, #tpu.memory_space<vmem>>, %arg7: memref<2x8x8x128xf32, #tpu.memory_space<vmem>>) attributes {dimension_semantics = [#tpu.dimension_semantics<parallel>, #tpu.dimension_semantics<parallel>], iteration_bounds = array<i64: 1, 1>, scalar_prefetch = 0 : i64, scratch_operands = 0 : i64, tpu.core_type = #tpu.core_type<tc>, window_params = [{transform_indices = @transform_0, window_bounds = array<i64: 2, 8, 8, 128>}, {transform_indices = @transform_1, window_bounds = array<i64: 2, 8, 8, 32>}, {pipeline_mode = #tpu.pipeline_mode<synchronous>, transform_indices = @transform_2, window_bounds = array<i64: 5, 160, 384>}, {pipeline_mode = #tpu.pipeline_mode<synchronous>, transform_indices = @transform_3, window_bounds = array<i64: 5, 128, 128>}, {pipeline_mode = #tpu.pipeline_mode<synchronous>, transform_indices = @transform_4, window_bounds = array<i64: 1, 384>}, {transform_indices = @transform_5, window_bounds = array<i64: 2, 8, 8, 128>}]} {
    %c0 = arith.constant 0 : index
    %c0_0 = arith.constant 0 : index
    %c0_1 = arith.constant 0 : index
    %c0_2 = arith.constant 0 : index
    %0 = vector.load %arg2[%c0, %c0_0, %c0_1, %c0_2] : memref<2x8x8x128xf32, #tpu.memory_space<vmem>>, vector<2x8x8x128xf32>
    %1 = vector.shape_cast %0 : vector<2x8x8x128xf32> to vector<128x128xf32>
    %2 = arith.truncf %0 : vector<2x8x8x128xf32> to vector<2x8x8x128xbf16>
    %c0_3 = arith.constant 0 : index
    %c0_4 = arith.constant 0 : index
    %c0_5 = arith.constant 0 : index
    %c0_6 = arith.constant 0 : index
    %3 = vector.load %arg3[%c0_3, %c0_4, %c0_5, %c0_6] : memref<2x8x8x32xf32, #tpu.memory_space<vmem>>, vector<2x8x8x32xf32>
    %4 = arith.truncf %3 : vector<2x8x8x32xf32> to vector<2x8x8x32xbf16>
    %5 = tpu.concatenate %2, %4 in 3 : vector<2x8x8x128xbf16>, vector<2x8x8x32xbf16> -> vector<2x8x8x160xbf16>
    %c0_7 = arith.constant 0 : index
    %c0_8 = arith.constant 0 : index
    %6 = vector.load %arg6[%c0_7, %c0_8] : memref<1x384xf32, #tpu.memory_space<vmem>>, vector<1x384xf32>
    %cst = arith.constant 0.000000e+00 : bf16
    %7 = vector.broadcast %cst : bf16 to vector<2x2x8x160xbf16>
    %8 = tpu.concatenate %7, %5, %7 in 1 : vector<2x2x8x160xbf16>, vector<2x8x8x160xbf16>, vector<2x2x8x160xbf16> -> vector<2x12x8x160xbf16>
    %9 = vector.extract_strided_slice %8 {offsets = [0, 0, 0, 0], sizes = [2, 8, 8, 160], strides = [1, 1, 1, 1]} : vector<2x12x8x160xbf16> to vector<2x8x8x160xbf16>
    %10 = vector.shape_cast %9 : vector<2x8x8x160xbf16> to vector<128x160xbf16>
    %c0_9 = arith.constant 0 : index
    %c0_10 = arith.constant 0 : index
    %c0_11 = arith.constant 0 : index
    %11 = vector.load %arg4[%c0_9, %c0_10, %c0_11] : memref<5x160x384xbf16, #tpu.memory_space<vmem>>, vector<1x160x384xbf16>
    %12 = vector.shape_cast %11 : vector<1x160x384xbf16> to vector<160x384xbf16>
    %cst_12 = arith.constant dense<0.000000e+00> : vector<128x384xf32>
    %13 = tpu.matmul %10, %12, %cst_12 {dimension_numbers = #tpu.dot_dimension_numbers<[1], [0], [0], [1], [0, 0, 1, 1], [], []>} : vector<128x160xbf16>, vector<160x384xbf16>, vector<128x384xf32> -> vector<128x384xf32>
    %14 = vector.broadcast %6 : vector<1x384xf32> to vector<128x384xf32>
    %15 = arith.addf %14, %13 : vector<128x384xf32>
    %16 = vector.extract_strided_slice %8 {offsets = [0, 1, 0, 0], sizes = [2, 8, 8, 160], strides = [1, 1, 1, 1]} : vector<2x12x8x160xbf16> to vector<2x8x8x160xbf16>
    %17 = vector.shape_cast %16 : vector<2x8x8x160xbf16> to vector<128x160xbf16>
    %c1 = arith.constant 1 : index
    %c0_13 = arith.constant 0 : index
    %c0_14 = arith.constant 0 : index
    %18 = vector.load %arg4[%c1, %c0_13, %c0_14] : memref<5x160x384xbf16, #tpu.memory_space<vmem>>, vector<1x160x384xbf16>
    %19 = vector.shape_cast %18 : vector<1x160x384xbf16> to vector<160x384xbf16>
    %cst_15 = arith.constant dense<0.000000e+00> : vector<128x384xf32>
    %20 = tpu.matmul %17, %19, %cst_15 {dimension_numbers = #tpu.dot_dimension_numbers<[1], [0], [0], [1], [0, 0, 1, 1], [], []>} : vector<128x160xbf16>, vector<160x384xbf16>, vector<128x384xf32> -> vector<128x384xf32>
    %21 = arith.addf %15, %20 : vector<128x384xf32>
    %22 = vector.extract_strided_slice %8 {offsets = [0, 2, 0, 0], sizes = [2, 8, 8, 160], strides = [1, 1, 1, 1]} : vector<2x12x8x160xbf16> to vector<2x8x8x160xbf16>
    %23 = vector.shape_cast %22 : vector<2x8x8x160xbf16> to vector<128x160xbf16>
    %c2 = arith.constant 2 : index
    %c0_16 = arith.constant 0 : index
    %c0_17 = arith.constant 0 : index
    %24 = vector.load %arg4[%c2, %c0_16, %c0_17] : memref<5x160x384xbf16, #tpu.memory_space<vmem>>, vector<1x160x384xbf16>
    %25 = vector.shape_cast %24 : vector<1x160x384xbf16> to vector<160x384xbf16>
    %cst_18 = arith.constant dense<0.000000e+00> : vector<128x384xf32>
    %26 = tpu.matmul %23, %25, %cst_18 {dimension_numbers = #tpu.dot_dimension_numbers<[1], [0], [0], [1], [0, 0, 1, 1], [], []>} : vector<128x160xbf16>, vector<160x384xbf16>, vector<128x384xf32> -> vector<128x384xf32>
    %27 = arith.addf %21, %26 : vector<128x384xf32>
    %28 = vector.extract_strided_slice %8 {offsets = [0, 3, 0, 0], sizes = [2, 8, 8, 160], strides = [1, 1, 1, 1]} : vector<2x12x8x160xbf16> to vector<2x8x8x160xbf16>
    %29 = vector.shape_cast %28 : vector<2x8x8x160xbf16> to vector<128x160xbf16>
    %c3 = arith.constant 3 : index
    %c0_19 = arith.constant 0 : index
    %c0_20 = arith.constant 0 : index
    %30 = vector.load %arg4[%c3, %c0_19, %c0_20] : memref<5x160x384xbf16, #tpu.memory_space<vmem>>, vector<1x160x384xbf16>
    %31 = vector.shape_cast %30 : vector<1x160x384xbf16> to vector<160x384xbf16>
    %cst_21 = arith.constant dense<0.000000e+00> : vector<128x384xf32>
    %32 = tpu.matmul %29, %31, %cst_21 {dimension_numbers = #tpu.dot_dimension_numbers<[1], [0], [0], [1], [0, 0, 1, 1], [], []>} : vector<128x160xbf16>, vector<160x384xbf16>, vector<128x384xf32> -> vector<128x384xf32>
    %33 = arith.addf %27, %32 : vector<128x384xf32>
    %34 = vector.extract_strided_slice %8 {offsets = [0, 4, 0, 0], sizes = [2, 8, 8, 160], strides = [1, 1, 1, 1]} : vector<2x12x8x160xbf16> to vector<2x8x8x160xbf16>
    %35 = vector.shape_cast %34 : vector<2x8x8x160xbf16> to vector<128x160xbf16>
    %c4 = arith.constant 4 : index
    %c0_22 = arith.constant 0 : index
    %c0_23 = arith.constant 0 : index
    %36 = vector.load %arg4[%c4, %c0_22, %c0_23] : memref<5x160x384xbf16, #tpu.memory_space<vmem>>, vector<1x160x384xbf16>
    %37 = vector.shape_cast %36 : vector<1x160x384xbf16> to vector<160x384xbf16>
    %cst_24 = arith.constant dense<0.000000e+00> : vector<128x384xf32>
    %38 = tpu.matmul %35, %37, %cst_24 {dimension_numbers = #tpu.dot_dimension_numbers<[1], [0], [0], [1], [0, 0, 1, 1], [], []>} : vector<128x160xbf16>, vector<160x384xbf16>, vector<128x384xf32> -> vector<128x384xf32>
    %39 = arith.addf %33, %38 : vector<128x384xf32>
    %40 = vector.extract_strided_slice %39 {offsets = [0, 0], sizes = [128, 128], strides = [1, 1]} : vector<128x384xf32> to vector<128x128xf32>
    %cst_25 = arith.constant 5.000000e-01 : f32
    %41 = vector.broadcast %cst_25 : f32 to vector<128x128xf32>
    %42 = arith.mulf %41, %40 : vector<128x128xf32>
    %43 = math.tanh %42 : vector<128x128xf32>
    %cst_26 = arith.constant 5.000000e-01 : f32
    %44 = vector.broadcast %cst_26 : f32 to vector<128x128xf32>
    %45 = arith.mulf %44, %43 : vector<128x128xf32>
    %cst_27 = arith.constant 5.000000e-01 : f32
    %46 = vector.broadcast %cst_27 : f32 to vector<128x128xf32>
    %47 = arith.addf %45, %46 : vector<128x128xf32>
    %48 = vector.extract_strided_slice %39 {offsets = [0, 128], sizes = [128, 128], strides = [1, 1]} : vector<128x384xf32> to vector<128x128xf32>
    %cst_28 = arith.constant 5.000000e-01 : f32
    %49 = vector.broadcast %cst_28 : f32 to vector<128x128xf32>
    %50 = arith.mulf %49, %48 : vector<128x128xf32>
    %51 = math.tanh %50 : vector<128x128xf32>
    %cst_29 = arith.constant 5.000000e-01 : f32
    %52 = vector.broadcast %cst_29 : f32 to vector<128x128xf32>
    %53 = arith.mulf %52, %51 : vector<128x128xf32>
    %cst_30 = arith.constant 5.000000e-01 : f32
    %54 = vector.broadcast %cst_30 : f32 to vector<128x128xf32>
    %55 = arith.addf %53, %54 : vector<128x128xf32>
    %56 = vector.extract_strided_slice %39 {offsets = [0, 256], sizes = [128, 128], strides = [1, 1]} : vector<128x384xf32> to vector<128x128xf32>
    %57 = arith.mulf %55, %1 : vector<128x128xf32>
    %58 = vector.shape_cast %57 : vector<128x128xf32> to vector<2x8x8x128xf32>
    %59 = arith.truncf %58 : vector<2x8x8x128xf32> to vector<2x8x8x128xbf16>
    %cst_31 = arith.constant 0.000000e+00 : bf16
    %60 = vector.broadcast %cst_31 : bf16 to vector<2x2x8x128xbf16>
    %61 = tpu.concatenate %60, %59, %60 in 1 : vector<2x2x8x128xbf16>, vector<2x8x8x128xbf16>, vector<2x2x8x128xbf16> -> vector<2x12x8x128xbf16>
    %62 = vector.extract_strided_slice %61 {offsets = [0, 0, 0, 0], sizes = [2, 8, 8, 128], strides = [1, 1, 1, 1]} : vector<2x12x8x128xbf16> to vector<2x8x8x128xbf16>
    %63 = vector.shape_cast %62 : vector<2x8x8x128xbf16> to vector<128x128xbf16>
    %c0_32 = arith.constant 0 : index
    %c0_33 = arith.constant 0 : index
    %c0_34 = arith.constant 0 : index
    %64 = vector.load %arg5[%c0_32, %c0_33, %c0_34] : memref<5x128x128xbf16, #tpu.memory_space<vmem>>, vector<1x128x128xbf16>
    %65 = vector.shape_cast %64 : vector<1x128x128xbf16> to vector<128x128xbf16>
    %cst_35 = arith.constant dense<0.000000e+00> : vector<128x128xf32>
    %66 = tpu.matmul %63, %65, %cst_35 {dimension_numbers = #tpu.dot_dimension_numbers<[1], [0], [0], [1], [0, 0, 1, 1], [], []>} : vector<128x128xbf16>, vector<128x128xbf16>, vector<128x128xf32> -> vector<128x128xf32>
    %67 = arith.addf %56, %66 : vector<128x128xf32>
    %68 = vector.extract_strided_slice %61 {offsets = [0, 1, 0, 0], sizes = [2, 8, 8, 128], strides = [1, 1, 1, 1]} : vector<2x12x8x128xbf16> to vector<2x8x8x128xbf16>
    %69 = vector.shape_cast %68 : vector<2x8x8x128xbf16> to vector<128x128xbf16>
    %c1_36 = arith.constant 1 : index
    %c0_37 = arith.constant 0 : index
    %c0_38 = arith.constant 0 : index
    %70 = vector.load %arg5[%c1_36, %c0_37, %c0_38] : memref<5x128x128xbf16, #tpu.memory_space<vmem>>, vector<1x128x128xbf16>
    %71 = vector.shape_cast %70 : vector<1x128x128xbf16> to vector<128x128xbf16>
    %cst_39 = arith.constant dense<0.000000e+00> : vector<128x128xf32>
    %72 = tpu.matmul %69, %71, %cst_39 {dimension_numbers = #tpu.dot_dimension_numbers<[1], [0], [0], [1], [0, 0, 1, 1], [], []>} : vector<128x128xbf16>, vector<128x128xbf16>, vector<128x128xf32> -> vector<128x128xf32>
    %73 = arith.addf %67, %72 : vector<128x128xf32>
    %74 = vector.extract_strided_slice %61 {offsets = [0, 2, 0, 0], sizes = [2, 8, 8, 128], strides = [1, 1, 1, 1]} : vector<2x12x8x128xbf16> to vector<2x8x8x128xbf16>
    %75 = vector.shape_cast %74 : vector<2x8x8x128xbf16> to vector<128x128xbf16>
    %c2_40 = arith.constant 2 : index
    %c0_41 = arith.constant 0 : index
    %c0_42 = arith.constant 0 : index
    %76 = vector.load %arg5[%c2_40, %c0_41, %c0_42] : memref<5x128x128xbf16, #tpu.memory_space<vmem>>, vector<1x128x128xbf16>
    %77 = vector.shape_cast %76 : vector<1x128x128xbf16> to vector<128x128xbf16>
    %cst_43 = arith.constant dense<0.000000e+00> : vector<128x128xf32>
    %78 = tpu.matmul %75, %77, %cst_43 {dimension_numbers = #tpu.dot_dimension_numbers<[1], [0], [0], [1], [0, 0, 1, 1], [], []>} : vector<128x128xbf16>, vector<128x128xbf16>, vector<128x128xf32> -> vector<128x128xf32>
    %79 = arith.addf %73, %78 : vector<128x128xf32>
    %80 = vector.extract_strided_slice %61 {offsets = [0, 3, 0, 0], sizes = [2, 8, 8, 128], strides = [1, 1, 1, 1]} : vector<2x12x8x128xbf16> to vector<2x8x8x128xbf16>
    %81 = vector.shape_cast %80 : vector<2x8x8x128xbf16> to vector<128x128xbf16>
    %c3_44 = arith.constant 3 : index
    %c0_45 = arith.constant 0 : index
    %c0_46 = arith.constant 0 : index
    %82 = vector.load %arg5[%c3_44, %c0_45, %c0_46] : memref<5x128x128xbf16, #tpu.memory_space<vmem>>, vector<1x128x128xbf16>
    %83 = vector.shape_cast %82 : vector<1x128x128xbf16> to vector<128x128xbf16>
    %cst_47 = arith.constant dense<0.000000e+00> : vector<128x128xf32>
    %84 = tpu.matmul %81, %83, %cst_47 {dimension_numbers = #tpu.dot_dimension_numbers<[1], [0], [0], [1], [0, 0, 1, 1], [], []>} : vector<128x128xbf16>, vector<128x128xbf16>, vector<128x128xf32> -> vector<128x128xf32>
    %85 = arith.addf %79, %84 : vector<128x128xf32>
    %86 = vector.extract_strided_slice %61 {offsets = [0, 4, 0, 0], sizes = [2, 8, 8, 128], strides = [1, 1, 1, 1]} : vector<2x12x8x128xbf16> to vector<2x8x8x128xbf16>
    %87 = vector.shape_cast %86 : vector<2x8x8x128xbf16> to vector<128x128xbf16>
    %c4_48 = arith.constant 4 : index
    %c0_49 = arith.constant 0 : index
    %c0_50 = arith.constant 0 : index
    %88 = vector.load %arg5[%c4_48, %c0_49, %c0_50] : memref<5x128x128xbf16, #tpu.memory_space<vmem>>, vector<1x128x128xbf16>
    %89 = vector.shape_cast %88 : vector<1x128x128xbf16> to vector<128x128xbf16>
    %cst_51 = arith.constant dense<0.000000e+00> : vector<128x128xf32>
    %90 = tpu.matmul %87, %89, %cst_51 {dimension_numbers = #tpu.dot_dimension_numbers<[1], [0], [0], [1], [0, 0, 1, 1], [], []>} : vector<128x128xbf16>, vector<128x128xbf16>, vector<128x128xf32> -> vector<128x128xf32>
    %91 = arith.addf %85, %90 : vector<128x128xf32>
    %92 = math.tanh %91 : vector<128x128xf32>
    %cst_52 = arith.constant 1.000000e+00 : f32
    %93 = vector.broadcast %cst_52 : f32 to vector<128x128xf32>
    %94 = arith.subf %93, %47 : vector<128x128xf32>
    %95 = arith.mulf %94, %1 : vector<128x128xf32>
    %96 = arith.mulf %47, %92 : vector<128x128xf32>
    %97 = arith.addf %95, %96 : vector<128x128xf32>
    %98 = vector.shape_cast %97 : vector<128x128xf32> to vector<2x8x8x128xf32>
    %c0_53 = arith.constant 0 : index
    %c0_54 = arith.constant 0 : index
    %c0_55 = arith.constant 0 : index
    %c0_56 = arith.constant 0 : index
    %99 = vector.load %arg7[%c0_53, %c0_54, %c0_55, %c0_56] : memref<2x8x8x128xf32, #tpu.memory_space<vmem>>, vector<2x8x8x128xf32>
    tpu.vector_store %arg7[%c0_53, %c0_54, %c0_55, %c0_56], %98 {strides = array<i32>} : memref<2x8x8x128xf32, #tpu.memory_space<vmem>>, vector<2x8x8x128xf32>,
    return
  }
  func.func @transform_0(%arg0: i32, %arg1: i32) -> (i32, i32, i32, i32) {
    %c0_i32 = arith.constant 0 : i32
    %c0_i32_0 = arith.constant 0 : i32
    %c0_i32_1 = arith.constant 0 : i32
    return %arg0, %c0_i32, %arg1, %c0_i32_0 : i32, i32, i32, i32
  }
  func.func @transform_1(%arg0: i32, %arg1: i32) -> (i32, i32, i32, i32) {
    %c0_i32 = arith.constant 0 : i32
    %c0_i32_0 = arith.constant 0 : i32
    %c0_i32_1 = arith.constant 0 : i32
    return %arg0, %c0_i32, %arg1, %c0_i32_0 : i32, i32, i32, i32
  }
  func.func @transform_2(%arg0: i32, %arg1: i32) -> (i32, i32, i32) {
    %c0_i32 = arith.constant 0 : i32
    %c0_i32_0 = arith.constant 0 : i32
    %c0_i32_1 = arith.constant 0 : i32
    %c0_i32_2 = arith.constant 0 : i32
    return %c0_i32, %c0_i32_0, %c0_i32_1 : i32, i32, i32
  }
  func.func @transform_3(%arg0: i32, %arg1: i32) -> (i32, i32, i32) {
    %c0_i32 = arith.constant 0 : i32
    %c0_i32_0 = arith.constant 0 : i32
    %c0_i32_1 = arith.constant 0 : i32
    %c0_i32_2 = arith.constant 0 : i32
    return %c0_i32, %c0_i32_0, %c0_i32_1 : i32, i32, i32
  }
  func.func @transform_4(%arg0: i32, %arg1: i32) -> (i32, i32) {
    %c0_i32 = arith.constant 0 : i32
    %c0_i32_0 = arith.constant 0 : i32
    %c0_i32_1 = arith.constant 0 : i32
    return %c0_i32, %c0_i32_0 : i32, i32
  }
  func.func @transform_5(%arg0: i32, %arg1: i32) -> (i32, i32, i32, i32) {
    %c0_i32 = arith.constant 0 : i32
    %c0_i32_0 = arith.constant 0 : i32
    %c0_i32_1 = arith.constant 0 : i32
    return %arg0, %c0_i32, %arg1, %c0_i32_0 : i32, i32, i32, i32
  }
}

</mosaic_0001>

<bundles_post_ra>
// kernel: sepconv_gru.3
= control target key start
LH: loop header
LB: loop body
LE: loop exit
PB: predicated region body
PF: predicated region fallthrough
CT: control target
= control target key end

     0   :  { %10 = vsyncpa [#allocation3], 0  ;;  %s6362_s0 = inlined_call_operand.hbm [shape: f32[2,8,8,128], index: 0, kind: input, shape index: {}]   ;;  %s6363_s1 = inlined_call_operand.hbm [shape: f32[2,8,8,32], index: 1, kind: input, shape index: {}]   ;;  %s6364_s2 = inlined_call_operand.hbm [shape: bf16[5,160,384], index: 2, kind: input, shape index: {}]   ;;  %s6365_s3 = inlined_call_operand.hbm [shape: bf16[5,128,128], index: 3, kind: input, shape index: {}]   ;;  %s6366_s4 = inlined_call_operand.hbm [shape: f32[1,384], index: 4, kind: input, shape index: {}]   ;;  %s6367_s5 = inlined_call_operand.hbm [shape: f32[2,8,8,128], index: 5, kind: output, shape index: {}]  }
   0x1   :  { %11 = vsyncpa [#allocation6], 0 }
   0x2   :  { %12 = vsyncpa [#allocation9], 0 }
   0x3   :  { %13 = vsyncpa [#allocation4], 0  ;;  %s5309_s18 = smov [#allocation5]   ;;  %s5310_s20 = smov [#allocation8]  }
   0x4   :  { %s31_s19 = sshll.u32 %s5309_s18, 4  ;;  %s55_s21 = sshll.u32 %s5310_s20, 4  ;;  %s32_s19 = int_to_ptr.vmem [resolvable:$true] %s31_s19  ;;  %s5352_s21 = int_to_ptr.vmem [resolvable:$true] %s55_s21 }
   0x5   :  { %s5169_s24 = scalar_lea.hbm %s6363_s1, 2048 }
   0x6   :  { %p5170_p0 = scmp.ne.s32.totalorder %s6363_s1, %s5169_s24  ;;  %p5173_p1 = scmp.lt.u32.totalorder %s5169_s24, %s6363_s1 }
   0x8   :  { %p5175_p2 = pnand %p5173_p1, %p5170_p0 }
   0xa   :  { %5178 = shalt.err (!%p5175_p2)
}
   0xb   :  { %s5179_s29 = scalar_lea.vmem %s32_s19, 2048  ;;  %p5184_p4 = scmp.lt.s32.totalorder %s32_s19, %s32_s19 }
   0xc   :  { %p5180_p3 = scmp.ne.s32.totalorder %s32_s19, %s5179_s29  ;;  %p5185_p5 = scmp.lt.s32.totalorder %s5179_s29, %s5179_s29 }
   0xe   :  { %p5186_p6 = por %p5185_p5, %p5184_p4 }
  0x10   :  { %p5187_p7 = pnand %p5186_p6, %p5180_p3 }
  0x12   :  { %5190 = shalt.err (!%p5187_p7)
}
  0x13   :  { %s5311_s30 = smov 128   ;;  %s5312_s6 = smov 8  }
  0x14   :  { %37 = dma.hbm_to_vmem [thread:$0]  %s6363_s1, 2048, %s32_s19, [#allocation6], %s5311_s30, %s5311_s30, %s5312_s6  }
  0x15   :  { %s5191_s11 = scalar_lea.hbm %s6365_s3, 5120 }
  0x16   :  { %p5192_p8 = scmp.ne.s32.totalorder %s6365_s3, %s5191_s11  ;;  %p5195_p9 = scmp.lt.u32.totalorder %s5191_s11, %s6365_s3 }
  0x18   :  { %p5197_p10 = pnand %p5195_p9, %p5192_p8 }
  0x1a   :  { %5200 = shalt.err (!%p5197_p10)
}
  0x1b   :  { %s5201_s16 = scalar_lea.vmem %s5352_s21, 5120  ;;  %p5206_p12 = scmp.lt.s32.totalorder %s5352_s21, %s5352_s21 }
  0x1c   :  { %p5202_p11 = scmp.ne.s32.totalorder %s5352_s21, %s5201_s16  ;;  %p5207_p13 = scmp.lt.s32.totalorder %s5201_s16, %s5201_s16 }
  0x1e   :  { %p5208_p0 = por %p5207_p13, %p5206_p12 }
  0x20   :  { %p5209_p1 = pnand %p5208_p0, %p5202_p11 }
  0x22   :  { %5212 = shalt.err (!%p5209_p1)
}
  0x23   :  { %s5313_s1 = smov 64   ;;  %s5314_s17 = smov 4  }
  0x24   :  { %61 = dma.hbm_to_vmem [thread:$0]  %s6365_s3, 5120, %s5352_s21, [#allocation9], %s5313_s1, %s5313_s1, %s5314_s17  }
  0x25   :  { %s5315_s20 = smov [#allocation2]   ;;  %s5316_s23 = smov [#allocation7]  }
  0x26   :  { %s19_s22 = sshll.u32 %s5315_s20, 4  ;;  %s43_s24 = sshll.u32 %s5316_s23, 4  ;;  %s20_s22 = int_to_ptr.vmem [resolvable:$true] %s19_s22  ;;  %s5386_s24 = int_to_ptr.vmem [resolvable:$true] %s43_s24 }
  0x27   :  { %s5213_s27 = scalar_lea.hbm %s6362_s0, 2048 }
  0x28   :  { %p5214_p2 = scmp.ne.s32.totalorder %s6362_s0, %s5213_s27  ;;  %p5217_p3 = scmp.lt.u32.totalorder %s5213_s27, %s6362_s0 }
  0x2a   :  { %p5219_p4 = pnand %p5217_p3, %p5214_p2 }
  0x2c   :  { %5222 = shalt.err (!%p5219_p4)
}
  0x2d   :  { %s5223_s3 = scalar_lea.vmem %s20_s22, 2048  ;;  %p5228_p6 = scmp.lt.s32.totalorder %s20_s22, %s20_s22 }
  0x2e   :  { %p5224_p5 = scmp.ne.s32.totalorder %s20_s22, %s5223_s3  ;;  %p5229_p7 = scmp.lt.s32.totalorder %s5223_s3, %s5223_s3 }
  0x30   :  { %p5230_p8 = por %p5229_p7, %p5228_p6 }
  0x32   :  { %p5231_p9 = pnand %p5230_p8, %p5224_p5 }
  0x34   :  { %5234 = shalt.err (!%p5231_p9)
}
  0x35   :  { %25 = dma.hbm_to_vmem [thread:$0]  %s6362_s0, 2048, %s20_s22, [#allocation3], %s5311_s30, %s5311_s30, %s5312_s6  }
  0x36   :  { %s5235_s12 = scalar_lea.hbm %s6364_s2, 19200 }
  0x37   :  { %p5236_p10 = scmp.ne.s32.totalorder %s6364_s2, %s5235_s12  ;;  %p5239_p11 = scmp.lt.u32.totalorder %s5235_s12, %s6364_s2 }
  0x39   :  { %p5241_p12 = pnand %p5239_p11, %p5236_p10 }
  0x3b   :  { %5244 = shalt.err (!%p5241_p12)
}
  0x3c   :  { %s5245_s1 = scalar_lea.vmem %s5386_s24, 19200  ;;  %p5250_p0 = scmp.lt.s32.totalorder %s5386_s24, %s5386_s24 }
  0x3d   :  { %p5246_p13 = scmp.ne.s32.totalorder %s5386_s24, %s5245_s1  ;;  %p5251_p1 = scmp.lt.s32.totalorder %s5245_s1, %s5245_s1 }
  0x3f   :  { %p5252_p2 = por %p5251_p1, %p5250_p0 }
  0x41   :  { %p5253_p3 = pnand %p5252_p2, %p5246_p13 }
  0x43   :  { %5256 = shalt.err (!%p5253_p3)
}
  0x44   :  { %s5317_s0 = smov 192   ;;  %s5318_s17 = smov 12  }
  0x45   :  { %49 = dma.hbm_to_vmem [thread:$0]  %s6364_s2, 19200, %s5386_s24, [#allocation6], %s5317_s0, %s5317_s0, %s5318_s17  }
  0x46   :  { %s5319_s20 = smov [#allocation10]   ;;  %s5257_s26 = scalar_lea.hbm %s6366_s4, 48 }
  0x47   :  { %s68_s22 = sshll.u32 %s5319_s20, 4  ;;  %p5258_p4 = scmp.ne.s32.totalorder %s6366_s4, %s5257_s26  ;;  %s69_s22 = int_to_ptr.vmem [resolvable:$true] %s68_s22 }
  0x48   :  { %p5261_p5 = scmp.lt.u32.totalorder %s5257_s26, %s6366_s4 }
  0x4a   :  { %p5263_p6 = pnand %p5261_p5, %p5258_p4 }
  0x4c   :  { %5266 = shalt.err (!%p5263_p6)
}
  0x4d   :  { %s5267_s8 = scalar_lea.vmem %s69_s22, 48  ;;  %s5271_s2 = scalar_lea.vmem %s69_s22, 64 }
  0x4e   :  { %p5268_p7 = scmp.ne.s32.totalorder %s69_s22, %s5267_s8  ;;  %p5272_p8 = scmp.lt.s32.totalorder %s69_s22, %s69_s22 }
  0x4f   :  { %p5273_p9 = scmp.lt.s32.totalorder %s5271_s2, %s5267_s8 }
  0x51   :  { %p5274_p10 = por %p5273_p9, %p5272_p8 }
  0x53   :  { %p5275_p11 = pnand %p5274_p10, %p5268_p7 }
  0x55   :  { %5278 = shalt.err (!%p5275_p11)
}
  0x56   :  { %71 = dma.hbm_to_vmem [thread:$0]  %s6366_s4, 48, %s69_s22, [#allocation9]  }
  0x57   :  { %5301 = dma.done.wait [#allocation3], 2048  }
  0x58   :  { %5302 = vsyncadd [#allocation3], 4294965248 }
  0x59   :  { %5303 = dma.done.wait [#allocation6], 21248  }
  0x5a   :  { %5304 = vsyncadd [#allocation6], 4294946048 }
  0x5b   :  { %5305 = dma.done.wait [#allocation9], 5168  }
  0x5c   :  { %5306 = vsyncadd [#allocation9], 4294962128  ;;  %vm423_vm0 = vcmask 261120   ;;  %v6368_v0 = vmov 0   ;;  %v4815_v2 = vld [vmem:[#allocation7 + $0x4] ss:$12 sps:$4 sm:$0xff]  }
  0x5d   :  { %558 = vmatprep.subr.bf16.mxu1 %v6368_v0  ;;  %v5435_v1 = vcombine.low %v6368_v0, %v6368_v0  ;;  %v4817_v3 = vld [vmem:[#allocation7 + $0x8] ss:$12 sps:$4 sm:$0xff]   ;;  %445 = vmatprep.subr.bf16.mxu0 %v4815_v2  ;;  %v4818_v4 = vld [vmem:[#allocation7] ss:$12 sps:$4 sm:$0xff]   ;;  %v4822_v7 = vld [vmem:[#allocation7 + $0x18] ss:$12 sps:$4 sm:$0xff]  }
  0x5e   :  { %559 = vmatpush1.bf16.msra.mxu1 %v4817_v3  ;;  %v4819_v5 = vld [vmem:[#allocation7 + $0x1c] ss:$12 sps:$4 sm:$0xff]   ;;  %446 = vmatpush1.bf16.msra.mxu0 %v4818_v4  ;;  %v4821_v6 = vld [vmem:[#allocation7 + $0x20] ss:$12 sps:$4 sm:$0xff]   ;;  %v4825_v9 = vld [vmem:[#allocation7 + $0x38] ss:$12 sps:$4 sm:$0xff]  }
  0x5f   :  { %3926 = vmatprep.mubr.msk.bf16.mxu1 %vm423_vm0, %v5435_v1  ;;  %3918 = vmatprep.mubr.msk.bf16.mxu0 %vm423_vm0, %v5435_v1  ;;  %v4823_v8 = vld [vmem:[#allocation7 + $0x34] ss:$12 sps:$4 sm:$0xff]   ;;  %v4826_v10 = vld [vmem:[#allocation7 + $0x30] ss:$12 sps:$4 sm:$0xff]   ;;  %v4827_v11 = vld [vmem:[#allocation7 + $0x4c] ss:$12 sps:$4 sm:$0xff]  }
  0x60   :  { %560 = vmatprep.subr.bf16.mxu1 %v6368_v0  ;;  %447 = vmatprep.subr.bf16.mxu0 %v4819_v5  ;;  %v4829_v12 = vld [vmem:[#allocation7 + $0x50] ss:$12 sps:$4 sm:$0xff]   ;;  %v4830_v13 = vld [vmem:[#allocation7 + $0x48] ss:$12 sps:$4 sm:$0xff]   ;;  %v4834_v16 = vld [vmem:[#allocation7 + $0x60] ss:$12 sps:$4 sm:$0xff]  }
  0x61   :  { %v4831_v14 = vld [vmem:[#allocation7 + $0x64] ss:$12 sps:$4 sm:$0xff]   ;;  %v4833_v15 = vld [vmem:[#allocation7 + $0x68] ss:$12 sps:$4 sm:$0xff]   ;;  %v4837_v18 = vld [vmem:[#allocation7 + $0x80] ss:$12 sps:$4 sm:$0xff]  }
  0x62   :  { %561 = vmatpush1.bf16.msra.mxu1 %v4821_v6  ;;  %448 = vmatpush1.bf16.msra.mxu0 %v4822_v7  ;;  %v4835_v17 = vld [vmem:[#allocation7 + $0x7c] ss:$12 sps:$4 sm:$0xff]   ;;  %v4838_v19 = vld [vmem:[#allocation7 + $0x78] ss:$12 sps:$4 sm:$0xff]   ;;  %v4839_v20 = vld [vmem:[#allocation7 + $0x94] ss:$12 sps:$4 sm:$0xff]  }
  0x63   :  { %562 = vmatprep.subr.bf16.mxu1 %v6368_v0  ;;  %449 = vmatprep.subr.bf16.mxu0 %v4823_v8  ;;  %v4841_v21 = vld [vmem:[#allocation7 + $0x98] ss:$12 sps:$4 sm:$0xff]   ;;  %v4842_v22 = vld [vmem:[#allocation7 + $0x90] ss:$12 sps:$4 sm:$0xff]   ;;  %v4846_v25 = vld [vmem:[#allocation7 + $0xa8] ss:$12 sps:$4 sm:$0xff]  }
  0x64   :  { %v4843_v23 = vld [vmem:[#allocation7 + $0xac] ss:$12 sps:$4 sm:$0xff]   ;;  %v4845_v24 = vld [vmem:[#allocation7 + $0xb0] ss:$12 sps:$4 sm:$0xff]   ;;  %v4849_v27 = vld [vmem:[#allocation7 + $0xc8] ss:$12 sps:$4 sm:$0xff]  }
  0x65   :  { %v4847_v26 = vld [vmem:[#allocation7 + $0xc4] ss:$12 sps:$4 sm:$0xff]   ;;  %v4850_v28 = vld [vmem:[#allocation7 + $0xc0] ss:$12 sps:$4 sm:$0xff]   ;;  %v4851_v29 = vld [vmem:[#allocation7 + $0xdc] ss:$12 sps:$4 sm:$0xff]  }
  0x66   :  { %563 = vmatpush1.bf16.msra.mxu1 %v4825_v9  ;;  %450 = vmatpush1.bf16.msra.mxu0 %v4826_v10  ;;  %v4853_v30 = vld [vmem:[#allocation7 + $0xe0] ss:$12 sps:$4 sm:$0xff]   ;;  %v4854_v31 = vld [vmem:[#allocation7 + $0xd8] ss:$12 sps:$4 sm:$0xff]   ;;  %v4855_v36 = vld [vmem:[#allocation7 + $0xf0] ss:$12 sps:$4 sm:$0xff]  }
  0x67   :  { %564 = vmatprep.subr.bf16.mxu1 %v6368_v0  ;;  %451 = vmatprep.subr.bf16.mxu0 %v4827_v11  ;;  %v5449_v32 = vld [vmem:[#allocation5] sm:$0xff]  ;;  %v5452_v33 = vld [vmem:[#allocation5 + $0x8] sm:$0xff]  ;;  %v5467_v42 = vld [vmem:[#allocation5 + $0x10] sm:$0xff]  ;;  %s5321_s4 = smov [#allocation11]  }
  0x68   :  { %v4857_v34 = vld [vmem:[#allocation7 + $0xf4] ss:$12 sps:$4 sm:$0xff]   ;;  %v5456_v35 = vpack.c.bf16 %v5452_v33, %v5449_v32  ;;  %v5461_v38 = vld [vmem:[#allocation2 + $0x8] sm:$0xff]  ;;  %v4867_v40 = vld [vmem:[#allocation7 + $0xf8] ss:$12 sps:$4 sm:$0xff]   ;;  %s3861_s21 = sshll.u32 %s5321_s4, 4  ;;  %s3862_s21 = int_to_ptr.vmem [resolvable:$true] %s3861_s21 }
  0x69   :  { %v5459_v37 = vld [vmem:[#allocation2] sm:$0xff]  ;;  %v4860_v39 = vld [vmem:[#allocation7 + $0x10c] ss:$12 sps:$4 sm:$0xff]   ;;  %v4858_v41 = vld [vmem:[#allocation7 + $0x108] ss:$12 sps:$4 sm:$0xff]   ;;  %s5279_s9 = scalar_lea.vmem %s3862_s21, 2048  ;;  %p5284_p13 = scmp.lt.s32.totalorder %s3862_s21, %s3862_s21 }
  0x6a   :  { %565 = vmatpush1.bf16.msra.mxu1 %v4829_v12  ;;  %452 = vmatpush1.bf16.msra.mxu0 %v4830_v13  ;;  %v5471_v43 = vld [vmem:[#allocation5 + $0x18] sm:$0xff]  ;;  %v4863_v44 = vld [vmem:[#allocation7 + $0x124] ss:$12 sps:$4 sm:$0xff]   ;;  %v5475_v46 = vpack.c.bf16 %v5461_v38, %v5459_v37  ;;  %v4861_v48 = vld [vmem:[#allocation7 + $0x120] ss:$12 sps:$4 sm:$0xff]   ;;  %p5280_p12 = scmp.ne.s32.totalorder %s3862_s21, %s5279_s9  ;;  %p5285_p0 = scmp.lt.s32.totalorder %s5279_s9, %s5279_s9 }
  0x6b   :  { %566 = vmatprep.subr.bf16.mxu1 %v6368_v0  ;;  %453 = vmatprep.subr.bf16.mxu0 %v4831_v14  ;;  %v4871_v45 = vld [vmem:[#allocation7 + $0x110] ss:$12 sps:$4 sm:$0xff]   ;;  %v5480_v47 = vpack.c.bf16 %v5471_v43, %v5467_v42  ;;  %v4875_v50 = vld [vmem:[#allocation7 + $0x128] ss:$12 sps:$4 sm:$0xff]   ;;  %v4864_v53 = vld [vmem:[#allocation7 + $0x138] ss:$12 sps:$4 sm:$0xff]  }
  0x6c   :  { %v4866_v49 = vld [vmem:[#allocation7 + $0x13c] ss:$12 sps:$4 sm:$0xff]   ;;  %v5483_v51 = vld [vmem:[#allocation2 + $0x10] sm:$0xff]  ;;  %v5491_v54 = vld [vmem:[#allocation5 + $0x20] sm:$0xff]  ;;  %p5286_p1 = por %p5285_p0, %p5284_p13 }
  0x6d   :  { %v5485_v52 = vld [vmem:[#allocation2 + $0x18] sm:$0xff]  ;;  %v5495_v55 = vld [vmem:[#allocation5 + $0x28] sm:$0xff]  ;;  %v4870_v56 = vld [vmem:[#allocation7 + $0x154] ss:$12 sps:$4 sm:$0xff]  }
  0x6e   :  { %567 = vmatpush1.bf16.msra.mxu1 %v4833_v15  ;;  %454 = vmatpush1.bf16.msra.mxu0 %v4834_v16  ;;  %v4876_v57 = vld [vmem:[#allocation7 + $0x140] ss:$12 sps:$4 sm:$0xff]   ;;  %v5499_v58 = vpack.c.bf16 %v5485_v52, %v5483_v51  ;;  %v5504_v59 = vpack.c.bf16 %v5495_v55, %v5491_v54  ;;  %v4868_v60 = vld [vmem:[#allocation7 + $0x150] ss:$12 sps:$4 sm:$0xff]   ;;  %v4880_v62 = vld [vmem:[#allocation7 + $0x158] ss:$12 sps:$4 sm:$0xff]   ;;  %p5287_p2 = pnand %p5286_p1, %p5280_p12 }
  0x6f   :  { %568 = vmatprep.subr.bf16.mxu1 %v6368_v0  ;;  %455 = vmatprep.subr.bf16.mxu0 %v4835_v17  ;;  %v4874_v61 = vld [vmem:[#allocation7 + $0x16c] ss:$12 sps:$4 sm:$0xff]   ;;  %v5511_v63 = vld [vmem:[#allocation2 + $0x20] sm:$0xff]  ;;  %v4872_v3 = vld [vmem:[#allocation7 + $0x168] ss:$12 sps:$4 sm:$0xff]  }
  0x70   :  { %v5513_v2 = vld [vmem:[#allocation2 + $0x28] sm:$0xff]  ;;  %v4879_v4 = vld [vmem:[#allocation7 + $0x184] ss:$12 sps:$4 sm:$0xff]   ;;  %v4888_v13 = vld [vmem:[#allocation7 + $0x1b4] ss:$12 sps:$4 sm:$0xff]  }
  0x71   :  { %v4881_v5 = vld [vmem:[#allocation7 + $0x170] ss:$12 sps:$4 sm:$0xff]   ;;  %v5519_v6 = vpack.c.bf16 %v5513_v2, %v5511_v63  ;;  %v4877_v7 = vld [vmem:[#allocation7 + $0x180] ss:$12 sps:$4 sm:$0xff]   ;;  %v4885_v9 = vld [vmem:[#allocation7 + $0x188] ss:$12 sps:$4 sm:$0xff]  }
  0x72   :  { %569 = vmatpush1.bf16.msra.mxu1 %v4837_v18  ;;  %456 = vmatpush1.bf16.msra.mxu0 %v4838_v19  ;;  %v4884_v8 = vld [vmem:[#allocation7 + $0x19c] ss:$12 sps:$4 sm:$0xff]   ;;  %v5523_v10 = vld [vmem:[#allocation5 + $0x40] sm:$0xff]  ;;  %v4893_v19 = vld [vmem:[#allocation7 + $0x1cc] ss:$12 sps:$4 sm:$0xff]  }
  0x73   :  { %570 = vmatprep.subr.bf16.mxu1 %v6368_v0  ;;  %457 = vmatprep.subr.bf16.mxu0 %v4839_v20  ;;  %v5529_v11 = vld [vmem:[#allocation5 + $0x48] sm:$0xff]  ;;  %v4882_v12 = vld [vmem:[#allocation7 + $0x198] ss:$12 sps:$4 sm:$0xff]   ;;  %v4886_v16 = vld [vmem:[#allocation7 + $0x1b0] ss:$12 sps:$4 sm:$0xff]  }
  0x74   :  { %v4889_v14 = vld [vmem:[#allocation7 + $0x1a0] ss:$12 sps:$4 sm:$0xff]   ;;  %v5536_v15 = vpack.c.bf16 %v5529_v11, %v5523_v10  ;;  %v4890_v17 = vld [vmem:[#allocation7 + $0x1b8] ss:$12 sps:$4 sm:$0xff]  }
  0x75   :  { %v5538_v18 = vld [vmem:[#allocation2 + $0x40] sm:$0xff]  ;;  %v5541_v20 = vld [vmem:[#allocation2 + $0x48] sm:$0xff] }
  0x76   :  { %571 = vmatpush1.bf16.msra.mxu1 %v4841_v21  ;;  %458 = vmatpush1.bf16.msra.mxu0 %v4842_v22  ;;  %v5547_v21 = vld [vmem:[#allocation5 + $0x50] sm:$0xff]  ;;  %v5549_v22 = vld [vmem:[#allocation5 + $0x58] sm:$0xff] }
  0x77   :  { %572 = vmatprep.subr.bf16.mxu1 %v6368_v0  ;;  %459 = vmatprep.subr.bf16.mxu0 %v4843_v23  ;;  %v4891_v23 = vld [vmem:[#allocation7 + $0x1c8] ss:$12 sps:$4 sm:$0xff]  }
  0x7a   :  { %573 = vmatpush1.bf16.msra.mxu1 %v4845_v24  ;;  %460 = vmatpush1.bf16.msra.mxu0 %v4846_v25  ;;  %v4894_v24 = vld [vmem:[#allocation7 + $0x1d0] ss:$12 sps:$4 sm:$0xff]  }
  0x7b   :  { %574 = vmatprep.subr.bf16.mxu1 %v6368_v0  ;;  %461 = vmatprep.subr.bf16.mxu0 %v4847_v26  ;;  %v4897_v25 = vld [vmem:[#allocation7 + $0x1e4] ss:$12 sps:$4 sm:$0xff]   ;;  %v5555_v26 = vpack.c.bf16 %v5541_v20, %v5538_v18 }
  0x7e   :  { %575 = vmatpush1.bf16.msra.mxu1 %v4849_v27  ;;  %462 = vmatpush1.bf16.msra.mxu0 %v4850_v28  ;;  %v5560_v27 = vpack.c.bf16 %v5549_v22, %v5547_v21  ;;  %v5563_v28 = vld [vmem:[#allocation2 + $0x50] sm:$0xff] }
  0x7f   :  { %576 = vmatprep.subr.bf16.mxu1 %v6368_v0  ;;  %463 = vmatprep.subr.bf16.mxu0 %v4851_v29  ;;  %v5569_v29 = vld [vmem:[#allocation2 + $0x58] sm:$0xff] }
  0x82   :  { %577 = vmatpush1.bf16.msra.mxu1 %v4853_v30  ;;  %464 = vmatpush1.bf16.msra.mxu0 %v4854_v31  ;;  %v5573_v30 = vld [vmem:[#allocation5 + $0x60] sm:$0xff]  ;;  %v5575_v31 = vld [vmem:[#allocation5 + $0x68] sm:$0xff] }
  0x83   :  { %1089 = vmatprep.subr.bf16.mxu1 %v6368_v0  ;;  %976 = vmatprep.subr.bf16.mxu0 %v4857_v34  ;;  %v5579_v34 = vpack.c.bf16 %v5569_v29, %v5563_v28 }
  0x85   :  { %591 = vmatmul.mubr.bf16.vlgmr.msra.gmra.mrb[0].mxu1 %v5435_v1  ;;  %478 = vmatmul.mubr.bf16.vlgmr.msra.gmra.mrb[0].mxu0 %v5435_v1 }
  0x86   :  { %3927 = vmatprep.mubr.msk.bf16.mxu1 %vm423_vm0, %v5456_v35  ;;  %977 = vmatpush1.bf16.msra.mxu0 %v4855_v36  ;;  %v5583_v36 = vpack.c.bf16 %v5575_v31, %v5573_v30 }
  0x87   :  { %3919 = vmatprep.mubr.msk.bf16.mxu0 %vm423_vm0, %v5456_v35  ;;  %978 = vmatprep.subr.bf16.mxu0 %v4860_v39  ;;  %v5586_v39 = vld [vmem:[#allocation2 + $0x60] sm:$0xff] }
  0x88   :  { %1090 = vmatpush1.bf16.msra.mxu1 %v4867_v40  ;;  %v5591_v40 = vld [vmem:[#allocation2 + $0x68] sm:$0xff] }
  0x89   :  { %1091 = vmatprep.subr.bf16.mxu1 %v6368_v0 }
  0x8a   :  { %979 = vmatpush1.bf16.msra.mxu0 %v4858_v41  ;;  %v136_v41 = vpack.c.bf16 %v5449_v32, %v5449_v32 }
  0x8b   :  { %980 = vmatprep.subr.bf16.mxu0 %v4863_v44  ;;  %v5599_v44 = vpack.c.bf16 %v5591_v40, %v5586_v39 }
  0x8c   :  { %1092 = vmatpush1.bf16.msra.mxu1 %v4871_v45  ;;  %v3935_v45 = vcombine.low %v6368_v0, %v136_v41 }
  0x8d   :  { %599 = vmatmul.mubr.bf16.gmra.mrb[4].mxu1 %v5475_v46  ;;  %1093 = vmatprep.subr.bf16.mxu1 %v6368_v0 }
  0x8e   :  { %488 = vmatmul.mubr.bf16.gmra.mrb[4].mxu0 %v5475_v46  ;;  %3928 = vmatprep.mubr.msk.bf16.mxu1 %vm423_vm0, %v5480_v47 }
  0x8f   :  { %981 = vmatpush1.bf16.msra.mxu0 %v4861_v48  ;;  %3920 = vmatprep.mubr.msk.bf16.mxu0 %vm423_vm0, %v5480_v47  ;;  %v104_v48 = vpack.c.bf16 %v5459_v37, %v5459_v37  ;;  %v4903_v37 = vld [vmem:[#allocation7 + $0x214] ss:$12 sps:$4 sm:$0xff]  }
  0x90   :  { %982 = vmatprep.subr.bf16.mxu0 %v4866_v49  ;;  %1094 = vmatpush1.bf16.msra.mxu1 %v4875_v50  ;;  %v4895_v49 = vld [vmem:[#allocation7 + $0x1e0] ss:$12 sps:$4 sm:$0xff]   ;;  %v5611_v50 = vpack.c.bf16 %v5467_v42, %v5452_v33  ;;  %v5619_v33 = vpack.c.bf16 %v5483_v51, %v5461_v38  ;;  %v4901_v42 = vld [vmem:[#allocation7 + $0x210] ss:$12 sps:$4 sm:$0xff]   ;;  %v5637_v51 = vpack.c.bf16 %v5511_v63, %v5485_v52 }
  0x91   :  { %1095 = vmatprep.subr.bf16.mxu1 %v6368_v0  ;;  %v3934_v32 = vcombine.low %v6368_v0, %v104_v48  ;;  %v4910_v38 = vld [vmem:[#allocation7 + $0x244] ss:$12 sps:$4 sm:$0xff]   ;;  %v144_v52 = vpack.c.bf16 %v5523_v10, %v5523_v10  ;;  %v4921_v63 = vld [vmem:[#allocation7 + $0x260] ss:$12 sps:$4 sm:$0xff]   ;;  %v4930_v48 = vld [vmem:[#allocation7 + $0x2a8] ss:$12 sps:$4 sm:$0xff]  }
  0x92   :  { %v4925_v10 = vld [vmem:[#allocation7 + $0x278] ss:$12 sps:$4 sm:$0xff]  }
  0x93   :  { %983 = vmatpush1.bf16.msra.mxu0 %v4864_v53  ;;  %v4900_v53 = vld [vmem:[#allocation7 + $0x1fc] ss:$12 sps:$4 sm:$0xff]  }
  0x94   :  { %984 = vmatprep.subr.bf16.mxu0 %v4870_v56  ;;  %1096 = vmatpush1.bf16.msra.mxu1 %v4876_v57  ;;  %v4907_v56 = vld [vmem:[#allocation7 + $0x1e8] ss:$12 sps:$4 sm:$0xff]   ;;  %v4898_v57 = vld [vmem:[#allocation7 + $0x1f8] ss:$12 sps:$4 sm:$0xff]  }
  0x95   :  { %607 = vmatmul.mubr.bf16.gmra.mrb[8].mxu1 %v5499_v58  ;;  %1097 = vmatprep.subr.bf16.mxu1 %v6368_v0 }
  0x96   :  { %498 = vmatmul.mubr.bf16.gmra.mrb[8].mxu0 %v5499_v58  ;;  %3929 = vmatprep.mubr.msk.bf16.mxu1 %vm423_vm0, %v5504_v59 }
  0x97   :  { %3921 = vmatprep.mubr.msk.bf16.mxu0 %vm423_vm0, %v5504_v59  ;;  %985 = vmatpush1.bf16.msra.mxu0 %v4868_v60  ;;  %v4911_v60 = vld [vmem:[#allocation7 + $0x200] ss:$12 sps:$4 sm:$0xff]  }
  0x98   :  { %986 = vmatprep.subr.bf16.mxu0 %v4874_v61  ;;  %1098 = vmatpush1.bf16.msra.mxu1 %v4880_v62  ;;  %v5624_v61 = vpack.c.bf16 %v5491_v54, %v5471_v43  ;;  %v4906_v62 = vld [vmem:[#allocation7 + $0x22c] ss:$12 sps:$4 sm:$0xff]   ;;  %v4916_v43 = vld [vmem:[#allocation7 + $0x230] ss:$12 sps:$4 sm:$0xff]  }
  0x99   :  { %1099 = vmatprep.subr.bf16.mxu1 %v6368_v0  ;;  %v4908_v54 = vld [vmem:[#allocation7 + $0x240] ss:$12 sps:$4 sm:$0xff]  }
  0x9b   :  { %987 = vmatpush1.bf16.msra.mxu0 %v4872_v3  ;;  %v4915_v3 = vld [vmem:[#allocation7 + $0x218] ss:$12 sps:$4 sm:$0xff]  }
  0x9c   :  { %988 = vmatprep.subr.bf16.mxu0 %v4879_v4  ;;  %1100 = vmatpush1.bf16.msra.mxu1 %v4881_v5  ;;  %v4904_v4 = vld [vmem:[#allocation7 + $0x228] ss:$12 sps:$4 sm:$0xff]  }
  0x9d   :  { %615 = vmatmul.mubr.bf16.gmra.mrb[12].mxu1 %v5519_v6  ;;  %1101 = vmatprep.subr.bf16.mxu1 %v6368_v0  ;;  %v5627_v5 = vld [vmem:[#allocation5 + $0x30] sm:$0xff] }
  0x9e   :  { %508 = vmatmul.mubr.bf16.gmra.mrb[12].mxu0 %v5519_v6  ;;  %3930 = vmatprep.mubr.msk.bf16.mxu1 %vm423_vm0, %v5435_v1 }
  0x9f   :  { %3922 = vmatprep.mubr.msk.bf16.mxu0 %vm423_vm0, %v5435_v1  ;;  %989 = vmatpush1.bf16.msra.mxu0 %v4877_v7  ;;  %v5642_v7 = vpack.c.bf16 %v5627_v5, %v5495_v55  ;;  %v4919_v55 = vld [vmem:[#allocation7 + $0x274] ss:$12 sps:$4 sm:$0xff]  }
  0xa0   :  { %990 = vmatprep.subr.bf16.mxu0 %v4884_v8  ;;  %1102 = vmatpush1.bf16.msra.mxu1 %v4885_v9  ;;  %v4914_v8 = vld [vmem:[#allocation7 + $0x25c] ss:$12 sps:$4 sm:$0xff]  }
  0xa1   :  { %1103 = vmatprep.subr.bf16.mxu1 %v6368_v0  ;;  %v4920_v9 = vld [vmem:[#allocation7 + $0x248] ss:$12 sps:$4 sm:$0xff]  }
  0xa3   :  { %991 = vmatpush1.bf16.msra.mxu0 %v4882_v12  ;;  %v5644_v12 = vld [vmem:[#allocation2 + $0x30] sm:$0xff] }
  0xa4   :  { %992 = vmatprep.subr.bf16.mxu0 %v4888_v13  ;;  %1104 = vmatpush1.bf16.msra.mxu1 %v4889_v14  ;;  %v4912_v13 = vld [vmem:[#allocation7 + $0x258] ss:$12 sps:$4 sm:$0xff]   ;;  %v5657_v14 = vpack.c.bf16 %v5644_v12, %v5513_v2  ;;  %v4922_v2 = vld [vmem:[#allocation7 + $0x288] ss:$12 sps:$4 sm:$0xff]  }
  0xa5   :  { %623 = vmatmul.mubr.bf16.gmra.mrb[16].mxu1 %v5435_v1  ;;  %1105 = vmatprep.subr.bf16.mxu1 %v6368_v0 }
  0xa6   :  { %518 = vmatmul.mubr.bf16.gmra.mrb[16].mxu0 %v5435_v1  ;;  %3931 = vmatprep.mubr.msk.bf16.mxu1 %vm423_vm0, %v5536_v15 }
  0xa7   :  { %3923 = vmatprep.mubr.msk.bf16.mxu0 %vm423_vm0, %v5536_v15  ;;  %993 = vmatpush1.bf16.msra.mxu0 %v4886_v16  ;;  %v4917_v16 = vld [vmem:[#allocation7 + $0x270] ss:$12 sps:$4 sm:$0xff]  }
  0xa8   :  { %1106 = vmatpush1.bf16.msra.mxu1 %v4890_v17  ;;  %994 = vmatprep.subr.bf16.mxu0 %v4893_v19  ;;  %v3943_v17 = vcombine.low %v6368_v0, %v144_v52  ;;  %v4924_v19 = vld [vmem:[#allocation7 + $0x28c] ss:$12 sps:$4 sm:$0xff]   ;;  %v4959_v52 = vld [vmem:[#allocation7 + $0x364] ss:$12 sps:$4 sm:$0xff]  }
  0xa9   :  { %1107 = vmatprep.subr.bf16.mxu1 %v6368_v0 }
  0xab   :  { %995 = vmatpush1.bf16.msra.mxu0 %v4891_v23  ;;  %v112_v23 = vpack.c.bf16 %v5538_v18, %v5538_v18  ;;  %v5672_v18 = vpack.c.bf16 %v5547_v21, %v5529_v11  ;;  %v5681_v11 = vpack.c.bf16 %v5563_v28, %v5541_v20  ;;  %v5686_v21 = vpack.c.bf16 %v5573_v30, %v5549_v22  ;;  %v5693_v20 = vld [vmem:[#allocation5 + $0x70] sm:$0xff] }
  0xac   :  { %1108 = vmatpush1.bf16.msra.mxu1 %v4894_v24  ;;  %1455 = vmatprep.subr.bf16.mxu0 %v4897_v25  ;;  %v4928_v24 = vld [vmem:[#allocation7 + $0x2a4] ss:$12 sps:$4 sm:$0xff]   ;;  %v5699_v22 = vpack.c.bf16 %v5586_v39, %v5569_v29  ;;  %v5703_v28 = vpack.c.bf16 %v5693_v20, %v5575_v31  ;;  %v4940_v39 = vld [vmem:[#allocation7 + $0x2ec] ss:$12 sps:$4 sm:$0xff]  }
  0xad   :  { %631 = vmatmul.mubr.bf16.gmra.mrb[20].mxu1 %v5555_v26  ;;  %1568 = vmatprep.subr.bf16.mxu1 %v6368_v0  ;;  %v4929_v25 = vld [vmem:[#allocation7 + $0x290] ss:$12 sps:$4 sm:$0xff]   ;;  %v3942_v41 = vcombine.low %v6368_v0, %v112_v23  ;;  %v4969_v23 = vld [vmem:[#allocation7 + $0x380] ss:$12 sps:$4 sm:$0xff]  }
  0xae   :  { %528 = vmatmul.mubr.bf16.gmra.mrb[20].mxu0 %v5555_v26  ;;  %3932 = vmatprep.mubr.msk.bf16.mxu1 %vm423_vm0, %v5560_v27  ;;  %v5709_v30 = vld [vmem:[#allocation2 + $0x70] sm:$0xff] }
  0xaf   :  { %3924 = vmatprep.mubr.msk.bf16.mxu0 %vm423_vm0, %v5560_v27  ;;  %v5715_v29 = vpack.c.bf16 %v5709_v30, %v5591_v40  ;;  %v4935_v31 = vld [vmem:[#allocation7 + $0x2d0] ss:$12 sps:$4 sm:$0xff]   ;;  %v4938_v40 = vld [vmem:[#allocation7 + $0x2e8] ss:$12 sps:$4 sm:$0xff]  }
  0xb5   :  { %639 = vmatmul.mubr.bf16.gmra.mrb[24].mxu1 %v5579_v34 }
  0xb6   :  { %538 = vmatmul.mubr.bf16.gmra.mrb[24].mxu0 %v5579_v34  ;;  %3933 = vmatprep.mubr.msk.bf16.mxu1 %vm423_vm0, %v5583_v36 }
  0xb7   :  { %3925 = vmatprep.mubr.msk.bf16.mxu0 %vm423_vm0, %v5583_v36 }
  0xbd   :  { %647 = vmatmul.mubr.bf16.gmra.mrb[28].mxu1 %v5599_v44 }
  0xbe   :  { %548 = vmatmul.mubr.bf16.gmra.mrb[28].mxu0 %v5599_v44  ;;  %3988 = vmatprep.mubr.msk.bf16.mxu1 %vm423_vm0, %v3935_v45 }
  0xbf   :  { %3980 = vmatprep.mubr.msk.bf16.mxu0 %vm423_vm0, %v3935_v45  ;;  %v4926_v45 = vld [vmem:[#allocation7 + $0x2a0] ss:$12 sps:$4 sm:$0xff]  }
  0xc5   :  { %1122 = vmatmul.mubr.bf16.vlgmr.msra.gmra.mrb[0].mxu1 %v3934_v32 }
  0xc6   :  { %1009 = vmatmul.mubr.bf16.vlgmr.msra.gmra.mrb[0].mxu0 %v3934_v32  ;;  %3989 = vmatprep.mubr.msk.bf16.mxu1 %vm423_vm0, %v5611_v50  ;;  %v4933_v32 = vld [vmem:[#allocation7 + $0x2bc] ss:$12 sps:$4 sm:$0xff]  }
  0xc7   :  { %1456 = vmatpush1.bf16.msra.mxu0 %v4895_v49  ;;  %3981 = vmatprep.mubr.msk.bf16.mxu0 %vm423_vm0, %v5611_v50  ;;  %v4931_v49 = vld [vmem:[#allocation7 + $0x2b8] ss:$12 sps:$4 sm:$0xff]  }
  0xc8   :  { %1457 = vmatprep.subr.bf16.mxu0 %v4900_v53  ;;  %1569 = vmatpush1.bf16.msra.mxu1 %v4907_v56  ;;  %v4934_v53 = vld [vmem:[#allocation7 + $0x2c0] ss:$12 sps:$4 sm:$0xff]  }
  0xc9   :  { %1570 = vmatprep.subr.bf16.mxu1 %v6368_v0  ;;  %v4937_v56 = vld [vmem:[#allocation7 + $0x2d4] ss:$12 sps:$4 sm:$0xff]  }
  0xcb   :  { %1458 = vmatpush1.bf16.msra.mxu0 %v4898_v57  ;;  %v4947_v57 = vld [vmem:[#allocation7 + $0x2d8] ss:$12 sps:$4 sm:$0xff]  }
  0xcc   :  { %1459 = vmatprep.subr.bf16.mxu0 %v4903_v37  ;;  %1571 = vmatpush1.bf16.msra.mxu1 %v4911_v60  ;;  %v4943_v37 = vld [vmem:[#allocation7 + $0x304] ss:$12 sps:$4 sm:$0xff]  }
  0xcd   :  { %1130 = vmatmul.mubr.bf16.gmra.mrb[4].mxu1 %v5619_v33  ;;  %1572 = vmatprep.subr.bf16.mxu1 %v6368_v0  ;;  %v4951_v60 = vld [vmem:[#allocation7 + $0x2f0] ss:$12 sps:$4 sm:$0xff]  }
  0xce   :  { %1019 = vmatmul.mubr.bf16.gmra.mrb[4].mxu0 %v5619_v33  ;;  %3990 = vmatprep.mubr.msk.bf16.mxu1 %vm423_vm0, %v5624_v61 }
  0xcf   :  { %1460 = vmatpush1.bf16.msra.mxu0 %v4901_v42  ;;  %3982 = vmatprep.mubr.msk.bf16.mxu0 %vm423_vm0, %v5624_v61  ;;  %v4946_v42 = vld [vmem:[#allocation7 + $0x31c] ss:$12 sps:$4 sm:$0xff]  }
  0xd0   :  { %1461 = vmatprep.subr.bf16.mxu0 %v4906_v62  ;;  %1573 = vmatpush1.bf16.msra.mxu1 %v4915_v3  ;;  %v4944_v62 = vld [vmem:[#allocation7 + $0x318] ss:$12 sps:$4 sm:$0xff]  }
  0xd1   :  { %1574 = vmatprep.subr.bf16.mxu1 %v6368_v0  ;;  %v5737_v3 = vld [vmem:[#allocation5 + $0x38] sm:$0xff] }
  0xd3   :  { %1462 = vmatpush1.bf16.msra.mxu0 %v4904_v4  ;;  %v4950_v4 = vld [vmem:[#allocation7 + $0x334] ss:$12 sps:$4 sm:$0xff]  }
  0xd4   :  { %1463 = vmatprep.subr.bf16.mxu0 %v4910_v38  ;;  %1575 = vmatpush1.bf16.msra.mxu1 %v4916_v43  ;;  %v4956_v38 = vld [vmem:[#allocation7 + $0x320] ss:$12 sps:$4 sm:$0xff]   ;;  %v5742_v43 = vpack.c.bf16 %v5737_v3, %v5627_v5  ;;  %v4952_v5 = vld [vmem:[#allocation7 + $0x348] ss:$12 sps:$4 sm:$0xff]  }
  0xd5   :  { %1138 = vmatmul.mubr.bf16.gmra.mrb[8].mxu1 %v5637_v51  ;;  %1576 = vmatprep.subr.bf16.mxu1 %v6368_v0 }
  0xd6   :  { %1029 = vmatmul.mubr.bf16.gmra.mrb[8].mxu0 %v5637_v51  ;;  %3991 = vmatprep.mubr.msk.bf16.mxu1 %vm423_vm0, %v5642_v7 }
  0xd7   :  { %3983 = vmatprep.mubr.msk.bf16.mxu0 %vm423_vm0, %v5642_v7  ;;  %1464 = vmatpush1.bf16.msra.mxu0 %v4908_v54  ;;  %v4948_v54 = vld [vmem:[#allocation7 + $0x330] ss:$12 sps:$4 sm:$0xff]  }
  0xd8   :  { %1465 = vmatprep.subr.bf16.mxu0 %v4914_v8  ;;  %1577 = vmatpush1.bf16.msra.mxu1 %v4920_v9  ;;  %v4954_v8 = vld [vmem:[#allocation7 + $0x34c] ss:$12 sps:$4 sm:$0xff]  }
  0xd9   :  { %1578 = vmatprep.subr.bf16.mxu1 %v6368_v0  ;;  %v4960_v9 = vld [vmem:[#allocation7 + $0x338] ss:$12 sps:$4 sm:$0xff]  }
  0xdb   :  { %1466 = vmatpush1.bf16.msra.mxu0 %v4912_v13  ;;  %v5749_v13 = vld [vmem:[#allocation2 + $0x38] sm:$0xff] }
  0xdc   :  { %1467 = vmatprep.subr.bf16.mxu0 %v4919_v55  ;;  %1579 = vmatpush1.bf16.msra.mxu1 %v4921_v63  ;;  %v4961_v55 = vld [vmem:[#allocation7 + $0x350] ss:$12 sps:$4 sm:$0xff]   ;;  %v5755_v63 = vpack.c.bf16 %v5749_v13, %v5644_v12  ;;  %v4962_v12 = vld [vmem:[#allocation7 + $0x378] ss:$12 sps:$4 sm:$0xff]  }
  0xdd   :  { %1146 = vmatmul.mubr.bf16.gmra.mrb[12].mxu1 %v5657_v14  ;;  %1580 = vmatprep.subr.bf16.mxu1 %v6368_v0 }
  0xde   :  { %1039 = vmatmul.mubr.bf16.gmra.mrb[12].mxu0 %v5657_v14  ;;  %3992 = vmatprep.mubr.msk.bf16.mxu1 %vm423_vm0, %v3943_v17 }
  0xdf   :  { %3984 = vmatprep.mubr.msk.bf16.mxu0 %vm423_vm0, %v3943_v17  ;;  %1468 = vmatpush1.bf16.msra.mxu0 %v4917_v16  ;;  %v4957_v16 = vld [vmem:[#allocation7 + $0x360] ss:$12 sps:$4 sm:$0xff]   ;;  %v4964_v17 = vld [vmem:[#allocation7 + $0x37c] ss:$12 sps:$4 sm:$0xff]  }
  0xe0   :  { %1469 = vmatprep.subr.bf16.mxu0 %v4924_v19  ;;  %1581 = vmatpush1.bf16.msra.mxu1 %v4925_v10  ;;  %v4965_v19 = vld [vmem:[#allocation7 + $0x368] ss:$12 sps:$4 sm:$0xff]  }
  0xe1   :  { %1582 = vmatprep.subr.bf16.mxu1 %v6368_v0  ;;  %v4968_v10 = vld [vmem:[#allocation7 + $0x394] ss:$12 sps:$4 sm:$0xff]  }
  0xe3   :  { %1470 = vmatpush1.bf16.msra.mxu0 %v4922_v2  ;;  %v4966_v2 = vld [vmem:[#allocation7 + $0x390] ss:$12 sps:$4 sm:$0xff]  }
  0xe4   :  { %1471 = vmatprep.subr.bf16.mxu0 %v4928_v24  ;;  %1583 = vmatpush1.bf16.msra.mxu1 %v4929_v25  ;;  %v4970_v24 = vld [vmem:[#allocation7 + $0x398] ss:$12 sps:$4 sm:$0xff]  }
  0xe5   :  { %1154 = vmatmul.mubr.bf16.gmra.mrb[16].mxu1 %v3942_v41  ;;  %1584 = vmatprep.subr.bf16.mxu1 %v6368_v0  ;;  %v4973_v25 = vld [vmem:[#allocation7 + $0x3ac] ss:$12 sps:$4 sm:$0xff]  }
  0xe6   :  { %1049 = vmatmul.mubr.bf16.gmra.mrb[16].mxu0 %v3942_v41  ;;  %3993 = vmatprep.mubr.msk.bf16.mxu1 %vm423_vm0, %v5672_v18  ;;  %v4974_v41 = vld [vmem:[#allocation7 + $0x3b0] ss:$12 sps:$4 sm:$0xff]  }
  0xe7   :  { %3985 = vmatprep.mubr.msk.bf16.mxu0 %vm423_vm0, %v5672_v18  ;;  %1472 = vmatpush1.bf16.msra.mxu0 %v4926_v45  ;;  %v4977_v45 = vld [vmem:[#allocation7 + $0x3c4] ss:$12 sps:$4 sm:$0xff]  }
  0xe8   :  { %1585 = vmatpush1.bf16.msra.mxu1 %v4930_v48  ;;  %1473 = vmatprep.subr.bf16.mxu0 %v4933_v32  ;;  %v5791_v32 = vld [vmem:[#allocation2 + $0x78] sm:$0xff] }
  0xe9   :  { %1586 = vmatprep.subr.bf16.mxu1 %v6368_v0 }
  0xeb   :  { %1474 = vmatpush1.bf16.msra.mxu0 %v4931_v49  ;;  %v5797_v49 = vpack.c.bf16 %v5791_v32, %v5709_v30  ;;  %v4978_v30 = vld [vmem:[#allocation7 + $0x3d8] ss:$12 sps:$4 sm:$0xff]  }
  0xec   :  { %1587 = vmatpush1.bf16.msra.mxu1 %v4934_v53  ;;  %1926 = vmatprep.subr.bf16.mxu0 %v4937_v56  ;;  %v4975_v53 = vld [vmem:[#allocation7 + $0x3c0] ss:$12 sps:$4 sm:$0xff]   ;;  %v4980_v56 = vld [vmem:[#allocation7 + $0x3dc] ss:$12 sps:$4 sm:$0xff]  }
  0xed   :  { %1162 = vmatmul.mubr.bf16.gmra.mrb[20].mxu1 %v5681_v11  ;;  %2039 = vmatprep.subr.bf16.mxu1 %v6368_v0 }
  0xee   :  { %1059 = vmatmul.mubr.bf16.gmra.mrb[20].mxu0 %v5681_v11  ;;  %3994 = vmatprep.mubr.msk.bf16.mxu1 %vm423_vm0, %v5686_v21 }
  0xef   :  { %3986 = vmatprep.mubr.msk.bf16.mxu0 %vm423_vm0, %v5686_v21 }
  0xf5   :  { %1170 = vmatmul.mubr.bf16.gmra.mrb[24].mxu1 %v5699_v22 }
  0xf6   :  { %1069 = vmatmul.mubr.bf16.gmra.mrb[24].mxu0 %v5699_v22  ;;  %3995 = vmatprep.mubr.msk.bf16.mxu1 %vm423_vm0, %v5703_v28 }
  0xf7   :  { %3987 = vmatprep.mubr.msk.bf16.mxu0 %vm423_vm0, %v5703_v28 }
  0xfd   :  { %1178 = vmatmul.mubr.bf16.gmra.mrb[28].mxu1 %v5715_v29 }
  0xfe   :  { %1079 = vmatmul.mubr.bf16.gmra.mrb[28].mxu0 %v5715_v29  ;;  %4038 = vmatprep.mubr.msk.bf16.mxu1 %vm423_vm0, %v5456_v35 }
  0xff   :  { %4030 = vmatprep.mubr.msk.bf16.mxu0 %vm423_vm0, %v5456_v35  ;;  %v4941_v35 = vld [vmem:[#allocation7 + $0x300] ss:$12 sps:$4 sm:$0xff]  }
 0x105   :  { %1601 = vmatmul.mubr.bf16.vlgmr.msra.gmra.mrb[0].mxu1 %v5475_v46 }
 0x106   :  { %1488 = vmatmul.mubr.bf16.vlgmr.msra.gmra.mrb[0].mxu0 %v5475_v46  ;;  %4039 = vmatprep.mubr.msk.bf16.mxu1 %vm423_vm0, %v5480_v47  ;;  %v4955_v46 = vld [vmem:[#allocation7 + $0x308] ss:$12 sps:$4 sm:$0xff]  }
 0x107   :  { %1927 = vmatpush1.bf16.msra.mxu0 %v4935_v31  ;;  %4031 = vmatprep.mubr.msk.bf16.mxu0 %vm423_vm0, %v5480_v47  ;;  %v4983_v31 = vld [vmem:[#allocation7 + $0x3f4] ss:$12 sps:$4 sm:$0xff]  }
 0x108   :  { %1928 = vmatprep.subr.bf16.mxu0 %v4940_v39  ;;  %2040 = vmatpush1.bf16.msra.mxu1 %v4947_v57  ;;  %v4991_v39 = vld [vmem:[#allocation7 + $0x3e0] ss:$12 sps:$4 sm:$0xff]  }
 0x109   :  { %2041 = vmatprep.subr.bf16.mxu1 %v6368_v0  ;;  %v4986_v57 = vld [vmem:[#allocation7 + $0x40c] ss:$12 sps:$4 sm:$0xff]  }
 0x10b   :  { %1929 = vmatpush1.bf16.msra.mxu0 %v4938_v40  ;;  %v4984_v40 = vld [vmem:[#allocation7 + $0x408] ss:$12 sps:$4 sm:$0xff]  }
 0x10c   :  { %1930 = vmatprep.subr.bf16.mxu0 %v4943_v37  ;;  %2042 = vmatpush1.bf16.msra.mxu1 %v4951_v60  ;;  %v4990_v37 = vld [vmem:[#allocation7 + $0x424] ss:$12 sps:$4 sm:$0xff]  }
 0x10d   :  { %1609 = vmatmul.mubr.bf16.gmra.mrb[4].mxu1 %v5499_v58  ;;  %2043 = vmatprep.subr.bf16.mxu1 %v6368_v0  ;;  %v4996_v60 = vld [vmem:[#allocation7 + $0x410] ss:$12 sps:$4 sm:$0xff]  }
 0x10e   :  { %1498 = vmatmul.mubr.bf16.gmra.mrb[4].mxu0 %v5499_v58  ;;  %4040 = vmatprep.mubr.msk.bf16.mxu1 %vm423_vm0, %v5504_v59 }
 0x10f   :  { %1931 = vmatpush1.bf16.msra.mxu0 %v4941_v35  ;;  %4032 = vmatprep.mubr.msk.bf16.mxu0 %vm423_vm0, %v5504_v59 }
 0x110   :  { %1932 = vmatprep.subr.bf16.mxu0 %v4946_v42  ;;  %2044 = vmatpush1.bf16.msra.mxu1 %v4955_v46  ;;  %v4994_v42 = vld [vmem:[#allocation7 + $0x43c] ss:$12 sps:$4 sm:$0xff]  }
 0x111   :  { %2045 = vmatprep.subr.bf16.mxu1 %v6368_v0  ;;  %v5000_v46 = vld [vmem:[#allocation7 + $0x428] ss:$12 sps:$4 sm:$0xff]  }
 0x113   :  { %1933 = vmatpush1.bf16.msra.mxu0 %v4944_v62  ;;  %v4992_v62 = vld [vmem:[#allocation7 + $0x438] ss:$12 sps:$4 sm:$0xff]  }
 0x114   :  { %1934 = vmatprep.subr.bf16.mxu0 %v4950_v4  ;;  %2046 = vmatpush1.bf16.msra.mxu1 %v4956_v38  ;;  %v5001_v4 = vld [vmem:[#allocation7 + $0x440] ss:$12 sps:$4 sm:$0xff]  }
 0x115   :  { %1617 = vmatmul.mubr.bf16.gmra.mrb[8].mxu1 %v5519_v6  ;;  %2047 = vmatprep.subr.bf16.mxu1 %v6368_v0 }
 0x116   :  { %1508 = vmatmul.mubr.bf16.gmra.mrb[8].mxu0 %v5519_v6  ;;  %4041 = vmatprep.mubr.msk.bf16.mxu1 %vm423_vm0, %v5742_v43 }
 0x117   :  { %4033 = vmatprep.mubr.msk.bf16.mxu0 %vm423_vm0, %v5742_v43  ;;  %1935 = vmatpush1.bf16.msra.mxu0 %v4948_v54  ;;  %v4997_v54 = vld [vmem:[#allocation7 + $0x450] ss:$12 sps:$4 sm:$0xff]  }
 0x118   :  { %1936 = vmatprep.subr.bf16.mxu0 %v4954_v8  ;;  %2048 = vmatpush1.bf16.msra.mxu1 %v4960_v9  ;;  %v5004_v8 = vld [vmem:[#allocation7 + $0x46c] ss:$12 sps:$4 sm:$0xff]   ;;  %v5002_v9 = vld [vmem:[#allocation7 + $0x468] ss:$12 sps:$4 sm:$0xff]  }
 0x119   :  { %2049 = vmatprep.subr.bf16.mxu1 %v6368_v0 }
 0x11b   :  { %1937 = vmatpush1.bf16.msra.mxu0 %v4952_v5  ;;  %v5008_v5 = vld [vmem:[#allocation7 + $0x484] ss:$12 sps:$4 sm:$0xff]  }
 0x11c   :  { %1938 = vmatprep.subr.bf16.mxu0 %v4959_v52  ;;  %2050 = vmatpush1.bf16.msra.mxu1 %v4961_v55  ;;  %v5009_v52 = vld [vmem:[#allocation7 + $0x470] ss:$12 sps:$4 sm:$0xff]   ;;  %v5006_v55 = vld [vmem:[#allocation7 + $0x480] ss:$12 sps:$4 sm:$0xff]  }
 0x11d   :  { %1625 = vmatmul.mubr.bf16.gmra.mrb[12].mxu1 %v5755_v63  ;;  %2051 = vmatprep.subr.bf16.mxu1 %v6368_v0 }
 0x11e   :  { %1518 = vmatmul.mubr.bf16.gmra.mrb[12].mxu0 %v5755_v63  ;;  %4042 = vmatprep.mubr.msk.bf16.mxu1 %vm423_vm0, %v5536_v15 }
 0x11f   :  { %4034 = vmatprep.mubr.msk.bf16.mxu0 %vm423_vm0, %v5536_v15  ;;  %1939 = vmatpush1.bf16.msra.mxu0 %v4957_v16  ;;  %v4971_v15 = vld [vmem:[#allocation7 + $0x3a8] ss:$12 sps:$4 sm:$0xff]  }
 0x120   :  { %1940 = vmatprep.subr.bf16.mxu0 %v4964_v17  ;;  %2052 = vmatpush1.bf16.msra.mxu1 %v4965_v19  ;;  %v5010_v16 = vld [vmem:[#allocation7 + $0x488] ss:$12 sps:$4 sm:$0xff]   ;;  %v5014_v19 = vld [vmem:[#allocation7 + $0x4a0] ss:$12 sps:$4 sm:$0xff]  }
 0x121   :  { %2053 = vmatprep.subr.bf16.mxu1 %v6368_v0  ;;  %v5013_v17 = vld [vmem:[#allocation7 + $0x49c] ss:$12 sps:$4 sm:$0xff]  }
 0x123   :  { %1941 = vmatpush1.bf16.msra.mxu0 %v4962_v12  ;;  %v5015_v12 = vld [vmem:[#allocation8] sm:$0xff]  }
 0x124   :  { %1942 = vmatprep.subr.bf16.mxu0 %v4968_v10  ;;  %2054 = vmatpush1.bf16.msra.mxu1 %v4969_v23  ;;  %v5016_v10 = vld [vmem:[#allocation8 + $0x40] sm:$0xff]   ;;  %v119_v23 = vpack.c.bf16 %v5791_v32, %v5791_v32 }
 0x125   :  { %1633 = vmatmul.mubr.bf16.gmra.mrb[16].mxu1 %v5555_v26  ;;  %2055 = vmatprep.subr.bf16.mxu1 %v6368_v0 }
 0x126   :  { %1528 = vmatmul.mubr.bf16.gmra.mrb[16].mxu0 %v5555_v26  ;;  %4043 = vmatprep.mubr.msk.bf16.mxu1 %vm423_vm0, %v5560_v27  ;;  %v5781_v26 = vld [vmem:[#allocation5 + $0x78] sm:$0xff] }
 0x127   :  { %4035 = vmatprep.mubr.msk.bf16.mxu0 %vm423_vm0, %v5560_v27  ;;  %1943 = vmatpush1.bf16.msra.mxu0 %v4966_v2  ;;  %v5785_v48 = vpack.c.bf16 %v5781_v26, %v5693_v20  ;;  %v4987_v20 = vld [vmem:[#allocation7 + $0x3c8] ss:$12 sps:$4 sm:$0xff]   ;;  %v5029_v2 = vld [vmem:[#allocation8 + $0x70] sm:$0xff]  }
 0x128   :  { %2056 = vmatpush1.bf16.msra.mxu1 %v4970_v24  ;;  %1944 = vmatprep.subr.bf16.mxu0 %v4973_v25  ;;  %v5030_v24 = vld [vmem:[#allocation8 + $0x78] sm:$0xff]   ;;  %v5911_v25 = vld [vmem:[#allocation8 + $0x80] sm:$0xff]  }
 0x129   :  { %2057 = vmatprep.subr.bf16.mxu1 %v6368_v0 }
 0x12b   :  { %1945 = vmatpush1.bf16.msra.mxu0 %v4971_v15  ;;  %v5914_v15 = vld [vmem:[#allocation8 + $0xc0] sm:$0xff]  }
 0x12c   :  { %2058 = vmatpush1.bf16.msra.mxu1 %v4974_v41  ;;  %2385 = vmatprep.subr.bf16.mxu0 %v4977_v45  ;;  %v656_v41 = vlaneseq }
 0x12d   :  { %1641 = vmatmul.mubr.bf16.gmra.mrb[20].mxu1 %v5579_v34  ;;  %2498 = vmatprep.subr.bf16.mxu1 %v6368_v0 }
 0x12e   :  { %1538 = vmatmul.mubr.bf16.gmra.mrb[20].mxu0 %v5579_v34  ;;  %4044 = vmatprep.mubr.msk.bf16.mxu1 %vm423_vm0, %v5583_v36  ;;  %v5917_v45 = vshrl.u32 %v656_v41, 7 }
 0x12f   :  { %4036 = vmatprep.mubr.msk.bf16.mxu0 %vm423_vm0, %v5583_v36 }
 0x135   :  { %1649 = vmatmul.mubr.bf16.gmra.mrb[24].mxu1 %v5599_v44 }
 0x136   :  { %1548 = vmatmul.mubr.bf16.gmra.mrb[24].mxu0 %v5599_v44  ;;  %4045 = vmatprep.mubr.msk.bf16.mxu1 %vm423_vm0, %v5785_v48 }
 0x137   :  { %4037 = vmatprep.mubr.msk.bf16.mxu0 %vm423_vm0, %v5785_v48 }
 0x13d   :  { %1657 = vmatmul.mubr.bf16.gmra.mrb[28].mxu1 %v5797_v49 }
 0x13e   :  { %1558 = vmatmul.mubr.bf16.gmra.mrb[28].mxu0 %v5797_v49  ;;  %4088 = vmatprep.mubr.msk.bf16.mxu1 %vm423_vm0, %v5611_v50 }
 0x13f   :  { %4080 = vmatprep.mubr.msk.bf16.mxu0 %vm423_vm0, %v5611_v50  ;;  %v4981_v50 = vld [vmem:[#allocation7 + $0x3f0] ss:$12 sps:$4 sm:$0xff]  }
 0x145   :  { %2072 = vmatmul.mubr.bf16.vlgmr.msra.gmra.mrb[0].mxu1 %v5619_v33 }
 0x146   :  { %1959 = vmatmul.mubr.bf16.vlgmr.msra.gmra.mrb[0].mxu0 %v5619_v33  ;;  %4089 = vmatprep.mubr.msk.bf16.mxu1 %vm423_vm0, %v5624_v61  ;;  %v4995_v33 = vld [vmem:[#allocation7 + $0x3f8] ss:$12 sps:$4 sm:$0xff]  }
 0x147   :  { %2386 = vmatpush1.bf16.msra.mxu0 %v4975_v53  ;;  %4081 = vmatprep.mubr.msk.bf16.mxu0 %vm423_vm0, %v5624_v61  ;;  %v143_v61 = vpack.c.bf16 %v5737_v3, %v5737_v3  ;;  %v4999_v3 = vld [vmem:[#allocation7 + $0x454] ss:$12 sps:$4 sm:$0xff]  }
 0x148   :  { %2387 = vmatprep.subr.bf16.mxu0 %v4980_v56  ;;  %2499 = vmatpush1.bf16.msra.mxu1 %v4987_v20 }
 0x149   :  { %2500 = vmatprep.subr.bf16.mxu1 %v6368_v0  ;;  %v4047_v35 = vcombine.low %v143_v61, %v6368_v0 }
 0x14b   :  { %2388 = vmatpush1.bf16.msra.mxu0 %v4978_v30 }
 0x14c   :  { %2389 = vmatprep.subr.bf16.mxu0 %v4983_v31  ;;  %2501 = vmatpush1.bf16.msra.mxu1 %v4991_v39 }
 0x14d   :  { %2080 = vmatmul.mubr.bf16.gmra.mrb[4].mxu1 %v5637_v51  ;;  %2502 = vmatprep.subr.bf16.mxu1 %v6368_v0 }
 0x14e   :  { %1969 = vmatmul.mubr.bf16.gmra.mrb[4].mxu0 %v5637_v51  ;;  %4090 = vmatprep.mubr.msk.bf16.mxu1 %vm423_vm0, %v5642_v7  ;;  %v4988_v51 = vld [vmem:[#allocation7 + $0x420] ss:$12 sps:$4 sm:$0xff]  }
 0x14f   :  { %2390 = vmatpush1.bf16.msra.mxu0 %v4981_v50  ;;  %4082 = vmatprep.mubr.msk.bf16.mxu0 %vm423_vm0, %v5642_v7  ;;  %v111_v7 = vpack.c.bf16 %v5749_v13, %v5749_v13 }
 0x150   :  { %2391 = vmatprep.subr.bf16.mxu0 %v4986_v57  ;;  %2503 = vmatpush1.bf16.msra.mxu1 %v4995_v33 }
 0x151   :  { %2504 = vmatprep.subr.bf16.mxu1 %v6368_v0  ;;  %v4046_v38 = vcombine.low %v111_v7, %v6368_v0 }
 0x153   :  { %2392 = vmatpush1.bf16.msra.mxu0 %v4984_v40 }
 0x154   :  { %2393 = vmatprep.subr.bf16.mxu0 %v4990_v37  ;;  %2505 = vmatpush1.bf16.msra.mxu1 %v4996_v60 }
 0x155   :  { %2088 = vmatmul.mubr.bf16.gmra.mrb[8].mxu1 %v5657_v14  ;;  %2506 = vmatprep.subr.bf16.mxu1 %v6368_v0 }
 0x156   :  { %1979 = vmatmul.mubr.bf16.gmra.mrb[8].mxu0 %v5657_v14  ;;  %4091 = vmatprep.mubr.msk.bf16.mxu1 %vm423_vm0, %v4047_v35  ;;  %v5005_v14 = vld [vmem:[#allocation7 + $0x458] ss:$12 sps:$4 sm:$0xff]  }
 0x157   :  { %4083 = vmatprep.mubr.msk.bf16.mxu0 %vm423_vm0, %v4047_v35  ;;  %2394 = vmatpush1.bf16.msra.mxu0 %v4988_v51 }
 0x158   :  { %2395 = vmatprep.subr.bf16.mxu0 %v4994_v42  ;;  %2507 = vmatpush1.bf16.msra.mxu1 %v5000_v46 }
 0x159   :  { %2508 = vmatprep.subr.bf16.mxu1 %v6368_v0 }
 0x15b   :  { %2396 = vmatpush1.bf16.msra.mxu0 %v4992_v62 }
 0x15c   :  { %2397 = vmatprep.subr.bf16.mxu0 %v4999_v3  ;;  %2509 = vmatpush1.bf16.msra.mxu1 %v5001_v4 }
 0x15d   :  { %2096 = vmatmul.mubr.bf16.gmra.mrb[12].mxu1 %v4046_v38  ;;  %2510 = vmatprep.subr.bf16.mxu1 %v6368_v0 }
 0x15e   :  { %1989 = vmatmul.mubr.bf16.gmra.mrb[12].mxu0 %v4046_v38  ;;  %4092 = vmatprep.mubr.msk.bf16.mxu1 %vm423_vm0, %v5672_v18 }
 0x15f   :  { %4084 = vmatprep.mubr.msk.bf16.mxu0 %vm423_vm0, %v5672_v18  ;;  %2398 = vmatpush1.bf16.msra.mxu0 %v4997_v54  ;;  %v5011_v18 = vld [vmem:[#allocation7 + $0x498] ss:$12 sps:$4 sm:$0xff]  }
 0x160   :  { %2399 = vmatprep.subr.bf16.mxu0 %v5004_v8  ;;  %2511 = vmatpush1.bf16.msra.mxu1 %v5005_v14 }
 0x161   :  { %2512 = vmatprep.subr.bf16.mxu1 %v6368_v0 }
 0x163   :  { %2400 = vmatpush1.bf16.msra.mxu0 %v5002_v9 }
 0x164   :  { %2401 = vmatprep.subr.bf16.mxu0 %v5008_v5  ;;  %2513 = vmatpush1.bf16.msra.mxu1 %v5009_v52 }
 0x165   :  { %2104 = vmatmul.mubr.bf16.gmra.mrb[16].mxu1 %v5681_v11  ;;  %2514 = vmatprep.subr.bf16.mxu1 %v6368_v0 }
 0x166   :  { %1999 = vmatmul.mubr.bf16.gmra.mrb[16].mxu0 %v5681_v11  ;;  %4093 = vmatprep.mubr.msk.bf16.mxu1 %vm423_vm0, %v5686_v21  ;;  %v151_v11 = vpack.c.bf16 %v5781_v26, %v5781_v26  ;;  %v662_v26 = vsub.s32 1, %v5917_v45 }
 0x167   :  { %4085 = vmatprep.mubr.msk.bf16.mxu0 %vm423_vm0, %v5686_v21  ;;  %2402 = vmatpush1.bf16.msra.mxu0 %v5006_v55 }
 0x168   :  { %2515 = vmatpush1.bf16.msra.mxu1 %v5010_v16  ;;  %2403 = vmatprep.subr.bf16.mxu0 %v5013_v17  ;;  %v4049_v21 = vcombine.low %v151_v11, %v6368_v0 }
 0x169   :  { %2516 = vmatprep.subr.bf16.mxu1 %v6368_v0 }
 0x16b   :  { %2404 = vmatpush1.bf16.msra.mxu0 %v5011_v18 }
 0x16c   :  { %2517 = vmatpush1.bf16.msra.mxu1 %v5014_v19  ;;  %4322 = vmatprep.subr.bf16.mxu0 %v5015_v12 }
 0x16d   :  { %2112 = vmatmul.mubr.bf16.gmra.mrb[20].mxu1 %v5699_v22  ;;  %4354 = vmatprep.subr.bf16.mxu1 %v5016_v10 }
 0x16e   :  { %2009 = vmatmul.mubr.bf16.gmra.mrb[20].mxu0 %v5699_v22  ;;  %4094 = vmatprep.mubr.msk.bf16.mxu1 %vm423_vm0, %v5703_v28  ;;  %v4048_v22 = vcombine.low %v119_v23, %v6368_v0 }
 0x16f   :  { %4086 = vmatprep.mubr.msk.bf16.mxu0 %vm423_vm0, %v5703_v28  ;;  %v5025_v28 = vld [vmem:[#allocation8 + $0x60] sm:$0xff]  }
 0x175   :  { %2120 = vmatmul.mubr.bf16.gmra.mrb[24].mxu1 %v5715_v29 }
 0x176   :  { %2019 = vmatmul.mubr.bf16.gmra.mrb[24].mxu0 %v5715_v29  ;;  %4095 = vmatprep.mubr.msk.bf16.mxu1 %vm423_vm0, %v4049_v21  ;;  %v5026_v29 = vld [vmem:[#allocation8 + $0x30] sm:$0xff]  }
 0x177   :  { %4087 = vmatprep.mubr.msk.bf16.mxu0 %vm423_vm0, %v4049_v21 }
 0x17d   :  { %2128 = vmatmul.mubr.bf16.gmra.mrb[28].mxu1 %v4048_v22 }
 0x17e   :  { %2029 = vmatmul.mubr.bf16.gmra.mrb[28].mxu0 %v4048_v22  ;;  %4134 = vmatprep.mubr.msk.bf16.mxu1 %vm423_vm0, %v5480_v47 }
 0x17f   :  { %4126 = vmatprep.mubr.msk.bf16.mxu0 %vm423_vm0, %v5480_v47  ;;  %v5017_v47 = vld [vmem:[#allocation8 + $0x8] sm:$0xff]  }
 0x185   :  { %2531 = vmatmul.mubr.bf16.vlgmr.msra.gmra.mrb[0].mxu1 %v5499_v58 }
 0x186   :  { %2418 = vmatmul.mubr.bf16.vlgmr.msra.gmra.mrb[0].mxu0 %v5499_v58  ;;  %4135 = vmatprep.mubr.msk.bf16.mxu1 %vm423_vm0, %v5504_v59  ;;  %v5019_v58 = vld [vmem:[#allocation8 + $0x10] sm:$0xff]  }
 0x187   :  { %4127 = vmatprep.mubr.msk.bf16.mxu0 %vm423_vm0, %v5504_v59  ;;  %4323 = vmatpush3.bf16.msra.mxu0 %v5015_v12  ;;  %v5018_v59 = vld [vmem:[#allocation8 + $0x48] sm:$0xff]  }
 0x188   :  { %4355 = vmatpush3.bf16.msra.mxu1 %v5016_v10  ;;  %4324 = vmatprep.subr.bf16.mxu0 %v5017_v47 }
 0x189   :  { %4356 = vmatprep.subr.bf16.mxu1 %v5018_v59 }
 0x18b   :  { %4325 = vmatpush3.bf16.msra.mxu0 %v5017_v47 }
 0x18c   :  { %4326 = vmatprep.subr.bf16.mxu0 %v5019_v58  ;;  %4357 = vmatpush3.bf16.msra.mxu1 %v5018_v59 }
 0x18d   :  { %2539 = vmatmul.mubr.bf16.gmra.mrb[4].mxu1 %v5519_v6 }
 0x18e   :  { %2428 = vmatmul.mubr.bf16.gmra.mrb[4].mxu0 %v5519_v6  ;;  %4136 = vmatprep.mubr.msk.bf16.mxu1 %vm423_vm0, %v5742_v43  ;;  %v5020_v6 = vld [vmem:[#allocation8 + $0x18] sm:$0xff]  }
 0x18f   :  { %4128 = vmatprep.mubr.msk.bf16.mxu0 %vm423_vm0, %v5742_v43  ;;  %4327 = vmatpush3.bf16.msra.mxu0 %v5019_v58  ;;  %v5027_v43 = vld [vmem:[#allocation8 + $0x68] sm:$0xff]   ;;  %v5955_v58 = vld [vmem:[#allocation2] sm:$0xff] }
 0x190   :  { %4328 = vmatprep.subr.bf16.mxu0 %v5020_v6  ;;  %6380 = vst [vmem:[#allocation16_spill] sm:$0xff] %v5955_v58 }
 0x193   :  { %4329 = vmatpush3.bf16.msra.mxu0 %v5020_v6 }
 0x195   :  { %2547 = vmatmul.mubr.bf16.gmra.mrb[8].mxu1 %v5755_v63 }
 0x196   :  { %2438 = vmatmul.mubr.bf16.gmra.mrb[8].mxu0 %v5755_v63  ;;  %4137 = vmatprep.mubr.msk.bf16.mxu1 %vm423_vm0, %v5435_v1  ;;  %v5028_v63 = vld [vmem:[#allocation8 + $0x38] sm:$0xff]  }
 0x197   :  { %4129 = vmatprep.mubr.msk.bf16.mxu0 %vm423_vm0, %v5435_v1 }
 0x19d   :  { %2555 = vmatmul.mubr.bf16.gmra.mrb[12].mxu1 %v5435_v1 }
 0x19e   :  { %2448 = vmatmul.mubr.bf16.gmra.mrb[12].mxu0 %v5435_v1  ;;  %4138 = vmatprep.mubr.msk.bf16.mxu1 %vm423_vm0, %v5560_v27 }
 0x19f   :  { %4130 = vmatprep.mubr.msk.bf16.mxu0 %vm423_vm0, %v5560_v27  ;;  %v5021_v27 = vld [vmem:[#allocation8 + $0x50] sm:$0xff]  }
 0x1a0   :  { %4358 = vmatprep.subr.bf16.mxu1 %v5021_v27 }
 0x1a1   :  { %4359 = vmatpush3.bf16.msra.mxu1 %v5021_v27 }
 0x1a5   :  { %2563 = vmatmul.mubr.bf16.gmra.mrb[16].mxu1 %v5579_v34 }
 0x1a6   :  { %2458 = vmatmul.mubr.bf16.gmra.mrb[16].mxu0 %v5579_v34  ;;  %4139 = vmatprep.mubr.msk.bf16.mxu1 %vm423_vm0, %v5583_v36  ;;  %v5022_v34 = vld [vmem:[#allocation8 + $0x20] sm:$0xff]  }
 0x1a7   :  { %4131 = vmatprep.mubr.msk.bf16.mxu0 %vm423_vm0, %v5583_v36  ;;  %4330 = vmatprep.subr.bf16.mxu0 %v5022_v34  ;;  %v5023_v36 = vld [vmem:[#allocation8 + $0x58] sm:$0xff]  }
 0x1a8   :  { %4331 = vmatpush3.bf16.msra.mxu0 %v5022_v34  ;;  %4360 = vmatprep.subr.bf16.mxu1 %v5023_v36  ;;  %v5958_v34 = vld [vmem:[#allocation2 + $0x8] sm:$0xff] }
 0x1a9   :  { %4361 = vmatpush3.bf16.msra.mxu1 %v5023_v36  ;;  %6381 = vst [vmem:[#allocation17_spill] sm:$0xff] %v5958_v34 }
 0x1aa   :  { %4362 = vmatprep.subr.bf16.mxu1 %v5025_v28 }
 0x1ad   :  { %2571 = vmatmul.mubr.bf16.gmra.mrb[20].mxu1 %v5599_v44 }
 0x1ae   :  { %2468 = vmatmul.mubr.bf16.gmra.mrb[20].mxu0 %v5599_v44  ;;  %4140 = vmatprep.mubr.msk.bf16.mxu1 %vm423_vm0, %v5785_v48  ;;  %v5024_v44 = vld [vmem:[#allocation8 + $0x28] sm:$0xff]  }
 0x1af   :  { %4132 = vmatprep.mubr.msk.bf16.mxu0 %vm423_vm0, %v5785_v48  ;;  %4332 = vmatprep.subr.bf16.mxu0 %v5024_v44  ;;  %v5920_v48 = vld [vmem:[#allocation10] sm:$0x7] }
 0x1b0   :  { %4333 = vmatpush3.bf16.msra.mxu0 %v5024_v44  ;;  %4363 = vmatpush3.bf16.msra.mxu1 %v5025_v28 }
 0x1b1   :  { %4334 = vmatprep.subr.bf16.mxu0 %v5026_v29  ;;  %4364 = vmatprep.subr.bf16.mxu1 %v5027_v43 }
 0x1b4   :  { %4335 = vmatpush3.bf16.msra.mxu0 %v5026_v29  ;;  %4365 = vmatpush3.bf16.msra.mxu1 %v5027_v43 }
 0x1b5   :  { %2579 = vmatmul.mubr.bf16.gmra.mrb[24].mxu1 %v5797_v49  ;;  %4336 = vmatprep.subr.bf16.mxu0 %v5028_v63 }
 0x1b6   :  { %2478 = vmatmul.mubr.bf16.gmra.mrb[24].mxu0 %v5797_v49  ;;  %4141 = vmatprep.mubr.msk.bf16.mxu1 %vm423_vm0, %v5435_v1  ;;  %v5923_v49 = vrot.slane %v5920_v48, %v662_v26 }
 0x1b7   :  { %4133 = vmatprep.mubr.msk.bf16.mxu0 %vm423_vm0, %v5435_v1  ;;  %4366 = vmatprep.subr.bf16.mxu1 %v5029_v2 }
 0x1b8   :  { %4337 = vmatpush3.bf16.msra.mxu0 %v5028_v63  ;;  %4367 = vmatpush3.bf16.msra.mxu1 %v5029_v2 }
 0x1b9   :  { %4368 = vmatprep.subr.bf16.mxu1 %v5030_v24  ;;  %4386 = vmatprep.subr.bf16.mxu0 %v5911_v25 }
 0x1bc   :  { %4369 = vmatpush3.bf16.msra.mxu1 %v5030_v24 }
 0x1bd   :  { %2587 = vmatmul.mubr.bf16.gmra.mrb[28].mxu1 %v5435_v1  ;;  %4418 = vmatprep.subr.bf16.mxu1 %v5914_v15 }
 0x1be   :  { %2488 = vmatmul.mubr.bf16.gmra.mrb[28].mxu0 %v5435_v1 }
 0x1bf   :  { %4338 = vmatprep.mubr.bf16.mxu0 %v5435_v1 }
 0x258   :  { %v5925_v53 = vpop.f32.mrb[0].mxu1 }
 0x259   :  { %v5927_v56 = vpop.f32.mrb[0].mxu0  ;;  %v2534_v20 = vpop.f32.mrb[1].mxu1 }
 0x25a   :  { %v2421_v30 = vpop.f32.mrb[1].mxu0  ;;  %v5929_v31 = vpop.f32.mrb[2].mxu1 }
 0x25b   :  { %v4499_v39 = vadd.f32 %v2421_v30, %v5923_v49  ;;  %v5932_v50 = vpop.f32.mrb[2].mxu0  ;;  %v2537_v57 = vpop.f32.mrb[3].mxu1  ;;  %v5032_v30 = vld [vmem:[#allocation8 + $0x88] sm:$0xff]  }
 0x25c   :  { %v2425_v33 = vpop.f32.mrb[3].mxu0 }
 0x25d   :  { %v2707_v61 = vmul.f32 0.5, %v4499_v39  ;;  %v4501_v40 = vadd.f32 %v2425_v33, %v5923_v49 }
 0x25f   :  { %5055 = vtanh.f32 %v2707_v61  ;;  %v2708_v37 = vmul.f32 0.5, %v4501_v40 }
 0x260   :  { %v5935_v60 = vpop.f32.mrb[4].mxu1 }
 0x261   :  { %5057 = vtanh.f32 %v2708_v37  ;;  %v5937_v35 = vpop.f32.mrb[4].mxu0  ;;  %v2542_v51 = vpop.f32.mrb[5].mxu1 }
 0x262   :  { %v2431_v42 = vpop.f32.mrb[5].mxu0  ;;  %v5939_v46 = vpop.f32.mrb[6].mxu1 }
 0x263   :  { %v4503_v7 = vadd.f32 %v2431_v42, %v5923_v49  ;;  %v5942_v62 = vpop.f32.mrb[6].mxu0  ;;  %v2545_v3 = vpop.f32.mrb[7].mxu1 }
 0x264   :  { %v2435_v4 = vpop.f32.mrb[7].mxu0  ;;  %v5976_v3 = vld [vmem:[#allocation2 + $0x10] sm:$0xff] }
 0x265   :  { %v2709_v38 = vmul.f32 0.5, %v4503_v7  ;;  %v4505_v54 = vadd.f32 %v2435_v4, %v5923_v49  ;;  %6382 = vst [vmem:[#allocation18_spill] sm:$0xff] %v5976_v3 }
 0x267   :  { %5059 = vtanh.f32 %v2709_v38  ;;  %v2710_v8 = vmul.f32 0.5, %v4505_v54  ;;  %v5034_v54 = vld [vmem:[#allocation8 + $0x90] sm:$0xff]  }
 0x268   :  { %v5945_v14 = vpop.f32.mrb[8].mxu1 }
 0x269   :  { %v5056_v9 = vpop.eup %5055  ;;  %5061 = vtanh.f32 %v2710_v8  ;;  %v5947_v5 = vpop.f32.mrb[8].mxu0 }
 0x26a   :  { %v2550_v52 = vpop.f32.mrb[9].mxu1  ;;  %v2739_v55 = vmul.f32 0.5, %v5056_v9  ;;  %v2441_v16 = vpop.f32.mrb[9].mxu0 }
 0x26b   :  { %v5949_v17 = vpop.f32.mrb[10].mxu1  ;;  %v5058_v18 = vpop.eup %5057  ;;  %v4507_v19 = vadd.f32 %v2441_v16, %v5923_v49 }
 0x26c   :  { %v5952_v12 = vpop.f32.mrb[10].mxu0  ;;  %v2553_v10 = vpop.f32.mrb[11].mxu1  ;;  %v2755_v11 = vadd.f32 0.5, %v2739_v55  ;;  %v2740_v21 = vmul.f32 0.5, %v5058_v18  ;;  %v5983_v55 = vld [vmem:[#allocation2 + $0x18] sm:$0xff] }
 0x26d   :  { %v2445_v23 = vpop.f32.mrb[11].mxu0  ;;  %v2711_v22 = vmul.f32 0.5, %v4507_v19  ;;  %6383 = vst [vmem:[#allocation19_spill] sm:$0xff] %v5983_v55  ;;  %v5035_v18 = vld [vmem:[#allocation8 + $0xc8] sm:$0xff]  }
 0x26e   :  { %v4509_v47 = vadd.f32 %v2445_v23, %v5923_v49  ;;  %v2771_v59 = vmul.f32 %v5955_v58, %v2755_v11  ;;  %v2756_v6 = vadd.f32 0.5, %v2740_v21  ;;  %v6061_v58 = vld [vmem:[#allocation2 + $0x50] sm:$0xff] }
 0x26f   :  { %5063 = vtanh.f32 %v2711_v22  ;;  %6389 = vst [vmem:[#allocation24_spill] sm:$0xff] %v6061_v58 }
 0x270   :  { %v2712_v27 = vmul.f32 0.5, %v4509_v47  ;;  %v2772_v36 = vmul.f32 %v5958_v34, %v2756_v6  ;;  %v5961_v44 = vpop.f32.mrb[12].mxu1  ;;  %v2787_v28 = vpack.c.bf16 %v2771_v59, %v2771_v59  ;;  %v5036_v47 = vld [vmem:[#allocation8 + $0x98] sm:$0xff]  }
 0x271   :  { %v5060_v29 = vpop.eup %5059  ;;  %v5963_v43 = vpop.f32.mrb[12].mxu0 }
 0x272   :  { %5065 = vtanh.f32 %v2712_v27  ;;  %v2558_v63 = vpop.f32.mrb[13].mxu1  ;;  %v5965_v2 = vpack.c.bf16 %v2772_v36, %v2771_v59  ;;  %v2741_v24 = vmul.f32 0.5, %v5060_v29  ;;  %v2451_v41 = vpop.f32.mrb[13].mxu0  ;;  %v4156_v20 = vcombine.low %v6368_v0, %v2787_v28  ;;  %v6038_v0 = vld [vmem:[#allocation2 + $0x40] sm:$0xff] }
 0x273   :  { %v5967_v26 = vpop.f32.mrb[14].mxu1  ;;  %v5062_v39 = vpop.eup %5061  ;;  %v4511_v57 = vadd.f32 %v2451_v41, %v5923_v49  ;;  %6385 = vst [vmem:[#allocation21_spill] sm:$0xff] %v6038_v0 }
 0x274   :  { %v5971_v33 = vpop.f32.mrb[14].mxu0  ;;  %v2561_v61 = vpop.f32.mrb[15].mxu1  ;;  %v2757_v40 = vadd.f32 0.5, %v2741_v24  ;;  %v2742_v37 = vmul.f32 0.5, %v5062_v39  ;;  %4339 = vmatmul.mubr.bf16.vlgmr.msra.gmra.mrb[32].mxu0 %v5965_v2  ;;  %4370 = vmatprep.mubr.bf16.mxu1 %v4156_v20  ;;  %v5037_v24 = vld [vmem:[#allocation8 + $0xd0] sm:$0xff]  }
 0x275   :  { %v2455_v51 = vpop.f32.mrb[15].mxu0  ;;  %v2713_v42 = vmul.f32 0.5, %v4511_v57  ;;  %4387 = vmatpush3.bf16.msra.mxu0 %v5911_v25  ;;  %v5155_v39 = vld [vmem:[#allocation2 + $0x20] sm:$0xff]  ;;  %v5038_v61 = vld [vmem:[#allocation8 + $0xa0] sm:$0xff]  }
 0x276   :  { %v4513_v7 = vadd.f32 %v2455_v51, %v5923_v49  ;;  %v2773_v4 = vmul.f32 %v5976_v3, %v2757_v40  ;;  %v2758_v38 = vadd.f32 0.5, %v2742_v37  ;;  %4388 = vmatprep.subr.bf16.mxu0 %v5032_v30  ;;  %v5156_v51 = vld [vmem:[#allocation2 + $0x28] sm:$0xff] }
 0x277   :  { %5067 = vtanh.f32 %v2713_v42 }
 0x278   :  { %v2714_v8 = vmul.f32 0.5, %v4513_v7  ;;  %v5979_v9 = vpack.c.bf16 %v2773_v4, %v2772_v36  ;;  %v5981_v52 = vpop.f32.mrb[16].mxu1  ;;  %v2774_v16 = vmul.f32 %v5983_v55, %v2758_v38  ;;  %v5039_v7 = vld [vmem:[#allocation8 + $0xd8] sm:$0xff]  }
 0x279   :  { %v5064_v19 = vpop.eup %5063  ;;  %v5986_v25 = vpop.f32.mrb[16].mxu0  ;;  %4389 = vmatpush3.bf16.msra.mxu0 %v5032_v30 }
 0x27a   :  { %5069 = vtanh.f32 %v2714_v8  ;;  %v2566_v10 = vpop.f32.mrb[17].mxu1  ;;  %v2743_v11 = vmul.f32 0.5, %v5064_v19  ;;  %v2461_v21 = vpop.f32.mrb[17].mxu0  ;;  %4371 = vmatmul.mubr.bf16.vlgmr.msra.gmra.mrb[32].mxu1 %v5979_v9  ;;  %v5991_v22 = vpack.c.bf16 %v2774_v16, %v2773_v4  ;;  %4390 = vmatprep.subr.bf16.mxu0 %v5034_v54 }
 0x27b   :  { %v5988_v23 = vpop.f32.mrb[18].mxu1  ;;  %v4515_v6 = vadd.f32 %v2461_v21, %v5923_v49  ;;  %v5994_v27 = vpop.f32.mrb[18].mxu0  ;;  %4419 = vmatpush3.bf16.msra.mxu1 %v5914_v15 }
 0x27c   :  { %v5066_v59 = vpop.eup %5065  ;;  %v2569_v36 = vpop.f32.mrb[19].mxu1  ;;  %v2759_v28 = vadd.f32 0.5, %v2743_v11  ;;  %4342 = vmatprep.mubr.bf16.mxu0 %v5991_v22  ;;  %4420 = vmatprep.subr.bf16.mxu1 %v5035_v18 }
 0x27d   :  { %v2744_v29 = vmul.f32 0.5, %v5066_v59  ;;  %v2465_v63 = vpop.f32.mrb[19].mxu0  ;;  %v2715_v41 = vmul.f32 0.5, %v4515_v6  ;;  %4391 = vmatpush3.bf16.msra.mxu0 %v5034_v54 }
 0x27e   :  { %v4517_v20 = vadd.f32 %v2465_v63, %v5923_v49  ;;  %v2775_v57 = vmul.f32 %v5155_v39, %v2759_v28  ;;  %4392 = vmatprep.subr.bf16.mxu0 %v5036_v47 }
 0x27f   :  { %v2760_v30 = vadd.f32 0.5, %v2744_v29  ;;  %5071 = vtanh.f32 %v2715_v41  ;;  %4421 = vmatpush3.bf16.msra.mxu1 %v5035_v18  ;;  %v5041_v29 = vld [vmem:[#allocation8 + $0xe0] sm:$0xff]  }
 0x280   :  { %v2716_v40 = vmul.f32 0.5, %v4517_v20  ;;  %v5999_v15 = vpop.f32.mrb[20].mxu1  ;;  %v6001_v37 = vpack.c.bf16 %v2775_v57, %v2774_v16  ;;  %4422 = vmatprep.subr.bf16.mxu1 %v5037_v24  ;;  %v5040_v16 = vld [vmem:[#allocation8 + $0xa8] sm:$0xff]  }
 0x281   :  { %v2776_v42 = vmul.f32 %v5156_v51, %v2760_v30  ;;  %v5068_v4 = vpop.eup %5067  ;;  %v6003_v38 = vpop.f32.mrb[20].mxu0  ;;  %4393 = vmatpush3.bf16.msra.mxu0 %v5036_v47  ;;  %v6016_v30 = vld [vmem:[#allocation2 + $0x30] sm:$0xff] }
 0x282   :  { %5073 = vtanh.f32 %v2716_v40  ;;  %v2574_v54 = vpop.f32.mrb[21].mxu1  ;;  %v2745_v8 = vmul.f32 0.5, %v5068_v4  ;;  %v2471_v19 = vpop.f32.mrb[21].mxu0  ;;  %4374 = vmatprep.mubr.bf16.mxu1 %v6001_v37  ;;  %4394 = vmatprep.subr.bf16.mxu0 %v5038_v61  ;;  %6384 = vst [vmem:[#allocation20_spill] sm:$0xff] %v6016_v30  ;;  %v5043_v4 = vld [vmem:[#allocation8 + $0xe8] sm:$0xff]  }
 0x283   :  { %v6005_v10 = vpop.f32.mrb[22].mxu1  ;;  %v6008_v18 = vpack.c.bf16 %v2776_v42, %v2775_v57  ;;  %v4519_v21 = vadd.f32 %v2471_v19, %v5923_v49  ;;  %v6011_v59 = vpop.f32.mrb[22].mxu0  ;;  %4423 = vmatpush3.bf16.msra.mxu1 %v5037_v24  ;;  %v5042_v24 = vld [vmem:[#allocation8 + $0xb0] sm:$0xff]  }
 0x284   :  { %v5070_v11 = vpop.eup %5069  ;;  %v2577_v6 = vpop.f32.mrb[23].mxu1  ;;  %v2761_v36 = vadd.f32 0.5, %v2745_v8  ;;  %4424 = vmatprep.subr.bf16.mxu1 %v5039_v7 }
 0x285   :  { %v2746_v28 = vmul.f32 0.5, %v5070_v11  ;;  %v2475_v47 = vpop.f32.mrb[23].mxu0  ;;  %4343 = vmatmul.mubr.bf16.gmra.mrb[36].mxu0 %v6008_v18  ;;  %v2717_v63 = vmul.f32 0.5, %v4519_v21 }
 0x286   :  { %v4521_v41 = vadd.f32 %v2475_v47, %v5923_v49  ;;  %4346 = vmatprep.mubr.bf16.mxu0 %v5435_v1  ;;  %4395 = vmatpush3.bf16.msra.mxu0 %v5038_v61  ;;  %v2777_v39 = vmul.f32 %v6016_v30, %v2761_v36 }
 0x287   :  { %v2762_v20 = vadd.f32 0.5, %v2746_v28  ;;  %4396 = vmatprep.subr.bf16.mxu0 %v5040_v16  ;;  %5075 = vtanh.f32 %v2717_v63  ;;  %4425 = vmatpush3.bf16.msra.mxu1 %v5039_v7 }
 0x288   :  { %v2718_v57 = vmul.f32 0.5, %v4521_v41  ;;  %v6019_v40 = vpop.f32.mrb[24].mxu1  ;;  %v6021_v51 = vpack.c.bf16 %v2777_v39, %v2776_v42  ;;  %4426 = vmatprep.subr.bf16.mxu1 %v5041_v29  ;;  %v5044_v42 = vld [vmem:[#allocation8 + $0xb8] sm:$0xff]  }
 0x289   :  { %v6024_v54 = vmul.f32 %v2762_v20, %v5749_v13  ;;  %v5072_v61 = vpop.eup %5071  ;;  %v6026_v8 = vpop.f32.mrb[24].mxu0  ;;  %v5045_v20 = vld [vmem:[#allocation8 + $0xf0] sm:$0xff]  }
 0x28a   :  { %5077 = vtanh.f32 %v2718_v57  ;;  %v2582_v19 = vpop.f32.mrb[25].mxu1  ;;  %4397 = vmatpush3.bf16.msra.mxu0 %v5040_v16  ;;  %v2747_v11 = vmul.f32 0.5, %v5072_v61  ;;  %v2481_v21 = vpop.f32.mrb[25].mxu0  ;;  %4375 = vmatmul.mubr.bf16.gmra.mrb[36].mxu1 %v6021_v51 }
 0x28b   :  { %v6028_v6 = vpop.f32.mrb[26].mxu1  ;;  %4398 = vmatprep.subr.bf16.mxu0 %v5042_v24  ;;  %v6032_v7 = vpack.c.bf16 %v6024_v54, %v2777_v39  ;;  %v4523_v13 = vadd.f32 %v2481_v21, %v5923_v49  ;;  %v6035_v28 = vpop.f32.mrb[26].mxu0  ;;  %4427 = vmatpush3.bf16.msra.mxu1 %v5041_v29  ;;  %v6041_v21 = vld [vmem:[#allocation8 + $0x100] sm:$0xff]  }
 0x28c   :  { %v5074_v36 = vpop.eup %5073  ;;  %v2585_v47 = vpop.f32.mrb[27].mxu1  ;;  %v2763_v63 = vadd.f32 0.5, %v2747_v11  ;;  %4428 = vmatprep.subr.bf16.mxu1 %v5043_v4  ;;  %v6045_v11 = vld [vmem:[#allocation2 + $0x48] sm:$0xff] }
 0x28d   :  { %v2748_v16 = vmul.f32 0.5, %v5074_v36  ;;  %v2485_v41 = vpop.f32.mrb[27].mxu0  ;;  %v2719_v57 = vmul.f32 0.5, %v4523_v13  ;;  %6386 = vst [vmem:[#allocation22_spill] sm:$0xff] %v6045_v11 }
 0x28e   :  { %v4525_v61 = vadd.f32 %v2485_v41, %v5923_v49  ;;  %4399 = vmatpush3.bf16.msra.mxu0 %v5042_v24  ;;  %v2779_v39 = vmul.f32 %v6038_v0, %v2763_v63  ;;  %v5047_v63 = vld [vmem:[#allocation8 + $0xf8] sm:$0xff]  }
 0x28f   :  { %v2764_v19 = vadd.f32 0.5, %v2748_v16  ;;  %4400 = vmatprep.subr.bf16.mxu0 %v5044_v42  ;;  %5079 = vtanh.f32 %v2719_v57  ;;  %4429 = vmatpush3.bf16.msra.mxu1 %v5043_v4 }
 0x290   :  { %v2720_v47 = vmul.f32 0.5, %v4525_v61  ;;  %v6043_v29 = vpop.f32.mrb[28].mxu1  ;;  %v2795_v13 = vpack.c.bf16 %v2779_v39, %v2779_v39  ;;  %4430 = vmatprep.subr.bf16.mxu1 %v5045_v20  ;;  %v6388_v61 = vmov 0  }
 0x291   :  { %v2780_v36 = vmul.f32 %v6045_v11, %v2764_v19  ;;  %v5076_v24 = vpop.eup %5075  ;;  %v6048_v16 = vpop.f32.mrb[28].mxu0 }
 0x292   :  { %5081 = vtanh.f32 %v2720_v47  ;;  %6387 = vst [vmem:[#allocation23_spill] sm:$0xff] %v6048_v16  ;;  %v2590_v41 = vpop.f32.mrb[29].mxu1  ;;  %4401 = vmatpush3.bf16.msra.mxu0 %v5044_v42  ;;  %v2749_v0 = vmul.f32 0.5, %v5076_v24  ;;  %v2491_v30 = vpop.f32.mrb[29].mxu0  ;;  %v4160_v55 = vcombine.low %v6388_v61, %v2795_v13 }
 0x293   :  { %v6050_v57 = vpop.f32.mrb[30].mxu1  ;;  %v6052_v4 = vpack.c.bf16 %v2780_v36, %v2779_v39  ;;  %4450 = vmatprep.subr.bf16.mxu0 %v6041_v21  ;;  %v4527_v11 = vadd.f32 %v2491_v30, %v5923_v49  ;;  %v6057_v3 = vpop.f32.mrb[30].mxu0  ;;  %4431 = vmatpush3.bf16.msra.mxu1 %v5045_v20  ;;  %v6064_v20 = vld [vmem:[#allocation2 + $0x58] sm:$0xff] }
 0x294   :  { %v5078_v19 = vpop.eup %5077  ;;  %v2593_v47 = vpop.f32.mrb[31].mxu1  ;;  %v2765_v41 = vadd.f32 0.5, %v2749_v0  ;;  %4378 = vmatprep.mubr.bf16.mxu1 %v4160_v55  ;;  %4432 = vmatprep.subr.bf16.mxu1 %v5047_v63  ;;  %6390 = vst [vmem:[#allocation25_spill] sm:$0xff] %v6064_v20 }
 0x295   :  { %v2750_v42 = vmul.f32 0.5, %v5078_v19  ;;  %v2495_v34 = vpop.f32.mrb[31].mxu0  ;;  %4347 = vmatmul.mubr.bf16.gmra.mrb[40].mxu0 %v6052_v4  ;;  %v2721_v24 = vmul.f32 0.5, %v4527_v11 }
 0x296   :  { %v4529_v39 = vadd.f32 %v2495_v34, %v5923_v49  ;;  %v2781_v16 = vmul.f32 %v6061_v58, %v2765_v41  ;;  %v6081_v58 = vld [vmem:[#allocation2 + $0x70] sm:$0xff] }
 0x297   :  { %v2766_v13 = vadd.f32 0.5, %v2750_v42  ;;  %5083 = vtanh.f32 %v2721_v24  ;;  %4433 = vmatpush3.bf16.msra.mxu1 %v5047_v63  ;;  %v6071_v63 = vld [vmem:[#allocation2 + $0x60] sm:$0xff] }
 0x298   :  { %v2722_v30 = vmul.f32 0.5, %v4529_v39  ;;  %v4237_v47 = vpack.c.bf16 %v2781_v16, %v2780_v36  ;;  %4482 = vmatprep.subr.bf16.mxu1 %v6041_v21  ;;  %v6074_v39 = vld [vmem:[#allocation2 + $0x68] sm:$0xff] }
 0x299   :  { %v2782_v0 = vmul.f32 %v6064_v20, %v2766_v13  ;;  %v5080_v55 = vpop.eup %5079  ;;  %6391 = vst [vmem:[#allocation26_spill] sm:$0xff] %v6074_v39 }
 0x29a   :  { %5085 = vtanh.f32 %v2722_v30  ;;  %v2751_v11 = vmul.f32 0.5, %v5080_v55  ;;  %4379 = vmatmul.mubr.bf16.gmra.mrb[40].mxu1 %v4237_v47 }
 0x29b   :  { %v6068_v49 = vpack.c.bf16 %v2782_v0, %v2781_v16 }
 0x29c   :  { %v5082_v34 = vpop.eup %5081  ;;  %v2767_v19 = vadd.f32 0.5, %v2751_v11 }
 0x29d   :  { %v2752_v42 = vmul.f32 0.5, %v5082_v34  ;;  %4350 = vmatprep.mubr.bf16.mxu0 %v6068_v49 }
 0x29e   :  { %v2783_v36 = vmul.f32 %v6071_v63, %v2767_v19 }
 0x29f   :  { %v2768_v41 = vadd.f32 0.5, %v2752_v42 }
 0x2a0   :  { %v4238_v24 = vpack.c.bf16 %v2783_v36, %v2782_v0 }
 0x2a1   :  { %v2784_v13 = vmul.f32 %v6074_v39, %v2768_v41  ;;  %v5084_v30 = vpop.eup %5083 }
 0x2a2   :  { %v2753_v55 = vmul.f32 0.5, %v5084_v30  ;;  %4382 = vmatprep.mubr.bf16.mxu1 %v4238_v24  ;;  %v5048_v30 = vld [vmem:[#allocation8 + $0x108] sm:$0xff]  }
 0x2a3   :  { %v6077_v16 = vpack.c.bf16 %v2784_v13, %v2783_v36 }
 0x2a4   :  { %v5086_v20 = vpop.eup %5085  ;;  %v2769_v11 = vadd.f32 0.5, %v2753_v55 }
 0x2a5   :  { %v2754_v34 = vmul.f32 0.5, %v5086_v20  ;;  %4351 = vmatmul.mubr.bf16.gmra.mrb[44].mxu0 %v6077_v16  ;;  %v5050_v20 = vld [vmem:[#allocation8 + $0x118] sm:$0xff]  }
 0x2a6   :  { %4402 = vmatprep.mubr.bf16.mxu0 %v5965_v2  ;;  %v2785_v0 = vmul.f32 %v6081_v58, %v2769_v11  ;;  %v5049_v2 = vld [vmem:[#allocation8 + $0x110] sm:$0xff]  }
 0x2a7   :  { %v2770_v42 = vadd.f32 0.5, %v2754_v34 }
 0x2a8   :  { %v4239_v19 = vpack.c.bf16 %v2785_v0, %v2784_v13 }
 0x2a9   :  { %v2786_v41 = vmul.f32 %v2770_v42, %v5791_v32  ;;  %v2794_v32 = vpack.c.bf16 %v6024_v54, %v6024_v54  ;;  %v5053_v54 = vld [vmem:[#allocation8 + $0x130] sm:$0xff]  }
 0x2aa   :  { %4383 = vmatmul.mubr.bf16.gmra.mrb[44].mxu1 %v4239_v19 }
 0x2ab   :  { %v4241_v39 = vpack.c.bf16 %v2786_v41, %v2785_v0  ;;  %4434 = vmatprep.mubr.bf16.mxu1 %v5979_v9  ;;  %v5051_v9 = vld [vmem:[#allocation8 + $0x120] sm:$0xff]  }
 0x2ad   :  { %4403 = vmatmul.mubr.bf16.vlgmr.msra.gmra.mrb[48].mxu0 %v5991_v22 }
 0x2ae   :  { %4406 = vmatprep.mubr.bf16.mxu0 %v6008_v18  ;;  %4451 = vmatpush3.bf16.msra.mxu0 %v6041_v21 }
 0x2af   :  { %4452 = vmatprep.subr.bf16.mxu0 %v5048_v30 }
 0x2b2   :  { %4453 = vmatpush3.bf16.msra.mxu0 %v5048_v30  ;;  %4435 = vmatmul.mubr.bf16.vlgmr.msra.gmra.mrb[48].mxu1 %v6001_v37  ;;  %v4182_v37 = vcombine.low %v2794_v32, %v6388_v61 }
 0x2b3   :  { %4454 = vmatprep.subr.bf16.mxu0 %v5049_v2  ;;  %4438 = vmatprep.mubr.bf16.mxu1 %v6021_v51  ;;  %v5052_v51 = vld [vmem:[#allocation8 + $0x128] sm:$0xff]  }
 0x2b4   :  { %4490 = vmatpush3.bf16.msra.mxu1 %v6041_v21  ;;  %v5054_v21 = vld [vmem:[#allocation8 + $0x138] sm:$0xff]  }
 0x2b5   :  { %4407 = vmatmul.mubr.bf16.gmra.mrb[52].mxu0 %v6032_v7  ;;  %4483 = vmatprep.subr.bf16.mxu1 %v5048_v30 }
 0x2b6   :  { %4410 = vmatprep.mubr.bf16.mxu0 %v6052_v4  ;;  %4455 = vmatpush3.bf16.msra.mxu0 %v5049_v2  ;;  %v2802_v4 = vpack.c.bf16 %v2786_v41, %v2786_v41 }
 0x2b7   :  { %4456 = vmatprep.subr.bf16.mxu0 %v5050_v20 }
 0x2b8   :  { %4491 = vmatpush3.bf16.msra.mxu1 %v5048_v30 }
 0x2b9   :  { %4484 = vmatprep.subr.bf16.mxu1 %v5049_v2 }
 0x2ba   :  { %4457 = vmatpush3.bf16.msra.mxu0 %v5050_v20  ;;  %4439 = vmatmul.mubr.bf16.gmra.mrb[52].mxu1 %v4182_v37 }
 0x2bb   :  { %4458 = vmatprep.subr.bf16.mxu0 %v5051_v9  ;;  %4442 = vmatprep.mubr.bf16.mxu1 %v4237_v47  ;;  %v4183_v47 = vcombine.low %v2802_v4, %v6388_v61 }
 0x2bc   :  { %4492 = vmatpush3.bf16.msra.mxu1 %v5049_v2 }
 0x2bd   :  { %4411 = vmatmul.mubr.bf16.gmra.mrb[56].mxu0 %v6068_v49  ;;  %4485 = vmatprep.subr.bf16.mxu1 %v5050_v20 }
 0x2be   :  { %4414 = vmatprep.mubr.bf16.mxu0 %v6077_v16  ;;  %4459 = vmatpush3.bf16.msra.mxu0 %v5051_v9 }
 0x2bf   :  { %4460 = vmatprep.subr.bf16.mxu0 %v5052_v51 }
 0x2c0   :  { %4493 = vmatpush3.bf16.msra.mxu1 %v5050_v20 }
 0x2c1   :  { %4486 = vmatprep.subr.bf16.mxu1 %v5051_v9 }
 0x2c2   :  { %4461 = vmatpush3.bf16.msra.mxu0 %v5052_v51  ;;  %4443 = vmatmul.mubr.bf16.gmra.mrb[56].mxu1 %v4238_v24 }
 0x2c3   :  { %4462 = vmatprep.subr.bf16.mxu0 %v5053_v54  ;;  %4446 = vmatprep.mubr.bf16.mxu1 %v4239_v19 }
 0x2c4   :  { %4494 = vmatpush3.bf16.msra.mxu1 %v5051_v9 }
 0x2c5   :  { %4415 = vmatmul.mubr.bf16.gmra.mrb[60].mxu0 %v4241_v39  ;;  %4487 = vmatprep.subr.bf16.mxu1 %v5052_v51 }
 0x2c6   :  { %4463 = vmatpush3.bf16.msra.mxu0 %v5053_v54  ;;  %4466 = vmatprep.mubr.bf16.mxu0 %v5991_v22  ;;  %v666_v22 = vsub.s32 2, %v5917_v45 }
 0x2c7   :  { %4464 = vmatprep.subr.bf16.mxu0 %v5054_v21 }
 0x2c8   :  { %4495 = vmatpush3.bf16.msra.mxu1 %v5052_v51  ;;  %v6109_v61 = vrot.slane %v5920_v48, %v666_v22 }
 0x2c9   :  { %4488 = vmatprep.subr.bf16.mxu1 %v5053_v54 }
 0x2ca   :  { %4465 = vmatpush3.bf16.msra.mxu0 %v5054_v21  ;;  %4447 = vmatmul.mubr.bf16.gmra.mrb[60].mxu1 %v4183_v47  ;;  %v4533_v36 = vadd.f32 %v5939_v46, %v6109_v61  ;;  %v4534_v2 = vadd.f32 %v5945_v14, %v6109_v61  ;;  %v4537_v32 = vadd.f32 %v5967_v26, %v6109_v61 }
 0x2cb   :  { %4474 = vmatprep.mubr.bf16.mxu1 %v6068_v49  ;;  %v4532_v49 = vadd.f32 %v5935_v60, %v6109_v61  ;;  %v4535_v51 = vadd.f32 %v5949_v17, %v6109_v61  ;;  %v4540_v17 = vadd.f32 %v5999_v15, %v6109_v61 }
 0x2cc   :  { %4496 = vmatpush3.bf16.msra.mxu1 %v5053_v54 }
 0x2cd   :  { %4467 = vmatmul.mubr.bf16.vlgmr.msra.gmra.mrb[64].mxu0 %v6008_v18  ;;  %4489 = vmatprep.subr.bf16.mxu1 %v5054_v21  ;;  %v4530_v18 = vadd.f32 %v5925_v53, %v6109_v61 }
 0x2ce   :  { %4470 = vmatprep.mubr.bf16.mxu0 %v6032_v7 }
 0x2d0   :  { %4497 = vmatpush3.bf16.msra.mxu1 %v5054_v21 }
 0x2d3   :  { %4475 = vmatmul.mubr.bf16.vlgmr.msra.gmra.mrb[64].mxu1 %v6077_v16 }
 0x2d4   :  { %4478 = vmatprep.mubr.bf16.mxu1 %v4241_v39 }
 0x2d5   :  { %4471 = vmatmul.mubr.bf16.gmra.mrb[68].mxu0 %v5435_v1 }
 0x2db   :  { %4479 = vmatmul.mubr.bf16.gmra.mrb[68].mxu1 %v5435_v1  ;;  %v4531_v1 = vadd.f32 %v5929_v31, %v6109_v61  ;;  %v4536_v31 = vadd.f32 %v5961_v44, %v6109_v61 }
 0x347   :  { %v4340_v7 = vpop.f32.mrb[32].mxu0 }
 0x348   :  { %v3002_v24 = vadd.f32 %v4532_v49, %v4340_v7  ;;  %v2937_v39 = vpop.f32.mrb[33].mxu0 }
 0x349   :  { %v3000_v13 = vadd.f32 %v4530_v18, %v2937_v39  ;;  %v4341_v55 = vpop.f32.mrb[34].mxu0  ;;  %v4538_v39 = vadd.f32 %v5981_v52, %v6109_v61 }
 0x34a   :  { %v3003_v16 = vadd.f32 %v4533_v36, %v4341_v55  ;;  %v2940_v11 = vpop.f32.mrb[35].mxu0 }
 0x34b   :  { %v3001_v34 = vadd.f32 %v4531_v1, %v2940_v11  ;;  %v4539_v11 = vadd.f32 %v5988_v23, %v6109_v61  ;;  %v4544_v23 = vadd.f32 %v6043_v29, %v6109_v61 }
 0x34d   :  { %v4372_v42 = vpop.f32.mrb[32].mxu1 }
 0x34e   :  { %v6119_v0 = vadd.f32 %v4372_v42, %v3002_v24  ;;  %v3135_v60 = vpop.f32.mrb[33].mxu1 }
 0x34f   :  { %v6121_v19 = vadd.f32 %v3135_v60, %v3000_v13  ;;  %v4373_v53 = vpop.f32.mrb[34].mxu1  ;;  %v4541_v13 = vadd.f32 %v6005_v10, %v6109_v61 }
 0x350   :  { %v6123_v41 = vadd.f32 %v4373_v53, %v3003_v16  ;;  %v3138_v46 = vpop.f32.mrb[35].mxu1 }
 0x351   :  { %v6125_v30 = vadd.f32 %v3138_v46, %v3001_v34 }
 0x358   :  { %v4344_v20 = vpop.f32.mrb[36].mxu0 }
 0x359   :  { %v3006_v9 = vadd.f32 %v4536_v31, %v4344_v20  ;;  %v2953_v37 = vpop.f32.mrb[37].mxu0 }
 0x35a   :  { %v3004_v54 = vadd.f32 %v4534_v2, %v2953_v37  ;;  %v4345_v21 = vpop.f32.mrb[38].mxu0  ;;  %v658_v37 = vsub.s32 0, %v5917_v45 }
 0x35b   :  { %v3007_v4 = vadd.f32 %v4537_v32, %v4345_v21  ;;  %v2956_v47 = vpop.f32.mrb[39].mxu0  ;;  %v4545_v21 = vadd.f32 %v6050_v57, %v6109_v61 }
 0x35c   :  { %v3005_v22 = vadd.f32 %v4535_v51, %v2956_v47  ;;  %v4542_v51 = vadd.f32 %v6019_v40, %v6109_v61 }
 0x35d   :  { %v4376_v49 = vpop.f32.mrb[36].mxu1 }
 0x35e   :  { %v6135_v18 = vadd.f32 %v4376_v49, %v3006_v9  ;;  %v3151_v44 = vpop.f32.mrb[37].mxu1 }
 0x35f   :  { %v6137_v7 = vadd.f32 %v3151_v44, %v3004_v54  ;;  %v4377_v14 = vpop.f32.mrb[38].mxu1 }
 0x360   :  { %v6139_v36 = vadd.f32 %v4377_v14, %v3007_v4  ;;  %v3154_v26 = vpop.f32.mrb[39].mxu1  ;;  %v6169_v14 = vrot.slane %v5920_v48, %v658_v37 }
 0x361   :  { %v6141_v24 = vadd.f32 %v3154_v26, %v3005_v22  ;;  %v4543_v22 = vadd.f32 %v6028_v6, %v6109_v61 }
 0x362   :  { %v4498_v40 = vadd.f32 %v5927_v56, %v6169_v14  ;;  %v4502_v48 = vadd.f32 %v5937_v35, %v6169_v14 }
 0x368   :  { %v4348_v1 = vpop.f32.mrb[40].mxu0 }
 0x369   :  { %v3010_v55 = vadd.f32 %v4540_v17, %v4348_v1  ;;  %v2969_v16 = vpop.f32.mrb[41].mxu0  ;;  %v4500_v1 = vadd.f32 %v5932_v50, %v6169_v14  ;;  %v4504_v50 = vadd.f32 %v5942_v62, %v6169_v14 }
 0x36a   :  { %v3008_v34 = vadd.f32 %v4538_v39, %v2969_v16  ;;  %v4349_v42 = vpop.f32.mrb[42].mxu0 }
 0x36b   :  { %v3011_v60 = vadd.f32 %v4541_v13, %v4349_v42  ;;  %v2972_v53 = vpop.f32.mrb[43].mxu0 }
 0x36c   :  { %v3009_v46 = vadd.f32 %v4539_v11, %v2972_v53  ;;  %v2643_v53 = vmul.f32 0.5, %v4498_v40  ;;  %v4514_v40 = vadd.f32 %v5986_v25, %v6169_v14 }
 0x36d   :  { %v4380_v31 = vpop.f32.mrb[40].mxu1 }
 0x36e   :  { %v6151_v2 = vadd.f32 %v4380_v31, %v3010_v55  ;;  %v3167_v15 = vpop.f32.mrb[41].mxu1  ;;  %5087 = vtanh.f32 %v2643_v53 }
 0x36f   :  { %v6153_v20 = vadd.f32 %v3167_v15, %v3008_v34  ;;  %v4381_v52 = vpop.f32.mrb[42].mxu1  ;;  %v2644_v15 = vmul.f32 0.5, %v4500_v1 }
 0x370   :  { %v6155_v32 = vadd.f32 %v4381_v52, %v3011_v60  ;;  %v3170_v10 = vpop.f32.mrb[43].mxu1  ;;  %v2645_v52 = vmul.f32 0.5, %v4502_v48 }
 0x371   :  { %v6157_v9 = vadd.f32 %v3170_v10, %v3009_v46  ;;  %5089 = vtanh.f32 %v2644_v15 }
 0x372   :  { %5091 = vtanh.f32 %v2645_v52 }
 0x378   :  { %v4352_v54 = vpop.f32.mrb[44].mxu0 }
 0x379   :  { %v3014_v4 = vadd.f32 %v4544_v23, %v4352_v54  ;;  %v2985_v47 = vpop.f32.mrb[45].mxu0 }
 0x37a   :  { %v3012_v49 = vadd.f32 %v4542_v51, %v2985_v47  ;;  %v4353_v44 = vpop.f32.mrb[46].mxu0 }
 0x37b   :  { %v3015_v45 = vadd.f32 %v4545_v21, %v4353_v44  ;;  %v2988_v26 = vpop.f32.mrb[47].mxu0 }
 0x37c   :  { %v3013_v29 = vadd.f32 %v4543_v22, %v2988_v26 }
 0x37d   :  { %v4384_v17 = vpop.f32.mrb[44].mxu1 }
 0x37e   :  { %v6173_v39 = vadd.f32 %v4384_v17, %v3014_v4  ;;  %v3183_v57 = vpop.f32.mrb[45].mxu1 }
 0x37f   :  { %v6177_v13 = vadd.f32 %v3183_v57, %v3012_v49  ;;  %v4385_v6 = vpop.f32.mrb[46].mxu1  ;;  %v4510_v49 = vadd.f32 %v5963_v43, %v6169_v14  ;;  %v4518_v43 = vadd.f32 %v6003_v38, %v6169_v14 }
 0x380   :  { %v4404_v61 = vpop.f32.mrb[48].mxu0  ;;  %v6181_v55 = vadd.f32 %v4385_v6, %v3015_v45  ;;  %v3186_v11 = vpop.f32.mrb[47].mxu1 }
 0x381   :  { %v3386_v16 = vadd.f32 %v4404_v61, %v6119_v0  ;;  %v3321_v34 = vpop.f32.mrb[49].mxu0  ;;  %v6184_v56 = vadd.f32 %v3186_v11, %v3013_v29  ;;  %v2646_v0 = vmul.f32 0.5, %v4504_v50  ;;  %v4508_v29 = vadd.f32 %v5952_v12, %v6169_v14  ;;  %v5088_v61 = vpop.eup %5087 }
 0x382   :  { %v3384_v42 = vadd.f32 %v3321_v34, %v6121_v19  ;;  %v4405_v60 = vpop.f32.mrb[50].mxu0  ;;  %v5090_v34 = vpop.eup %5089 }
 0x383   :  { %v3387_v46 = vadd.f32 %v4405_v60, %v6123_v41  ;;  %v3324_v31 = vpop.f32.mrb[51].mxu0  ;;  %5093 = vtanh.f32 %v2646_v0  ;;  %v2648_v25 = vmul.f32 0.5, %v4508_v29  ;;  %v5092_v50 = vpop.eup %5091  ;;  %v2675_v0 = vmul.f32 0.5, %v5088_v61 }
 0x384   :  { %v3385_v35 = vadd.f32 %v3324_v31, %v6125_v30 }
 0x385   :  { %v4436_v10 = vpop.f32.mrb[48].mxu1 }
 0x386   :  { %v6191_v37 = vadd.f32 %v4436_v10, %v3386_v16  ;;  %v3503_v23 = vpop.f32.mrb[49].mxu1 }
 0x387   :  { %v6193_v19 = vadd.f32 %v3503_v23, %v3384_v42  ;;  %v4437_v54 = vpop.f32.mrb[50].mxu1  ;;  %v4512_v42 = vadd.f32 %v5971_v33, %v6169_v14  ;;  %v4520_v33 = vadd.f32 %v6011_v59, %v6169_v14  ;;  %v2677_v23 = vmul.f32 0.5, %v5092_v50 }
 0x388   :  { %v4408_v51 = vpop.f32.mrb[52].mxu0  ;;  %v6196_v41 = vadd.f32 %v4437_v54, %v3387_v46  ;;  %v3506_v4 = vpop.f32.mrb[51].mxu1  ;;  %v2651_v46 = vmul.f32 0.5, %v4514_v40 }
 0x389   :  { %v3390_v62 = vadd.f32 %v4408_v51, %v6135_v18  ;;  %v3337_v21 = vpop.f32.mrb[53].mxu0  ;;  %v6199_v47 = vadd.f32 %v3506_v4, %v3385_v35  ;;  %v4506_v18 = vadd.f32 %v5947_v5, %v6169_v14  ;;  %v2653_v35 = vmul.f32 0.5, %v4518_v43 }
 0x38a   :  { %v3388_v30 = vadd.f32 %v3337_v21, %v6137_v7  ;;  %v4409_v22 = vpop.f32.mrb[54].mxu0  ;;  %v2649_v7 = vmul.f32 0.5, %v4510_v49  ;;  %v2650_v51 = vmul.f32 0.5, %v4512_v42  ;;  %v4524_v4 = vadd.f32 %v6035_v28, %v6169_v14 }
 0x38b   :  { %v3391_v44 = vadd.f32 %v4409_v22, %v6139_v36  ;;  %v3340_v45 = vpop.f32.mrb[55].mxu0  ;;  %v2647_v5 = vmul.f32 0.5, %v4506_v18  ;;  %v2654_v49 = vmul.f32 0.5, %v4520_v33 }
 0x38c   :  { %v3389_v26 = vadd.f32 %v3340_v45, %v6141_v24  ;;  %5095 = vtanh.f32 %v2649_v7  ;;  %v2656_v61 = vmul.f32 0.5, %v4524_v4 }
 0x38d   :  { %v4440_v17 = vpop.f32.mrb[52].mxu1  ;;  %v5094_v10 = vpop.eup %5093  ;;  %5097 = vtanh.f32 %v2647_v5 }
 0x38e   :  { %v6211_v57 = vadd.f32 %v4440_v17, %v3390_v62  ;;  %v3519_v1 = vpop.f32.mrb[53].mxu1  ;;  %5099 = vtanh.f32 %v2648_v25  ;;  %v4528_v17 = vadd.f32 %v6057_v3, %v6169_v14 }
 0x38f   :  { %v6215_v36 = vadd.f32 %v3519_v1, %v3388_v30  ;;  %v4441_v6 = vpop.f32.mrb[54].mxu1  ;;  %5101 = vtanh.f32 %v2651_v46  ;;  %v6249_v1 = vadd.f32 0.5, %v2675_v0 }
 0x390   :  { %v4412_v24 = vpop.f32.mrb[56].mxu0  ;;  %v6218_v12 = vadd.f32 %v4441_v6, %v3391_v44  ;;  %v3522_v11 = vpop.f32.mrb[55].mxu1  ;;  %5103 = vtanh.f32 %v2653_v35  ;;  %v6392_v44 = vld [vmem:[#allocation23_spill] sm:$0xff] }
 0x391   :  { %v3394_v48 = vadd.f32 %v4412_v24, %v6151_v2  ;;  %v3353_v16 = vpop.f32.mrb[57].mxu0  ;;  %v6223_v38 = vadd.f32 %v3522_v11, %v3389_v26  ;;  %v4516_v2 = vadd.f32 %v5994_v27, %v6169_v14  ;;  %v4522_v27 = vadd.f32 %v6026_v8, %v6169_v14 }
 0x392   :  { %v3392_v60 = vadd.f32 %v3353_v16, %v6153_v20  ;;  %v4413_v53 = vpop.f32.mrb[58].mxu0  ;;  %v2676_v20 = vmul.f32 0.5, %v5090_v34  ;;  %v4526_v45 = vadd.f32 %v6392_v44, %v6169_v14  ;;  %5105 = vtanh.f32 %v2650_v51  ;;  %v6393_v44 = vld [vmem:[#allocation16_spill] sm:$0xff] }
 0x393   :  { %v3395_v31 = vadd.f32 %v4413_v53, %v6155_v32  ;;  %v3356_v15 = vpop.f32.mrb[59].mxu0  ;;  %v2652_v62 = vmul.f32 0.5, %v4516_v2  ;;  %v2655_v43 = vmul.f32 0.5, %v4522_v27  ;;  %v6255_v16 = vadd.f32 0.5, %v2677_v23 }
 0x394   :  { %v3393_v52 = vadd.f32 %v3356_v15, %v6157_v9  ;;  %v2678_v9 = vmul.f32 0.5, %v5094_v10  ;;  %v6252_v6 = vadd.f32 0.5, %v2676_v20  ;;  %v2657_v3 = vmul.f32 0.5, %v4526_v45 }
 0x395   :  { %v4444_v54 = vpop.f32.mrb[56].mxu1  ;;  %5107 = vtanh.f32 %v2652_v62  ;;  %v3776_v25 = vsub.f32 1.0, %v6249_v1  ;;  %v3778_v15 = vsub.f32 1.0, %v6255_v16 }
 0x396   :  { %v6233_v32 = vadd.f32 %v4444_v54, %v3394_v48  ;;  %v3535_v21 = vpop.f32.mrb[57].mxu1  ;;  %v5096_v48 = vpop.eup %5095  ;;  %5109 = vtanh.f32 %v2654_v49  ;;  %v6257_v14 = vadd.f32 0.5, %v2678_v9  ;;  %v3777_v53 = vsub.f32 1.0, %v6252_v6 }
 0x397   :  { %v6237_v30 = vadd.f32 %v3535_v21, %v3392_v60  ;;  %v4445_v22 = vpop.f32.mrb[58].mxu1  ;;  %v5098_v34 = vpop.eup %5097  ;;  %5111 = vtanh.f32 %v2655_v43  ;;  %v6278_v45 = vmul.f32 %v6393_v44, %v3776_v25 }
 0x398   :  { %v4416_v59 = vpop.f32.mrb[60].mxu0  ;;  %v6242_v18 = vadd.f32 %v4445_v22, %v3395_v31  ;;  %v3538_v29 = vpop.f32.mrb[59].mxu1  ;;  %5113 = vtanh.f32 %v2656_v61  ;;  %v3779_v20 = vsub.f32 1.0, %v6257_v14  ;;  %v2679_v62 = vmul.f32 0.5, %v5098_v34 }
 0x399   :  { %v3398_v26 = vadd.f32 %v4416_v59, %v6173_v39  ;;  %v3369_v8 = vpop.f32.mrb[61].mxu0  ;;  %v6247_v7 = vadd.f32 %v3538_v29, %v3393_v52  ;;  %v5100_v60 = vpop.eup %5099  ;;  %5115 = vtanh.f32 %v2657_v3  ;;  %v6395_v29 = vld [vmem:[#allocation18_spill] sm:$0xff] }
 0x39a   :  { %v3396_v28 = vadd.f32 %v3369_v8, %v6177_v13  ;;  %v4417_v40 = vpop.f32.mrb[62].mxu0  ;;  %v2658_v13 = vmul.f32 0.5, %v4528_v17  ;;  %v5102_v31 = vpop.eup %5101  ;;  %v2680_v27 = vmul.f32 0.5, %v5100_v60  ;;  %v3794_v17 = vmul.f32 %v6395_v29, %v3778_v15 }
 0x39b   :  { %v3399_v24 = vadd.f32 %v4417_v40, %v6181_v55  ;;  %v3372_v39 = vpop.f32.mrb[63].mxu0  ;;  %v5104_v33 = vpop.eup %5103 }
 0x39c   :  { %v3397_v5 = vadd.f32 %v3372_v39, %v6184_v56  ;;  %v2681_v56 = vmul.f32 0.5, %v5096_v48  ;;  %5117 = vtanh.f32 %v2658_v13  ;;  %v5106_v4 = vpop.eup %5105 }
 0x39d   :  { %v4448_v11 = vpop.f32.mrb[60].mxu1  ;;  %v2682_v39 = vmul.f32 0.5, %v5106_v4 }
 0x39e   :  { %v6260_v55 = vadd.f32 %v4448_v11, %v3398_v26  ;;  %v3551_v42 = vpop.f32.mrb[61].mxu1  ;;  %v6274_v59 = vadd.f32 0.5, %v2681_v56  ;;  %v2685_v26 = vmul.f32 0.5, %v5104_v33 }
 0x39f   :  { %v6263_v50 = vadd.f32 %v3551_v42, %v3396_v28  ;;  %v4449_v46 = vpop.f32.mrb[62].mxu1  ;;  %v5108_v49 = vpop.eup %5107 }
 0x3a0   :  { %v4468_v2 = vpop.f32.mrb[64].mxu0  ;;  %v6266_v35 = vadd.f32 %v4449_v46, %v3399_v24  ;;  %v3554_v10 = vpop.f32.mrb[63].mxu1  ;;  %v6287_v24 = vadd.f32 0.5, %v2679_v62  ;;  %v3782_v48 = vsub.f32 1.0, %v6274_v59  ;;  %v2684_v13 = vmul.f32 0.5, %v5108_v49 }
 0x3a1   :  { %v3746_v52 = vadd.f32 %v4468_v2, %v6191_v37  ;;  %v3681_v0 = vpop.f32.mrb[65].mxu0  ;;  %v6270_v23 = vadd.f32 %v3554_v10, %v3397_v5  ;;  %v2683_v37 = vmul.f32 0.5, %v5102_v31  ;;  %v5110_v43 = vpop.eup %5109  ;;  %v6296_v60 = vadd.f32 0.5, %v2685_v26 }
 0x3a2   :  { %v3744_v51 = vadd.f32 %v3681_v0, %v6193_v19  ;;  %v4469_v54 = vpop.f32.mrb[66].mxu0  ;;  %v6394_v19 = vld [vmem:[#allocation17_spill] sm:$0xff]  ;;  %v5112_v42 = vpop.eup %5111  ;;  %v2686_v31 = vmul.f32 0.5, %v5110_v43  ;;  %v3780_v0 = vsub.f32 1.0, %v6287_v24  ;;  %v6308_v62 = vadd.f32 0.5, %v2682_v39 }
 0x3a3   :  { %5119 = vtanh.f32 %v3746_v52  ;;  %v3747_v21 = vadd.f32 %v4469_v54, %v6196_v41  ;;  %v3684_v9 = vpop.f32.mrb[67].mxu0  ;;  %v6281_v8 = vmul.f32 %v6394_v19, %v3777_v53  ;;  %v6396_v41 = vld [vmem:[#allocation19_spill] sm:$0xff]  ;;  %v6293_v3 = vadd.f32 0.5, %v2683_v37  ;;  %v5114_v2 = vpop.eup %5113 }
 0x3a4   :  { %5121 = vtanh.f32 %v3744_v51  ;;  %v3745_v22 = vadd.f32 %v3684_v9, %v6199_v47  ;;  %v6285_v28 = vmul.f32 %v6396_v41, %v3779_v20  ;;  %v6289_v47 = vadd.f32 0.5, %v2680_v27  ;;  %v5116_v10 = vpop.eup %5115  ;;  %v6397_v51 = vld [vmem:[#allocation20_spill] sm:$0xff] }
 0x3a5   :  { %5123 = vtanh.f32 %v3747_v21  ;;  %v6306_v54 = vmul.f32 %v6397_v51, %v3782_v48  ;;  %v3784_v27 = vsub.f32 1.0, %v6293_v3  ;;  %v6312_v21 = vadd.f32 0.5, %v2684_v13 }
 0x3a6   :  { %5125 = vtanh.f32 %v3745_v22  ;;  %v4476_v40 = vpop.f32.mrb[64].mxu1  ;;  %v3781_v33 = vsub.f32 1.0, %v6289_v47  ;;  %v3786_v9 = vsub.f32 1.0, %v6296_v60  ;;  %v2687_v37 = vmul.f32 0.5, %v5112_v42 }
 0x3a7   :  { %v3754_v61 = vadd.f32 %v4476_v40, %v6233_v32  ;;  %v3713_v5 = vpop.f32.mrb[65].mxu1  ;;  %v2689_v26 = vmul.f32 0.5, %v5116_v10  ;;  %v6400_v10 = vld [vmem:[#allocation25_spill] sm:$0xff] }
 0x3a8   :  { %v3752_v11 = vadd.f32 %v3713_v5, %v6237_v30  ;;  %v4472_v34 = vpop.f32.mrb[68].mxu0  ;;  %v4477_v25 = vpop.f32.mrb[66].mxu1 }
 0x3a9   :  { %5127 = vtanh.f32 %v3754_v61  ;;  %v3750_v53 = vadd.f32 %v4472_v34, %v6211_v57  ;;  %v3755_v56 = vadd.f32 %v4477_v25, %v6242_v18  ;;  %v3697_v46 = vpop.f32.mrb[69].mxu0  ;;  %v3716_v32 = vpop.f32.mrb[67].mxu1  ;;  %v2688_v34 = vmul.f32 0.5, %v5114_v2 }
 0x3aa   :  { %5129 = vtanh.f32 %v3752_v11  ;;  %v3748_v15 = vadd.f32 %v3697_v46, %v6215_v36  ;;  %v3753_v52 = vadd.f32 %v3716_v32, %v6247_v7  ;;  %v4473_v30 = vpop.f32.mrb[70].mxu0  ;;  %v5118_v18 = vpop.eup %5117  ;;  %v2705_v42 = vadd.f32 0.5, %v2689_v26  ;;  %v5166_v26 = vld [vmem:[#allocation2 + $0x38] sm:$0xff] }
 0x3ab   :  { %5131 = vtanh.f32 %v3750_v53  ;;  %v3751_v57 = vadd.f32 %v4473_v30, %v6218_v12  ;;  %v3700_v20 = vpop.f32.mrb[71].mxu0  ;;  %v2702_v12 = vadd.f32 0.5, %v2686_v31  ;;  %v2690_v13 = vmul.f32 0.5, %v5118_v18 }
 0x3ac   :  { %5133 = vtanh.f32 %v3755_v56  ;;  %v3749_v36 = vadd.f32 %v3700_v20, %v6223_v38  ;;  %v2703_v46 = vadd.f32 0.5, %v2687_v37  ;;  %v6401_v37 = vld [vmem:[#allocation22_spill] sm:$0xff] }
 0x3ad   :  { %v5120_v7 = vpop.eup %5119  ;;  %5135 = vtanh.f32 %v3748_v15  ;;  %v3787_v11 = vsub.f32 1.0, %v2702_v12  ;;  %v2706_v31 = vadd.f32 0.5, %v2690_v13 }
 0x3ae   :  { %v5122_v4 = vpop.eup %5121  ;;  %v3810_v22 = vmul.f32 %v5120_v7, %v6255_v16  ;;  %5137 = vtanh.f32 %v3753_v52  ;;  %v4480_v49 = vpop.f32.mrb[68].mxu1 }
 0x3af   :  { %v5124_v44 = vpop.eup %5123  ;;  %v3808_v19 = vmul.f32 %v5122_v4, %v6249_v1  ;;  %5139 = vtanh.f32 %v3751_v57  ;;  %v3758_v38 = vadd.f32 %v4480_v49, %v6260_v55  ;;  %v3729_v29 = vpop.f32.mrb[69].mxu1  ;;  %v2704_v57 = vadd.f32 0.5, %v2688_v34 }
 0x3b0   :  { %v5126_v41 = vpop.eup %5125  ;;  %v3826_v40 = vadd.f32 %v3810_v22, %v3794_v17  ;;  %v3811_v43 = vmul.f32 %v5124_v44, %v6257_v14  ;;  %5141 = vtanh.f32 %v3749_v36  ;;  %v3756_v39 = vadd.f32 %v3729_v29, %v6263_v50  ;;  %v4481_v61 = vpop.f32.mrb[70].mxu1  ;;  %v5165_v36 = vld [vmem:[#allocation2 + $0x20] sm:$0xff] }
 0x3b1   :  { %v3824_v16 = vadd.f32 %v3808_v19, %v6278_v45  ;;  %v3809_v5 = vmul.f32 %v5126_v41, %v6252_v6  ;;  %5143 = vtanh.f32 %v3758_v38  ;;  %v3759_v48 = vadd.f32 %v4481_v61, %v6266_v35  ;;  %v3732_v1 = vpop.f32.mrb[71].mxu1  ;;  %v6398_v6 = vld [vmem:[#allocation24_spill] sm:$0xff] }
 0x3b2   :  { %3842 = vst [vmem:[#allocation11 + $0x10] sm:$0xff] %v3826_v40  ;;  %v3827_v55 = vadd.f32 %v3811_v43, %v6285_v28  ;;  %5145 = vtanh.f32 %v3756_v39  ;;  %v3757_v17 = vadd.f32 %v3732_v1, %v6270_v23  ;;  %v3802_v25 = vmul.f32 %v6398_v6, %v3786_v9  ;;  %v6399_v28 = vld [vmem:[#allocation21_spill] sm:$0xff] }
 0x3b3   :  { %v5128_v14 = vpop.eup %5127  ;;  %3840 = vst [vmem:[#allocation11] sm:$0xff] %v3824_v16  ;;  %v3825_v50 = vadd.f32 %v3809_v5, %v6281_v8  ;;  %5147 = vtanh.f32 %v3759_v48  ;;  %v3800_v56 = vmul.f32 %v6399_v28, %v3784_v27  ;;  %v3785_v23 = vsub.f32 1.0, %v6312_v21 }
 0x3b4   :  { %v5130_v45 = vpop.eup %5129  ;;  %3843 = vst [vmem:[#allocation11 + $0x18] sm:$0xff] %v3827_v55  ;;  %v3818_v35 = vmul.f32 %v5128_v14, %v6296_v60  ;;  %5149 = vtanh.f32 %v3757_v17  ;;  %v3783_v8 = vsub.f32 1.0, %v6308_v62  ;;  %v3803_v60 = vmul.f32 %v6400_v10, %v3787_v11  ;;  %v5168_v17 = vld [vmem:[#allocation2 + $0x78] sm:$0xff] }
 0x3b5   :  { %v5132_v53 = vpop.eup %5131  ;;  %3841 = vst [vmem:[#allocation11 + $0x8] sm:$0xff] %v3825_v50  ;;  %v3816_v32 = vmul.f32 %v5130_v45, %v6293_v3  ;;  %v3796_v7 = vmul.f32 %v5165_v36, %v3780_v0  ;;  %v3790_v27 = vsub.f32 1.0, %v2705_v42  ;;  %v3788_v22 = vsub.f32 1.0, %v2703_v46 }
 0x3b6   :  { %v5134_v2 = vpop.eup %5133  ;;  %v3834_v15 = vadd.f32 %v3818_v35, %v3802_v25  ;;  %v3814_v52 = vmul.f32 %v5132_v53, %v6274_v59  ;;  %v3801_v59 = vmul.f32 %v6401_v37, %v3785_v23  ;;  %v3799_v19 = vmul.f32 %v5166_v26, %v3783_v8 }
 0x3b7   :  { %v5136_v30 = vpop.eup %5135  ;;  %v3832_v20 = vadd.f32 %v3816_v32, %v3800_v56  ;;  %v3819_v18 = vmul.f32 %v5134_v2, %v2702_v12  ;;  %v3791_v38 = vsub.f32 1.0, %v2706_v31  ;;  %v3789_v40 = vsub.f32 1.0, %v2704_v57 }
 0x3b8   :  { %v5138_v51 = vpop.eup %5137  ;;  %3850 = vst [vmem:[#allocation11 + $0x50] sm:$0xff] %v3834_v15  ;;  %v3830_v3 = vadd.f32 %v3814_v52, %v6306_v54  ;;  %v3812_v9 = vmul.f32 %v5136_v30, %v6287_v24  ;;  %v5167_v54 = vld [vmem:[#allocation2 + $0x28] sm:$0xff]  ;;  %v3804_v1 = vmul.f32 %v6071_v63, %v3788_v22 }
 0x3b9   :  { %v5140_v4 = vpop.eup %5139  ;;  %3848 = vst [vmem:[#allocation11 + $0x40] sm:$0xff] %v3832_v20  ;;  %v3835_v49 = vadd.f32 %v3819_v18, %v3803_v60  ;;  %v3817_v44 = vmul.f32 %v5138_v51, %v6312_v21  ;;  %v3797_v24 = vmul.f32 %v5167_v54, %v3781_v33  ;;  %v3806_v21 = vmul.f32 %v6081_v58, %v3790_v27 }
 0x3ba   :  { %v5142_v12 = vpop.eup %5141  ;;  %3846 = vst [vmem:[#allocation11 + $0x30] sm:$0xff] %v3830_v3  ;;  %v3828_v0 = vadd.f32 %v3812_v9, %v3796_v7  ;;  %v3815_v29 = vmul.f32 %v5140_v4, %v6308_v62  ;;  %v3807_v33 = vmul.f32 %v5168_v17, %v3791_v38 }
 0x3bb   :  { %v5144_v41 = vpop.eup %5143  ;;  %3851 = vst [vmem:[#allocation11 + $0x58] sm:$0xff] %v3835_v49  ;;  %v3833_v43 = vadd.f32 %v3817_v44, %v3801_v59  ;;  %v3813_v39 = vmul.f32 %v5142_v12, %v6289_v47  ;;  %v6402_v47 = vld [vmem:[#allocation26_spill] sm:$0xff] }
 0x3bc   :  { %v5146_v61 = vpop.eup %5145  ;;  %3844 = vst [vmem:[#allocation11 + $0x20] sm:$0xff] %v3828_v0  ;;  %v3831_v16 = vadd.f32 %v3815_v29, %v3799_v19  ;;  %v3822_v5 = vmul.f32 %v5144_v41, %v2705_v42  ;;  %v3805_v34 = vmul.f32 %v6402_v47, %v3789_v40 }
 0x3bd   :  { %v5148_v48 = vpop.eup %5147  ;;  %3849 = vst [vmem:[#allocation11 + $0x48] sm:$0xff] %v3833_v43  ;;  %v3829_v62 = vadd.f32 %v3813_v39, %v3797_v24  ;;  %v3820_v13 = vmul.f32 %v5146_v61, %v2703_v46 }
 0x3be   :  { %v5150_v55 = vpop.eup %5149  ;;  %3847 = vst [vmem:[#allocation11 + $0x38] sm:$0xff] %v3831_v16  ;;  %v3838_v14 = vadd.f32 %v3822_v5, %v3806_v21  ;;  %v3823_v11 = vmul.f32 %v5148_v48, %v2706_v31 }
 0x3bf   :  { %3845 = vst [vmem:[#allocation11 + $0x28] sm:$0xff] %v3829_v62  ;;  %v3836_v58 = vadd.f32 %v3820_v13, %v3804_v1  ;;  %v3821_v50 = vmul.f32 %v5150_v55, %v2704_v57 }
 0x3c0   :  { %3854 = vst [vmem:[#allocation11 + $0x70] sm:$0xff] %v3838_v14  ;;  %v3839_v45 = vadd.f32 %v3823_v11, %v3807_v33 }
 0x3c1   :  { %3852 = vst [vmem:[#allocation11 + $0x60] sm:$0xff] %v3836_v58  ;;  %v3837_v63 = vadd.f32 %v3821_v50, %v3805_v34 }
 0x3c2   :  { %3855 = vst [vmem:[#allocation11 + $0x78] sm:$0xff] %v3839_v45 }
 0x3c3   :  { %3853 = vst [vmem:[#allocation11 + $0x68] sm:$0xff] %v3837_v63 }
 0x3c4   :  { %5290 = shalt.err (!%p5287_p2)
}
 0x3c5   :  { %s5291_s12 = scalar_lea.hbm %s6367_s5, 2048 }
 0x3c6   :  { %p5292_p3 = scmp.ne.s32.totalorder %s6367_s5, %s5291_s12  ;;  %p5295_p4 = scmp.lt.u32.totalorder %s5291_s12, %s6367_s5 }
 0x3c8   :  { %p5297_p5 = pnand %p5295_p4, %p5292_p3 }
 0x3ca   :  { %5300 = shalt.err (!%p5297_p5)
}
 0x3cb   :  { %3867 = dma.vmem_to_hbm [thread:$0]  %s3862_s21, 2048, %s6367_s5, [#allocation4], %s5311_s30, %s5311_s30, %s5312_s6  }
 0x3cc   :  { %5307 = dma.done.wait [#allocation4], 2048  }
 0x3cd   :  { %5308 = vsyncadd [#allocation4], 4294965248 }
 0x3ce   :  { %3871 = vsyncpa [#allocation3], 1 }
 0x3cf   :  { %3872 = vsyncpa [#allocation6], 1 }
 0x3d0   :  { %3873 = vsyncpa [#allocation9], 1 }
 0x3d1   :  { %3874 = vsyncpa [#allocation4], 1 }

// kernel: sepconv_gru.2
= control target key start
LH: loop header
LB: loop body
LE: loop exit
PB: predicated region body
PF: predicated region fallthrough
CT: control target
= control target key end

     0   :  { %10 = vsyncpa [#allocation3], 0  ;;  %s9284_s0 = inlined_call_operand.hbm [shape: f32[2,8,8,128], index: 0, kind: input, shape index: {}]   ;;  %s9285_s1 = inlined_call_operand.hbm [shape: f32[2,8,8,32], index: 1, kind: input, shape index: {}]   ;;  %s9286_s2 = inlined_call_operand.hbm [shape: bf16[5,160,384], index: 2, kind: input, shape index: {}]   ;;  %s9287_s3 = inlined_call_operand.hbm [shape: bf16[5,128,128], index: 3, kind: input, shape index: {}]   ;;  %s9288_s4 = inlined_call_operand.hbm [shape: f32[1,384], index: 4, kind: input, shape index: {}]   ;;  %s9289_s5 = inlined_call_operand.hbm [shape: f32[2,8,8,128], index: 5, kind: output, shape index: {}]  }
   0x1   :  { %11 = vsyncpa [#allocation6], 0 }
   0x2   :  { %12 = vsyncpa [#allocation9], 0 }
   0x3   :  { %13 = vsyncpa [#allocation4], 0  ;;  %s7227_s18 = smov [#allocation5]   ;;  %s7228_s20 = smov [#allocation8]  }
   0x4   :  { %s31_s19 = sshll.u32 %s7227_s18, 4  ;;  %s55_s21 = sshll.u32 %s7228_s20, 4  ;;  %s32_s19 = int_to_ptr.vmem [resolvable:$true] %s31_s19  ;;  %s7270_s21 = int_to_ptr.vmem [resolvable:$true] %s55_s21 }
   0x5   :  { %s7087_s24 = scalar_lea.hbm %s9285_s1, 2048 }
   0x6   :  { %p7088_p0 = scmp.ne.s32.totalorder %s9285_s1, %s7087_s24  ;;  %p7091_p1 = scmp.lt.u32.totalorder %s7087_s24, %s9285_s1 }
   0x8   :  { %p7093_p2 = pnand %p7091_p1, %p7088_p0 }
   0xa   :  { %7096 = shalt.err (!%p7093_p2)
}
   0xb   :  { %s7097_s29 = scalar_lea.vmem %s32_s19, 2048  ;;  %p7102_p4 = scmp.lt.s32.totalorder %s32_s19, %s32_s19 }
   0xc   :  { %p7098_p3 = scmp.ne.s32.totalorder %s32_s19, %s7097_s29  ;;  %p7103_p5 = scmp.lt.s32.totalorder %s7097_s29, %s7097_s29 }
   0xe   :  { %p7104_p6 = por %p7103_p5, %p7102_p4 }
  0x10   :  { %p7105_p7 = pnand %p7104_p6, %p7098_p3 }
  0x12   :  { %7108 = shalt.err (!%p7105_p7)
}
  0x13   :  { %s7229_s30 = smov 128   ;;  %s7230_s6 = smov 8  }
  0x14   :  { %37 = dma.hbm_to_vmem [thread:$0]  %s9285_s1, 2048, %s32_s19, [#allocation6], %s7229_s30, %s7229_s30, %s7230_s6  }
  0x15   :  { %s7109_s11 = scalar_lea.hbm %s9287_s3, 5120 }
  0x16   :  { %p7110_p8 = scmp.ne.s32.totalorder %s9287_s3, %s7109_s11  ;;  %p7113_p9 = scmp.lt.u32.totalorder %s7109_s11, %s9287_s3 }
  0x18   :  { %p7115_p10 = pnand %p7113_p9, %p7110_p8 }
  0x1a   :  { %7118 = shalt.err (!%p7115_p10)
}
  0x1b   :  { %s7119_s16 = scalar_lea.vmem %s7270_s21, 5120  ;;  %p7124_p12 = scmp.lt.s32.totalorder %s7270_s21, %s7270_s21 }
  0x1c   :  { %p7120_p11 = scmp.ne.s32.totalorder %s7270_s21, %s7119_s16  ;;  %p7125_p13 = scmp.lt.s32.totalorder %s7119_s16, %s7119_s16 }
  0x1e   :  { %p7126_p0 = por %p7125_p13, %p7124_p12 }
  0x20   :  { %p7127_p1 = pnand %p7126_p0, %p7120_p11 }
  0x22   :  { %7130 = shalt.err (!%p7127_p1)
}
  0x23   :  { %s7231_s1 = smov 64   ;;  %s7232_s17 = smov 4  }
  0x24   :  { %61 = dma.hbm_to_vmem [thread:$0]  %s9287_s3, 5120, %s7270_s21, [#allocation9], %s7231_s1, %s7231_s1, %s7232_s17  }
  0x25   :  { %s7233_s20 = smov [#allocation2]   ;;  %s7234_s23 = smov [#allocation7]  }
  0x26   :  { %s19_s22 = sshll.u32 %s7233_s20, 4  ;;  %s43_s24 = sshll.u32 %s7234_s23, 4  ;;  %s20_s22 = int_to_ptr.vmem [resolvable:$true] %s19_s22  ;;  %s7304_s24 = int_to_ptr.vmem [resolvable:$true] %s43_s24 }
  0x27   :  { %s7131_s27 = scalar_lea.hbm %s9284_s0, 2048 }
  0x28   :  { %p7132_p2 = scmp.ne.s32.totalorder %s9284_s0, %s7131_s27  ;;  %p7135_p3 = scmp.lt.u32.totalorder %s7131_s27, %s9284_s0 }
  0x2a   :  { %p7137_p4 = pnand %p7135_p3, %p7132_p2 }
  0x2c   :  { %7140 = shalt.err (!%p7137_p4)
}
  0x2d   :  { %s7141_s3 = scalar_lea.vmem %s20_s22, 2048  ;;  %p7146_p6 = scmp.lt.s32.totalorder %s20_s22, %s20_s22 }
  0x2e   :  { %p7142_p5 = scmp.ne.s32.totalorder %s20_s22, %s7141_s3  ;;  %p7147_p7 = scmp.lt.s32.totalorder %s7141_s3, %s7141_s3 }
  0x30   :  { %p7148_p8 = por %p7147_p7, %p7146_p6 }
  0x32   :  { %p7149_p9 = pnand %p7148_p8, %p7142_p5 }
  0x34   :  { %7152 = shalt.err (!%p7149_p9)
}
  0x35   :  { %25 = dma.hbm_to_vmem [thread:$0]  %s9284_s0, 2048, %s20_s22, [#allocation3], %s7229_s30, %s7229_s30, %s7230_s6  }
  0x36   :  { %s7153_s12 = scalar_lea.hbm %s9286_s2, 19200 }
  0x37   :  { %p7154_p10 = scmp.ne.s32.totalorder %s9286_s2, %s7153_s12  ;;  %p7157_p11 = scmp.lt.u32.totalorder %s7153_s12, %s9286_s2 }
  0x39   :  { %p7159_p12 = pnand %p7157_p11, %p7154_p10 }
  0x3b   :  { %7162 = shalt.err (!%p7159_p12)
}
  0x3c   :  { %s7163_s1 = scalar_lea.vmem %s7304_s24, 19200  ;;  %p7168_p0 = scmp.lt.s32.totalorder %s7304_s24, %s7304_s24 }
  0x3d   :  { %p7164_p13 = scmp.ne.s32.totalorder %s7304_s24, %s7163_s1  ;;  %p7169_p1 = scmp.lt.s32.totalorder %s7163_s1, %s7163_s1 }
  0x3f   :  { %p7170_p2 = por %p7169_p1, %p7168_p0 }
  0x41   :  { %p7171_p3 = pnand %p7170_p2, %p7164_p13 }
  0x43   :  { %7174 = shalt.err (!%p7171_p3)
}
  0x44   :  { %s7235_s0 = smov 192   ;;  %s7236_s17 = smov 12  }
  0x45   :  { %49 = dma.hbm_to_vmem [thread:$0]  %s9286_s2, 19200, %s7304_s24, [#allocation6], %s7235_s0, %s7235_s0, %s7236_s17  }
  0x46   :  { %s7237_s20 = smov [#allocation10]   ;;  %s7175_s26 = scalar_lea.hbm %s9288_s4, 48 }
  0x47   :  { %s68_s22 = sshll.u32 %s7237_s20, 4  ;;  %p7176_p4 = scmp.ne.s32.totalorder %s9288_s4, %s7175_s26  ;;  %s69_s22 = int_to_ptr.vmem [resolvable:$true] %s68_s22 }
  0x48   :  { %p7179_p5 = scmp.lt.u32.totalorder %s7175_s26, %s9288_s4 }
  0x4a   :  { %p7181_p6 = pnand %p7179_p5, %p7176_p4 }
  0x4c   :  { %7184 = shalt.err (!%p7181_p6)
}
  0x4d   :  { %s7185_s8 = scalar_lea.vmem %s69_s22, 48  ;;  %s7189_s2 = scalar_lea.vmem %s69_s22, 64 }
  0x4e   :  { %p7186_p7 = scmp.ne.s32.totalorder %s69_s22, %s7185_s8  ;;  %p7190_p8 = scmp.lt.s32.totalorder %s69_s22, %s69_s22 }
  0x4f   :  { %p7191_p9 = scmp.lt.s32.totalorder %s7189_s2, %s7185_s8 }
  0x51   :  { %p7192_p10 = por %p7191_p9, %p7190_p8 }
  0x53   :  { %p7193_p11 = pnand %p7192_p10, %p7186_p7 }
  0x55   :  { %7196 = shalt.err (!%p7193_p11)
}
  0x56   :  { %71 = dma.hbm_to_vmem [thread:$0]  %s9288_s4, 48, %s69_s22, [#allocation9]  }
  0x57   :  { %7219 = dma.done.wait [#allocation3], 2048  }
  0x58   :  { %7220 = vsyncadd [#allocation3], 4294965248 }
  0x59   :  { %7221 = dma.done.wait [#allocation6], 21248  }
  0x5a   :  { %7222 = vsyncadd [#allocation6], 4294946048 }
  0x5b   :  { %7223 = dma.done.wait [#allocation9], 5168  }
  0x5c   :  { %7224 = vsyncadd [#allocation9], 4294962128  ;;  %v9304_v0 = vmov 0   ;;  %v6718_v1 = vld [vmem:[#allocation7 + $0x4] ss:$12 sps:$4 sm:$0xff]   ;;  %v89_v23 = vld [vmem:[#allocation2 + $0x8] sm:$0xff] }
  0x5d   :  { %742 = vmatprep.subr.bf16.mxu1 %v9304_v0  ;;  %v6720_v2 = vld [vmem:[#allocation7 + $0x8] ss:$12 sps:$4 sm:$0xff]   ;;  %629 = vmatprep.subr.bf16.mxu0 %v6718_v1  ;;  %v6721_v3 = vld [vmem:[#allocation7] ss:$12 sps:$4 sm:$0xff]   ;;  %v6725_v6 = vld [vmem:[#allocation7 + $0x18] ss:$12 sps:$4 sm:$0xff]   ;;  %v105_v25 = vpack.c.bf16 %v89_v23, %v89_v23 }
  0x5e   :  { %743 = vmatpush1.bf16.msra.mxu1 %v6720_v2  ;;  %v6722_v4 = vld [vmem:[#allocation7 + $0x1c] ss:$12 sps:$4 sm:$0xff]   ;;  %630 = vmatpush1.bf16.msra.mxu0 %v6721_v3  ;;  %v6724_v5 = vld [vmem:[#allocation7 + $0x20] ss:$12 sps:$4 sm:$0xff]   ;;  %v6728_v8 = vld [vmem:[#allocation7 + $0x38] ss:$12 sps:$4 sm:$0xff]  }
  0x5f   :  { %744 = vmatprep.subr.bf16.mxu1 %v9304_v0  ;;  %631 = vmatprep.subr.bf16.mxu0 %v6722_v4  ;;  %v6726_v7 = vld [vmem:[#allocation7 + $0x34] ss:$12 sps:$4 sm:$0xff]   ;;  %v6729_v9 = vld [vmem:[#allocation7 + $0x30] ss:$12 sps:$4 sm:$0xff]   ;;  %v6730_v10 = vld [vmem:[#allocation7 + $0x4c] ss:$12 sps:$4 sm:$0xff]  }
  0x60   :  { %v6732_v11 = vld [vmem:[#allocation7 + $0x50] ss:$12 sps:$4 sm:$0xff]   ;;  %v6733_v12 = vld [vmem:[#allocation7 + $0x48] ss:$12 sps:$4 sm:$0xff]   ;;  %v6737_v15 = vld [vmem:[#allocation7 + $0x60] ss:$12 sps:$4 sm:$0xff]  }
  0x61   :  { %v6734_v13 = vld [vmem:[#allocation7 + $0x64] ss:$12 sps:$4 sm:$0xff]   ;;  %v6736_v14 = vld [vmem:[#allocation7 + $0x68] ss:$12 sps:$4 sm:$0xff]   ;;  %v6740_v17 = vld [vmem:[#allocation7 + $0x80] ss:$12 sps:$4 sm:$0xff]  }
  0x62   :  { %745 = vmatpush1.bf16.msra.mxu1 %v6724_v5  ;;  %632 = vmatpush1.bf16.msra.mxu0 %v6725_v6  ;;  %v6738_v16 = vld [vmem:[#allocation7 + $0x7c] ss:$12 sps:$4 sm:$0xff]   ;;  %v6741_v18 = vld [vmem:[#allocation7 + $0x78] ss:$12 sps:$4 sm:$0xff]   ;;  %v6742_v19 = vld [vmem:[#allocation7 + $0x94] ss:$12 sps:$4 sm:$0xff]  }
  0x63   :  { %746 = vmatprep.subr.bf16.mxu1 %v9304_v0  ;;  %633 = vmatprep.subr.bf16.mxu0 %v6726_v7  ;;  %v6744_v20 = vld [vmem:[#allocation7 + $0x98] ss:$12 sps:$4 sm:$0xff]   ;;  %v6745_v21 = vld [vmem:[#allocation7 + $0x90] ss:$12 sps:$4 sm:$0xff]   ;;  %v121_v27 = vld [vmem:[#allocation5 + $0x8] sm:$0xff]  ;;  %vm217_vm0 = vcmask 1040384  }
  0x64   :  { %v88_v22 = vld [vmem:[#allocation2] sm:$0xff]  ;;  %v6746_v28 = vld [vmem:[#allocation7 + $0xac] ss:$12 sps:$4 sm:$0xff]   ;;  %v137_v30 = vpack.c.bf16 %v121_v27, %v121_v27  ;;  %v6748_v31 = vld [vmem:[#allocation7 + $0xb0] ss:$12 sps:$4 sm:$0xff]   ;;  %vm283_vm1 = vcmask 1044480  }
  0x65   :  { %v104_v24 = vpack.c.bf16 %v88_v22, %v88_v22  ;;  %v120_v26 = vld [vmem:[#allocation5] sm:$0xff]  ;;  %v122_v32 = vld [vmem:[#allocation5 + $0x10] sm:$0xff]  ;;  %v123_v33 = vld [vmem:[#allocation5 + $0x18] sm:$0xff]  ;;  %v187_v40 = vrot.slane %v105_v25, 7  ;;  %vm604_vm2 = vcmask 261120   ;;  %vm1733_vm6 = vcmask 1042432  }
  0x66   :  { %747 = vmatpush1.bf16.msra.mxu1 %v6728_v8  ;;  %634 = vmatpush1.bf16.msra.mxu0 %v6729_v9  ;;  %v136_v29 = vpack.c.bf16 %v120_v26, %v120_v26  ;;  %v6749_v34 = vld [vmem:[#allocation7 + $0xa8] ss:$12 sps:$4 sm:$0xff]   ;;  %v188_v36 = vrot.slane %v137_v30, 7  ;;  %v138_v37 = vpack.c.bf16 %v122_v32, %v122_v32  ;;  %v6750_v38 = vld [vmem:[#allocation7 + $0xc4] ss:$12 sps:$4 sm:$0xff]   ;;  %v139_v41 = vpack.c.bf16 %v123_v33, %v123_v33  ;;  %v91_v45 = vld [vmem:[#allocation2 + $0x18] sm:$0xff] }
  0x67   :  { %748 = vmatprep.subr.bf16.mxu1 %v9304_v0  ;;  %635 = vmatprep.subr.bf16.mxu0 %v6730_v10  ;;  %v185_v39 = vrot.slane %v104_v24, 7  ;;  %v90_v42 = vld [vmem:[#allocation2 + $0x10] sm:$0xff]  ;;  %v6753_v50 = vld [vmem:[#allocation7 + $0xc0] ss:$12 sps:$4 sm:$0xff]   ;;  %v224_v54 = vsel %vm217_vm0, 0, %v187_v40  ;;  %v107_v56 = vpack.c.bf16 %v91_v45, %v91_v45  ;;  %v95_v40 = vld [vmem:[#allocation2 + $0x38] sm:$0xff] }
  0x68   :  { %v186_v35 = vrot.slane %v136_v29, 7  ;;  %v226_v44 = vsel %vm217_vm0, 0, %v188_v36  ;;  %v190_v48 = vrot.slane %v138_v37, 7  ;;  %v6752_v49 = vld [vmem:[#allocation7 + $0xc8] ss:$12 sps:$4 sm:$0xff]   ;;  %v106_v52 = vpack.c.bf16 %v90_v42, %v90_v42  ;;  %v124_v3 = vld [vmem:[#allocation5 + $0x20] sm:$0xff] }
  0x69   :  { %v7364_v47 = vsel %vm283_vm1, %v226_v44, 0  ;;  %v220_v53 = vsel %vm217_vm0, 0, %v185_v39  ;;  %v192_v55 = vrot.slane %v139_v41, 7  ;;  %v6754_v57 = vld [vmem:[#allocation7 + $0xdc] ss:$12 sps:$4 sm:$0xff]   ;;  %v7378_v62 = vsel %vm283_vm1, %v224_v54, 0 }
  0x6a   :  { %749 = vmatpush1.bf16.msra.mxu1 %v6732_v11  ;;  %636 = vmatpush1.bf16.msra.mxu0 %v6733_v12  ;;  %v222_v43 = vsel %vm217_vm0, 0, %v186_v35  ;;  %v230_v58 = vsel %vm217_vm0, 0, %v190_v48  ;;  %v6756_v59 = vld [vmem:[#allocation7 + $0xe0] ss:$12 sps:$4 sm:$0xff]   ;;  %v6757_v60 = vld [vmem:[#allocation7 + $0xd8] ss:$12 sps:$4 sm:$0xff]   ;;  %v140_v11 = vpack.c.bf16 %v124_v3, %v124_v3 }
  0x6b   :  { %750 = vmatprep.subr.bf16.mxu1 %v9304_v0  ;;  %637 = vmatprep.subr.bf16.mxu0 %v6734_v13  ;;  %v7361_v46 = vsel %vm283_vm1, %v222_v43, 0  ;;  %v7375_v61 = vsel %vm283_vm1, %v220_v53, 0  ;;  %v6760_v63 = vld [vmem:[#allocation7 + $0xf4] ss:$12 sps:$4 sm:$0xff]   ;;  %v234_v1 = vsel %vm217_vm0, 0, %v192_v55  ;;  %v189_v2 = vrot.slane %v106_v52, 7 }
  0x6c   :  { %v5628_v51 = vcombine.low %v7361_v46, %v7364_v47  ;;  %v125_v4 = vld [vmem:[#allocation5 + $0x28] sm:$0xff]  ;;  %v7383_v5 = vsel %vm283_vm1, %v230_v58, 0  ;;  %v7386_v6 = vsel %vm283_vm1, %v234_v1, 0  ;;  %v191_v7 = vrot.slane %v107_v56, 7  ;;  %v92_v8 = vld [vmem:[#allocation2 + $0x20] sm:$0xff]  ;;  %v126_v13 = vld [vmem:[#allocation5 + $0x30] sm:$0xff] }
  0x6d   :  { %v93_v9 = vld [vmem:[#allocation2 + $0x28] sm:$0xff]  ;;  %v5627_v10 = vcombine.low %v7375_v61, %v7378_v62  ;;  %v141_v12 = vpack.c.bf16 %v125_v4, %v125_v4  ;;  %v142_v24 = vpack.c.bf16 %v126_v13, %v126_v13  ;;  %v6770_v25 = vld [vmem:[#allocation7 + $0xf8] ss:$12 sps:$4 sm:$0xff]   ;;  %v94_v39 = vld [vmem:[#allocation2 + $0x30] sm:$0xff]  ;;  %v7413_v42 = vcombine.low %v7375_v61, %v7361_v46  ;;  %s7239_s4 = smov [#allocation11]  }
  0x6e   :  { %751 = vmatpush1.bf16.msra.mxu1 %v6736_v14  ;;  %638 = vmatpush1.bf16.msra.mxu0 %v6737_v15  ;;  %v6758_v14 = vld [vmem:[#allocation7 + $0xf0] ss:$12 sps:$4 sm:$0xff]   ;;  %v5630_v15 = vcombine.low %v7383_v5, %v7386_v6  ;;  %v109_v22 = vpack.c.bf16 %v93_v9, %v93_v9  ;;  %v6763_v23 = vld [vmem:[#allocation7 + $0x10c] ss:$12 sps:$4 sm:$0xff]   ;;  %v6761_v26 = vld [vmem:[#allocation7 + $0x108] ss:$12 sps:$4 sm:$0xff]   ;;  %v110_v55 = vpack.c.bf16 %v94_v39, %v94_v39 }
  0x6f   :  { %752 = vmatprep.subr.bf16.mxu1 %v9304_v0  ;;  %639 = vmatprep.subr.bf16.mxu0 %v6738_v16  ;;  %v228_v16 = vsel %vm217_vm0, 0, %v189_v2  ;;  %v6766_v32 = vld [vmem:[#allocation7 + $0x124] ss:$12 sps:$4 sm:$0xff]   ;;  %v198_v37 = vrot.slane %v142_v24, 7  ;;  %9394 = vst [vmem:[#allocation16_spill] sm:$0xff] %v7413_v42  ;;  %v129_v45 = vld [vmem:[#allocation5 + $0x48] sm:$0xff]  ;;  %v111_v56 = vpack.c.bf16 %v95_v40, %v95_v40 }
  0x70   :  { %5681 = vmatprep.mubr.msk.bf16.mxu1 %vm604_vm2, %v5628_v51  ;;  %5673 = vmatprep.mubr.msk.bf16.mxu0 %vm604_vm2, %v5628_v51  ;;  %v7399_v30 = vsel %vm283_vm1, %v228_v16, 0  ;;  %v6774_v41 = vld [vmem:[#allocation7 + $0x110] ss:$12 sps:$4 sm:$0xff]   ;;  %v128_v44 = vld [vmem:[#allocation5 + $0x40] sm:$0xff]  ;;  %v145_v58 = vpack.c.bf16 %v129_v45, %v129_v45  ;;  %v9299_v1 = vshrl.u32 %v7413_v42, 16  ;;  %vm1734_vm7 = vcmask 1046532  }
  0x71   :  { %v6764_v48 = vld [vmem:[#allocation7 + $0x120] ss:$12 sps:$4 sm:$0xff]   ;;  %v6769_v52 = vld [vmem:[#allocation7 + $0x13c] ss:$12 sps:$4 sm:$0xff]   ;;  %v246_v53 = vsel %vm217_vm0, 0, %v198_v37  ;;  %v130_v4 = vld [vmem:[#allocation5 + $0x50] sm:$0xff] }
  0x72   :  { %753 = vmatpush1.bf16.msra.mxu1 %v6740_v17  ;;  %640 = vmatpush1.bf16.msra.mxu0 %v6741_v18  ;;  %v108_v17 = vpack.c.bf16 %v92_v8, %v92_v8  ;;  %v127_v18 = vld [vmem:[#allocation5 + $0x38] sm:$0xff]  ;;  %v7438_v9 = vsel %vm283_vm1, %v246_v53, 0  ;;  %v6779_v16 = vld [vmem:[#allocation7 + $0x140] ss:$12 sps:$4 sm:$0xff]   ;;  %v98_v40 = vld [vmem:[#allocation2 + $0x50] sm:$0xff]  ;;  %v7477_v53 = vcombine.high %v7378_v62, %v7364_v47  ;;  %vm3041_vm12 = vcmask 1041408  }
  0x73   :  { %754 = vmatprep.subr.bf16.mxu1 %v9304_v0  ;;  %641 = vmatprep.subr.bf16.mxu0 %v6742_v19  ;;  %v232_v19 = vsel %vm217_vm0, 0, %v191_v7  ;;  %v143_v29 = vpack.c.bf16 %v127_v18, %v127_v18  ;;  %v6767_v3 = vld [vmem:[#allocation7 + $0x138] ss:$12 sps:$4 sm:$0xff]   ;;  %v7431_v7 = vcombine.high %v7375_v61, %v7361_v46  ;;  %v204_v46 = vrot.slane %v145_v58, 7  ;;  %vm7881_vm8 = vmor %vm1733_vm6, %vm1734_vm7  ;;  %s5613_s21 = sshll.u32 %s7239_s4, 4  ;;  %s5614_s21 = int_to_ptr.vmem [resolvable:$true] %s5613_s21 }
  0x74   :  { %v193_v33 = vrot.slane %v108_v17, 7  ;;  %v131_v61 = vld [vmem:[#allocation5 + $0x58] sm:$0xff]  ;;  %9397 = vst [vmem:[#allocation19_spill] sm:$0xff] %v7477_v53  ;;  %vm967_vm3 = vsmask.f32 3328  ;;  %vm3042_vm13 = vcmask 1045508   ;;  %p7202_p13 = scmp.lt.s32.totalorder %s5614_s21, %s5614_s21 }
  0x75   :  { %9395 = vst [vmem:[#allocation17_spill] sm:$0xff] %v7431_v7  ;;  %v147_v24 = vpack.c.bf16 %v131_v61, %v131_v61  ;;  %v100_v61 = vld [vmem:[#allocation2 + $0x60] sm:$0xff]  ;;  %vm968_vm4 = vsmask.f32 7440  ;;  %vm2339_vm9 = vsmask.f32 2304  ;;  %vm8288_vm14 = vmor %vm3041_vm12, %vm3042_vm13 }
  0x76   :  { %755 = vmatpush1.bf16.msra.mxu1 %v6744_v20  ;;  %642 = vmatpush1.bf16.msra.mxu0 %v6745_v21  ;;  %v194_v20 = vrot.slane %v140_v11, 7  ;;  %v196_v21 = vrot.slane %v141_v12, 7  ;;  %v197_v11 = vrot.slane %v110_v55, 7  ;;  %v199_v12 = vrot.slane %v111_v56, 7  ;;  %v6784_v55 = vld [vmem:[#allocation7 + $0x170] ss:$12 sps:$4 sm:$0xff]   ;;  %vm7645_vm5 = vmor %vm967_vm3, %vm968_vm4 }
  0x77   :  { %756 = vmatprep.subr.bf16.mxu1 %v9304_v0  ;;  %643 = vmatprep.subr.bf16.mxu0 %v6746_v28  ;;  %v133_v56 = vld [vmem:[#allocation5 + $0x68] sm:$0xff]  ;;  %vm2340_vm10 = vsmask.f32 6416  ;;  %s7197_s9 = scalar_lea.vmem %s5614_s21, 2048 }
  0x78   :  { %v238_v27 = vsel %vm217_vm0, 0, %v194_v20  ;;  %v242_v28 = vsel %vm217_vm0, 0, %v196_v21  ;;  %v146_v20 = vpack.c.bf16 %v130_v4, %v130_v4  ;;  %v9298_v21 = vshll.u32 %v7413_v42, 16  ;;  %vm7964_vm11 = vmor %vm2339_vm9, %vm2340_vm10  ;;  %p7198_p12 = scmp.ne.s32.totalorder %s5614_s21, %s7197_s9  ;;  %p7203_p0 = scmp.lt.s32.totalorder %s7197_s9, %s7197_s9 }
  0x79   :  { %v7406_v35 = vsel %vm283_vm1, %v238_v27, 0  ;;  %v7409_v36 = vsel %vm283_vm1, %v242_v28, 0  ;;  %v6771_v27 = vld [vmem:[#allocation7 + $0x150] ss:$12 sps:$4 sm:$0xff]  }
  0x7a   :  { %757 = vmatpush1.bf16.msra.mxu1 %v6748_v31  ;;  %644 = vmatpush1.bf16.msra.mxu0 %v6749_v34  ;;  %v7402_v31 = vsel %vm283_vm1, %v232_v19, 0  ;;  %v195_v34 = vrot.slane %v109_v22, 7  ;;  %v9297_v22 = vshll.u32 %v7431_v7, 16  ;;  %v206_v39 = vrot.slane %v146_v20, 7  ;;  %v6785_v20 = vld [vmem:[#allocation7 + $0x198] ss:$12 sps:$4 sm:$0xff]   ;;  %p7204_p1 = por %p7203_p0, %p7202_p13 }
  0x7b   :  { %758 = vmatprep.subr.bf16.mxu1 %v9304_v0  ;;  %645 = vmatprep.subr.bf16.mxu0 %v6750_v38  ;;  %v200_v38 = vrot.slane %v143_v29, 7  ;;  %v5629_v43 = vcombine.low %v7399_v30, %v7402_v31  ;;  %v258_v29 = vsel %vm217_vm0, 0, %v204_v46  ;;  %v6787_v46 = vld [vmem:[#allocation7 + $0x19c] ss:$12 sps:$4 sm:$0xff]  }
  0x7c   :  { %v240_v51 = vsel %vm217_vm0, 0, %v195_v34  ;;  %v7471_v45 = vsel %vm283_vm1, %v258_v29, 0  ;;  %v135_v29 = vld [vmem:[#allocation5 + $0x78] sm:$0xff]  ;;  %p7205_p2 = pnand %p7204_p1, %p7198_p12 }
  0x7d   :  { %v250_v54 = vsel %vm217_vm0, 0, %v200_v38  ;;  %v7435_v8 = vsel %vm283_vm1, %v240_v51, 0  ;;  %v6775_v38 = vld [vmem:[#allocation7 + $0x168] ss:$12 sps:$4 sm:$0xff]   ;;  %v6782_v51 = vld [vmem:[#allocation7 + $0x184] ss:$12 sps:$4 sm:$0xff]  }
  0x7e   :  { %759 = vmatpush1.bf16.msra.mxu1 %v6752_v49  ;;  %646 = vmatpush1.bf16.msra.mxu0 %v6753_v50  ;;  %v5632_v49 = vcombine.low %v7406_v35, %v7409_v36  ;;  %v236_v50 = vsel %vm217_vm0, 0, %v193_v33  ;;  %v6783_v33 = vld [vmem:[#allocation7 + $0x158] ss:$12 sps:$4 sm:$0xff]  }
  0x7f   :  { %760 = vmatprep.subr.bf16.mxu1 %v9304_v0  ;;  %647 = vmatprep.subr.bf16.mxu0 %v6754_v57  ;;  %v144_v57 = vpack.c.bf16 %v128_v44, %v128_v44  ;;  %v7426_v2 = vsel %vm283_vm1, %v236_v50, 0  ;;  %v99_v50 = vld [vmem:[#allocation2 + $0x58] sm:$0xff] }
  0x80   :  { %v5631_v17 = vcombine.low %v7426_v2, %v7435_v8 }
  0x81   :  { %v202_v13 = vrot.slane %v144_v57, 7 }
  0x82   :  { %761 = vmatpush1.bf16.msra.mxu1 %v6756_v59  ;;  %648 = vmatpush1.bf16.msra.mxu0 %v6757_v60  ;;  %v96_v59 = vld [vmem:[#allocation2 + $0x40] sm:$0xff]  ;;  %v97_v60 = vld [vmem:[#allocation2 + $0x48] sm:$0xff] }
  0x83   :  { %1588 = vmatprep.subr.bf16.mxu1 %v9304_v0  ;;  %1475 = vmatprep.subr.bf16.mxu0 %v6760_v63  ;;  %v6778_v63 = vld [vmem:[#allocation7 + $0x128] ss:$12 sps:$4 sm:$0xff]   ;;  %v112_v18 = vpack.c.bf16 %v96_v59, %v96_v59  ;;  %v113_v19 = vpack.c.bf16 %v97_v60, %v97_v60  ;;  %v254_v28 = vsel %vm217_vm0, 0, %v202_v13  ;;  %v9294_v13 = vshll.u32 %v7477_v53, 16 }
  0x84   :  { %v7468_v44 = vsel %vm283_vm1, %v254_v28, 0  ;;  %v134_v28 = vld [vmem:[#allocation5 + $0x70] sm:$0xff] }
  0x85   :  { %775 = vmatmul.mubr.bf16.vlgmr.msra.gmra.mrb[0].mxu1 %v5627_v10  ;;  %662 = vmatmul.mubr.bf16.vlgmr.msra.gmra.mrb[0].mxu0 %v5627_v10  ;;  %v7441_v10 = vsel %vm283_vm1, %v250_v54, 0  ;;  %v201_v34 = vrot.slane %v112_v18, 7  ;;  %v203_v37 = vrot.slane %v113_v19, 7  ;;  %v5636_v58 = vcombine.low %v7468_v44, %v7471_v45 }
  0x86   :  { %5682 = vmatprep.mubr.msk.bf16.mxu1 %vm604_vm2, %v5630_v15  ;;  %1476 = vmatpush1.bf16.msra.mxu0 %v6758_v14  ;;  %v7446_v14 = vcombine.low %v7378_v62, %v7364_v47  ;;  %v262_v47 = vsel %vm217_vm0, 0, %v206_v39  ;;  %v114_v62 = vpack.c.bf16 %v98_v40, %v98_v40  ;;  %v6792_v39 = vld [vmem:[#allocation7 + $0x1a0] ss:$12 sps:$4 sm:$0xff]  }
  0x87   :  { %5674 = vmatprep.mubr.msk.bf16.mxu0 %vm604_vm2, %v5630_v15  ;;  %1477 = vmatprep.subr.bf16.mxu0 %v6763_v23  ;;  %v6773_v15 = vld [vmem:[#allocation7 + $0x154] ss:$12 sps:$4 sm:$0xff]   ;;  %v5634_v23 = vcombine.low %v7438_v9, %v7441_v10  ;;  %v252_v59 = vsel %vm217_vm0, 0, %v201_v34  ;;  %v256_v60 = vsel %vm217_vm0, 0, %v203_v37  ;;  %v7501_v19 = vsel %vm283_vm1, %v262_v47, 0 }
  0x88   :  { %1589 = vmatpush1.bf16.msra.mxu1 %v6770_v25  ;;  %9396 = vst [vmem:[#allocation18_spill] sm:$0xff] %v7446_v14  ;;  %v244_v25 = vsel %vm217_vm0, 0, %v197_v11  ;;  %v9290_v54 = vshll.u32 %v7446_v14, 16  ;;  %v6780_v11 = vld [vmem:[#allocation7 + $0x180] ss:$12 sps:$4 sm:$0xff]   ;;  %v7498_v18 = vsel %vm283_vm1, %v256_v60, 0 }
  0x89   :  { %1590 = vmatprep.subr.bf16.mxu1 %v9304_v0 }
  0x8a   :  { %1478 = vmatpush1.bf16.msra.mxu0 %v6761_v26  ;;  %v248_v26 = vsel %vm217_vm0, 0, %v199_v12  ;;  %v149_v12 = vpack.c.bf16 %v133_v56, %v133_v56 }
  0x8b   :  { %1479 = vmatprep.subr.bf16.mxu0 %v6766_v32  ;;  %v6777_v32 = vld [vmem:[#allocation7 + $0x16c] ss:$12 sps:$4 sm:$0xff]  }
  0x8c   :  { %1591 = vmatpush1.bf16.msra.mxu1 %v6774_v41  ;;  %v7462_v41 = vsel %vm283_vm1, %v244_v25, 0  ;;  %v205_v25 = vrot.slane %v114_v62, 7 }
  0x8d   :  { %783 = vmatmul.mubr.bf16.gmra.mrb[4].mxu1 %v5629_v43  ;;  %1592 = vmatprep.subr.bf16.mxu1 %v9304_v0 }
  0x8e   :  { %672 = vmatmul.mubr.bf16.gmra.mrb[4].mxu0 %v5629_v43  ;;  %5683 = vmatprep.mubr.msk.bf16.mxu1 %vm604_vm2, %v5632_v49  ;;  %v7465_v43 = vsel %vm283_vm1, %v248_v26, 0  ;;  %v260_v56 = vsel %vm217_vm0, 0, %v205_v25 }
  0x8f   :  { %1480 = vmatpush1.bf16.msra.mxu0 %v6764_v48  ;;  %5675 = vmatprep.mubr.msk.bf16.mxu0 %vm604_vm2, %v5632_v49  ;;  %v9291_v48 = vshrl.u32 %v7446_v14, 16  ;;  %v208_v49 = vrot.slane %v147_v24, 7  ;;  %v5633_v57 = vcombine.low %v7462_v41, %v7465_v43 }
  0x90   :  { %1481 = vmatprep.subr.bf16.mxu0 %v6769_v52  ;;  %1593 = vmatpush1.bf16.msra.mxu1 %v6778_v63  ;;  %v132_v52 = vld [vmem:[#allocation5 + $0x60] sm:$0xff]  ;;  %v115_v63 = vpack.c.bf16 %v99_v50, %v99_v50 }
  0x91   :  { %1594 = vmatprep.subr.bf16.mxu1 %v9304_v0  ;;  %v266_v4 = vsel %vm217_vm0, 0, %v208_v49  ;;  %v7513_v49 = vcombine.low %v7402_v31, %v7386_v6 }
  0x92   :  { %v7506_v24 = vsel %vm283_vm1, %v266_v4, 0  ;;  %v207_v26 = vrot.slane %v115_v63, 7  ;;  %v6793_v4 = vld [vmem:[#allocation7 + $0x1b8] ss:$12 sps:$4 sm:$0xff]  }
  0x93   :  { %1482 = vmatpush1.bf16.msra.mxu0 %v6767_v3  ;;  %v148_v3 = vpack.c.bf16 %v132_v52, %v132_v52  ;;  %9399 = vst [vmem:[#allocation21_spill] sm:$0xff] %v7513_v49 }
  0x94   :  { %1483 = vmatprep.subr.bf16.mxu0 %v6773_v15  ;;  %1595 = vmatpush1.bf16.msra.mxu1 %v6779_v16  ;;  %v6788_v15 = vld [vmem:[#allocation7 + $0x188] ss:$12 sps:$4 sm:$0xff]   ;;  %v7492_v16 = vcombine.low %v7399_v30, %v7383_v5 }
  0x95   :  { %791 = vmatmul.mubr.bf16.gmra.mrb[8].mxu1 %v5631_v17  ;;  %1596 = vmatprep.subr.bf16.mxu1 %v9304_v0 }
  0x96   :  { %682 = vmatmul.mubr.bf16.gmra.mrb[8].mxu0 %v5631_v17  ;;  %5684 = vmatprep.mubr.msk.bf16.mxu1 %vm604_vm2, %v5634_v23  ;;  %9398 = vst [vmem:[#allocation20_spill] sm:$0xff] %v7492_v16  ;;  %v7495_v17 = vsel %vm283_vm1, %v252_v59, 0  ;;  %v9292_v52 = vshrl.u32 %v7492_v16, 16  ;;  %v264_v59 = vsel %vm217_vm0, 0, %v207_v26  ;;  %v9293_v63 = vshll.u32 %v7492_v16, 16 }
  0x97   :  { %5676 = vmatprep.mubr.msk.bf16.mxu0 %vm604_vm2, %v5634_v23  ;;  %1484 = vmatpush1.bf16.msra.mxu0 %v6771_v27  ;;  %v101_v23 = vld [vmem:[#allocation2 + $0x68] sm:$0xff]  ;;  %v210_v27 = vrot.slane %v148_v3, 7  ;;  %v5635_v50 = vcombine.low %v7495_v17, %v7498_v18 }
  0x98   :  { %1485 = vmatprep.subr.bf16.mxu0 %v6777_v32  ;;  %1597 = vmatpush1.bf16.msra.mxu1 %v6783_v33  ;;  %v212_v32 = vrot.slane %v149_v12, 7  ;;  %v116_v33 = vpack.c.bf16 %v100_v61, %v100_v61  ;;  %v117_v37 = vpack.c.bf16 %v101_v23, %v101_v23  ;;  %v9295_v12 = vshrl.u32 %v7513_v49, 16 }
  0x99   :  { %1598 = vmatprep.subr.bf16.mxu1 %v9304_v0  ;;  %v270_v60 = vsel %vm217_vm0, 0, %v210_v27  ;;  %v7538_v23 = vsel %vm283_vm1, %v264_v59, 0  ;;  %v7548_v27 = vcombine.low %v7426_v2, %v7406_v35  ;;  %v976_v59 = vrot.slane %v9298_v21, 5 }
  0x9a   :  { %v274_v47 = vsel %vm217_vm0, 0, %v212_v32  ;;  %v209_v62 = vrot.slane %v116_v33, 7  ;;  %v211_v3 = vrot.slane %v117_v37, 7  ;;  %v7541_v25 = vsel %vm283_vm1, %v270_v60, 0  ;;  %v102_v32 = vld [vmem:[#allocation2 + $0x70] sm:$0xff]  ;;  %v103_v33 = vld [vmem:[#allocation2 + $0x78] sm:$0xff] }
  0x9b   :  { %1486 = vmatpush1.bf16.msra.mxu0 %v6775_v38  ;;  %v6791_v38 = vld [vmem:[#allocation7 + $0x1b4] ss:$12 sps:$4 sm:$0xff]   ;;  %v7544_v26 = vsel %vm283_vm1, %v274_v47, 0  ;;  %v987_v60 = vrot.slane %v9291_v48, 4  ;;  %v9302_v47 = vshrl.u32 %v7548_v27, 16  ;;  %v9403_v48 = vmov 0 }
  0x9c   :  { %1487 = vmatprep.subr.bf16.mxu0 %v6782_v51  ;;  %1599 = vmatpush1.bf16.msra.mxu1 %v6784_v55  ;;  %v150_v51 = vpack.c.bf16 %v134_v28, %v134_v28  ;;  %v5638_v55 = vcombine.low %v7501_v19, %v7506_v24  ;;  %v268_v28 = vsel %vm217_vm0, 0, %v209_v62  ;;  %v6794_v37 = vld [vmem:[#allocation7 + $0x1c8] ss:$12 sps:$4 sm:$0xff]   ;;  %v9404_v48 = vsel %vm7645_vm5, 4294967295, %v9403_v48 }
  0x9d   :  { %799 = vmatmul.mubr.bf16.gmra.mrb[12].mxu1 %v5633_v57  ;;  %1600 = vmatprep.subr.bf16.mxu1 %v9304_v0  ;;  %9405 = vst [vmem:[#allocation25_spill] sm:$0xff] %v9404_v48  ;;  %v6833_v48 = vld [vmem:[#allocation7 + $0x2a8] ss:$12 sps:$4 sm:$0xff]  }
  0x9e   :  { %692 = vmatmul.mubr.bf16.gmra.mrb[12].mxu0 %v5633_v57  ;;  %5685 = vmatprep.mubr.msk.bf16.mxu1 %vm604_vm2, %v5636_v58  ;;  %v6789_v57 = vld [vmem:[#allocation7 + $0x1b0] ss:$12 sps:$4 sm:$0xff]   ;;  %v214_v61 = vrot.slane %v150_v51, 7 }
  0x9f   :  { %5677 = vmatprep.mubr.msk.bf16.mxu0 %vm604_vm2, %v5636_v58  ;;  %1488 = vmatpush1.bf16.msra.mxu0 %v6780_v11  ;;  %v151_v58 = vpack.c.bf16 %v135_v29, %v135_v29  ;;  %v6796_v11 = vld [vmem:[#allocation7 + $0x1cc] ss:$12 sps:$4 sm:$0xff]   ;;  %v6797_v51 = vld [vmem:[#allocation7 + $0x1d0] ss:$12 sps:$4 sm:$0xff]  }
  0xa0   :  { %1489 = vmatprep.subr.bf16.mxu0 %v6787_v46  ;;  %1601 = vmatpush1.bf16.msra.mxu1 %v6788_v15  ;;  %v9296_v46 = vshll.u32 %v7513_v49, 16  ;;  %v7531_v15 = vrot.slane %v9299_v1, 4 }
  0xa1   :  { %1602 = vmatprep.subr.bf16.mxu1 %v9304_v0  ;;  %v216_v29 = vrot.slane %v151_v58, 7  ;;  %v118_v58 = vpack.c.bf16 %v102_v32, %v102_v32  ;;  %v7591_v32 = vcombine.low %v7462_v41, %v7438_v9 }
  0xa3   :  { %1490 = vmatpush1.bf16.msra.mxu0 %v6785_v20  ;;  %v7535_v20 = vsel %vm283_vm1, %v260_v56, 0  ;;  %v282_v62 = vsel %vm217_vm0, 0, %v216_v29 }
  0xa4   :  { %1491 = vmatprep.subr.bf16.mxu0 %v6791_v38  ;;  %1603 = vmatpush1.bf16.msra.mxu1 %v6792_v39  ;;  %v7554_v38 = vcombine.high %v7399_v30, %v7383_v5  ;;  %v7558_v39 = vcombine.low %v7435_v8, %v7409_v36  ;;  %v5637_v56 = vcombine.low %v7535_v20, %v7538_v23  ;;  %v278_v30 = vsel %vm217_vm0, 0, %v214_v61 }
  0xa5   :  { %807 = vmatmul.mubr.bf16.gmra.mrb[16].mxu1 %v5635_v50  ;;  %1604 = vmatprep.subr.bf16.mxu1 %v9304_v0  ;;  %v5640_v5 = vcombine.low %v7541_v25, %v7544_v26 }
  0xa6   :  { %702 = vmatmul.mubr.bf16.gmra.mrb[16].mxu0 %v5635_v50  ;;  %5686 = vmatprep.mubr.msk.bf16.mxu1 %vm604_vm2, %v5638_v55  ;;  %9400 = vst [vmem:[#allocation22_spill] sm:$0xff] %v7554_v38  ;;  %v272_v50 = vsel %vm217_vm0, 0, %v211_v3  ;;  %v119_v3 = vpack.c.bf16 %v103_v33, %v103_v33  ;;  %v9301_v61 = vshrl.u32 %v7558_v39, 16  ;;  %v213_v33 = vrot.slane %v118_v58, 7 }
  0xa7   :  { %5678 = vmatprep.mubr.msk.bf16.mxu0 %vm604_vm2, %v5638_v55  ;;  %1492 = vmatpush1.bf16.msra.mxu0 %v6789_v57  ;;  %v7563_v55 = vcombine.high %v7402_v31, %v7386_v6  ;;  %v6800_v57 = vld [vmem:[#allocation7 + $0x1e4] ss:$12 sps:$4 sm:$0xff]   ;;  %v990_v6 = vrot.slane %v9290_v54, 5  ;;  %v7579_v31 = vcombine.high %v7426_v2, %v7406_v35  ;;  %v9303_v35 = vshll.u32 %v7558_v39, 16 }
  0xa8   :  { %1605 = vmatpush1.bf16.msra.mxu1 %v6793_v4  ;;  %1493 = vmatprep.subr.bf16.mxu0 %v6796_v11  ;;  %v7585_v4 = vcombine.high %v7435_v8, %v7409_v36  ;;  %v9300_v11 = vshll.u32 %v7548_v27, 16  ;;  %v7595_v2 = vsel %vm283_vm1, %v268_v28, 0  ;;  %v7598_v29 = vsel %vm283_vm1, %v272_v50, 0 }
  0xa9   :  { %9401 = vst [vmem:[#allocation23_spill] sm:$0xff] %v7563_v55  ;;  %1606 = vmatprep.subr.bf16.mxu1 %v9304_v0  ;;  %v7601_v36 = vsel %vm283_vm1, %v278_v30, 0  ;;  %v7605_v8 = vsel %vm283_vm1, %v282_v62, 0  ;;  %v7610_v28 = vcombine.high %v7462_v41, %v7438_v9  ;;  %v7614_v50 = vcombine.low %v7465_v43, %v7441_v10 }
  0xaa   :  { %v215_v30 = vrot.slane %v119_v3, 7  ;;  %v7626_v9 = vcombine.low %v7495_v17, %v7468_v44  ;;  %v982_v41 = vrot.slane %v9297_v22, 5  ;;  %v1001_v58 = vrot.slane %v9292_v52, 4 }
  0xab   :  { %1494 = vmatpush1.bf16.msra.mxu0 %v6794_v37  ;;  %v977_v37 = vor.u32 %v976_v59, %v7531_v15  ;;  %9402 = vst [vmem:[#allocation24_spill] sm:$0xff] %v7610_v28  ;;  %v9307_v15 = vshrl.u32 %v7591_v32, 16  ;;  %v276_v59 = vsel %vm217_vm0, 0, %v213_v33  ;;  %v1004_v62 = vrot.slane %v9293_v63, 5 }
  0xac   :  { %1607 = vmatpush1.bf16.msra.mxu1 %v6797_v51  ;;  %2081 = vmatprep.subr.bf16.mxu0 %v6800_v57  ;;  %v991_v51 = vor.u32 %v990_v6, %v987_v60  ;;  %v9308_v57 = vshll.u32 %v7591_v32, 16  ;;  %v9310_v3 = vshrl.u32 %v7614_v50, 16  ;;  %v280_v54 = vsel %vm217_vm0, 0, %v215_v30 }
  0xad   :  { %815 = vmatmul.mubr.bf16.gmra.mrb[20].mxu1 %v5637_v56  ;;  %2194 = vmatprep.subr.bf16.mxu1 %v9304_v0  ;;  %v978_v60 = vrot.slane %v977_v37, 4  ;;  %v1015_v52 = vrot.slane %v9295_v12, 4  ;;  %v1018_v33 = vrot.slane %v9296_v46, 5  ;;  %v9311_v37 = vshll.u32 %v7614_v50, 16 }
  0xae   :  { %712 = vmatmul.mubr.bf16.gmra.mrb[20].mxu0 %v5637_v56  ;;  %5687 = vmatprep.mubr.msk.bf16.mxu1 %vm604_vm2, %v5640_v5  ;;  %v7618_v56 = vcombine.high %v7465_v43, %v7441_v10  ;;  %v5639_v10 = vcombine.low %v7595_v2, %v7598_v29  ;;  %v5642_v43 = vcombine.low %v7601_v36, %v7605_v8  ;;  %v992_v6 = vrot.slane %v991_v51, 4 }
  0xaf   :  { %5679 = vmatprep.mubr.msk.bf16.mxu0 %vm604_vm2, %v5640_v5  ;;  %v996_v5 = vrot.slane %v9294_v13, 5  ;;  %v7656_v51 = vcombine.low %v7498_v18, %v7471_v45  ;;  %v9315_v30 = vshrl.u32 %v7626_v9, 16  ;;  %v9318_v63 = vshll.u32 %v7626_v9, 16 }
  0xb0   :  { %v7662_v13 = vcombine.high %v7495_v17, %v7468_v44  ;;  %v7666_v12 = vcombine.high %v7498_v18, %v7471_v45  ;;  %v312_v46 = vsel %vm283_vm1, %v276_v59, 0  ;;  %v9306_v22 = vshll.u32 %v7554_v38, 16 }
  0xb1   :  { %9406 = vst [vmem:[#allocation26_spill] sm:$0xff] %v7656_v51  ;;  %v314_v21 = vsel %vm283_vm1, %v280_v54, 0  ;;  %v983_v1 = vsel %vm7645_vm5, %v978_v60, %v982_v41  ;;  %v997_v44 = vsel %vm7645_vm5, %v992_v6, %v996_v5  ;;  %v1005_v17 = vor.u32 %v1004_v62, %v1001_v58 }
  0xb2   :  { %9407 = vst [vmem:[#allocation27_spill] sm:$0xff] %v7666_v12  ;;  %v1019_v45 = vor.u32 %v1018_v33, %v1015_v52  ;;  %v9313_v18 = vshll.u32 %v7563_v55, 16  ;;  %v1029_v59 = vrot.slane %v9302_v47, 4  ;;  %v9317_v54 = vshrl.u32 %v7656_v51, 16 }
  0xb3   :  { %v7685_v41 = vcombine.low %v7535_v20, %v7501_v19  ;;  %v1043_v5 = vrot.slane %v9301_v61, 4  ;;  %v1046_v52 = vrot.slane %v9303_v35, 5  ;;  %v7694_v58 = vcombine.high %v7535_v20, %v7501_v19 }
  0xb4   :  { %v7698_v60 = vcombine.low %v7538_v23, %v7506_v24  ;;  %v5641_v6 = vcombine.low %v312_v46, %v314_v21  ;;  %v5722_v62 = vcombine.high %v983_v1, %v997_v44  ;;  %v1006_v33 = vrot.slane %v1005_v17, 4 }
  0xb5   :  { %823 = vmatmul.mubr.bf16.gmra.mrb[24].mxu1 %v5639_v10  ;;  %9408 = vst [vmem:[#allocation28_spill] sm:$0xff] %v7685_v41  ;;  %9409 = vst [vmem:[#allocation29_spill] sm:$0xff] %v7694_v58  ;;  %v9312_v61 = vshll.u32 %v7579_v31, 16  ;;  %v1020_v47 = vrot.slane %v1019_v45, 4  ;;  %v1024_v35 = vrot.slane %v9313_v18, 5  ;;  %v9309_v19 = vshll.u32 %v7585_v4, 16 }
  0xb6   :  { %722 = vmatmul.mubr.bf16.gmra.mrb[24].mxu0 %v5639_v10  ;;  %5688 = vmatprep.mubr.msk.bf16.mxu1 %vm604_vm2, %v5642_v43  ;;  %v1032_v10 = vrot.slane %v9300_v11, 5  ;;  %9410 = vst [vmem:[#allocation30_spill] sm:$0xff] %v7698_v60  ;;  %v1010_v11 = vrot.slane %v9306_v22, 5  ;;  %v7708_v20 = vcombine.high %v7538_v23, %v7506_v24  ;;  %v9320_v34 = vshrl.u32 %v7685_v41, 16  ;;  %v6810_v22 = vld [vmem:[#allocation7 + $0x1e8] ss:$12 sps:$4 sm:$0xff]  }
  0xb7   :  { %5680 = vmatprep.mubr.msk.bf16.mxu0 %vm604_vm2, %v5642_v43  ;;  %v9321_v17 = vshll.u32 %v7685_v41, 16  ;;  %v1047_v0 = vor.u32 %v1046_v52, %v1043_v5  ;;  %v7716_v45 = vcombine.low %v7595_v2, %v7541_v25  ;;  %v7724_v24 = vcombine.low %v7598_v29, %v7544_v26 }
  0xb8   :  { %v1033_v40 = vor.u32 %v1032_v10, %v1029_v59  ;;  %v7720_v59 = vcombine.high %v7595_v2, %v7541_v25  ;;  %v1011_v23 = vsel %vm7645_vm5, %v1006_v33, %v1010_v11  ;;  %v1038_v10 = vrot.slane %v9312_v61, 5  ;;  %v6798_v61 = vld [vmem:[#allocation7 + $0x1e0] ss:$12 sps:$4 sm:$0xff]  }
  0xb9   :  { %9411 = vst [vmem:[#allocation31_spill] sm:$0xff] %v7716_v45  ;;  %v1057_v5 = vrot.slane %v9307_v15, 4  ;;  %v1025_v25 = vsel %vm7645_vm5, %v1020_v47, %v1024_v35  ;;  %v1052_v52 = vrot.slane %v9309_v19, 5  ;;  %v7742_v11 = vcombine.high %v7598_v29, %v7544_v26 }
  0xba   :  { %v1034_v2 = vrot.slane %v1033_v40, 4  ;;  %v1048_v33 = vrot.slane %v1047_v0, 4  ;;  %v1071_v15 = vrot.slane %v9310_v3, 4  ;;  %v7750_v40 = vcombine.low %v312_v46, %v7601_v36 }
  0xbb   :  { %v7753_v35 = vcombine.low %v314_v21, %v7605_v8  ;;  %v5724_v0 = vcombine.high %v1011_v23, %v1025_v25  ;;  %v9314_v29 = vshll.u32 %v7610_v28, 16  ;;  %v9316_v47 = vshll.u32 %v7618_v56, 16 }
  0xbc   :  { %v7764_v43 = vcombine.high %v314_v21, %v7605_v8  ;;  %v1053_v26 = vsel %vm7645_vm5, %v1048_v33, %v1052_v52  ;;  %v5723_v8 = vcombine.low %v1011_v23, %v1025_v25  ;;  %v6806_v52 = vld [vmem:[#allocation7 + $0x214] ss:$12 sps:$4 sm:$0xff]   ;;  %v6804_v21 = vld [vmem:[#allocation7 + $0x210] ss:$12 sps:$4 sm:$0xff]  }
  0xbd   :  { %831 = vmatmul.mubr.bf16.gmra.mrb[28].mxu1 %v5641_v6  ;;  %9412 = vst [vmem:[#allocation32_spill] sm:$0xff] %v7753_v35 }
  0xbe   :  { %732 = vmatmul.mubr.bf16.gmra.mrb[28].mxu0 %v5641_v6  ;;  %5775 = vmatprep.mubr.msk.bf16.mxu1 %vm604_vm2, %v5722_v62  ;;  %v1060_v6 = vrot.slane %v9308_v57, 5  ;;  %v5721_v57 = vcombine.low %v983_v1, %v997_v44  ;;  %v6803_v1 = vld [vmem:[#allocation7 + $0x1fc] ss:$12 sps:$4 sm:$0xff]   ;;  %v1039_v44 = vsel %vm7645_vm5, %v1034_v2, %v1038_v10  ;;  %v6801_v10 = vld [vmem:[#allocation7 + $0x1f8] ss:$12 sps:$4 sm:$0xff]   ;;  %v1085_v2 = vrot.slane %v9315_v30, 4 }
  0xbf   :  { %5767 = vmatprep.mubr.msk.bf16.mxu0 %vm604_vm2, %v5722_v62  ;;  %v1074_v62 = vrot.slane %v9311_v37, 5  ;;  %v7760_v37 = vcombine.high %v312_v46, %v7601_v36  ;;  %v7785_v23 = vcombine.low %v1039_v44, %v1053_v26  ;;  %v9417_v36 = vshrl.u32 %v7716_v45, 16 }
  0xc0   :  { %v1061_v18 = vor.u32 %v1060_v6, %v1057_v5  ;;  %v9319_v5 = vshll.u32 %v7662_v13, 16  ;;  %v5726_v6 = vcombine.high %v1039_v44, %v1053_v26  ;;  %v6809_v26 = vld [vmem:[#allocation7 + $0x22c] ss:$12 sps:$4 sm:$0xff]   ;;  %v9415_v44 = vshrl.u32 %v7698_v60, 16 }
  0xc1   :  { %v1075_v19 = vor.u32 %v1074_v62, %v1071_v15  ;;  %v1066_v15 = vrot.slane %v9314_v29, 5  ;;  %v1080_v62 = vrot.slane %v9316_v47, 5  ;;  %v6814_v29 = vld [vmem:[#allocation7 + $0x200] ss:$12 sps:$4 sm:$0xff]   ;;  %v1141_v46 = vrot.slane %v9417_v36, 4 }
  0xc2   :  { %v1062_v33 = vrot.slane %v1061_v18, 4  ;;  %v9414_v18 = vmov 0   ;;  %v7794_v47 = vrot.slane %v9319_v5, 5  ;;  %v9418_v5 = vshll.u32 %v7716_v45, 16 }
  0xc3   :  { %v1076_v25 = vrot.slane %v1075_v19, 4  ;;  %v1113_v19 = vrot.slane %v9320_v34, 4 }
  0xc4   :  { %v1144_v3 = vrot.slane %v9418_v5, 5  ;;  %v7811_v34 = vsel %vm7645_vm5, %v1062_v33, %v1066_v15  ;;  %v6818_v5 = vld [vmem:[#allocation7 + $0x218] ss:$12 sps:$4 sm:$0xff]   ;;  %v9422_v15 = vshll.u32 %v7750_v40, 16  ;;  %v6807_v33 = vld [vmem:[#allocation7 + $0x228] ss:$12 sps:$4 sm:$0xff]  }
  0xc5   :  { %1621 = vmatmul.mubr.bf16.vlgmr.msra.gmra.mrb[0].mxu1 %v5721_v57 }
  0xc6   :  { %1508 = vmatmul.mubr.bf16.vlgmr.msra.gmra.mrb[0].mxu0 %v5721_v57  ;;  %5776 = vmatprep.mubr.msk.bf16.mxu1 %vm604_vm2, %v5724_v0  ;;  %v1088_v57 = vrot.slane %v9318_v63, 5 }
  0xc7   :  { %2082 = vmatpush1.bf16.msra.mxu0 %v6798_v61  ;;  %5768 = vmatprep.mubr.msk.bf16.mxu0 %vm604_vm2, %v5724_v0  ;;  %v1099_v61 = vrot.slane %v9317_v54, 4  ;;  %v9413_v0 = vshll.u32 %v7656_v51, 16  ;;  %v1127_v54 = vrot.slane %v9415_v44, 4  ;;  %v9420_v44 = vshll.u32 %v7724_v24, 16 }
  0xc8   :  { %2083 = vmatprep.subr.bf16.mxu0 %v6803_v1  ;;  %2195 = vmatpush1.bf16.msra.mxu1 %v6810_v22  ;;  %v1116_v22 = vrot.slane %v9321_v17, 5  ;;  %v1089_v1 = vor.u32 %v1088_v57, %v1085_v2  ;;  %v9419_v17 = vshrl.u32 %v7724_v24, 16  ;;  %v1172_v2 = vrot.slane %v9422_v15, 5 }
  0xc9   :  { %v1102_v30 = vrot.slane %v9413_v0, 5  ;;  %2196 = vmatprep.subr.bf16.mxu1 %v9414_v18  ;;  %v9416_v0 = vshll.u32 %v7698_v60, 16  ;;  %v1158_v51 = vrot.slane %v9420_v44, 5  ;;  %v9423_v57 = vshrl.u32 %v7753_v35, 16 }
  0xca   :  { %v1155_v41 = vrot.slane %v9419_v17, 4  ;;  %v1117_v17 = vor.u32 %v1116_v22, %v1113_v19  ;;  %v1145_v44 = vor.u32 %v1144_v3, %v1141_v46  ;;  %v6813_v22 = vld [vmem:[#allocation7 + $0x244] ss:$12 sps:$4 sm:$0xff]   ;;  %v1090_v15 = vrot.slane %v1089_v1, 4 }
  0xcb   :  { %v1130_v63 = vrot.slane %v9416_v0, 5  ;;  %2084 = vmatpush1.bf16.msra.mxu0 %v6801_v10  ;;  %v7819_v0 = vsel %vm7645_vm5, %v1076_v25, %v1080_v62  ;;  %v1103_v36 = vor.u32 %v1102_v30, %v1099_v61  ;;  %v9421_v10 = vshrl.u32 %v7750_v40, 16  ;;  %v6819_v3 = vld [vmem:[#allocation7 + $0x230] ss:$12 sps:$4 sm:$0xff]  }
  0xcc   :  { %2085 = vmatprep.subr.bf16.mxu0 %v6806_v52  ;;  %2197 = vmatpush1.bf16.msra.mxu1 %v6814_v29  ;;  %v9330_v52 = vshll.u32 %v7694_v58, 16  ;;  %v1183_v62 = vrot.slane %v9423_v57, 4  ;;  %v9424_v29 = vshll.u32 %v7753_v35, 16  ;;  %v9332_v61 = vshll.u32 %v7708_v20, 16 }
  0xcd   :  { %v1169_v45 = vrot.slane %v9421_v10, 4  ;;  %1629 = vmatmul.mubr.bf16.gmra.mrb[4].mxu1 %v5723_v8  ;;  %2198 = vmatprep.subr.bf16.mxu1 %v9414_v18  ;;  %v1131_v25 = vor.u32 %v1130_v63, %v1127_v54  ;;  %v5728_v19 = vcombine.high %v7811_v34, %v7819_v0  ;;  %v1159_v57 = vor.u32 %v1158_v51, %v1155_v41  ;;  %v6811_v10 = vld [vmem:[#allocation7 + $0x240] ss:$12 sps:$4 sm:$0xff]  }
  0xce   :  { %v1186_v30 = vrot.slane %v9424_v29, 5  ;;  %1518 = vmatmul.mubr.bf16.gmra.mrb[4].mxu0 %v5723_v8  ;;  %5777 = vmatprep.mubr.msk.bf16.mxu1 %vm604_vm2, %v5726_v6  ;;  %v1104_v8 = vrot.slane %v1103_v36, 4  ;;  %v9425_v63 = vshll.u32 %v7666_v12, 16  ;;  %v1122_v1 = vrot.slane %v9330_v52, 5 }
  0xcf   :  { %2086 = vmatpush1.bf16.msra.mxu0 %v6804_v21  ;;  %5769 = vmatprep.mubr.msk.bf16.mxu0 %vm604_vm2, %v5726_v6  ;;  %v1173_v46 = vor.u32 %v1172_v2, %v1169_v45  ;;  %v1118_v6 = vrot.slane %v1117_v17, 4  ;;  %v9331_v41 = vshll.u32 %v7764_v43, 16  ;;  %v1132_v36 = vrot.slane %v1131_v25, 4 }
  0xd0   :  { %2087 = vmatprep.subr.bf16.mxu0 %v6809_v26  ;;  %v1108_v54 = vrot.slane %v9425_v63, 5  ;;  %2199 = vmatpush1.bf16.msra.mxu1 %v6818_v5  ;;  %v1187_v51 = vor.u32 %v1186_v30, %v1183_v62  ;;  %v6817_v26 = vld [vmem:[#allocation7 + $0x25c] ss:$12 sps:$4 sm:$0xff]   ;;  %v1136_v63 = vrot.slane %v9332_v61, 5  ;;  %v1146_v29 = vrot.slane %v1145_v44, 4 }
  0xd1   :  { %2200 = vmatprep.subr.bf16.mxu1 %v9414_v18  ;;  %v6823_v5 = vld [vmem:[#allocation7 + $0x248] ss:$12 sps:$4 sm:$0xff]   ;;  %v9426_v45 = vshll.u32 %v7720_v59, 16  ;;  %v1160_v21 = vrot.slane %v1159_v57, 4  ;;  %v9427_v17 = vshll.u32 %v7742_v11, 16  ;;  %v1174_v62 = vrot.slane %v1173_v46, 4 }
  0xd2   :  { %v9428_v30 = vshll.u32 %v7760_v37, 16  ;;  %v1095_v25 = vsel %vm7645_vm5, %v1090_v15, %v7794_v47  ;;  %v6815_v44 = vld [vmem:[#allocation7 + $0x258] ss:$12 sps:$4 sm:$0xff]   ;;  %v1192_v57 = vrot.slane %v9331_v41, 5  ;;  %v6822_v46 = vld [vmem:[#allocation7 + $0x274] ss:$12 sps:$4 sm:$0xff]  }
  0xd3   :  { %v1150_v2 = vrot.slane %v9426_v45, 5  ;;  %2088 = vmatpush1.bf16.msra.mxu0 %v6807_v33  ;;  %v1164_v35 = vrot.slane %v9427_v17, 5  ;;  %v1109_v33 = vsel %vm7645_vm5, %v1104_v8, %v1108_v54  ;;  %v5783_v47 = vrot.slane %v7413_v42, 9  ;;  %v6820_v17 = vld [vmem:[#allocation7 + $0x270] ss:$12 sps:$4 sm:$0xff]  }
  0xd4   :  { %2089 = vmatprep.subr.bf16.mxu0 %v6813_v22  ;;  %2201 = vmatpush1.bf16.msra.mxu1 %v6819_v3  ;;  %v1178_v52 = vrot.slane %v9428_v30, 5  ;;  %v1188_v22 = vrot.slane %v1187_v51, 4  ;;  %v5727_v3 = vcombine.low %v7811_v34, %v7819_v0  ;;  %v1738_v15 = vrot.slane %v7431_v7, 5 }
  0xd5   :  { %1637 = vmatmul.mubr.bf16.gmra.mrb[8].mxu1 %v7785_v23  ;;  %2202 = vmatprep.subr.bf16.mxu1 %v9414_v18  ;;  %v5784_v8 = vrot.slane %v7446_v14, 9  ;;  %v1742_v54 = vrot.slane %v7477_v53, 5  ;;  %v9429_v51 = vshrl.u32 %v7431_v7, 16  ;;  %v5730_v45 = vcombine.high %v1095_v25, %v1109_v33 }
  0xd6   :  { %1528 = vmatmul.mubr.bf16.gmra.mrb[8].mxu0 %v7785_v23  ;;  %5778 = vmatprep.mubr.msk.bf16.mxu1 %vm604_vm2, %v5728_v19  ;;  %v1123_v34 = vsel %vm7645_vm5, %v1118_v6, %v1122_v1  ;;  %v1137_v0 = vsel %vm7645_vm5, %v1132_v36, %v1136_v63  ;;  %v1165_v6 = vsel %vm7645_vm5, %v1160_v21, %v1164_v35  ;;  %v5785_v63 = vrot.slane %v7492_v16, 9  ;;  %v6827_v35 = vld [vmem:[#allocation7 + $0x28c] ss:$12 sps:$4 sm:$0xff]  }
  0xd7   :  { %5770 = vmatprep.mubr.msk.bf16.mxu0 %vm604_vm2, %v5728_v19  ;;  %2090 = vmatpush1.bf16.msra.mxu0 %v6811_v10  ;;  %v7873_v23 = vrot.slane %v9429_v51, 5  ;;  %v6824_v10 = vld [vmem:[#allocation7 + $0x260] ss:$12 sps:$4 sm:$0xff]   ;;  %v1179_v1 = vsel %vm7645_vm5, %v1174_v62, %v1178_v52  ;;  %v1193_v36 = vsel %vm7645_vm5, %v1188_v22, %v1192_v57  ;;  %v5786_v30 = vrot.slane %v7513_v49, 9  ;;  %v6825_v57 = vld [vmem:[#allocation7 + $0x288] ss:$12 sps:$4 sm:$0xff]  }
  0xd8   :  { %2091 = vmatprep.subr.bf16.mxu0 %v6817_v26  ;;  %2203 = vmatpush1.bf16.msra.mxu1 %v6823_v5  ;;  %v1151_v26 = vsel %vm7645_vm5, %v1146_v29, %v1150_v2  ;;  %v1746_v5 = vrot.slane %v7554_v38, 5  ;;  %v1750_v51 = vrot.slane %v7563_v55, 5  ;;  %v7898_v41 = vcombine.low %v1095_v25, %v1109_v33 }
  0xd9   :  { %2204 = vmatprep.subr.bf16.mxu1 %v9414_v18  ;;  %v7900_v29 = vcombine.high %v1123_v34, %v1137_v0  ;;  %v1739_v52 = vsel %vm7881_vm8, %v5783_v47, %v1738_v15  ;;  %v1743_v21 = vsel %vm7881_vm8, %v5784_v8, %v1742_v54  ;;  %v9432_v2 = vshrl.u32 %v7477_v53, 16 }
  0xda   :  { %v7910_v22 = vcombine.low %v1123_v34, %v1137_v0  ;;  %v7912_v25 = vcombine.high %v1151_v26, %v1165_v6  ;;  %v7914_v33 = vcombine.low %v1151_v26, %v1165_v6  ;;  %v7917_v47 = vcombine.high %v1179_v1, %v1193_v36  ;;  %v6832_v34 = vld [vmem:[#allocation7 + $0x290] ss:$12 sps:$4 sm:$0xff]  }
  0xdb   :  { %2092 = vmatpush1.bf16.msra.mxu0 %v6815_v44  ;;  %v7908_v62 = vrot.slane %v9432_v2, 5  ;;  %v6828_v44 = vld [vmem:[#allocation7 + $0x278] ss:$12 sps:$4 sm:$0xff]   ;;  %v7919_v15 = vcombine.low %v1179_v1, %v1193_v36  ;;  %v7924_v0 = vcombine.low %v1739_v52, %v1743_v21  ;;  %v7932_v26 = vsel %vm7881_vm8, %v5786_v30, %v1750_v51  ;;  %v6829_v2 = vld [vmem:[#allocation7 + $0x2a0] ss:$12 sps:$4 sm:$0xff]  }
  0xdc   :  { %2093 = vmatprep.subr.bf16.mxu0 %v6822_v46  ;;  %2205 = vmatpush1.bf16.msra.mxu1 %v6824_v10  ;;  %v6831_v46 = vld [vmem:[#allocation7 + $0x2a4] ss:$12 sps:$4 sm:$0xff]   ;;  %v7928_v10 = vsel %vm7881_vm8, %v5785_v63, %v1746_v5  ;;  %v9433_v6 = vshrl.u32 %v7413_v42, 16  ;;  %v9434_v63 = vshll.u32 %v7413_v42, 16  ;;  %v9435_v30 = vshll.u32 %v7431_v7, 16 }
  0xdd   :  { %1645 = vmatmul.mubr.bf16.gmra.mrb[12].mxu1 %v5727_v3  ;;  %2206 = vmatprep.subr.bf16.mxu1 %v9414_v18  ;;  %v2366_v61 = vshrl.u32 %v7554_v38, 16  ;;  %v6836_v7 = vld [vmem:[#allocation7 + $0x2bc] ss:$12 sps:$4 sm:$0xff]  }
  0xde   :  { %1538 = vmatmul.mubr.bf16.gmra.mrb[12].mxu0 %v5727_v3  ;;  %5779 = vmatprep.mubr.msk.bf16.mxu1 %vm604_vm2, %v5730_v45  ;;  %v2342_v1 = vrot.slane %v9433_v6, 5  ;;  %v7937_v3 = vcombine.high %v1739_v52, %v1743_v21  ;;  %v2343_v5 = vrot.slane %v9434_v63, 6  ;;  %v2349_v51 = vrot.slane %v9435_v30, 6 }
  0xdf   :  { %5771 = vmatprep.mubr.msk.bf16.mxu0 %vm604_vm2, %v5730_v45  ;;  %2094 = vmatpush1.bf16.msra.mxu0 %v6820_v17  ;;  %v9436_v6 = vshrl.u32 %v7446_v14, 16  ;;  %v7950_v17 = vcombine.high %v7928_v10, %v7932_v26  ;;  %v9437_v52 = vshll.u32 %v7446_v14, 16  ;;  %v9438_v21 = vshll.u32 %v7477_v53, 16 }
  0xe0   :  { %2095 = vmatprep.subr.bf16.mxu0 %v6827_v35  ;;  %2207 = vmatpush1.bf16.msra.mxu1 %v6828_v44  ;;  %v9439_v63 = vshrl.u32 %v7492_v16, 16  ;;  %v2344_v30 = vor.u32 %v2343_v5, %v2342_v1  ;;  %v2350_v8 = vor.u32 %v2349_v51, %v7873_v23  ;;  %v9444_v1 = vshll.u32 %v7554_v38, 16 }
  0xe1   :  { %v2352_v45 = vrot.slane %v9436_v6, 5  ;;  %2208 = vmatprep.subr.bf16.mxu1 %v9414_v18  ;;  %v2353_v35 = vrot.slane %v9437_v52, 6  ;;  %v2359_v44 = vrot.slane %v9438_v21, 6  ;;  %v9440_v6 = vshll.u32 %v7492_v16, 16 }
  0xe2   :  { %v2362_v36 = vrot.slane %v9439_v63, 5  ;;  %v9441_v52 = vmov 0  ;;  %v2369_v23 = vrot.slane %v9444_v1, 6  ;;  %v9445_v5 = vshrl.u32 %v7513_v49, 16 }
  0xe3   :  { %v2363_v54 = vrot.slane %v9440_v6, 6  ;;  %2096 = vmatpush1.bf16.msra.mxu0 %v6825_v57  ;;  %v9442_v52 = vsel %vm7964_vm11, 4294967295, %v9441_v52  ;;  %v2354_v21 = vor.u32 %v2353_v35, %v2352_v45  ;;  %v2360_v63 = vor.u32 %v2359_v44, %v7908_v62 }
  0xe4   :  { %9443 = vst [vmem:[#allocation33_spill] sm:$0xff] %v9442_v52  ;;  %v2372_v51 = vrot.slane %v9445_v5, 5  ;;  %2097 = vmatprep.subr.bf16.mxu0 %v6831_v46  ;;  %2209 = vmatpush1.bf16.msra.mxu1 %v6832_v34  ;;  %v2345_v57 = vrot.slane %v2344_v30, 4  ;;  %v2368_v16 = vrot.slane %v2366_v61, 5  ;;  %v9446_v53 = vshll.u32 %v7513_v49, 16 }
  0xe5   :  { %v2364_v6 = vor.u32 %v2363_v54, %v2362_v36  ;;  %1653 = vmatmul.mubr.bf16.gmra.mrb[16].mxu1 %v7898_v41  ;;  %2210 = vmatprep.subr.bf16.mxu1 %v9414_v18  ;;  %v2355_v45 = vrot.slane %v2354_v21, 4  ;;  %v2376_v62 = vshrl.u32 %v7563_v55, 16  ;;  %v9447_v35 = vshll.u32 %v7563_v55, 16  ;;  %v6834_v61 = vld [vmem:[#allocation7 + $0x2b8] ss:$12 sps:$4 sm:$0xff]  }
  0xe6   :  { %v2373_v14 = vrot.slane %v9446_v53, 6  ;;  %v9448_v1 = vshrl.u32 %v7548_v27, 16  ;;  %1548 = vmatmul.mubr.bf16.gmra.mrb[16].mxu0 %v7898_v41  ;;  %5780 = vmatprep.mubr.msk.bf16.mxu1 %vm604_vm2, %v7900_v29  ;;  %v6837_v53 = vld [vmem:[#allocation7 + $0x2c0] ss:$12 sps:$4 sm:$0xff]   ;;  %v2351_v54 = vsel %vm7964_vm11, %v2345_v57, %v2350_v8  ;;  %v2370_v36 = vor.u32 %v2369_v23, %v2368_v16 }
  0xe7   :  { %v2379_v44 = vrot.slane %v9447_v35, 6  ;;  %v2365_v34 = vrot.slane %v2364_v6, 4  ;;  %5772 = vmatprep.mubr.msk.bf16.mxu0 %vm604_vm2, %v7900_v29  ;;  %2098 = vmatpush1.bf16.msra.mxu0 %v6829_v2  ;;  %v6840_v21 = vld [vmem:[#allocation7 + $0x2d4] ss:$12 sps:$4 sm:$0xff]   ;;  %v2361_v5 = vsel %vm7964_vm11, %v2355_v45, %v2360_v63  ;;  %v2378_v41 = vrot.slane %v2376_v62, 5 }
  0xe8   :  { %v2382_v46 = vrot.slane %v9448_v1, 5  ;;  %v2374_v30 = vor.u32 %v2373_v14, %v2372_v51  ;;  %v9449_v35 = vshll.u32 %v7548_v27, 16  ;;  %v2386_v55 = vshrl.u32 %v7579_v31, 16  ;;  %2211 = vmatpush1.bf16.msra.mxu1 %v6833_v48  ;;  %2099 = vmatprep.subr.bf16.mxu0 %v6836_v7  ;;  %v6859_v52 = vld [vmem:[#allocation7 + $0x320] ss:$12 sps:$4 sm:$0xff]  }
  0xe9   :  { %v7994_v8 = vcombine.low %v2351_v54, %v2361_v5  ;;  %v7996_v16 = vcombine.high %v2351_v54, %v2361_v5  ;;  %v2371_v14 = vsel %vm7964_vm11, %v2365_v34, %v2370_v36  ;;  %2212 = vmatprep.subr.bf16.mxu1 %v9414_v18  ;;  %v2380_v2 = vor.u32 %v2379_v44, %v2378_v41 }
  0xea   :  { %v2383_v1 = vrot.slane %v9449_v35, 6  ;;  %v2375_v29 = vrot.slane %v2374_v30, 4  ;;  %v2388_v23 = vrot.slane %v2386_v55, 5  ;;  %v9450_v51 = vshll.u32 %v7579_v31, 16 }
  0xeb   :  { %v9451_v6 = vshrl.u32 %v7558_v39, 16  ;;  %v9452_v7 = vshll.u32 %v7558_v39, 16  ;;  %v2396_v62 = vshrl.u32 %v7585_v4, 16  ;;  %v9453_v54 = vshll.u32 %v7585_v4, 16  ;;  %2100 = vmatpush1.bf16.msra.mxu0 %v6834_v61 }
  0xec   :  { %v2384_v63 = vor.u32 %v2383_v1, %v2382_v46  ;;  %v2389_v57 = vrot.slane %v9450_v51, 6  ;;  %v2381_v44 = vsel %vm7964_vm11, %v2375_v29, %v2380_v2  ;;  %v9454_v36 = vshrl.u32 %v7591_v32, 16  ;;  %2213 = vmatpush1.bf16.msra.mxu1 %v6837_v53  ;;  %2783 = vmatprep.subr.bf16.mxu0 %v6840_v21 }
  0xed   :  { %v2392_v48 = vrot.slane %v9451_v6, 5  ;;  %v2393_v45 = vrot.slane %v9452_v7, 6  ;;  %v2399_v34 = vrot.slane %v9453_v54, 6  ;;  %v8014_v5 = vcombine.high %v2371_v14, %v2381_v44  ;;  %1661 = vmatmul.mubr.bf16.gmra.mrb[20].mxu1 %v7910_v22  ;;  %2896 = vmatprep.subr.bf16.mxu1 %v9414_v18 }
  0xee   :  { %v2385_v46 = vrot.slane %v2384_v63, 4  ;;  %v2390_v55 = vor.u32 %v2389_v57, %v2388_v23  ;;  %v2402_v30 = vrot.slane %v9454_v36, 5  ;;  %v8016_v41 = vcombine.low %v2371_v14, %v2381_v44  ;;  %1558 = vmatmul.mubr.bf16.gmra.mrb[20].mxu0 %v7910_v22  ;;  %5781 = vmatprep.mubr.msk.bf16.mxu1 %vm604_vm2, %v7912_v25 }
  0xef   :  { %v2394_v35 = vor.u32 %v2393_v45, %v2392_v48  ;;  %v2398_v1 = vrot.slane %v2396_v62, 5  ;;  %v9455_v29 = vshll.u32 %v7591_v32, 16  ;;  %v2406_v63 = vshrl.u32 %v7610_v28, 16  ;;  %5773 = vmatprep.mubr.msk.bf16.mxu0 %vm604_vm2, %v7912_v25 }
  0xf0   :  { %v2391_v61 = vsel %vm7964_vm11, %v2385_v46, %v2390_v55  ;;  %v9456_v53 = vshll.u32 %v7610_v28, 16  ;;  %v9457_v51 = vshrl.u32 %v7614_v50, 16  ;;  %v9458_v6 = vshll.u32 %v7614_v50, 16 }
  0xf1   :  { %v2403_v2 = vrot.slane %v9455_v29, 6  ;;  %v2395_v14 = vrot.slane %v2394_v35, 4  ;;  %v2400_v23 = vor.u32 %v2399_v34, %v2398_v1  ;;  %v2408_v45 = vrot.slane %v2406_v63, 5 }
  0xf2   :  { %v2409_v21 = vrot.slane %v9456_v53, 6  ;;  %v2412_v57 = vrot.slane %v9457_v51, 5  ;;  %v2413_v48 = vrot.slane %v9458_v6, 6  ;;  %v2416_v62 = vshrl.u32 %v7618_v56, 16  ;;  %v9463_v6 = vld [vmem:[#allocation26_spill] sm:$0xff] }
  0xf3   :  { %v2404_v7 = vor.u32 %v2403_v2, %v2402_v30  ;;  %v9459_v22 = vshll.u32 %v7618_v56, 16  ;;  %v2401_v44 = vsel %vm7964_vm11, %v2395_v14, %v2400_v23  ;;  %v9460_v46 = vshrl.u32 %v7626_v9, 16 }
  0xf4   :  { %v2414_v34 = vor.u32 %v2413_v48, %v2412_v57  ;;  %v9461_v36 = vshll.u32 %v7626_v9, 16  ;;  %v8045_v1 = vcombine.high %v2391_v61, %v2401_v44  ;;  %v8047_v25 = vcombine.low %v2391_v61, %v2401_v44 }
  0xf5   :  { %v2419_v54 = vrot.slane %v9459_v22, 6  ;;  %v2422_v55 = vrot.slane %v9460_v46, 5  ;;  %v2405_v30 = vrot.slane %v2404_v7, 4  ;;  %v2410_v29 = vor.u32 %v2409_v21, %v2408_v45  ;;  %1669 = vmatmul.mubr.bf16.gmra.mrb[24].mxu1 %v7914_v33 }
  0xf6   :  { %v2423_v35 = vrot.slane %v9461_v36, 6  ;;  %v2415_v2 = vrot.slane %v2414_v34, 4  ;;  %v2418_v63 = vrot.slane %v2416_v62, 5  ;;  %v2426_v51 = vshrl.u32 %v7662_v13, 16  ;;  %v9467_v36 = vld [vmem:[#allocation28_spill] sm:$0xff]  ;;  %1568 = vmatmul.mubr.bf16.gmra.mrb[24].mxu0 %v7914_v33  ;;  %5782 = vmatprep.mubr.msk.bf16.mxu1 %vm604_vm2, %v7917_v47 }
  0xf7   :  { %v2411_v14 = vsel %vm7964_vm11, %v2405_v30, %v2410_v29  ;;  %v9462_v23 = vshll.u32 %v7662_v13, 16  ;;  %v9464_v48 = vshrl.u32 %v9463_v6, 16  ;;  %v9465_v46 = vshll.u32 %v9463_v6, 16  ;;  %5774 = vmatprep.mubr.msk.bf16.mxu0 %vm604_vm2, %v7917_v47 }
  0xf8   :  { %v2424_v53 = vor.u32 %v2423_v35, %v2422_v55  ;;  %v2420_v44 = vor.u32 %v2419_v54, %v2418_v63  ;;  %v2428_v21 = vrot.slane %v2426_v51, 5  ;;  %v2436_v45 = vshrl.u32 %v7666_v12, 16 }
  0xf9   :  { %v2429_v57 = vrot.slane %v9462_v23, 6  ;;  %v2432_v22 = vrot.slane %v9464_v48, 5  ;;  %v2433_v61 = vrot.slane %v9465_v46, 6  ;;  %v9466_v34 = vshll.u32 %v7666_v12, 16 }
  0xfa   :  { %v2425_v7 = vrot.slane %v2424_v53, 4  ;;  %v9468_v35 = vshrl.u32 %v9467_v36, 16  ;;  %v9469_v29 = vshll.u32 %v9467_v36, 16  ;;  %v2421_v54 = vsel %vm7964_vm11, %v2415_v2, %v2420_v44 }
  0xfb   :  { %v2434_v62 = vor.u32 %v2433_v61, %v2432_v22  ;;  %v2439_v55 = vrot.slane %v9466_v34, 6  ;;  %v2430_v63 = vor.u32 %v2429_v57, %v2428_v21  ;;  %v2438_v53 = vrot.slane %v2436_v45, 5 }
  0xfc   :  { %v2442_v30 = vrot.slane %v9468_v35, 5  ;;  %v2443_v23 = vrot.slane %v9469_v29, 6  ;;  %v2446_v51 = vshrl.u32 %v7694_v58, 16  ;;  %v8074_v48 = vcombine.high %v2411_v14, %v2421_v54 }
  0xfd   :  { %v8076_v22 = vcombine.low %v2411_v14, %v2421_v54  ;;  %v2435_v46 = vrot.slane %v2434_v62, 4  ;;  %v2431_v33 = vsel %vm7964_vm11, %v2425_v7, %v2430_v63  ;;  %v2440_v34 = vor.u32 %v2439_v55, %v2438_v53  ;;  %1677 = vmatmul.mubr.bf16.gmra.mrb[28].mxu1 %v7919_v15 }
  0xfe   :  { %v2444_v61 = vor.u32 %v2443_v23, %v2442_v30  ;;  %v2448_v35 = vrot.slane %v2446_v51, 5  ;;  %v9470_v2 = vshll.u32 %v7694_v58, 16  ;;  %v9471_v21 = vshrl.u32 %v7698_v60, 16  ;;  %v9474_v23 = vld [vmem:[#allocation31_spill] sm:$0xff]  ;;  %1578 = vmatmul.mubr.bf16.gmra.mrb[28].mxu0 %v7919_v15  ;;  %5853 = vmatprep.mubr.msk.bf16.mxu1 %vm604_vm2, %v7937_v3 }
  0xff   :  { %v9472_v47 = vshll.u32 %v7698_v60, 16  ;;  %v2456_v14 = vshrl.u32 %v7708_v20, 16  ;;  %v2441_v62 = vsel %vm7964_vm11, %v2435_v46, %v2440_v34  ;;  %v9473_v7 = vshll.u32 %v7708_v20, 16  ;;  %5845 = vmatprep.mubr.msk.bf16.mxu0 %vm604_vm2, %v7937_v3 }
 0x100   :  { %v2449_v57 = vrot.slane %v9470_v2, 6  ;;  %v2445_v44 = vrot.slane %v2444_v61, 4  ;;  %v2452_v45 = vrot.slane %v9471_v21, 5  ;;  %v9475_v54 = vshrl.u32 %v9474_v23, 16 }
 0x101   :  { %v2453_v29 = vrot.slane %v9472_v47, 6  ;;  %v2459_v55 = vrot.slane %v9473_v7, 6  ;;  %v8093_v53 = vcombine.high %v2431_v33, %v2441_v62  ;;  %v8095_v51 = vcombine.low %v2431_v33, %v2441_v62 }
 0x102   :  { %v2450_v30 = vor.u32 %v2449_v57, %v2448_v35  ;;  %v2462_v63 = vrot.slane %v9475_v54, 5  ;;  %v2458_v2 = vrot.slane %v2456_v14, 5  ;;  %v9477_v47 = vshll.u32 %v9474_v23, 16 }
 0x103   :  { %9476 = vst [vmem:[#allocation26_spill] sm:$0xff] %v8095_v51  ;;  %v2454_v61 = vor.u32 %v2453_v29, %v2452_v45  ;;  %v2466_v46 = vshrl.u32 %v7720_v59, 16  ;;  %v9478_v34 = vshll.u32 %v7720_v59, 16  ;;  %v9479_v33 = vshrl.u32 %v7724_v24, 16 }
 0x104   :  { %v2451_v21 = vsel %vm7964_vm11, %v2445_v44, %v2450_v30  ;;  %v2463_v49 = vrot.slane %v9477_v47, 6  ;;  %v2460_v7 = vor.u32 %v2459_v55, %v2458_v2  ;;  %v9480_v45 = vshll.u32 %v7724_v24, 16 }
 0x105   :  { %v2469_v35 = vrot.slane %v9478_v34, 6  ;;  %v2455_v57 = vrot.slane %v2454_v61, 4  ;;  %v2472_v62 = vrot.slane %v9479_v33, 5  ;;  %v2468_v14 = vrot.slane %v2466_v46, 5  ;;  %2227 = vmatmul.mubr.bf16.vlgmr.msra.gmra.mrb[0].mxu1 %v7924_v0 }
 0x106   :  { %v2473_v29 = vrot.slane %v9480_v45, 6  ;;  %v2464_v44 = vor.u32 %v2463_v49, %v2462_v63  ;;  %v2476_v30 = vshrl.u32 %v7742_v11, 16  ;;  %v9481_v54 = vshll.u32 %v7742_v11, 16  ;;  %2114 = vmatmul.mubr.bf16.vlgmr.msra.gmra.mrb[0].mxu0 %v7924_v0  ;;  %5854 = vmatprep.mubr.msk.bf16.mxu1 %vm604_vm2, %v7950_v17 }
 0x107   :  { %v2461_v55 = vsel %vm7964_vm11, %v2455_v57, %v2460_v7  ;;  %v9482_v2 = vshrl.u32 %v7750_v40, 16  ;;  %v9483_v34 = vshll.u32 %v7750_v40, 16  ;;  %v2470_v45 = vor.u32 %v2469_v35, %v2468_v14  ;;  %v6843_v57 = vld [vmem:[#allocation7 + $0x2ec] ss:$12 sps:$4 sm:$0xff]   ;;  %5846 = vmatprep.mubr.msk.bf16.mxu0 %vm604_vm2, %v7950_v17 }
 0x108   :  { %v2479_v47 = vrot.slane %v9481_v54, 6  ;;  %v2474_v61 = vor.u32 %v2473_v29, %v2472_v62  ;;  %v8123_v49 = vcombine.high %v2451_v21, %v2461_v55  ;;  %v8125_v63 = vcombine.low %v2451_v21, %v2461_v55  ;;  %v6838_v54 = vld [vmem:[#allocation7 + $0x2d0] ss:$12 sps:$4 sm:$0xff]  }
 0x109   :  { %v2482_v15 = vrot.slane %v9482_v2, 5  ;;  %v2483_v33 = vrot.slane %v9483_v34, 6  ;;  %v2465_v46 = vrot.slane %v2464_v44, 4  ;;  %v2478_v42 = vrot.slane %v2476_v30, 5  ;;  %v9486_v2 = vld [vmem:[#allocation32_spill] sm:$0xff]  ;;  %2784 = vmatpush1.bf16.msra.mxu0 %v6838_v54 }
 0x10a   :  { %9484 = vst [vmem:[#allocation28_spill] sm:$0xff] %v8123_v49  ;;  %v2475_v38 = vrot.slane %v2474_v61, 4  ;;  %v2486_v51 = vshrl.u32 %v7760_v37, 16  ;;  %v9485_v62 = vshll.u32 %v7760_v37, 16  ;;  %v9487_v34 = vshrl.u32 %v9486_v2, 16  ;;  %2785 = vmatprep.subr.bf16.mxu0 %v6843_v57 }
 0x10b   :  { %v2484_v3 = vor.u32 %v2483_v33, %v2482_v15  ;;  %v2471_v7 = vsel %vm7964_vm11, %v2465_v46, %v2470_v45  ;;  %v9488_v21 = vshll.u32 %v9486_v2, 16  ;;  %v2480_v35 = vor.u32 %v2479_v47, %v2478_v42  ;;  %v6850_v46 = vld [vmem:[#allocation7 + $0x2d8] ss:$12 sps:$4 sm:$0xff]  }
 0x10c   :  { %v2489_v29 = vrot.slane %v9485_v62, 6  ;;  %v2492_v49 = vrot.slane %v9487_v34, 5  ;;  %v2488_v55 = vrot.slane %v2486_v51, 5  ;;  %v2496_v30 = vshrl.u32 %v7764_v43, 16  ;;  %2897 = vmatpush1.bf16.msra.mxu1 %v6850_v46  ;;  %v6858_v46 = vld [vmem:[#allocation7 + $0x308] ss:$12 sps:$4 sm:$0xff]  }
 0x10d   :  { %v2493_v44 = vrot.slane %v9488_v21, 6  ;;  %v2485_v14 = vrot.slane %v2484_v3, 4  ;;  %v9489_v61 = vrot.slane %v7579_v31, 5  ;;  %v9490_v15 = vrot.slane %v7548_v27, 9  ;;  %v6841_v21 = vld [vmem:[#allocation7 + $0x2e8] ss:$12 sps:$4 sm:$0xff]   ;;  %2898 = vmatprep.subr.bf16.mxu1 %v9414_v18 }
 0x10e   :  { %v9491_v62 = vshll.u32 %v7764_v43, 16  ;;  %v5789_v42 = vrot.slane %v7591_v32, 9  ;;  %v2481_v51 = vsel %vm7964_vm11, %v2475_v38, %v2480_v35  ;;  %v2490_v47 = vor.u32 %v2489_v29, %v2488_v55  ;;  %v6854_v35 = vld [vmem:[#allocation7 + $0x2f0] ss:$12 sps:$4 sm:$0xff]   ;;  %2786 = vmatpush1.bf16.msra.mxu0 %v6841_v21 }
 0x10f   :  { %v1755_v33 = vsel %vm7881_vm8, %v9490_v15, %v9489_v61  ;;  %v2494_v45 = vor.u32 %v2493_v44, %v2492_v49  ;;  %v2498_v3 = vrot.slane %v2496_v30, 5  ;;  %v6846_v61 = vld [vmem:[#allocation7 + $0x304] ss:$12 sps:$4 sm:$0xff]   ;;  %v1762_v49 = vrot.slane %v7610_v28, 5  ;;  %v6844_v28 = vld [vmem:[#allocation7 + $0x300] ss:$12 sps:$4 sm:$0xff]  }
 0x110   :  { %v2499_v34 = vrot.slane %v9491_v62, 6  ;;  %v8153_v44 = vcombine.high %v2471_v7, %v2481_v51  ;;  %v8155_v15 = vcombine.low %v2471_v7, %v2481_v51  ;;  %v9492_v38 = vrot.slane %v7585_v4, 5  ;;  %2787 = vmatprep.subr.bf16.mxu0 %v6846_v61  ;;  %2899 = vmatpush1.bf16.msra.mxu1 %v6854_v35 }
 0x111   :  { %v2495_v62 = vrot.slane %v2494_v45, 4  ;;  %v9493_v29 = vrot.slane %v7558_v39, 9  ;;  %v2491_v55 = vsel %vm7964_vm11, %v2485_v14, %v2490_v47  ;;  %v5790_v7 = vrot.slane %v7614_v50, 9  ;;  %v6849_v47 = vld [vmem:[#allocation7 + $0x31c] ss:$12 sps:$4 sm:$0xff]   ;;  %2900 = vmatprep.subr.bf16.mxu1 %v9414_v18 }
 0x112   :  { %v2500_v30 = vor.u32 %v2499_v34, %v2498_v3  ;;  %v1766_v54 = vrot.slane %v7618_v56, 5  ;;  %v5791_v17 = vrot.slane %v7626_v9, 9  ;;  %v1770_v45 = vrot.slane %v7662_v13, 5  ;;  %2788 = vmatpush1.bf16.msra.mxu0 %v6844_v28  ;;  %v6855_v28 = vld [vmem:[#allocation7 + $0x348] ss:$12 sps:$4 sm:$0xff]  }
 0x113   :  { %v1759_v0 = vsel %vm7881_vm8, %v9493_v29, %v9492_v38  ;;  %v5801_v51 = vcombine.low %v7928_v10, %v7932_v26  ;;  %v5792_v38 = vrot.slane %v9463_v6, 9  ;;  %v1774_v14 = vrot.slane %v7666_v12, 5  ;;  %v6847_v10 = vld [vmem:[#allocation7 + $0x318] ss:$12 sps:$4 sm:$0xff]   ;;  %v6853_v26 = vld [vmem:[#allocation7 + $0x334] ss:$12 sps:$4 sm:$0xff]   ;;  %2789 = vmatprep.subr.bf16.mxu0 %v6849_v47 }
 0x114   :  { %v2501_v57 = vsel %vm7964_vm11, %v2495_v62, %v2500_v30  ;;  %v5804_v34 = vcombine.high %v1755_v33, %v1759_v0  ;;  %v5793_v62 = vrot.slane %v9467_v36, 9  ;;  %v1778_v30 = vrot.slane %v7694_v58, 5  ;;  %2901 = vmatpush1.bf16.msra.mxu1 %v6858_v46  ;;  %v6857_v58 = vld [vmem:[#allocation7 + $0x34c] ss:$12 sps:$4 sm:$0xff]  }
 0x115   :  { %v8178_v3 = vcombine.high %v2491_v55, %v2501_v57  ;;  %v8180_v29 = vcombine.low %v2491_v55, %v2501_v57  ;;  %2235 = vmatmul.mubr.bf16.gmra.mrb[4].mxu1 %v5801_v51  ;;  %2124 = vmatmul.mubr.bf16.gmra.mrb[4].mxu0 %v5801_v51  ;;  %v5794_v12 = vrot.slane %v7698_v60, 9  ;;  %v1782_v55 = vrot.slane %v7708_v20, 5  ;;  %v6851_v51 = vld [vmem:[#allocation7 + $0x330] ss:$12 sps:$4 sm:$0xff]   ;;  %v6863_v60 = vld [vmem:[#allocation7 + $0x338] ss:$12 sps:$4 sm:$0xff]  }
 0x116   :  { %5855 = vmatprep.mubr.msk.bf16.mxu1 %vm604_vm2, %v5804_v34  ;;  %5847 = vmatprep.mubr.msk.bf16.mxu0 %vm604_vm2, %v5804_v34  ;;  %v1763_v21 = vsel %vm7881_vm8, %v5789_v42, %v1762_v49  ;;  %v1767_v61 = vsel %vm7881_vm8, %v5790_v7, %v1766_v54  ;;  %v5803_v35 = vcombine.low %v1755_v33, %v1759_v0  ;;  %v6862_v42 = vld [vmem:[#allocation7 + $0x364] ss:$12 sps:$4 sm:$0xff]   ;;  %v5795_v33 = vrot.slane %v9474_v23, 9  ;;  %v6860_v46 = vld [vmem:[#allocation7 + $0x360] ss:$12 sps:$4 sm:$0xff]  }
 0x117   :  { %2902 = vmatprep.subr.bf16.mxu1 %v9414_v18  ;;  %v5806_v57 = vcombine.high %v1763_v21, %v1767_v61  ;;  %2790 = vmatpush1.bf16.msra.mxu0 %v6847_v10  ;;  %v6864_v49 = vld [vmem:[#allocation7 + $0x350] ss:$12 sps:$4 sm:$0xff]   ;;  %v1786_v0 = vrot.slane %v7720_v59, 5  ;;  %v5796_v7 = vrot.slane %v7724_v24, 9  ;;  %v1790_v54 = vrot.slane %v7742_v11, 5 }
 0x118   :  { %2791 = vmatprep.subr.bf16.mxu0 %v6853_v26  ;;  %2903 = vmatpush1.bf16.msra.mxu1 %v6859_v52  ;;  %v1771_v52 = vsel %vm7881_vm8, %v5791_v17, %v1770_v45  ;;  %v1775_v34 = vsel %vm7881_vm8, %v5792_v38, %v1774_v14  ;;  %v5805_v47 = vcombine.low %v1763_v21, %v1767_v61  ;;  %v6867_v26 = vld [vmem:[#allocation7 + $0x37c] ss:$12 sps:$4 sm:$0xff]   ;;  %v6871_v17 = vld [vmem:[#allocation7 + $0x394] ss:$12 sps:$4 sm:$0xff]   ;;  %v6873_v61 = vld [vmem:[#allocation7 + $0x398] ss:$12 sps:$4 sm:$0xff]  }
 0x119   :  { %2904 = vmatprep.subr.bf16.mxu1 %v9414_v18  ;;  %v5808_v10 = vcombine.high %v1771_v52, %v1775_v34  ;;  %v1783_v45 = vsel %vm7881_vm8, %v5794_v12, %v1782_v55  ;;  %v5807_v38 = vcombine.low %v1771_v52, %v1775_v34  ;;  %v6869_v21 = vld [vmem:[#allocation7 + $0x390] ss:$12 sps:$4 sm:$0xff]   ;;  %v1787_v12 = vsel %vm7881_vm8, %v5795_v33, %v1786_v0 }
 0x11a   :  { %v6877_v55 = vld [vmem:[#allocation7 + $0x3b0] ss:$12 sps:$4 sm:$0xff]   ;;  %v5797_v52 = vrot.slane %v7750_v40, 9  ;;  %v1794_v34 = vrot.slane %v7760_v37, 5  ;;  %v1798_v33 = vrot.slane %v7764_v43, 5 }
 0x11b   :  { %2792 = vmatpush1.bf16.msra.mxu0 %v6851_v51  ;;  %v6865_v51 = vld [vmem:[#allocation7 + $0x378] ss:$12 sps:$4 sm:$0xff]  }
 0x11c   :  { %2793 = vmatprep.subr.bf16.mxu0 %v6857_v58  ;;  %2905 = vmatpush1.bf16.msra.mxu1 %v6863_v60  ;;  %v6872_v58 = vld [vmem:[#allocation7 + $0x380] ss:$12 sps:$4 sm:$0xff]   ;;  %v1779_v60 = vsel %vm7881_vm8, %v5793_v62, %v1778_v30  ;;  %v1791_v62 = vsel %vm7881_vm8, %v5796_v7, %v1790_v54  ;;  %v6874_v30 = vld [vmem:[#allocation7 + $0x3a8] ss:$12 sps:$4 sm:$0xff]   ;;  %v1795_v0 = vsel %vm7881_vm8, %v5797_v52, %v1794_v34  ;;  %v6914_v34 = vld [vmem:[#allocation7 + $0x498] ss:$12 sps:$4 sm:$0xff]  }
 0x11d   :  { %2243 = vmatmul.mubr.bf16.gmra.mrb[8].mxu1 %v5803_v35  ;;  %2134 = vmatmul.mubr.bf16.gmra.mrb[8].mxu0 %v5803_v35  ;;  %v6868_v35 = vld [vmem:[#allocation7 + $0x368] ss:$12 sps:$4 sm:$0xff]   ;;  %v5810_v14 = vcombine.high %v1779_v60, %v1783_v45  ;;  %v5811_v54 = vcombine.low %v1787_v12, %v1791_v62 }
 0x11e   :  { %5856 = vmatprep.mubr.msk.bf16.mxu1 %vm604_vm2, %v5806_v57  ;;  %5848 = vmatprep.mubr.msk.bf16.mxu0 %vm604_vm2, %v5806_v57  ;;  %v6876_v57 = vld [vmem:[#allocation7 + $0x3ac] ss:$12 sps:$4 sm:$0xff]   ;;  %v9494_v52 = vld [vmem:[#allocation26_spill] sm:$0xff] }
 0x11f   :  { %2906 = vmatprep.subr.bf16.mxu1 %v9414_v18  ;;  %2794 = vmatpush1.bf16.msra.mxu0 %v6855_v28  ;;  %v6880_v28 = vld [vmem:[#allocation7 + $0x3c4] ss:$12 sps:$4 sm:$0xff]  }
 0x120   :  { %2795 = vmatprep.subr.bf16.mxu0 %v6862_v42  ;;  %2907 = vmatpush1.bf16.msra.mxu1 %v6864_v49  ;;  %v5809_v42 = vcombine.low %v1779_v60, %v1783_v45  ;;  %v5812_v49 = vcombine.high %v1787_v12, %v1791_v62  ;;  %v6894_v60 = vld [vmem:[#allocation7 + $0x3e0] ss:$12 sps:$4 sm:$0xff]   ;;  %v6900_v62 = vld [vmem:[#allocation7 + $0x450] ss:$12 sps:$4 sm:$0xff]  }
 0x121   :  { %2908 = vmatprep.subr.bf16.mxu1 %v9414_v18  ;;  %v6889_v45 = vld [vmem:[#allocation7 + $0x40c] ss:$12 sps:$4 sm:$0xff]  }
 0x122   :  { %v6904_v12 = vld [vmem:[#allocation7 + $0x440] ss:$12 sps:$4 sm:$0xff]  }
 0x123   :  { %2796 = vmatpush1.bf16.msra.mxu0 %v6860_v46 }
 0x124   :  { %2797 = vmatprep.subr.bf16.mxu0 %v6867_v26  ;;  %2909 = vmatpush1.bf16.msra.mxu1 %v6868_v35  ;;  %v6878_v26 = vld [vmem:[#allocation7 + $0x3c0] ss:$12 sps:$4 sm:$0xff]   ;;  %v6883_v35 = vld [vmem:[#allocation7 + $0x3dc] ss:$12 sps:$4 sm:$0xff]  }
 0x125   :  { %2251 = vmatmul.mubr.bf16.gmra.mrb[12].mxu1 %v5805_v47  ;;  %2144 = vmatmul.mubr.bf16.gmra.mrb[12].mxu0 %v5805_v47  ;;  %v5798_v47 = vrot.slane %v9486_v2, 9 }
 0x126   :  { %5857 = vmatprep.mubr.msk.bf16.mxu1 %vm604_vm2, %v5808_v10  ;;  %5849 = vmatprep.mubr.msk.bf16.mxu0 %vm604_vm2, %v5808_v10 }
 0x127   :  { %2910 = vmatprep.subr.bf16.mxu1 %v9414_v18  ;;  %2798 = vmatpush1.bf16.msra.mxu0 %v6865_v51  ;;  %v1799_v7 = vsel %vm7881_vm8, %v5798_v47, %v1798_v33  ;;  %v6890_v51 = vld [vmem:[#allocation7 + $0x3c8] ss:$12 sps:$4 sm:$0xff]   ;;  %v6917_v47 = vld [vmem:[#allocation7 + $0x4a0] ss:$12 sps:$4 sm:$0xff]  }
 0x128   :  { %2799 = vmatprep.subr.bf16.mxu0 %v6871_v17  ;;  %2911 = vmatpush1.bf16.msra.mxu1 %v6872_v58  ;;  %v5814_v46 = vcombine.high %v1795_v0, %v1799_v7  ;;  %v5813_v10 = vcombine.low %v1795_v0, %v1799_v7  ;;  %v6881_v17 = vld [vmem:[#allocation7 + $0x3d8] ss:$12 sps:$4 sm:$0xff]   ;;  %v6886_v58 = vld [vmem:[#allocation7 + $0x3f4] ss:$12 sps:$4 sm:$0xff]  }
 0x129   :  { %2912 = vmatprep.subr.bf16.mxu1 %v9414_v18  ;;  %v9496_v33 = vld [vmem:[#allocation16_spill] sm:$0xff]  ;;  %v9497_v7 = vld [vmem:[#allocation17_spill] sm:$0xff] }
 0x12a   :  { %v5923_v0 = vrot.slane %v9496_v33, 10  ;;  %v9509_v33 = vld [vmem:[#allocation30_spill] sm:$0xff] }
 0x12b   :  { %2800 = vmatpush1.bf16.msra.mxu0 %v6869_v21  ;;  %v6891_v21 = vld [vmem:[#allocation7 + $0x420] ss:$12 sps:$4 sm:$0xff]  }
 0x12c   :  { %2913 = vmatpush1.bf16.msra.mxu1 %v6873_v61  ;;  %2801 = vmatprep.subr.bf16.mxu0 %v6876_v57  ;;  %v6897_v61 = vld [vmem:[#allocation7 + $0x43c] ss:$12 sps:$4 sm:$0xff]   ;;  %v6902_v57 = vld [vmem:[#allocation7 + $0x454] ss:$12 sps:$4 sm:$0xff]  }
 0x12d   :  { %2259 = vmatmul.mubr.bf16.gmra.mrb[16].mxu1 %v5807_v38  ;;  %2154 = vmatmul.mubr.bf16.gmra.mrb[16].mxu0 %v5807_v38  ;;  %v6893_v38 = vld [vmem:[#allocation7 + $0x424] ss:$12 sps:$4 sm:$0xff]  }
 0x12e   :  { %5858 = vmatprep.mubr.msk.bf16.mxu1 %vm604_vm2, %v5810_v14  ;;  %5850 = vmatprep.mubr.msk.bf16.mxu0 %vm604_vm2, %v5810_v14  ;;  %v6899_v14 = vld [vmem:[#allocation7 + $0x410] ss:$12 sps:$4 sm:$0xff]  }
 0x12f   :  { %2914 = vmatprep.subr.bf16.mxu1 %v9414_v18  ;;  %2802 = vmatpush1.bf16.msra.mxu0 %v6874_v30  ;;  %v6907_v30 = vld [vmem:[#allocation7 + $0x46c] ss:$12 sps:$4 sm:$0xff]  }
 0x130   :  { %2915 = vmatpush1.bf16.msra.mxu1 %v6877_v55  ;;  %3389 = vmatprep.subr.bf16.mxu0 %v6880_v28  ;;  %v6911_v55 = vld [vmem:[#allocation7 + $0x484] ss:$12 sps:$4 sm:$0xff]  }
 0x131   :  { %3502 = vmatprep.subr.bf16.mxu1 %v9414_v18  ;;  %v6912_v28 = vld [vmem:[#allocation7 + $0x470] ss:$12 sps:$4 sm:$0xff]  }
 0x135   :  { %2267 = vmatmul.mubr.bf16.gmra.mrb[20].mxu1 %v5809_v42  ;;  %2164 = vmatmul.mubr.bf16.gmra.mrb[20].mxu0 %v5809_v42  ;;  %v6909_v42 = vld [vmem:[#allocation7 + $0x480] ss:$12 sps:$4 sm:$0xff]  }
 0x136   :  { %5859 = vmatprep.mubr.msk.bf16.mxu1 %vm604_vm2, %v5812_v49  ;;  %5851 = vmatprep.mubr.msk.bf16.mxu0 %vm604_vm2, %v5812_v49  ;;  %v6913_v49 = vld [vmem:[#allocation7 + $0x488] ss:$12 sps:$4 sm:$0xff]  }
 0x13d   :  { %2275 = vmatmul.mubr.bf16.gmra.mrb[24].mxu1 %v5811_v54  ;;  %2174 = vmatmul.mubr.bf16.gmra.mrb[24].mxu0 %v5811_v54  ;;  %v3046_v54 = vrot.slane %v9497_v7, 6  ;;  %v3090_v7 = vrot.slane %v7708_v20, 6  ;;  %v5936_v20 = vrot.slane %v7724_v24, 10  ;;  %v3102_v24 = vrot.slane %v7760_v37, 6 }
 0x13e   :  { %5860 = vmatprep.mubr.msk.bf16.mxu1 %vm604_vm2, %v5814_v46  ;;  %5852 = vmatprep.mubr.msk.bf16.mxu0 %vm604_vm2, %v5814_v46  ;;  %v9498_v46 = vld [vmem:[#allocation18_spill] sm:$0xff] }
 0x145   :  { %2283 = vmatmul.mubr.bf16.gmra.mrb[28].mxu1 %v5813_v10  ;;  %2184 = vmatmul.mubr.bf16.gmra.mrb[28].mxu0 %v5813_v10  ;;  %v9499_v10 = vld [vmem:[#allocation19_spill] sm:$0xff] }
 0x146   :  { %5915 = vmatprep.mubr.msk.bf16.mxu1 %vm604_vm2, %v7996_v16  ;;  %5907 = vmatprep.mubr.msk.bf16.mxu0 %vm604_vm2, %v7996_v16  ;;  %v6884_v16 = vld [vmem:[#allocation7 + $0x3f0] ss:$12 sps:$4 sm:$0xff]  }
 0x14d   :  { %2929 = vmatmul.mubr.bf16.vlgmr.msra.gmra.mrb[0].mxu1 %v7994_v8  ;;  %2816 = vmatmul.mubr.bf16.vlgmr.msra.gmra.mrb[0].mxu0 %v7994_v8  ;;  %v6898_v8 = vld [vmem:[#allocation7 + $0x3f8] ss:$12 sps:$4 sm:$0xff]  }
 0x14e   :  { %5916 = vmatprep.mubr.msk.bf16.mxu1 %vm604_vm2, %v8014_v5  ;;  %3390 = vmatpush1.bf16.msra.mxu0 %v6878_v26  ;;  %v3050_v26 = vrot.slane %v9499_v10, 6  ;;  %v5935_v10 = vrot.slane %v9474_v23, 10 }
 0x14f   :  { %5908 = vmatprep.mubr.msk.bf16.mxu0 %vm604_vm2, %v8014_v5  ;;  %3391 = vmatprep.subr.bf16.mxu0 %v6883_v35  ;;  %v6887_v5 = vld [vmem:[#allocation7 + $0x408] ss:$12 sps:$4 sm:$0xff]  }
 0x150   :  { %3503 = vmatpush1.bf16.msra.mxu1 %v6890_v51 }
 0x151   :  { %3504 = vmatprep.subr.bf16.mxu1 %v9414_v18 }
 0x152   :  { %3392 = vmatpush1.bf16.msra.mxu0 %v6881_v17  ;;  %v9502_v17 = vld [vmem:[#allocation20_spill] sm:$0xff] }
 0x153   :  { %3393 = vmatprep.subr.bf16.mxu0 %v6886_v58  ;;  %v5925_v58 = vrot.slane %v9502_v17, 10 }
 0x154   :  { %3505 = vmatpush1.bf16.msra.mxu1 %v6894_v60  ;;  %v9503_v60 = vld [vmem:[#allocation22_spill] sm:$0xff] }
 0x155   :  { %2937 = vmatmul.mubr.bf16.gmra.mrb[4].mxu1 %v8016_v41  ;;  %3506 = vmatprep.subr.bf16.mxu1 %v9414_v18 }
 0x156   :  { %2826 = vmatmul.mubr.bf16.gmra.mrb[4].mxu0 %v8016_v41  ;;  %5917 = vmatprep.mubr.msk.bf16.mxu1 %vm604_vm2, %v8045_v1  ;;  %v6903_v41 = vld [vmem:[#allocation7 + $0x428] ss:$12 sps:$4 sm:$0xff]  }
 0x157   :  { %3394 = vmatpush1.bf16.msra.mxu0 %v6884_v16  ;;  %5909 = vmatprep.mubr.msk.bf16.mxu0 %vm604_vm2, %v8045_v1  ;;  %v6895_v1 = vld [vmem:[#allocation7 + $0x438] ss:$12 sps:$4 sm:$0xff]   ;;  %v3054_v16 = vrot.slane %v9503_v60, 6 }
 0x158   :  { %3395 = vmatprep.subr.bf16.mxu0 %v6889_v45  ;;  %3507 = vmatpush1.bf16.msra.mxu1 %v6898_v8  ;;  %v9504_v45 = vld [vmem:[#allocation21_spill] sm:$0xff] }
 0x159   :  { %3508 = vmatprep.subr.bf16.mxu1 %v9414_v18  ;;  %v5926_v8 = vrot.slane %v9504_v45, 10 }
 0x15b   :  { %3396 = vmatpush1.bf16.msra.mxu0 %v6887_v5 }
 0x15c   :  { %3397 = vmatprep.subr.bf16.mxu0 %v6893_v38  ;;  %3509 = vmatpush1.bf16.msra.mxu1 %v6899_v14 }
 0x15d   :  { %2945 = vmatmul.mubr.bf16.gmra.mrb[8].mxu1 %v8047_v25  ;;  %3510 = vmatprep.subr.bf16.mxu1 %v9414_v18 }
 0x15e   :  { %2836 = vmatmul.mubr.bf16.gmra.mrb[8].mxu0 %v8047_v25  ;;  %5918 = vmatprep.mubr.msk.bf16.mxu1 %vm604_vm2, %v8074_v48  ;;  %v6908_v25 = vld [vmem:[#allocation7 + $0x458] ss:$12 sps:$4 sm:$0xff]  }
 0x15f   :  { %5910 = vmatprep.mubr.msk.bf16.mxu0 %vm604_vm2, %v8074_v48  ;;  %3398 = vmatpush1.bf16.msra.mxu0 %v6891_v21  ;;  %v6905_v48 = vld [vmem:[#allocation7 + $0x468] ss:$12 sps:$4 sm:$0xff]  }
 0x160   :  { %3399 = vmatprep.subr.bf16.mxu0 %v6897_v61  ;;  %3511 = vmatpush1.bf16.msra.mxu1 %v6903_v41  ;;  %v5927_v61 = vrot.slane %v7548_v27, 10  ;;  %v3062_v41 = vrot.slane %v7579_v31, 6  ;;  %v5929_v31 = vrot.slane %v7591_v32, 10 }
 0x161   :  { %3512 = vmatprep.subr.bf16.mxu1 %v9414_v18 }
 0x163   :  { %3400 = vmatpush1.bf16.msra.mxu0 %v6895_v1  ;;  %v5928_v1 = vrot.slane %v7558_v39, 10 }
 0x164   :  { %3401 = vmatprep.subr.bf16.mxu0 %v6902_v57  ;;  %3513 = vmatpush1.bf16.msra.mxu1 %v6904_v12  ;;  %v3063_v57 = vsel %vm8288_vm14, %v5927_v61, %v3062_v41  ;;  %v6927_v61 = vld [vmem:[#allocation8 + $0x58] sm:$0xff]   ;;  %v6928_v41 = vld [vmem:[#allocation8 + $0x30] sm:$0xff]  }
 0x165   :  { %2953 = vmatmul.mubr.bf16.gmra.mrb[12].mxu1 %v8076_v22  ;;  %3514 = vmatprep.subr.bf16.mxu1 %v9414_v18 }
 0x166   :  { %2846 = vmatmul.mubr.bf16.gmra.mrb[12].mxu0 %v8076_v22  ;;  %5919 = vmatprep.mubr.msk.bf16.mxu1 %vm604_vm2, %v8093_v53  ;;  %v6916_v22 = vld [vmem:[#allocation7 + $0x49c] ss:$12 sps:$4 sm:$0xff]  }
 0x167   :  { %5911 = vmatprep.mubr.msk.bf16.mxu0 %vm604_vm2, %v8093_v53  ;;  %3402 = vmatpush1.bf16.msra.mxu0 %v6900_v62  ;;  %v9495_v53 = vld [vmem:[#allocation28_spill] sm:$0xff] }
 0x168   :  { %3403 = vmatprep.subr.bf16.mxu0 %v6907_v30  ;;  %3515 = vmatpush1.bf16.msra.mxu1 %v6908_v25  ;;  %v9506_v30 = vld [vmem:[#allocation24_spill] sm:$0xff]  ;;  %v3074_v25 = vrot.slane %v7618_v56, 6  ;;  %v5932_v56 = vrot.slane %v9463_v6, 10 }
 0x169   :  { %3516 = vmatprep.subr.bf16.mxu1 %v9414_v18  ;;  %v3070_v39 = vrot.slane %v9506_v30, 6  ;;  %v8379_v30 = vld [vmem:[#allocation8 + $0xc0] sm:$0xff]  }
 0x16b   :  { %3404 = vmatpush1.bf16.msra.mxu0 %v6905_v48  ;;  %v3071_v48 = vsel %vm8288_vm14, %v5929_v31, %v3070_v39  ;;  %v840_v31 = vlaneseq }
 0x16c   :  { %3405 = vmatprep.subr.bf16.mxu0 %v6911_v55  ;;  %3517 = vmatpush1.bf16.msra.mxu1 %v6912_v28 }
 0x16d   :  { %2961 = vmatmul.mubr.bf16.gmra.mrb[16].mxu1 %v9494_v52  ;;  %3518 = vmatprep.subr.bf16.mxu1 %v9414_v18  ;;  %v8381_v39 = vshrl.u32 %v840_v31, 7  ;;  %v7054_v31 = vld [vmem:[#allocation2] sm:$0xff] }
 0x16e   :  { %2856 = vmatmul.mubr.bf16.gmra.mrb[16].mxu0 %v9494_v52  ;;  %5920 = vmatprep.mubr.msk.bf16.mxu1 %vm604_vm2, %v9495_v53 }
 0x16f   :  { %5912 = vmatprep.mubr.msk.bf16.mxu0 %vm604_vm2, %v9495_v53  ;;  %3406 = vmatpush1.bf16.msra.mxu0 %v6909_v42  ;;  %v5931_v42 = vrot.slane %v7626_v9, 10  ;;  %9510 = vst [vmem:[#allocation31_spill] sm:$0xff] %v8381_v39 }
 0x170   :  { %3519 = vmatpush1.bf16.msra.mxu1 %v6913_v49  ;;  %3407 = vmatprep.subr.bf16.mxu0 %v6916_v22  ;;  %v9507_v49 = vld [vmem:[#allocation27_spill] sm:$0xff] }
 0x171   :  { %3520 = vmatprep.subr.bf16.mxu1 %v9414_v18  ;;  %v5924_v18 = vrot.slane %v9498_v46, 10  ;;  %v3082_v22 = vrot.slane %v9507_v49, 6 }
 0x173   :  { %3408 = vmatpush1.bf16.msra.mxu0 %v6914_v34  ;;  %v3083_v53 = vsel %vm8288_vm14, %v5932_v56, %v3082_v22 }
 0x174   :  { %3521 = vmatpush1.bf16.msra.mxu1 %v6917_v47  ;;  %v9508_v47 = vld [vmem:[#allocation29_spill] sm:$0xff] }
 0x175   :  { %2969 = vmatmul.mubr.bf16.gmra.mrb[20].mxu1 %v8125_v63  ;;  %v3086_v6 = vrot.slane %v9508_v47, 6 }
 0x176   :  { %2866 = vmatmul.mubr.bf16.gmra.mrb[20].mxu0 %v8125_v63  ;;  %5921 = vmatprep.mubr.msk.bf16.mxu1 %vm604_vm2, %v8153_v44  ;;  %v3047_v63 = vsel %vm8288_vm14, %v5923_v0, %v3046_v54  ;;  %v5934_v0 = vrot.slane %v9509_v33, 10 }
 0x177   :  { %5913 = vmatprep.mubr.msk.bf16.mxu0 %vm604_vm2, %v8153_v44  ;;  %v3051_v44 = vsel %vm8288_vm14, %v5924_v18, %v3050_v26  ;;  %v3094_v26 = vrot.slane %v7720_v59, 6  ;;  %v5937_v59 = vrot.slane %v7750_v40, 10 }
 0x178   :  { %v5940_v51 = vcombine.high %v3047_v63, %v3051_v44  ;;  %v5939_v14 = vcombine.low %v3047_v63, %v3051_v44  ;;  %v3091_v46 = vsel %vm8288_vm14, %v5934_v0, %v3090_v7  ;;  %v3098_v63 = vrot.slane %v7742_v11, 6 }
 0x179   :  { %v3095_v44 = vsel %vm8288_vm14, %v5935_v10, %v3094_v26  ;;  %v5938_v11 = vrot.slane %v9486_v2, 10  ;;  %v3103_v60 = vsel %vm8288_vm14, %v5937_v59, %v3102_v24  ;;  %v6920_v2 = vld [vmem:[#allocation8 + $0x8] sm:$0xff]  }
 0x17d   :  { %2977 = vmatmul.mubr.bf16.gmra.mrb[24].mxu1 %v8155_v15 }
 0x17e   :  { %2876 = vmatmul.mubr.bf16.gmra.mrb[24].mxu0 %v8155_v15  ;;  %5922 = vmatprep.mubr.msk.bf16.mxu1 %vm604_vm2, %v8178_v3  ;;  %v9505_v15 = vld [vmem:[#allocation23_spill] sm:$0xff] }
 0x17f   :  { %5914 = vmatprep.mubr.msk.bf16.mxu0 %vm604_vm2, %v8178_v3  ;;  %v3058_v5 = vrot.slane %v9505_v15, 6  ;;  %v3055_v3 = vsel %vm8288_vm14, %v5925_v58, %v3054_v16  ;;  %v3106_v58 = vrot.slane %v7764_v43, 6  ;;  %v6918_v43 = vld [vmem:[#allocation8] sm:$0xff]  }
 0x180   :  { %6225 = vmatprep.subr.bf16.mxu0 %v6918_v43  ;;  %v6919_v15 = vld [vmem:[#allocation8 + $0x40] sm:$0xff]  }
 0x181   :  { %v3059_v38 = vsel %vm8288_vm14, %v5926_v8, %v3058_v5  ;;  %v3107_v16 = vsel %vm8288_vm14, %v5938_v11, %v3106_v58  ;;  %v6921_v8 = vld [vmem:[#allocation8 + $0x10] sm:$0xff]   ;;  %6257 = vmatprep.subr.bf16.mxu1 %v6919_v15  ;;  %v6923_v5 = vld [vmem:[#allocation8 + $0x18] sm:$0xff]  }
 0x182   :  { %v5942_v21 = vcombine.high %v3055_v3, %v3059_v38  ;;  %v5941_v62 = vcombine.low %v3055_v3, %v3059_v38  ;;  %v5954_v40 = vcombine.high %v3103_v60, %v3107_v16  ;;  %v5953_v37 = vcombine.low %v3103_v60, %v3107_v16  ;;  %v6922_v3 = vld [vmem:[#allocation8 + $0x48] sm:$0xff]   ;;  %v6924_v38 = vld [vmem:[#allocation8 + $0x20] sm:$0xff]  }
 0x185   :  { %2985 = vmatmul.mubr.bf16.gmra.mrb[28].mxu1 %v8180_v29 }
 0x186   :  { %2886 = vmatmul.mubr.bf16.gmra.mrb[28].mxu0 %v8180_v29  ;;  %5993 = vmatprep.mubr.msk.bf16.mxu1 %vm604_vm2, %v5940_v51  ;;  %v3066_v29 = vrot.slane %v7585_v4, 6  ;;  %v5930_v4 = vrot.slane %v7614_v50, 10  ;;  %v3078_v50 = vrot.slane %v7662_v13, 6  ;;  %v5933_v13 = vrot.slane %v9467_v36, 10 }
 0x187   :  { %5985 = vmatprep.mubr.msk.bf16.mxu0 %vm604_vm2, %v5940_v51  ;;  %v3099_v51 = vsel %vm8288_vm14, %v5936_v20, %v3098_v63 }
 0x188   :  { %v3067_v12 = vsel %vm8288_vm14, %v5928_v1, %v3066_v29  ;;  %v3075_v55 = vsel %vm8288_vm14, %v5930_v4, %v3074_v25  ;;  %v3079_v52 = vsel %vm8288_vm14, %v5931_v42, %v3078_v50  ;;  %v3087_v54 = vsel %vm8288_vm14, %v5933_v13, %v3086_v6  ;;  %v6929_v1 = vld [vmem:[#allocation8 + $0x60] sm:$0xff]   ;;  %v6930_v29 = vld [vmem:[#allocation8 + $0x38] sm:$0xff]  }
 0x189   :  { %v5944_v27 = vcombine.high %v3063_v57, %v3067_v12  ;;  %v5943_v28 = vcombine.low %v3063_v57, %v3067_v12  ;;  %v5946_v32 = vcombine.high %v3071_v48, %v3075_v55  ;;  %v5945_v34 = vcombine.low %v3071_v48, %v3075_v55  ;;  %v6931_v57 = vld [vmem:[#allocation8 + $0x68] sm:$0xff]   ;;  %v6932_v12 = vld [vmem:[#allocation8 + $0x70] sm:$0xff]   ;;  %v152_v25 = vld [vmem:[#allocation10] sm:$0x7] }
 0x18a   :  { %v5948_v9 = vcombine.high %v3079_v52, %v3083_v53  ;;  %v5947_v18 = vcombine.low %v3079_v52, %v3083_v53  ;;  %v5950_v36 = vcombine.high %v3087_v54, %v3091_v46  ;;  %v5949_v17 = vcombine.low %v3087_v54, %v3091_v46 }
 0x18b   :  { %v5952_v23 = vcombine.high %v3095_v44, %v3099_v51  ;;  %v5951_v45 = vcombine.low %v3095_v44, %v3099_v51  ;;  %v846_v4 = vsub.s32 1, %v8381_v39 }
 0x18d   :  { %3535 = vmatmul.mubr.bf16.vlgmr.msra.gmra.mrb[0].mxu1 %v5939_v14  ;;  %v8385_v48 = vrot.slane %v152_v25, %v846_v4  ;;  %v7055_v25 = vld [vmem:[#allocation2 + $0x8] sm:$0xff] }
 0x18e   :  { %3422 = vmatmul.mubr.bf16.vlgmr.msra.gmra.mrb[0].mxu0 %v5939_v14  ;;  %5994 = vmatprep.mubr.msk.bf16.mxu1 %vm604_vm2, %v5942_v21  ;;  %v6925_v14 = vld [vmem:[#allocation8 + $0x50] sm:$0xff]  }
 0x18f   :  { %5986 = vmatprep.mubr.msk.bf16.mxu0 %vm604_vm2, %v5942_v21  ;;  %6226 = vmatpush3.bf16.msra.mxu0 %v6918_v43  ;;  %v6926_v21 = vld [vmem:[#allocation8 + $0x28] sm:$0xff]  }
 0x190   :  { %6227 = vmatprep.subr.bf16.mxu0 %v6920_v2  ;;  %6258 = vmatpush3.bf16.msra.mxu1 %v6919_v15 }
 0x191   :  { %6259 = vmatprep.subr.bf16.mxu1 %v6922_v3 }
 0x193   :  { %6228 = vmatpush3.bf16.msra.mxu0 %v6920_v2 }
 0x194   :  { %6229 = vmatprep.subr.bf16.mxu0 %v6921_v8  ;;  %6260 = vmatpush3.bf16.msra.mxu1 %v6922_v3 }
 0x195   :  { %3543 = vmatmul.mubr.bf16.gmra.mrb[4].mxu1 %v5941_v62  ;;  %6261 = vmatprep.subr.bf16.mxu1 %v6925_v14 }
 0x196   :  { %3432 = vmatmul.mubr.bf16.gmra.mrb[4].mxu0 %v5941_v62  ;;  %5995 = vmatprep.mubr.msk.bf16.mxu1 %vm604_vm2, %v5944_v27  ;;  %v6933_v62 = vld [vmem:[#allocation8 + $0x78] sm:$0xff]  }
 0x197   :  { %5987 = vmatprep.mubr.msk.bf16.mxu0 %vm604_vm2, %v5944_v27  ;;  %6230 = vmatpush3.bf16.msra.mxu0 %v6921_v8  ;;  %v8376_v27 = vld [vmem:[#allocation8 + $0x80] sm:$0xff]  }
 0x198   :  { %6231 = vmatprep.subr.bf16.mxu0 %v6923_v5  ;;  %6262 = vmatpush3.bf16.msra.mxu1 %v6925_v14 }
 0x199   :  { %6263 = vmatprep.subr.bf16.mxu1 %v6927_v61 }
 0x19b   :  { %6232 = vmatpush3.bf16.msra.mxu0 %v6923_v5 }
 0x19c   :  { %6233 = vmatprep.subr.bf16.mxu0 %v6924_v38  ;;  %6264 = vmatpush3.bf16.msra.mxu1 %v6927_v61 }
 0x19d   :  { %3551 = vmatmul.mubr.bf16.gmra.mrb[8].mxu1 %v5943_v28  ;;  %6265 = vmatprep.subr.bf16.mxu1 %v6929_v1 }
 0x19e   :  { %3442 = vmatmul.mubr.bf16.gmra.mrb[8].mxu0 %v5943_v28  ;;  %5996 = vmatprep.mubr.msk.bf16.mxu1 %vm604_vm2, %v5946_v32 }
 0x19f   :  { %5988 = vmatprep.mubr.msk.bf16.mxu0 %vm604_vm2, %v5946_v32  ;;  %6234 = vmatpush3.bf16.msra.mxu0 %v6924_v38 }
 0x1a0   :  { %6235 = vmatprep.subr.bf16.mxu0 %v6926_v21  ;;  %6266 = vmatpush3.bf16.msra.mxu1 %v6929_v1 }
 0x1a1   :  { %6267 = vmatprep.subr.bf16.mxu1 %v6931_v57 }
 0x1a3   :  { %6236 = vmatpush3.bf16.msra.mxu0 %v6926_v21 }
 0x1a4   :  { %6237 = vmatprep.subr.bf16.mxu0 %v6928_v41  ;;  %6268 = vmatpush3.bf16.msra.mxu1 %v6931_v57 }
 0x1a5   :  { %3559 = vmatmul.mubr.bf16.gmra.mrb[12].mxu1 %v5945_v34  ;;  %6269 = vmatprep.subr.bf16.mxu1 %v6932_v12 }
 0x1a6   :  { %3452 = vmatmul.mubr.bf16.gmra.mrb[12].mxu0 %v5945_v34  ;;  %5997 = vmatprep.mubr.msk.bf16.mxu1 %vm604_vm2, %v5948_v9 }
 0x1a7   :  { %5989 = vmatprep.mubr.msk.bf16.mxu0 %vm604_vm2, %v5948_v9  ;;  %6238 = vmatpush3.bf16.msra.mxu0 %v6928_v41 }
 0x1a8   :  { %6239 = vmatprep.subr.bf16.mxu0 %v6930_v29  ;;  %6270 = vmatpush3.bf16.msra.mxu1 %v6932_v12 }
 0x1a9   :  { %6271 = vmatprep.subr.bf16.mxu1 %v6933_v62 }
 0x1ab   :  { %6240 = vmatpush3.bf16.msra.mxu0 %v6930_v29 }
 0x1ac   :  { %6272 = vmatpush3.bf16.msra.mxu1 %v6933_v62  ;;  %6289 = vmatprep.subr.bf16.mxu0 %v8376_v27 }
 0x1ad   :  { %3567 = vmatmul.mubr.bf16.gmra.mrb[16].mxu1 %v5947_v18  ;;  %6321 = vmatprep.subr.bf16.mxu1 %v8379_v30 }
 0x1ae   :  { %3462 = vmatmul.mubr.bf16.gmra.mrb[16].mxu0 %v5947_v18  ;;  %5998 = vmatprep.mubr.msk.bf16.mxu1 %vm604_vm2, %v5950_v36 }
 0x1af   :  { %5990 = vmatprep.mubr.msk.bf16.mxu0 %vm604_vm2, %v5950_v36 }
 0x1b5   :  { %3575 = vmatmul.mubr.bf16.gmra.mrb[20].mxu1 %v5949_v17 }
 0x1b6   :  { %3472 = vmatmul.mubr.bf16.gmra.mrb[20].mxu0 %v5949_v17  ;;  %5999 = vmatprep.mubr.msk.bf16.mxu1 %vm604_vm2, %v5952_v23 }
 0x1b7   :  { %5991 = vmatprep.mubr.msk.bf16.mxu0 %vm604_vm2, %v5952_v23 }
 0x1bd   :  { %3583 = vmatmul.mubr.bf16.gmra.mrb[24].mxu1 %v5951_v45 }
 0x1be   :  { %3482 = vmatmul.mubr.bf16.gmra.mrb[24].mxu0 %v5951_v45  ;;  %6000 = vmatprep.mubr.msk.bf16.mxu1 %vm604_vm2, %v5954_v40 }
 0x1bf   :  { %5992 = vmatprep.mubr.msk.bf16.mxu0 %vm604_vm2, %v5954_v40 }
 0x1c5   :  { %3591 = vmatmul.mubr.bf16.gmra.mrb[28].mxu1 %v5953_v37 }
 0x1c6   :  { %3492 = vmatmul.mubr.bf16.gmra.mrb[28].mxu0 %v5953_v37 }
 0x260   :  { %v8387_v55 = vpop.f32.mrb[0].mxu1 }
 0x261   :  { %9511 = vst [vmem:[#allocation32_spill] sm:$0xff] %v8387_v55  ;;  %v8389_v28 = vpop.f32.mrb[0].mxu0  ;;  %v3538_v32 = vpop.f32.mrb[1].mxu1 }
 0x262   :  { %9512 = vst [vmem:[#allocation26_spill] sm:$0xff] %v8389_v28  ;;  %v3425_v42 = vpop.f32.mrb[1].mxu0  ;;  %v8391_v50 = vpop.f32.mrb[2].mxu1 }
 0x263   :  { %9513 = vst [vmem:[#allocation28_spill] sm:$0xff] %v8391_v50  ;;  %v6402_v56 = vadd.f32 %v3425_v42, %v8385_v48  ;;  %v8394_v49 = vpop.f32.mrb[2].mxu0  ;;  %v3541_v22 = vpop.f32.mrb[3].mxu1 }
 0x264   :  { %9514 = vst [vmem:[#allocation16_spill] sm:$0xff] %v8394_v49  ;;  %v3429_v52 = vpop.f32.mrb[3].mxu0 }
 0x265   :  { %v6404_v53 = vadd.f32 %v3429_v52, %v8385_v48  ;;  %v3711_v34 = vmul.f32 0.5, %v6402_v56 }
 0x267   :  { %v3712_v9 = vmul.f32 0.5, %v6404_v53  ;;  %6958 = vtanh.f32 %v3711_v34  ;;  %v7056_v53 = vld [vmem:[#allocation2 + $0x18] sm:$0xff] }
 0x268   :  { %v8397_v13 = vpop.f32.mrb[4].mxu1 }
 0x269   :  { %9515 = vst [vmem:[#allocation17_spill] sm:$0xff] %v8397_v13  ;;  %v8399_v47 = vpop.f32.mrb[4].mxu0  ;;  %v3546_v6 = vpop.f32.mrb[5].mxu1  ;;  %6960 = vtanh.f32 %v3712_v9 }
 0x26a   :  { %9516 = vst [vmem:[#allocation18_spill] sm:$0xff] %v8399_v47  ;;  %v3435_v33 = vpop.f32.mrb[5].mxu0  ;;  %v8401_v0 = vpop.f32.mrb[6].mxu1 }
 0x26b   :  { %9517 = vst [vmem:[#allocation19_spill] sm:$0xff] %v8401_v0  ;;  %v6406_v7 = vadd.f32 %v3435_v33, %v8385_v48  ;;  %v8404_v54 = vpop.f32.mrb[6].mxu0  ;;  %v3549_v46 = vpop.f32.mrb[7].mxu1 }
 0x26c   :  { %9518 = vst [vmem:[#allocation20_spill] sm:$0xff] %v8404_v54  ;;  %v3439_v18 = vpop.f32.mrb[7].mxu0 }
 0x26d   :  { %v3713_v36 = vmul.f32 0.5, %v6406_v7  ;;  %v6408_v10 = vadd.f32 %v3439_v18, %v8385_v48 }
 0x26f   :  { %6962 = vtanh.f32 %v3713_v36  ;;  %v3714_v26 = vmul.f32 0.5, %v6408_v10  ;;  %v7057_v36 = vld [vmem:[#allocation2 + $0x10] sm:$0xff] }
 0x270   :  { %v8407_v20 = vpop.f32.mrb[8].mxu1 }
 0x271   :  { %9519 = vst [vmem:[#allocation22_spill] sm:$0xff] %v8407_v20  ;;  %6964 = vtanh.f32 %v3714_v26  ;;  %v8409_v63 = vpop.f32.mrb[8].mxu0  ;;  %v3554_v44 = vpop.f32.mrb[9].mxu1 }
 0x272   :  { %9520 = vst [vmem:[#allocation21_spill] sm:$0xff] %v8409_v63  ;;  %v3445_v51 = vpop.f32.mrb[9].mxu0  ;;  %v8411_v17 = vpop.f32.mrb[10].mxu1 }
 0x273   :  { %9521 = vst [vmem:[#allocation23_spill] sm:$0xff] %v8411_v17  ;;  %v8413_v23 = vpop.f32.mrb[10].mxu0  ;;  %v3557_v59 = vpop.f32.mrb[11].mxu1  ;;  %v6410_v11 = vadd.f32 %v3445_v51, %v8385_v48 }
 0x274   :  { %9522 = vst [vmem:[#allocation24_spill] sm:$0xff] %v8413_v23  ;;  %v6959_v24 = vpop.eup %6958  ;;  %v3449_v58 = vpop.f32.mrb[11].mxu0 }
 0x275   :  { %v6961_v60 = vpop.eup %6960  ;;  %v6412_v16 = vadd.f32 %v3449_v58, %v8385_v48  ;;  %v3743_v45 = vmul.f32 0.5, %v6959_v24  ;;  %v3715_v37 = vmul.f32 0.5, %v6410_v11 }
 0x276   :  { %v3744_v40 = vmul.f32 0.5, %v6961_v60 }
 0x277   :  { %v3716_v5 = vmul.f32 0.5, %v6412_v16  ;;  %v3759_v21 = vadd.f32 0.5, %v3743_v45  ;;  %6966 = vtanh.f32 %v3715_v37 }
 0x278   :  { %v8417_v43 = vpop.f32.mrb[12].mxu1  ;;  %v3760_v1 = vadd.f32 0.5, %v3744_v40 }
 0x279   :  { %9523 = vst [vmem:[#allocation27_spill] sm:$0xff] %v8417_v43  ;;  %v6963_v2 = vpop.eup %6962  ;;  %v8419_v8 = vpop.f32.mrb[12].mxu0  ;;  %6968 = vtanh.f32 %v3716_v5  ;;  %v3775_v4 = vmul.f32 %v7054_v31, %v3759_v21 }
 0x27a   :  { %9524 = vst [vmem:[#allocation29_spill] sm:$0xff] %v8419_v8  ;;  %v3562_v15 = vpop.f32.mrb[13].mxu1  ;;  %v3455_v3 = vpop.f32.mrb[13].mxu0  ;;  %v3745_v29 = vmul.f32 0.5, %v6963_v2  ;;  %v3776_v32 = vmul.f32 %v7055_v25, %v3760_v1 }
 0x27b   :  { %v8421_v38 = vpop.f32.mrb[14].mxu1  ;;  %v6965_v14 = vpop.eup %6964  ;;  %v3791_v33 = vpack.c.bf16 %v3775_v4, %v3775_v4  ;;  %v6414_v24 = vadd.f32 %v3455_v3, %v8385_v48 }
 0x27c   :  { %9525 = vst [vmem:[#allocation30_spill] sm:$0xff] %v8421_v38  ;;  %v8423_v61 = vpop.f32.mrb[14].mxu0  ;;  %v3565_v41 = vpop.f32.mrb[15].mxu1  ;;  %v3746_v57 = vmul.f32 0.5, %v6965_v14  ;;  %v3761_v42 = vadd.f32 0.5, %v3745_v29  ;;  %v3792_v18 = vpack.c.bf16 %v3776_v32, %v3776_v32 }
 0x27d   :  { %9526 = vst [vmem:[#allocation34_spill] sm:$0xff] %v8423_v61  ;;  %v3459_v12 = vpop.f32.mrb[15].mxu0  ;;  %v3823_v59 = vrot.slane %v3791_v33, 7  ;;  %v3717_v41 = vmul.f32 0.5, %v6414_v24 }
 0x27e   :  { %v3762_v62 = vadd.f32 0.5, %v3746_v57  ;;  %v3777_v10 = vmul.f32 %v7057_v36, %v3761_v42  ;;  %v3824_v58 = vrot.slane %v3792_v18, 7  ;;  %v6416_v16 = vadd.f32 %v3459_v12, %v8385_v48  ;;  %v7058_v36 = vld [vmem:[#allocation2 + $0x20] sm:$0xff] }
 0x27f   :  { %v3840_v1 = vsel %vm217_vm0, 0, %v3823_v59  ;;  %6970 = vtanh.f32 %v3717_v41  ;;  %v6935_v41 = vld [vmem:[#allocation8 + $0x88] sm:$0xff]  }
 0x280   :  { %v8425_v56 = vpop.f32.mrb[16].mxu1  ;;  %v3778_v34 = vmul.f32 %v7056_v53, %v3762_v62  ;;  %v3793_v60 = vpack.c.bf16 %v3777_v10, %v3777_v10  ;;  %v3718_v62 = vmul.f32 0.5, %v6416_v16  ;;  %v3842_v12 = vsel %vm217_vm0, 0, %v3824_v58  ;;  %v7059_v16 = vld [vmem:[#allocation2 + $0x28] sm:$0xff] }
 0x281   :  { %9527 = vst [vmem:[#allocation35_spill] sm:$0xff] %v8425_v56  ;;  %v8427_v22 = vpop.f32.mrb[16].mxu0  ;;  %v3570_v52 = vpop.f32.mrb[17].mxu1  ;;  %v3871_v42 = vsel %vm283_vm1, %v3840_v1, 0 }
 0x282   :  { %9528 = vst [vmem:[#allocation36_spill] sm:$0xff] %v8427_v22  ;;  %v3465_v9 = vpop.f32.mrb[17].mxu0  ;;  %v8429_v6 = vpop.f32.mrb[18].mxu1  ;;  %v3794_v51 = vpack.c.bf16 %v3778_v34, %v3778_v34  ;;  %v3825_v57 = vrot.slane %v3793_v60, 7  ;;  %v3872_v52 = vsel %vm283_vm1, %v3842_v12, 0  ;;  %6972 = vtanh.f32 %v3718_v62  ;;  %v7062_v22 = vld [vmem:[#allocation2 + $0x40] sm:$0xff] }
 0x283   :  { %9529 = vst [vmem:[#allocation37_spill] sm:$0xff] %v8429_v6  ;;  %v8431_v7 = vpop.f32.mrb[18].mxu0  ;;  %v3573_v46 = vpop.f32.mrb[19].mxu1  ;;  %v6418_v32 = vadd.f32 %v3465_v9, %v8385_v48  ;;  %v6001_v34 = vcombine.low %v3871_v42, %v3872_v52  ;;  %v8458_v24 = vcombine.low %v3871_v42, %v3871_v42  ;;  %v8472_v62 = vcombine.low %v3872_v52, %v3872_v52 }
 0x284   :  { %9530 = vst [vmem:[#allocation38_spill] sm:$0xff] %v8431_v7  ;;  %v3469_v26 = vpop.f32.mrb[19].mxu0  ;;  %v6967_v44 = vpop.eup %6966  ;;  %v3826_v15 = vrot.slane %v3794_v51, 7  ;;  %v3844_v33 = vsel %vm217_vm0, 0, %v3825_v57 }
 0x285   :  { %v6969_v11 = vpop.eup %6968  ;;  %v3747_v40 = vmul.f32 0.5, %v6967_v44  ;;  %6241 = vmatprep.mubr.bf16.mxu0 %v6001_v34  ;;  %v6420_v9 = vadd.f32 %v3469_v26, %v8385_v48  ;;  %v3719_v59 = vmul.f32 0.5, %v6418_v32  ;;  %v8463_v60 = vsel %vm283_vm1, %v3844_v33, 0 }
 0x286   :  { %v3748_v21 = vmul.f32 0.5, %v6969_v11  ;;  %v3846_v25 = vsel %vm217_vm0, 0, %v3826_v15  ;;  %v9352_v32 = vshll.u32 %v8458_v24, 16  ;;  %v8480_v34 = vcombine.high %v3872_v52, %v3872_v52 }
 0x287   :  { %v3763_v4 = vadd.f32 0.5, %v3747_v40  ;;  %v8453_v18 = vsel %vm283_vm1, %v3846_v25, 0  ;;  %6974 = vtanh.f32 %v3719_v59 }
 0x288   :  { %v8435_v45 = vpop.f32.mrb[20].mxu1  ;;  %v3764_v53 = vadd.f32 0.5, %v3748_v21  ;;  %v6002_v26 = vcombine.low %v8463_v60, %v8453_v18 }
 0x289   :  { %9531 = vst [vmem:[#allocation39_spill] sm:$0xff] %v8435_v45  ;;  %v8437_v37 = vpop.f32.mrb[20].mxu0  ;;  %v3578_v2 = vpop.f32.mrb[21].mxu1  ;;  %v3779_v10 = vmul.f32 %v7058_v36, %v3763_v4  ;;  %v9351_v4 = vshrl.u32 %v8458_v24, 16  ;;  %v6936_v36 = vld [vmem:[#allocation8 + $0x90] sm:$0xff]  }
 0x28a   :  { %9532 = vst [vmem:[#allocation40_spill] sm:$0xff] %v8437_v37  ;;  %v3475_v5 = vpop.f32.mrb[21].mxu0  ;;  %v8439_v14 = vpop.f32.mrb[22].mxu1  ;;  %v3780_v40 = vmul.f32 %v7059_v16, %v3764_v53  ;;  %6242 = vmatmul.mubr.bf16.vlgmr.msra.gmra.mrb[32].mxu0 %v6002_v26  ;;  %v8478_v53 = vcombine.high %v3871_v42, %v3871_v42  ;;  %v9353_v16 = vshrl.u32 %v8472_v62, 16 }
 0x28b   :  { %9533 = vst [vmem:[#allocation41_spill] sm:$0xff] %v8439_v14  ;;  %v8442_v3 = vpop.f32.mrb[22].mxu0  ;;  %v3581_v29 = vpop.f32.mrb[23].mxu1  ;;  %v3795_v1 = vpack.c.bf16 %v3779_v10, %v3779_v10  ;;  %v6422_v57 = vadd.f32 %v3475_v5, %v8385_v48  ;;  %6290 = vmatpush3.bf16.msra.mxu0 %v8376_v27  ;;  %v4163_v5 = vrot.slane %v9351_v4, 4 }
 0x28c   :  { %9534 = vst [vmem:[#allocation42_spill] sm:$0xff] %v8442_v3  ;;  %v3479_v31 = vpop.f32.mrb[23].mxu0  ;;  %v3720_v29 = vmul.f32 0.5, %v6420_v9  ;;  %v3796_v25 = vpack.c.bf16 %v3780_v40, %v3780_v40  ;;  %6291 = vmatprep.subr.bf16.mxu0 %v6935_v41  ;;  %v6971_v10 = vpop.eup %6970  ;;  %v4166_v9 = vrot.slane %v9352_v32, 5  ;;  %v9354_v40 = vshll.u32 %v8472_v62, 16 }
 0x28d   :  { %v6424_v12 = vadd.f32 %v3479_v31, %v8385_v48  ;;  %v3721_v31 = vmul.f32 0.5, %v6422_v57  ;;  %v6973_v42 = vpop.eup %6972  ;;  %v3827_v59 = vrot.slane %v3795_v1, 7  ;;  %v4177_v1 = vrot.slane %v9353_v16, 4 }
 0x28e   :  { %6976 = vtanh.f32 %v3720_v29  ;;  %v3828_v4 = vrot.slane %v3796_v25, 7  ;;  %v4167_v29 = vor.u32 %v4166_v9, %v4163_v5  ;;  %v3749_v25 = vmul.f32 0.5, %v6971_v10 }
 0x28f   :  { %v3722_v52 = vmul.f32 0.5, %v6424_v12  ;;  %6292 = vmatpush3.bf16.msra.mxu0 %v6935_v41  ;;  %v4180_v12 = vrot.slane %v9354_v40, 5  ;;  %v3750_v5 = vmul.f32 0.5, %v6973_v42  ;;  %6978 = vtanh.f32 %v3721_v31 }
 0x290   :  { %v8450_v46 = vpop.f32.mrb[24].mxu1  ;;  %6293 = vmatprep.subr.bf16.mxu0 %v6936_v36  ;;  %v4168_v41 = vrot.slane %v4167_v29, 4  ;;  %v3848_v32 = vsel %vm217_vm0, 0, %v3827_v59  ;;  %v9543_v10 = vshll.u32 %v8478_v53, 16  ;;  %v6940_v29 = vld [vmem:[#allocation8 + $0xa0] sm:$0xff]  }
 0x291   :  { %9535 = vst [vmem:[#allocation43_spill] sm:$0xff] %v8450_v46  ;;  %v8456_v44 = vpop.f32.mrb[24].mxu0  ;;  %v3586_v51 = vpop.f32.mrb[25].mxu1  ;;  %6980 = vtanh.f32 %v3722_v52  ;;  %v4181_v9 = vor.u32 %v4180_v12, %v4177_v1  ;;  %v3765_v1 = vadd.f32 0.5, %v3749_v25  ;;  %v8518_v59 = vsel %vm283_vm1, %v3848_v32, 0 }
 0x292   :  { %9536 = vst [vmem:[#allocation44_spill] sm:$0xff] %v8456_v44  ;;  %v3485_v11 = vpop.f32.mrb[25].mxu0  ;;  %v8460_v58 = vpop.f32.mrb[26].mxu1  ;;  %v6938_v44 = vld [vmem:[#allocation8 + $0x98] sm:$0xff]   ;;  %v4172_v42 = vrot.slane %v9543_v10, 5 }
 0x293   :  { %9537 = vst [vmem:[#allocation45_spill] sm:$0xff] %v8460_v58  ;;  %v8465_v2 = vpop.f32.mrb[26].mxu0  ;;  %v3589_v15 = vpop.f32.mrb[27].mxu1  ;;  %6294 = vmatpush3.bf16.msra.mxu0 %v6936_v36  ;;  %v4182_v31 = vrot.slane %v4181_v9, 4  ;;  %v3766_v36 = vadd.f32 0.5, %v3750_v5  ;;  %v7060_v5 = vld [vmem:[#allocation2 + $0x30] sm:$0xff] }
 0x294   :  { %9538 = vst [vmem:[#allocation46_spill] sm:$0xff] %v8465_v2  ;;  %v8469_v21 = vpop.f32.mrb[27].mxu0  ;;  %v6975_v40 = vpop.eup %6974  ;;  %6295 = vmatprep.subr.bf16.mxu0 %v6938_v44 }
 0x295   :  { %v3751_v7 = vmul.f32 0.5, %v6975_v40 }
 0x297   :  { %6296 = vmatpush3.bf16.msra.mxu0 %v6938_v44  ;;  %v6428_v44 = vadd.f32 %v8469_v21, %v8385_v48 }
 0x298   :  { %v8484_v33 = vpop.f32.mrb[28].mxu1  ;;  %6297 = vmatprep.subr.bf16.mxu0 %v6940_v29 }
 0x299   :  { %9539 = vst [vmem:[#allocation47_spill] sm:$0xff] %v8484_v33  ;;  %v8488_v51 = vpop.f32.mrb[28].mxu0  ;;  %v3594_v27 = vpop.f32.mrb[29].mxu1 }
 0x29a   :  { %9540 = vst [vmem:[#allocation48_spill] sm:$0xff] %v8488_v51  ;;  %v8492_v15 = vpop.f32.mrb[29].mxu0  ;;  %v8494_v26 = vpop.f32.mrb[30].mxu1  ;;  %v8511_v27 = vcombine.low %v8463_v60, %v8463_v60 }
 0x29b   :  { %9541 = vst [vmem:[#allocation49_spill] sm:$0xff] %v8494_v26  ;;  %v8496_v57 = vpop.f32.mrb[30].mxu0  ;;  %v3597_v2 = vpop.f32.mrb[31].mxu1  ;;  %6298 = vmatpush3.bf16.msra.mxu0 %v6940_v29  ;;  %v3724_v29 = vmul.f32 0.5, %v6428_v44 }
 0x29c   :  { %9542 = vst [vmem:[#allocation50_spill] sm:$0xff] %v8496_v57  ;;  %v8504_v51 = vpop.f32.mrb[31].mxu0  ;;  %v6426_v2 = vadd.f32 %v3485_v11, %v8385_v48  ;;  %v3850_v57 = vsel %vm217_vm0, 0, %v3828_v4  ;;  %v9544_v11 = vshll.u32 %v8480_v34, 16 }
 0x29d   :  { %v8521_v4 = vsel %vm283_vm1, %v3850_v57, 0  ;;  %v6942_v57 = vld [vmem:[#allocation8 + $0xa8] sm:$0xff]  }
 0x29e   :  { %v3723_v16 = vmul.f32 0.5, %v6426_v2  ;;  %v4186_v52 = vrot.slane %v9544_v11, 5  ;;  %v4173_v2 = vsel %vm7645_vm5, %v4168_v41, %v4172_v42  ;;  %v6003_v10 = vcombine.low %v8518_v59, %v8521_v4  ;;  %v6977_v11 = vpop.eup %6976  ;;  %6299 = vmatprep.subr.bf16.mxu0 %v6942_v57 }
 0x29f   :  { %v3781_v41 = vmul.f32 %v7060_v5, %v3765_v1  ;;  %v3752_v3 = vmul.f32 0.5, %v6977_v11  ;;  %v6979_v40 = vpop.eup %6978  ;;  %v9546_v1 = vshrl.u32 %v8511_v27, 16  ;;  %v6944_v5 = vld [vmem:[#allocation8 + $0xb0] sm:$0xff]   ;;  %6300 = vmatpush3.bf16.msra.mxu0 %v6942_v57 }
 0x2a0   :  { %6982 = vtanh.f32 %v3723_v16  ;;  %v4187_v9 = vsel %vm7645_vm5, %v4182_v31, %v4186_v52  ;;  %v8532_v16 = vcombine.low %v8453_v18, %v8453_v18  ;;  %6245 = vmatprep.mubr.bf16.mxu0 %v6003_v10  ;;  %v7061_v31 = vld [vmem:[#allocation2 + $0x38] sm:$0xff]  ;;  %v8539_v10 = vcombine.high %v8463_v60, %v8463_v60  ;;  %6301 = vmatprep.subr.bf16.mxu0 %v6944_v5 }
 0x2a1   :  { %v6049_v25 = vcombine.low %v4173_v2, %v4187_v9  ;;  %v3782_v52 = vmul.f32 %v7061_v31, %v3766_v36  ;;  %v3767_v2 = vadd.f32 0.5, %v3751_v7  ;;  %v6981_v9 = vpop.eup %6980  ;;  %v8546_v36 = vcombine.high %v8453_v18, %v8453_v18 }
 0x2a2   :  { %v3797_v21 = vpack.c.bf16 %v3781_v41, %v3781_v41  ;;  %v3768_v31 = vadd.f32 0.5, %v3752_v3  ;;  %v3753_v42 = vmul.f32 0.5, %v6979_v40  ;;  %v9547_v60 = vshll.u32 %v8511_v27, 16 }
 0x2a3   :  { %6273 = vmatprep.mubr.bf16.mxu1 %v6049_v25  ;;  %v4191_v25 = vrot.slane %v9546_v1, 4  ;;  %v3798_v11 = vpack.c.bf16 %v3782_v52, %v3782_v52  ;;  %v3783_v61 = vmul.f32 %v7062_v22, %v3767_v2  ;;  %v3754_v1 = vmul.f32 0.5, %v6981_v9  ;;  %v6946_v52 = vld [vmem:[#allocation8 + $0xb8] sm:$0xff]   ;;  %6302 = vmatpush3.bf16.msra.mxu0 %v6944_v5 }
 0x2a4   :  { %v4194_v37 = vrot.slane %v9547_v60, 5  ;;  %6984 = vtanh.f32 %v3724_v29  ;;  %v9355_v18 = vshll.u32 %v8539_v10, 16  ;;  %v9548_v7 = vshrl.u32 %v8532_v16, 16  ;;  %v7063_v22 = vld [vmem:[#allocation2 + $0x48] sm:$0xff]  ;;  %6303 = vmatprep.subr.bf16.mxu0 %v6946_v52 }
 0x2a5   :  { %v3829_v3 = vrot.slane %v3797_v21, 7  ;;  %v9549_v40 = vshll.u32 %v8532_v16, 16  ;;  %v9356_v60 = vshll.u32 %v8546_v36, 16  ;;  %v3830_v63 = vrot.slane %v3798_v11, 7 }
 0x2a6   :  { %v4195_v23 = vor.u32 %v4194_v37, %v4191_v25  ;;  %v4205_v41 = vrot.slane %v9548_v7, 4  ;;  %v3784_v2 = vmul.f32 %v7063_v22, %v3768_v31  ;;  %v3769_v9 = vadd.f32 0.5, %v3753_v42 }
 0x2a7   :  { %v4208_v44 = vrot.slane %v9549_v40, 5  ;;  %v8559_v37 = vcombine.low %v8518_v59, %v8518_v59  ;;  %v6430_v7 = vadd.f32 %v8492_v15, %v8385_v48  ;;  %v3770_v21 = vadd.f32 0.5, %v3754_v1  ;;  %v7064_v1 = vld [vmem:[#allocation2 + $0x50] sm:$0xff]  ;;  %6304 = vmatpush3.bf16.msra.mxu0 %v6946_v52 }
 0x2a8   :  { %v4196_v57 = vrot.slane %v4195_v23, 4  ;;  %v8565_v40 = vcombine.low %v8521_v4, %v8521_v4  ;;  %v4200_v42 = vrot.slane %v9355_v18, 5  ;;  %v8569_v23 = vld [vmem:[#allocation8 + $0x100] sm:$0xff]   ;;  %v4214_v11 = vrot.slane %v9356_v60, 5 }
 0x2a9   :  { %v4209_v25 = vor.u32 %v4208_v44, %v4205_v41  ;;  %v3725_v31 = vmul.f32 0.5, %v6430_v7  ;;  %v3852_v15 = vsel %vm217_vm0, 0, %v3829_v3  ;;  %v3800_v5 = vpack.c.bf16 %v3784_v2, %v3784_v2  ;;  %v6939_v2 = vld [vmem:[#allocation8 + $0xc8] sm:$0xff]   ;;  %6353 = vmatprep.subr.bf16.mxu0 %v8569_v23 }
 0x2aa   :  { %v6983_v32 = vpop.eup %6982  ;;  %v4201_v41 = vsel %vm7645_vm5, %v4196_v57, %v4200_v42  ;;  %v3854_v44 = vsel %vm217_vm0, 0, %v3830_v63  ;;  %v7065_v42 = vld [vmem:[#allocation2 + $0x58] sm:$0xff]  ;;  %v6432_v52 = vadd.f32 %v8504_v51, %v8385_v48  ;;  %v6941_v51 = vld [vmem:[#allocation8 + $0xd0] sm:$0xff]  }
 0x2ab   :  { %v3755_v8 = vmul.f32 0.5, %v6983_v32  ;;  %v3799_v32 = vpack.c.bf16 %v3783_v61, %v3783_v61  ;;  %v4210_v61 = vrot.slane %v4209_v25, 4  ;;  %6986 = vtanh.f32 %v3725_v31 }
 0x2ac   :  { %v3877_v25 = vsel %vm283_vm1, %v3852_v15, 0  ;;  %v8581_v18 = vsel %vm283_vm1, %v3854_v44, 0  ;;  %v3786_v63 = vmul.f32 %v7065_v42, %v3770_v21  ;;  %v9360_v31 = vshrl.u32 %v8559_v37, 16 }
 0x2ad   :  { %v3771_v29 = vadd.f32 0.5, %v3755_v8  ;;  %v3785_v8 = vmul.f32 %v7064_v1, %v3769_v9  ;;  %v4215_v22 = vsel %vm7645_vm5, %v4210_v61, %v4214_v11  ;;  %v6004_v3 = vcombine.low %v3877_v25, %v8581_v18  ;;  %v7066_v1 = vld [vmem:[#allocation2 + $0x60] sm:$0xff] }
 0x2ae   :  { %v6050_v7 = vcombine.low %v4201_v41, %v4215_v22  ;;  %v6985_v9 = vpop.eup %6984  ;;  %v3831_v57 = vrot.slane %v3799_v32, 7  ;;  %v8587_v61 = vcombine.high %v8518_v59, %v8518_v59  ;;  %v9357_v15 = vshll.u32 %v8559_v37, 16 }
 0x2af   :  { %v3787_v60 = vmul.f32 %v7066_v1, %v3771_v29  ;;  %v3756_v11 = vmul.f32 0.5, %v6985_v9  ;;  %6246 = vmatmul.mubr.bf16.gmra.mrb[36].mxu0 %v6004_v3  ;;  %v3832_v41 = vrot.slane %v3800_v5, 7  ;;  %v3801_v32 = vpack.c.bf16 %v3785_v8, %v3785_v8 }
 0x2b0   :  { %6274 = vmatmul.mubr.bf16.vlgmr.msra.gmra.mrb[32].mxu1 %v6050_v7  ;;  %v8595_v21 = vcombine.high %v8521_v4, %v8521_v4  ;;  %v9358_v29 = vshrl.u32 %v8565_v40, 16  ;;  %v3726_v44 = vmul.f32 0.5, %v6432_v52  ;;  %v4219_v22 = vrot.slane %v9360_v31, 4 }
 0x2b1   :  { %6322 = vmatpush3.bf16.msra.mxu1 %v8379_v30  ;;  %v3772_v59 = vadd.f32 0.5, %v3756_v11  ;;  %v4222_v48 = vrot.slane %v9357_v15, 5  ;;  %v3802_v5 = vpack.c.bf16 %v3786_v63, %v3786_v63  ;;  %v3803_v8 = vpack.c.bf16 %v3787_v60, %v3787_v60  ;;  %v7067_v30 = vld [vmem:[#allocation2 + $0x68] sm:$0xff] }
 0x2b2   :  { %9550 = vst [vmem:[#allocation25_spill] sm:$0xff] %v8595_v21  ;;  %6323 = vmatprep.subr.bf16.mxu1 %v6939_v2  ;;  %6988 = vtanh.f32 %v3726_v44  ;;  %v4233_v4 = vrot.slane %v9358_v29, 4  ;;  %v9359_v3 = vshll.u32 %v8565_v40, 16  ;;  %v9361_v42 = vshll.u32 %v8587_v61, 16  ;;  %v6943_v44 = vld [vmem:[#allocation8 + $0xd8] sm:$0xff]  }
 0x2b3   :  { %v4223_v7 = vor.u32 %v4222_v48, %v4219_v22  ;;  %v3788_v9 = vmul.f32 %v7067_v30, %v3772_v59  ;;  %v3856_v1 = vsel %vm217_vm0, 0, %v3831_v57  ;;  %v3858_v11 = vsel %vm217_vm0, 0, %v3832_v41 }
 0x2b4   :  { %v3833_v52 = vrot.slane %v3801_v32, 7  ;;  %v8609_v15 = vcombine.low %v3877_v25, %v3877_v25  ;;  %v4236_v60 = vrot.slane %v9359_v3, 5  ;;  %v3834_v48 = vrot.slane %v3802_v5, 7 }
 0x2b5   :  { %6324 = vmatpush3.bf16.msra.mxu1 %v6939_v2  ;;  %v6987_v22 = vpop.eup %6986  ;;  %v8616_v59 = vcombine.low %v8581_v18, %v8581_v18  ;;  %v4224_v57 = vrot.slane %v4223_v7, 4  ;;  %v3880_v41 = vsel %vm283_vm1, %v3858_v11, 0  ;;  %v8619_v2 = vrot.slane %v3803_v8, 7  ;;  %v6945_v11 = vld [vmem:[#allocation8 + $0xe0] sm:$0xff]  }
 0x2b6   :  { %6325 = vmatprep.subr.bf16.mxu1 %v6941_v51  ;;  %v3757_v32 = vmul.f32 0.5, %v6987_v22  ;;  %v4237_v30 = vor.u32 %v4236_v60, %v4233_v4  ;;  %v3879_v29 = vsel %vm283_vm1, %v3856_v1, 0  ;;  %v3804_v3 = vpack.c.bf16 %v3788_v9, %v3788_v9  ;;  %v7068_v1 = vld [vmem:[#allocation2 + $0x70] sm:$0xff] }
 0x2b7   :  { %v8622_v31 = vcombine.high %v3877_v25, %v3877_v25  ;;  %v4228_v63 = vrot.slane %v9361_v42, 5  ;;  %v6005_v5 = vcombine.low %v3879_v29, %v3880_v41  ;;  %v9551_v7 = vshll.u32 %v8595_v21, 16 }
 0x2b8   :  { %v3773_v54 = vadd.f32 0.5, %v3757_v32  ;;  %v4238_v47 = vrot.slane %v4237_v30, 4  ;;  %v9363_v8 = vshrl.u32 %v8609_v15, 16  ;;  %v8631_v4 = vcombine.high %v8581_v18, %v8581_v18 }
 0x2b9   :  { %6326 = vmatpush3.bf16.msra.mxu1 %v6941_v51  ;;  %v4242_v49 = vrot.slane %v9551_v7, 5  ;;  %v4229_v25 = vsel %vm7645_vm5, %v4224_v57, %v4228_v63  ;;  %6249 = vmatprep.mubr.bf16.mxu0 %v6005_v5  ;;  %v9362_v9 = vshll.u32 %v8609_v15, 16  ;;  %v9364_v51 = vshrl.u32 %v8616_v59, 16 }
 0x2ba   :  { %6327 = vmatprep.subr.bf16.mxu1 %v6943_v44  ;;  %v3789_v60 = vmul.f32 %v7068_v1, %v3773_v54  ;;  %v4247_v32 = vrot.slane %v9363_v8, 4  ;;  %v9365_v30 = vshll.u32 %v8616_v59, 16  ;;  %v8642_v7 = vcombine.low %v3879_v29, %v3879_v29 }
 0x2bb   :  { %v4243_v22 = vsel %vm7645_vm5, %v4238_v47, %v4242_v49  ;;  %v4250_v63 = vrot.slane %v9362_v9, 5  ;;  %v3836_v42 = vrot.slane %v3804_v3, 7  ;;  %v8647_v54 = vcombine.high %v3879_v29, %v3879_v29 }
 0x2bc   :  { %v6051_v18 = vcombine.low %v4229_v25, %v4243_v22  ;;  %v6989_v5 = vpop.eup %6988  ;;  %v4261_v49 = vrot.slane %v9364_v51, 4  ;;  %v4264_v47 = vrot.slane %v9365_v30, 5  ;;  %v6947_v25 = vld [vmem:[#allocation8 + $0xe8] sm:$0xff]   ;;  %v9366_v9 = vshll.u32 %v8631_v4, 16 }
 0x2bd   :  { %6328 = vmatpush3.bf16.msra.mxu1 %v6943_v44  ;;  %v3758_v1 = vmul.f32 0.5, %v6989_v5  ;;  %v4251_v22 = vor.u32 %v4250_v63, %v4247_v32  ;;  %v3860_v8 = vsel %vm217_vm0, 0, %v3833_v52  ;;  %v3805_v44 = vpack.c.bf16 %v3789_v60, %v3789_v60  ;;  %v6949_v63 = vld [vmem:[#allocation8 + $0xf0] sm:$0xff]   ;;  %v7069_v5 = vld [vmem:[#allocation2 + $0x78] sm:$0xff] }
 0x2be   :  { %6329 = vmatprep.subr.bf16.mxu1 %v6945_v11  ;;  %6277 = vmatprep.mubr.bf16.mxu1 %v6051_v18  ;;  %v8655_v57 = vcombine.low %v3880_v41, %v3880_v41  ;;  %v4265_v29 = vor.u32 %v4264_v47, %v4261_v49  ;;  %v3862_v3 = vsel %vm217_vm0, 0, %v3834_v48  ;;  %v9552_v58 = vshll.u32 %v8622_v31, 16 }
 0x2bf   :  { %v3774_v28 = vadd.f32 0.5, %v3758_v1  ;;  %v4252_v51 = vrot.slane %v4251_v22, 4  ;;  %v3881_v26 = vsel %vm283_vm1, %v3860_v8, 0  ;;  %v4270_v32 = vrot.slane %v9366_v9, 5 }
 0x2c0   :  { %v4256_v30 = vrot.slane %v9552_v58, 5  ;;  %v4266_v18 = vrot.slane %v4265_v29, 4  ;;  %v3882_v52 = vsel %vm283_vm1, %v3862_v3, 0  ;;  %v8664_v60 = vcombine.low %v3881_v26, %v3881_v26 }
 0x2c1   :  { %6330 = vmatpush3.bf16.msra.mxu1 %v6945_v11  ;;  %v3790_v48 = vmul.f32 %v7069_v5, %v3774_v28  ;;  %v8666_v49 = vcombine.high %v3880_v41, %v3880_v41  ;;  %v6006_v47 = vcombine.low %v3881_v26, %v3882_v52  ;;  %v8668_v1 = vcombine.high %v3881_v26, %v3881_v26 }
 0x2c2   :  { %6331 = vmatprep.subr.bf16.mxu1 %v6947_v25  ;;  %v3837_v58 = vrot.slane %v3805_v44, 7  ;;  %v4257_v8 = vsel %vm7645_vm5, %v4252_v51, %v4256_v30  ;;  %v4271_v11 = vsel %vm7645_vm5, %v4266_v18, %v4270_v32  ;;  %v8674_v22 = vcombine.low %v3882_v52, %v3882_v52  ;;  %v6951_v30 = vld [vmem:[#allocation8 + $0xf8] sm:$0xff]  }
 0x2c3   :  { %v3806_v29 = vpack.c.bf16 %v3790_v48, %v3790_v48  ;;  %v6052_v3 = vcombine.low %v4257_v8, %v4271_v11  ;;  %6250 = vmatmul.mubr.bf16.gmra.mrb[40].mxu0 %v6006_v47  ;;  %v8676_v9 = vcombine.high %v3882_v52, %v3882_v52  ;;  %v9368_v44 = vshrl.u32 %v8642_v7, 16 }
 0x2c4   :  { %v9367_v51 = vshll.u32 %v8642_v7, 16  ;;  %v9369_v32 = vshll.u32 %v8647_v54, 16  ;;  %v9370_v52 = vshrl.u32 %v8655_v57, 16  ;;  %v9371_v5 = vshll.u32 %v8655_v57, 16 }
 0x2c5   :  { %6332 = vmatpush3.bf16.msra.mxu1 %v6947_v25  ;;  %v3838_v18 = vrot.slane %v3806_v29, 7  ;;  %v4275_v25 = vrot.slane %v9368_v44, 4  ;;  %v9373_v47 = vshll.u32 %v8666_v49, 16  ;;  %v3864_v8 = vsel %vm217_vm0, 0, %v8619_v2 }
 0x2c6   :  { %6333 = vmatprep.subr.bf16.mxu1 %v6949_v63  ;;  %6278 = vmatmul.mubr.bf16.gmra.mrb[36].mxu1 %v6052_v3  ;;  %v4278_v48 = vrot.slane %v9367_v51, 5  ;;  %v4284_v11 = vrot.slane %v9369_v32, 5  ;;  %v4289_v29 = vrot.slane %v9370_v52, 4  ;;  %v4292_v3 = vrot.slane %v9371_v5, 5 }
 0x2c7   :  { %v3866_v41 = vsel %vm217_vm0, 0, %v3836_v42  ;;  %v4298_v26 = vrot.slane %v9373_v47, 5  ;;  %v3883_v51 = vsel %vm283_vm1, %v3864_v8, 0  ;;  %v9376_v8 = vshrl.u32 %v8674_v22, 16 }
 0x2c8   :  { %v4279_v28 = vor.u32 %v4278_v48, %v4275_v25  ;;  %v3884_v2 = vsel %vm283_vm1, %v3866_v41, 0  ;;  %v4293_v44 = vor.u32 %v4292_v3, %v4289_v29  ;;  %v8704_v46 = vcombine.low %v3883_v51, %v3883_v51 }
 0x2c9   :  { %6334 = vmatpush3.bf16.msra.mxu1 %v6949_v63  ;;  %v6007_v32 = vcombine.low %v3883_v51, %v3884_v2  ;;  %v8706_v52 = vcombine.high %v3883_v51, %v3883_v51  ;;  %v8708_v5 = vcombine.low %v3884_v2, %v3884_v2  ;;  %v8710_v42 = vcombine.high %v3884_v2, %v3884_v2 }
 0x2ca   :  { %6335 = vmatprep.subr.bf16.mxu1 %v6951_v30  ;;  %v4280_v33 = vrot.slane %v4279_v28, 4  ;;  %v9372_v63 = vshrl.u32 %v8664_v60, 16  ;;  %v4294_v25 = vrot.slane %v4293_v44, 4  ;;  %v9374_v48 = vshll.u32 %v8664_v60, 16 }
 0x2cb   :  { %6253 = vmatprep.mubr.bf16.mxu0 %v6007_v32  ;;  %v9375_v41 = vshll.u32 %v8668_v1, 16  ;;  %v9377_v29 = vshll.u32 %v8674_v22, 16  ;;  %v9378_v3 = vshll.u32 %v8676_v9, 16  ;;  %v3868_v47 = vsel %vm217_vm0, 0, %v3837_v58 }
 0x2cc   :  { %v4285_v51 = vsel %vm7645_vm5, %v4280_v33, %v4284_v11  ;;  %v4303_v28 = vrot.slane %v9372_v63, 4  ;;  %v4299_v44 = vsel %vm7645_vm5, %v4294_v25, %v4298_v26  ;;  %v4306_v32 = vrot.slane %v9374_v48, 5 }
 0x2cd   :  { %6336 = vmatpush3.bf16.msra.mxu1 %v6951_v30  ;;  %v4312_v30 = vrot.slane %v9375_v41, 5  ;;  %v4317_v33 = vrot.slane %v9376_v8, 4  ;;  %v6053_v11 = vcombine.low %v4285_v51, %v4299_v44  ;;  %v4320_v2 = vrot.slane %v9377_v29, 5 }
 0x2ce   :  { %6385 = vmatprep.subr.bf16.mxu1 %v8569_v23  ;;  %v4326_v63 = vrot.slane %v9378_v3, 5  ;;  %v4307_v6 = vor.u32 %v4306_v32, %v4303_v28  ;;  %v3870_v26 = vsel %vm217_vm0, 0, %v3838_v18  ;;  %v3885_v25 = vsel %vm283_vm1, %v3868_v47, 0 }
 0x2cf   :  { %v6065_v48 = vrot.slane %v8458_v24, 9  ;;  %6281 = vmatprep.mubr.bf16.mxu1 %v6053_v11  ;;  %v4321_v41 = vor.u32 %v4320_v2, %v4317_v33  ;;  %v3886_v8 = vsel %vm283_vm1, %v3870_v26, 0  ;;  %v8740_v51 = vcombine.low %v3885_v25, %v3885_v25 }
 0x2d0   :  { %v8742_v44 = vcombine.high %v3885_v25, %v3885_v25  ;;  %v4308_v29 = vrot.slane %v4307_v6, 4  ;;  %v6008_v14 = vcombine.low %v3885_v25, %v3886_v8  ;;  %v8744_v3 = vcombine.low %v3886_v8, %v3886_v8 }
 0x2d1   :  { %v8746_v58 = vcombine.high %v3886_v8, %v3886_v8  ;;  %v4322_v28 = vrot.slane %v4321_v41, 4  ;;  %v4596_v18 = vrot.slane %v8478_v53, 5  ;;  %v6066_v47 = vrot.slane %v8472_v62, 9 }
 0x2d2   :  { %v4600_v32 = vrot.slane %v8480_v34, 5  ;;  %v4313_v33 = vsel %vm7645_vm5, %v4308_v29, %v4312_v30  ;;  %6254 = vmatmul.mubr.bf16.gmra.mrb[44].mxu0 %v6008_v14  ;;  %v9384_v11 = vshrl.u32 %v8704_v46, 16  ;;  %v9381_v6 = vshll.u32 %v8704_v46, 16 }
 0x2d3   :  { %v9380_v2 = vshll.u32 %v8706_v52, 16  ;;  %v4327_v8 = vsel %vm7645_vm5, %v4322_v28, %v4326_v63  ;;  %v4597_v41 = vsel %vm7881_vm8, %v6065_v48, %v4596_v18  ;;  %v9379_v25 = vshrl.u32 %v8708_v5, 16 }
 0x2d4   :  { %v4601_v26 = vsel %vm7881_vm8, %v6066_v47, %v4600_v32  ;;  %v6054_v56 = vcombine.low %v4313_v33, %v4327_v8  ;;  %v4331_v14 = vrot.slane %v9384_v11, 4  ;;  %v4334_v30 = vrot.slane %v9381_v6, 5 }
 0x2d5   :  { %v6081_v29 = vcombine.low %v4597_v41, %v4601_v26  ;;  %v4340_v45 = vrot.slane %v9380_v2, 5  ;;  %v4345_v63 = vrot.slane %v9379_v25, 4  ;;  %v9382_v48 = vshll.u32 %v8708_v5, 16 }
 0x2d6   :  { %v9383_v28 = vshll.u32 %v8710_v42, 16  ;;  %6282 = vmatmul.mubr.bf16.gmra.mrb[40].mxu1 %v6054_v56  ;;  %v4335_v18 = vor.u32 %v4334_v30, %v4331_v14  ;;  %v6067_v47 = vrot.slane %v8511_v27, 9  ;;  %v4604_v32 = vrot.slane %v8539_v10, 5 }
 0x2d7   :  { %6305 = vmatprep.mubr.bf16.mxu0 %v6081_v29  ;;  %v6068_v33 = vrot.slane %v8532_v16, 9  ;;  %v4348_v8 = vrot.slane %v9382_v48, 5  ;;  %v4608_v26 = vrot.slane %v8546_v36, 5  ;;  %v6069_v25 = vrot.slane %v8559_v37, 9 }
 0x2d8   :  { %v4354_v41 = vrot.slane %v9383_v28, 5  ;;  %v4336_v2 = vrot.slane %v4335_v18, 4  ;;  %v4605_v56 = vsel %vm7881_vm8, %v6067_v47, %v4604_v32  ;;  %v4612_v29 = vrot.slane %v8587_v61, 5  ;;  %v8795_v32 = vld [vmem:[#allocation8 + $0x108] sm:$0xff]  }
 0x2d9   :  { %v6070_v14 = vrot.slane %v8565_v40, 9  ;;  %v4349_v30 = vor.u32 %v4348_v8, %v4345_v63  ;;  %v4609_v6 = vsel %vm7881_vm8, %v6068_v33, %v4608_v26  ;;  %v4616_v48 = vrot.slane %v8595_v21, 5 }
 0x2da   :  { %v9389_v28 = vshrl.u32 %v8740_v51, 16  ;;  %v4341_v11 = vsel %vm7645_vm5, %v4336_v2, %v4340_v45  ;;  %v6082_v17 = vcombine.low %v4605_v56, %v4609_v6  ;;  %v4613_v18 = vsel %vm7881_vm8, %v6069_v25, %v4612_v29 }
 0x2db   :  { %v9386_v47 = vshll.u32 %v8740_v51, 16  ;;  %v4350_v38 = vrot.slane %v4349_v30, 4  ;;  %v4617_v63 = vsel %vm7881_vm8, %v6070_v14, %v4616_v48  ;;  %v9385_v8 = vshll.u32 %v8742_v44, 16 }
 0x2dc   :  { %v4359_v33 = vrot.slane %v9389_v28, 4  ;;  %6306 = vmatmul.mubr.bf16.vlgmr.msra.gmra.mrb[48].mxu0 %v6082_v17  ;;  %v6083_v26 = vcombine.low %v4613_v18, %v4617_v63  ;;  %v9388_v6 = vshrl.u32 %v8744_v3, 16  ;;  %v9387_v2 = vshll.u32 %v8744_v3, 16 }
 0x2dd   :  { %v4362_v45 = vrot.slane %v9386_v47, 5  ;;  %v4355_v25 = vsel %vm7645_vm5, %v4350_v38, %v4354_v41  ;;  %6354 = vmatpush3.bf16.msra.mxu0 %v8569_v23  ;;  %v4368_v48 = vrot.slane %v9385_v8, 5  ;;  %v9390_v56 = vshll.u32 %v8746_v58, 16  ;;  %v8819_v38 = vld [vmem:[#allocation8 + $0x110] sm:$0xff]  }
 0x2de   :  { %v9553_v17 = vshrl.u32 %v8458_v24, 16  ;;  %v6055_v14 = vcombine.low %v4341_v11, %v4355_v25  ;;  %6309 = vmatprep.mubr.bf16.mxu0 %v6083_v26  ;;  %v4373_v18 = vrot.slane %v9388_v6, 4  ;;  %v4376_v63 = vrot.slane %v9387_v2, 5  ;;  %6355 = vmatprep.subr.bf16.mxu0 %v8795_v32 }
 0x2df   :  { %v4363_v30 = vor.u32 %v4362_v45, %v4359_v33  ;;  %v4382_v41 = vrot.slane %v9390_v56, 5  ;;  %v9554_v8 = vshll.u32 %v8458_v24, 16  ;;  %v4872_v11 = vshrl.u32 %v8478_v53, 16 }
 0x2e0   :  { %v4868_v29 = vrot.slane %v9553_v17, 5  ;;  %v9555_v33 = vshll.u32 %v8478_v53, 16  ;;  %6285 = vmatprep.mubr.bf16.mxu1 %v6055_v14  ;;  %v4377_v25 = vor.u32 %v4376_v63, %v4373_v18  ;;  %v9556_v17 = vshrl.u32 %v8472_v62, 16 }
 0x2e1   :  { %v4869_v47 = vrot.slane %v9554_v8, 6  ;;  %v4364_v45 = vrot.slane %v4363_v30, 4  ;;  %v9557_v6 = vshll.u32 %v8472_v62, 16  ;;  %v4874_v43 = vrot.slane %v4872_v11, 5  ;;  %6356 = vmatpush3.bf16.msra.mxu0 %v8795_v32 }
 0x2e2   :  { %v4875_v26 = vrot.slane %v9555_v33, 6  ;;  %v4878_v2 = vrot.slane %v9556_v17, 5  ;;  %v4882_v56 = vshrl.u32 %v8480_v34, 16  ;;  %v9558_v8 = vshll.u32 %v8480_v34, 16  ;;  %6357 = vmatprep.subr.bf16.mxu0 %v8819_v38  ;;  %v8840_v33 = vld [vmem:[#allocation8 + $0x118] sm:$0xff]  }
 0x2e3   :  { %v4879_v28 = vrot.slane %v9557_v6, 6  ;;  %v4870_v20 = vor.u32 %v4869_v47, %v4868_v29  ;;  %v4369_v14 = vsel %vm7645_vm5, %v4364_v45, %v4368_v48  ;;  %v4378_v30 = vrot.slane %v4377_v25, 4 }
 0x2e4   :  { %v4885_v50 = vrot.slane %v9558_v8, 6  ;;  %v6071_v63 = vrot.slane %v8609_v15, 9  ;;  %v4876_v6 = vor.u32 %v4875_v26, %v4874_v43  ;;  %v4884_v29 = vrot.slane %v4882_v56, 5 }
 0x2e5   :  { %v4880_v18 = vor.u32 %v4879_v28, %v4878_v2  ;;  %v4871_v47 = vrot.slane %v4870_v20, 4  ;;  %v4620_v11 = vrot.slane %v8622_v31, 5  ;;  %v4383_v17 = vsel %vm7645_vm5, %v4378_v30, %v4382_v41  ;;  %6358 = vmatpush3.bf16.msra.mxu0 %v8819_v38 }
 0x2e6   :  { %v6072_v0 = vrot.slane %v8616_v59, 9  ;;  %v4624_v48 = vrot.slane %v8631_v4, 5  ;;  %v6056_v28 = vcombine.low %v4369_v14, %v4383_v17  ;;  %v4886_v25 = vor.u32 %v4885_v50, %v4884_v29  ;;  %6359 = vmatprep.subr.bf16.mxu0 %v8840_v33 }
 0x2e7   :  { %v4881_v8 = vrot.slane %v4880_v18, 4  ;;  %v4877_v45 = vsel %vm7964_vm11, %v4871_v47, %v4876_v6  ;;  %v4621_v20 = vsel %vm7881_vm8, %v6071_v63, %v4620_v11  ;;  %v6073_v12 = vrot.slane %v8642_v7, 9  ;;  %v8863_v63 = vld [vmem:[#allocation8 + $0x120] sm:$0xff]  }
 0x2e8   :  { %v4625_v43 = vsel %vm7881_vm8, %v6072_v0, %v4624_v48  ;;  %v4628_v56 = vrot.slane %v8647_v54, 5  ;;  %v6074_v41 = vrot.slane %v8655_v57, 9  ;;  %6286 = vmatmul.mubr.bf16.gmra.mrb[44].mxu1 %v6056_v28  ;;  %v4632_v14 = vrot.slane %v8666_v49, 5 }
 0x2e9   :  { %v4887_v50 = vsel %vm7964_vm11, %v4881_v8, %v4886_v25  ;;  %v6084_v26 = vcombine.low %v4621_v20, %v4625_v43  ;;  %v9560_v30 = vshrl.u32 %v8511_v27, 16  ;;  %v9561_v6 = vshll.u32 %v8511_v27, 16  ;;  %6360 = vmatpush3.bf16.msra.mxu0 %v8840_v33 }
 0x2ea   :  { %v6097_v0 = vcombine.low %v4877_v45, %v4887_v50  ;;  %v4629_v47 = vsel %vm7881_vm8, %v6073_v12, %v4628_v56  ;;  %v4892_v11 = vshrl.u32 %v8539_v10, 16  ;;  %v4633_v17 = vsel %vm7881_vm8, %v6074_v41, %v4632_v14  ;;  %6361 = vmatprep.subr.bf16.mxu0 %v8863_v63 }
 0x2eb   :  { %v4888_v18 = vrot.slane %v9560_v30, 5  ;;  %v4889_v29 = vrot.slane %v9561_v6, 6  ;;  %6310 = vmatmul.mubr.bf16.gmra.mrb[52].mxu0 %v6084_v26  ;;  %v9562_v8 = vshll.u32 %v8539_v10, 16  ;;  %v9563_v28 = vshrl.u32 %v8532_v16, 16 }
 0x2ec   :  { %v9564_v45 = vshll.u32 %v8532_v16, 16  ;;  %6337 = vmatprep.mubr.bf16.mxu1 %v6097_v0  ;;  %v6085_v43 = vcombine.low %v4629_v47, %v4633_v17  ;;  %v4894_v56 = vrot.slane %v4892_v11, 5  ;;  %v4902_v50 = vshrl.u32 %v8546_v36, 16  ;;  %v8887_v0 = vld [vmem:[#allocation8 + $0x128] sm:$0xff]  }
 0x2ed   :  { %v4895_v48 = vrot.slane %v9562_v8, 6  ;;  %v4898_v25 = vrot.slane %v9563_v28, 5  ;;  %v4890_v12 = vor.u32 %v4889_v29, %v4888_v18  ;;  %v9565_v41 = vshll.u32 %v8546_v36, 16  ;;  %6362 = vmatpush3.bf16.msra.mxu0 %v8863_v63 }
 0x2ee   :  { %v4899_v20 = vrot.slane %v9564_v45, 6  ;;  %v9566_v30 = vshrl.u32 %v8559_v37, 16  ;;  %v9567_v8 = vshll.u32 %v8559_v37, 16  ;;  %6313 = vmatprep.mubr.bf16.mxu0 %v6085_v43  ;;  %v4904_v29 = vrot.slane %v4902_v50, 5  ;;  %6363 = vmatprep.subr.bf16.mxu0 %v8887_v0 }
 0x2ef   :  { %v4905_v14 = vrot.slane %v9565_v41, 6  ;;  %v4891_v18 = vrot.slane %v4890_v12, 4  ;;  %v4896_v47 = vor.u32 %v4895_v48, %v4894_v56  ;;  %v4912_v11 = vshrl.u32 %v8587_v61, 16 }
 0x2f0   :  { %v4900_v26 = vor.u32 %v4899_v20, %v4898_v25  ;;  %v4908_v6 = vrot.slane %v9566_v30, 5  ;;  %v4909_v28 = vrot.slane %v9567_v8, 6  ;;  %v9568_v45 = vshll.u32 %v8587_v61, 16 }
 0x2f1   :  { %v9569_v41 = vshrl.u32 %v8565_v40, 16  ;;  %v4897_v8 = vsel %vm7964_vm11, %v4891_v18, %v4896_v47  ;;  %v4906_v55 = vor.u32 %v4905_v14, %v4904_v29  ;;  %v4914_v13 = vrot.slane %v4912_v11, 5  ;;  %6364 = vmatpush3.bf16.msra.mxu0 %v8887_v0 }
 0x2f2   :  { %v4901_v17 = vrot.slane %v4900_v26, 4  ;;  %v4910_v25 = vor.u32 %v4909_v28, %v4908_v6  ;;  %v4915_v20 = vrot.slane %v9568_v45, 6  ;;  %v9570_v43 = vshll.u32 %v8565_v40, 16  ;;  %v8904_v28 = vld [vmem:[#allocation8 + $0x130] sm:$0xff]  }
 0x2f3   :  { %v4918_v30 = vrot.slane %v9569_v41, 5  ;;  %v4922_v56 = vshrl.u32 %v8595_v21, 16  ;;  %v9571_v50 = vshll.u32 %v8595_v21, 16  ;;  %v6075_v6 = vrot.slane %v8664_v60, 9  ;;  %6365 = vmatprep.subr.bf16.mxu0 %v8904_v28 }
 0x2f4   :  { %v4919_v12 = vrot.slane %v9570_v43, 6  ;;  %v4911_v48 = vrot.slane %v4910_v25, 4  ;;  %v4907_v14 = vsel %vm7964_vm11, %v4901_v17, %v4906_v55  ;;  %v4916_v18 = vor.u32 %v4915_v20, %v4914_v13 }
 0x2f5   :  { %v4925_v26 = vrot.slane %v9571_v50, 6  ;;  %v4636_v29 = vrot.slane %v8668_v1, 5  ;;  %v6098_v11 = vcombine.low %v4897_v8, %v4907_v14  ;;  %v4924_v25 = vrot.slane %v4922_v56, 5  ;;  %6366 = vmatpush3.bf16.msra.mxu0 %v8904_v28 }
 0x2f6   :  { %v4920_v47 = vor.u32 %v4919_v12, %v4918_v30  ;;  %v6076_v45 = vrot.slane %v8674_v22, 9  ;;  %v4640_v41 = vrot.slane %v8676_v9, 5  ;;  %v4917_v43 = vsel %vm7964_vm11, %v4911_v48, %v4916_v18 }
 0x2f7   :  { %v4637_v39 = vsel %vm7881_vm8, %v6075_v6, %v4636_v29  ;;  %v6077_v21 = vrot.slane %v8704_v46, 9  ;;  %6338 = vmatmul.mubr.bf16.vlgmr.msra.gmra.mrb[48].mxu1 %v6098_v11  ;;  %v4926_v55 = vor.u32 %v4925_v26, %v4924_v25  ;;  %v4644_v17 = vrot.slane %v8706_v52, 5 }
 0x2f8   :  { %v4921_v50 = vrot.slane %v4920_v47, 4  ;;  %v4641_v13 = vsel %vm7881_vm8, %v6076_v45, %v4640_v41  ;;  %v6078_v20 = vrot.slane %v8708_v5, 9  ;;  %6393 = vmatpush3.bf16.msra.mxu1 %v8569_v23  ;;  %v4648_v8 = vrot.slane %v8710_v42, 5  ;;  %v8940_v41 = vld [vmem:[#allocation8 + $0x138] sm:$0xff]  }
 0x2f9   :  { %v6086_v30 = vcombine.low %v4637_v39, %v4641_v13  ;;  %v9572_v12 = vshrl.u32 %v8609_v15, 16  ;;  %v9573_v56 = vshll.u32 %v8609_v15, 16  ;;  %6386 = vmatprep.subr.bf16.mxu1 %v8795_v32  ;;  %v4645_v14 = vsel %vm7881_vm8, %v6077_v21, %v4644_v17  ;;  %6367 = vmatprep.subr.bf16.mxu0 %v8940_v41 }
 0x2fa   :  { %v4927_v6 = vsel %vm7964_vm11, %v4921_v50, %v4926_v55  ;;  %v4932_v18 = vshrl.u32 %v8622_v31, 16  ;;  %v9574_v39 = vshll.u32 %v8622_v31, 16  ;;  %v4649_v29 = vsel %vm7881_vm8, %v6078_v20, %v4648_v8  ;;  %6368 = vmatpush3.bf16.msra.mxu0 %v8940_v41 }
 0x2fb   :  { %v4928_v48 = vrot.slane %v9572_v12, 5  ;;  %v4929_v26 = vrot.slane %v9573_v56, 6  ;;  %v6099_v47 = vcombine.low %v4917_v43, %v4927_v6  ;;  %6314 = vmatmul.mubr.bf16.gmra.mrb[56].mxu0 %v6086_v30  ;;  %v9575_v25 = vshrl.u32 %v8616_v59, 16 }
 0x2fc   :  { %v4935_v23 = vrot.slane %v9574_v39, 6  ;;  %v6087_v50 = vcombine.low %v4645_v14, %v4649_v29  ;;  %v4934_v55 = vrot.slane %v4932_v18, 5  ;;  %v9576_v21 = vshll.u32 %v8616_v59, 16  ;;  %6394 = vmatpush3.bf16.msra.mxu1 %v8795_v32 }
 0x2fd   :  { %v4930_v11 = vor.u32 %v4929_v26, %v4928_v48  ;;  %v4938_v45 = vrot.slane %v9575_v25, 5  ;;  %v4942_v17 = vshrl.u32 %v8631_v4, 16  ;;  %6341 = vmatprep.mubr.bf16.mxu1 %v6099_v47  ;;  %v9577_v20 = vshll.u32 %v8631_v4, 16  ;;  %6387 = vmatprep.subr.bf16.mxu1 %v8819_v38 }
 0x2fe   :  { %v4939_v13 = vrot.slane %v9576_v21, 6  ;;  %v9578_v8 = vshrl.u32 %v8642_v7, 16  ;;  %v9579_v48 = vshll.u32 %v8642_v7, 16  ;;  %6317 = vmatprep.mubr.bf16.mxu0 %v6087_v50  ;;  %v4936_v26 = vor.u32 %v4935_v23, %v4934_v55 }
 0x2ff   :  { %v4931_v43 = vrot.slane %v4930_v11, 4  ;;  %v4945_v30 = vrot.slane %v9577_v20, 6  ;;  %v4944_v14 = vrot.slane %v4942_v17, 5  ;;  %v4952_v18 = vshrl.u32 %v8647_v54, 16 }
 0x300   :  { %v4948_v12 = vrot.slane %v9578_v8, 5  ;;  %v4949_v56 = vrot.slane %v9579_v48, 6  ;;  %v4940_v6 = vor.u32 %v4939_v13, %v4938_v45  ;;  %v9580_v32 = vshll.u32 %v8647_v54, 16  ;;  %6395 = vmatpush3.bf16.msra.mxu1 %v8819_v38 }
 0x301   :  { %v9581_v29 = vshrl.u32 %v8655_v57, 16  ;;  %v9582_v25 = vshll.u32 %v8655_v57, 16  ;;  %v4937_v23 = vsel %vm7964_vm11, %v4931_v43, %v4936_v26  ;;  %v4946_v50 = vor.u32 %v4945_v30, %v4944_v14  ;;  %6388 = vmatprep.subr.bf16.mxu1 %v8840_v33 }
 0x302   :  { %v4950_v39 = vor.u32 %v4949_v56, %v4948_v12  ;;  %v4955_v47 = vrot.slane %v9580_v32, 6  ;;  %v4941_v45 = vrot.slane %v4940_v6, 4  ;;  %v4954_v55 = vrot.slane %v4952_v18, 5 }
 0x303   :  { %v4958_v11 = vrot.slane %v9581_v29, 5  ;;  %v4959_v21 = vrot.slane %v9582_v25, 6  ;;  %v4962_v20 = vshrl.u32 %v8666_v49, 16  ;;  %v9583_v8 = vshll.u32 %v8666_v49, 16 }
 0x304   :  { %v4951_v13 = vrot.slane %v4950_v39, 4  ;;  %v4947_v48 = vsel %vm7964_vm11, %v4941_v45, %v4946_v50  ;;  %v4956_v56 = vor.u32 %v4955_v47, %v4954_v55  ;;  %v6079_v43 = vrot.slane %v8740_v51, 9  ;;  %6396 = vmatpush3.bf16.msra.mxu1 %v8840_v33 }
 0x305   :  { %v4960_v17 = vor.u32 %v4959_v21, %v4958_v11  ;;  %v4965_v12 = vrot.slane %v9583_v8, 6  ;;  %v4652_v30 = vrot.slane %v8742_v44, 5  ;;  %v6100_v26 = vcombine.low %v4937_v23, %v4947_v48  ;;  %6389 = vmatprep.subr.bf16.mxu1 %v8863_v63 }
 0x306   :  { %v4964_v14 = vrot.slane %v4962_v20, 5  ;;  %v6080_v18 = vrot.slane %v8744_v3, 9  ;;  %v4957_v39 = vsel %vm7964_vm11, %v4951_v13, %v4956_v56  ;;  %v4656_v32 = vrot.slane %v8746_v58, 5 }
 0x307   :  { %v4961_v6 = vrot.slane %v4960_v17, 4  ;;  %v4653_v38 = vsel %vm7881_vm8, %v6079_v43, %v4652_v30  ;;  %v6113_v47 = vrot.slane %v8458_v24, 10  ;;  %6342 = vmatmul.mubr.bf16.gmra.mrb[52].mxu1 %v6100_v26  ;;  %v5240_v11 = vrot.slane %v8478_v53, 6 }
 0x308   :  { %v4966_v29 = vor.u32 %v4965_v12, %v4964_v14  ;;  %v6114_v25 = vrot.slane %v8472_v62, 10  ;;  %v5244_v21 = vrot.slane %v8480_v34, 6  ;;  %v4657_v23 = vsel %vm7881_vm8, %v6080_v18, %v4656_v32  ;;  %6397 = vmatpush3.bf16.msra.mxu1 %v8863_v63 }
 0x309   :  { %v9584_v45 = vshrl.u32 %v8664_v60, 16  ;;  %v9585_v55 = vshll.u32 %v8664_v60, 16  ;;  %v4972_v24 = vshrl.u32 %v8668_v1, 16  ;;  %v6088_v17 = vcombine.low %v4653_v38, %v4657_v23  ;;  %6390 = vmatprep.subr.bf16.mxu1 %v8887_v0 }
 0x30a   :  { %v4967_v53 = vsel %vm7964_vm11, %v4961_v6, %v4966_v29  ;;  %v5241_v62 = vsel %vm8288_vm14, %v6113_v47, %v5240_v11  ;;  %v5245_v19 = vsel %vm8288_vm14, %v6114_v25, %v5244_v21  ;;  %v9586_v12 = vshll.u32 %v8668_v1, 16 }
 0x30b   :  { %v4968_v50 = vrot.slane %v9584_v45, 5  ;;  %v4969_v13 = vrot.slane %v9585_v55, 6  ;;  %v6101_v34 = vcombine.low %v4957_v39, %v4967_v53  ;;  %v6129_v33 = vcombine.low %v5241_v62, %v5245_v19  ;;  %6318 = vmatmul.mubr.bf16.gmra.mrb[60].mxu0 %v6088_v17 }
 0x30c   :  { %v4974_v8 = vrot.slane %v4972_v24, 5  ;;  %v4975_v48 = vrot.slane %v9586_v12, 6  ;;  %v9587_v56 = vshrl.u32 %v8674_v22, 16  ;;  %v9588_v30 = vshll.u32 %v8674_v22, 16  ;;  %6398 = vmatpush3.bf16.msra.mxu1 %v8887_v0 }
 0x30d   :  { %v4970_v20 = vor.u32 %v4969_v13, %v4968_v50  ;;  %v4982_v6 = vshrl.u32 %v8676_v9, 16  ;;  %6345 = vmatprep.mubr.bf16.mxu1 %v6101_v34  ;;  %6369 = vmatprep.mubr.bf16.mxu0 %v6129_v33  ;;  %v9589_v18 = vshll.u32 %v8676_v9, 16  ;;  %v9590_v38 = vshrl.u32 %v8704_v46, 16 }
 0x30e   :  { %v4978_v43 = vrot.slane %v9587_v56, 5  ;;  %v4979_v26 = vrot.slane %v9588_v30, 6  ;;  %v9591_v47 = vshll.u32 %v8704_v46, 16  ;;  %v4976_v11 = vor.u32 %v4975_v48, %v4974_v8  ;;  %6391 = vmatprep.subr.bf16.mxu1 %v8904_v28 }
 0x30f   :  { %v4971_v14 = vrot.slane %v4970_v20, 4  ;;  %v4985_v39 = vrot.slane %v9589_v18, 6  ;;  %v4988_v32 = vrot.slane %v9590_v38, 5  ;;  %v4984_v21 = vrot.slane %v4982_v6, 5 }
 0x310   :  { %v4989_v29 = vrot.slane %v9591_v47, 6  ;;  %v4980_v25 = vor.u32 %v4979_v26, %v4978_v43  ;;  %v4992_v23 = vshrl.u32 %v8706_v52, 16  ;;  %v9592_v50 = vshll.u32 %v8706_v52, 16  ;;  %6399 = vmatpush3.bf16.msra.mxu1 %v8904_v28 }
 0x311   :  { %v9593_v13 = vshrl.u32 %v8708_v5, 16  ;;  %v9594_v53 = vshll.u32 %v8708_v5, 16  ;;  %v4977_v62 = vsel %vm7964_vm11, %v4971_v14, %v4976_v11  ;;  %v4986_v34 = vor.u32 %v4985_v39, %v4984_v21  ;;  %v9596_v11 = vld [vmem:[#allocation25_spill] sm:$0xff]  ;;  %6392 = vmatprep.subr.bf16.mxu1 %v8940_v41 }
 0x312   :  { %v4990_v45 = vor.u32 %v4989_v29, %v4988_v32  ;;  %v4995_v55 = vrot.slane %v9592_v50, 6  ;;  %v4981_v19 = vrot.slane %v4980_v25, 4  ;;  %v4994_v33 = vrot.slane %v4992_v23, 5 }
 0x313   :  { %v4998_v24 = vrot.slane %v9593_v13, 5  ;;  %v4999_v17 = vrot.slane %v9594_v53, 6  ;;  %v5002_v8 = vshrl.u32 %v8710_v42, 16  ;;  %v9595_v12 = vshll.u32 %v8710_v42, 16 }
 0x314   :  { %v4991_v20 = vrot.slane %v4990_v45, 4  ;;  %v4987_v56 = vsel %vm7964_vm11, %v4981_v19, %v4986_v34  ;;  %v4996_v43 = vor.u32 %v4995_v55, %v4994_v33  ;;  %v6115_v30 = vrot.slane %v8511_v27, 10  ;;  %6400 = vmatpush3.bf16.msra.mxu1 %v8940_v41 }
 0x315   :  { %v5000_v63 = vor.u32 %v4999_v17, %v4998_v24  ;;  %v5005_v48 = vrot.slane %v9595_v12, 6  ;;  %v5248_v26 = vrot.slane %v8539_v10, 6  ;;  %v6102_v6 = vcombine.low %v4977_v62, %v4987_v56 }
 0x316   :  { %v5004_v18 = vrot.slane %v5002_v8, 5  ;;  %v6116_v39 = vrot.slane %v8532_v16, 10  ;;  %v4997_v38 = vsel %vm7964_vm11, %v4991_v20, %v4996_v43  ;;  %v5252_v47 = vrot.slane %v8546_v36, 6 }
 0x317   :  { %v5001_v14 = vrot.slane %v5000_v63, 4  ;;  %v5249_v32 = vsel %vm8288_vm14, %v6115_v30, %v5248_v26  ;;  %v6117_v0 = vrot.slane %v8559_v37, 10  ;;  %6346 = vmatmul.mubr.bf16.gmra.mrb[56].mxu1 %v6102_v6  ;;  %v5256_v10 = vrot.slane %v8587_v61, 6 }
 0x318   :  { %v5006_v27 = vor.u32 %v5005_v48, %v5004_v18  ;;  %v6118_v29 = vrot.slane %v8565_v40, 10  ;;  %v5260_v16 = vrot.slane %v9596_v11, 6  ;;  %v5253_v25 = vsel %vm8288_vm14, %v6116_v39, %v5252_v47 }
 0x319   :  { %v9597_v21 = vshrl.u32 %v8740_v51, 16  ;;  %v9598_v45 = vshll.u32 %v8740_v51, 16  ;;  %v5012_v36 = vshrl.u32 %v8742_v44, 16  ;;  %v6130_v61 = vcombine.low %v5249_v32, %v5253_v25 }
 0x31a   :  { %v5007_v37 = vsel %vm7964_vm11, %v5001_v14, %v5006_v27  ;;  %v5257_v40 = vsel %vm8288_vm14, %v6117_v0, %v5256_v10  ;;  %v5261_v55 = vsel %vm8288_vm14, %v6118_v29, %v5260_v16  ;;  %v9599_v62 = vshll.u32 %v8742_v44, 16 }
 0x31b   :  { %v5008_v23 = vrot.slane %v9597_v21, 5  ;;  %v5009_v50 = vrot.slane %v9598_v45, 6  ;;  %v6103_v13 = vcombine.low %v4997_v38, %v5007_v37  ;;  %v6131_v24 = vcombine.low %v5257_v40, %v5261_v55  ;;  %6370 = vmatmul.mubr.bf16.vlgmr.msra.gmra.mrb[64].mxu0 %v6130_v61  ;;  %v9607_v40 = vld [vmem:[#allocation17_spill] sm:$0xff] }
 0x31c   :  { %v5014_v17 = vrot.slane %v5012_v36, 5  ;;  %v5015_v28 = vrot.slane %v9599_v62, 6  ;;  %v9600_v19 = vshrl.u32 %v8744_v3, 16  ;;  %v9601_v33 = vshll.u32 %v8744_v3, 16 }
 0x31d   :  { %v5010_v53 = vor.u32 %v5009_v50, %v5008_v23  ;;  %v5022_v63 = vshrl.u32 %v8746_v58, 16  ;;  %v5284_v8 = vrot.slane %v8676_v9, 6  ;;  %6349 = vmatprep.mubr.bf16.mxu1 %v6103_v13  ;;  %6373 = vmatprep.mubr.bf16.mxu0 %v6131_v24  ;;  %v9602_v48 = vshll.u32 %v8746_v58, 16  ;;  %v9608_v13 = vld [vmem:[#allocation32_spill] sm:$0xff] }
 0x31e   :  { %v5018_v34 = vrot.slane %v9600_v19, 5  ;;  %v5019_v20 = vrot.slane %v9601_v33, 6  ;;  %v6121_v43 = vrot.slane %v8642_v7, 10  ;;  %v5272_v6 = vrot.slane %v8647_v54, 6  ;;  %v9610_v19 = vld [vmem:[#allocation28_spill] sm:$0xff] }
 0x31f   :  { %v5011_v12 = vrot.slane %v5010_v53, 4  ;;  %v5025_v56 = vrot.slane %v9602_v48, 6  ;;  %v5024_v26 = vrot.slane %v5022_v63, 5  ;;  %v6122_v14 = vrot.slane %v8655_v57, 10  ;;  %v9611_v48 = vld [vmem:[#allocation27_spill] sm:$0xff] }
 0x320   :  { %v5020_v30 = vor.u32 %v5019_v20, %v5018_v34  ;;  %v5276_v18 = vrot.slane %v8666_v49, 6  ;;  %v6119_v9 = vrot.slane %v8609_v15, 10  ;;  %v5264_v39 = vrot.slane %v8622_v31, 6 }
 0x321   :  { %v5016_v38 = vor.u32 %v5015_v28, %v5014_v17  ;;  %v5026_v47 = vor.u32 %v5025_v56, %v5024_v26  ;;  %v6120_v0 = vrot.slane %v8616_v59, 10  ;;  %v5268_v54 = vrot.slane %v8631_v4, 6  ;;  %v9609_v17 = vld [vmem:[#allocation19_spill] sm:$0xff] }
 0x322   :  { %v5021_v32 = vrot.slane %v5020_v30, 4  ;;  %v5277_v7 = vsel %vm8288_vm14, %v6122_v14, %v5276_v18  ;;  %v9603_v57 = vrot.slane %v8668_v1, 6  ;;  %v9604_v41 = vrot.slane %v8664_v60, 10  ;;  %v9613_v14 = vld [vmem:[#allocation30_spill] sm:$0xff] }
 0x323   :  { %v5017_v31 = vsel %vm7964_vm11, %v5011_v12, %v5016_v38  ;;  %v5273_v59 = vsel %vm8288_vm14, %v6121_v43, %v5272_v6  ;;  %v9605_v27 = vrot.slane %v8674_v22, 10  ;;  %v5265_v60 = vsel %vm8288_vm14, %v6119_v9, %v5264_v39  ;;  %v9612_v43 = vld [vmem:[#allocation22_spill] sm:$0xff] }
 0x324   :  { %v5281_v49 = vsel %vm8288_vm14, %v9604_v41, %v9603_v57  ;;  %v5027_v15 = vsel %vm7964_vm11, %v5021_v32, %v5026_v47  ;;  %v5269_v10 = vsel %vm8288_vm14, %v6120_v0, %v5268_v54  ;;  %v6133_v11 = vcombine.low %v5273_v59, %v5277_v7  ;;  %v9614_v47 = vld [vmem:[#allocation23_spill] sm:$0xff] }
 0x325   :  { %v5285_v4 = vsel %vm8288_vm14, %v9605_v27, %v5284_v8  ;;  %v6104_v1 = vcombine.low %v5017_v31, %v5027_v15  ;;  %v6132_v16 = vcombine.low %v5265_v60, %v5269_v10  ;;  %v6126_v2 = vrot.slane %v8708_v5, 10  ;;  %v9616_v10 = vld [vmem:[#allocation35_spill] sm:$0xff] }
 0x326   :  { %v6134_v29 = vcombine.low %v5281_v49, %v5285_v4  ;;  %v6127_v25 = vrot.slane %v8740_v51, 10  ;;  %v5292_v22 = vrot.slane %v8710_v42, 6  ;;  %v5296_v21 = vrot.slane %v8742_v44, 6 }
 0x327   :  { %6350 = vmatmul.mubr.bf16.gmra.mrb[60].mxu1 %v6104_v1  ;;  %v6128_v23 = vrot.slane %v8744_v3, 10  ;;  %v5300_v45 = vrot.slane %v8746_v58, 6  ;;  %6374 = vmatmul.mubr.bf16.gmra.mrb[68].mxu0 %v6132_v16  ;;  %v6125_v50 = vrot.slane %v8704_v46, 10  ;;  %v5288_v36 = vrot.slane %v8706_v52, 6  ;;  %v9606_v46 = vld [vmem:[#allocation31_spill] sm:$0xff]  ;;  %v9617_v16 = vld [vmem:[#allocation41_spill] sm:$0xff] }
 0x328   :  { %6377 = vmatprep.mubr.bf16.mxu1 %v6133_v11  ;;  %v5297_v5 = vsel %vm8288_vm14, %v6127_v25, %v5296_v21  ;;  %v5293_v42 = vsel %vm8288_vm14, %v6126_v2, %v5292_v22  ;;  %v850_v58 = vsub.s32 2, %v9606_v46  ;;  %v9115_v52 = vld [vmem:[#allocation10] sm:$0x7]  ;;  %v9618_v21 = vld [vmem:[#allocation37_spill] sm:$0xff] }
 0x329   :  { %v5301_v51 = vsel %vm8288_vm14, %v6128_v23, %v5300_v45  ;;  %v5289_v3 = vsel %vm8288_vm14, %v6125_v50, %v5288_v36  ;;  %v9615_v1 = vld [vmem:[#allocation39_spill] sm:$0xff] }
 0x32a   :  { %v6136_v37 = vcombine.low %v5297_v5, %v5301_v51  ;;  %v6135_v44 = vcombine.low %v5289_v3, %v5293_v42  ;;  %v851_v61 = vrot.slane %v9115_v52, %v850_v58 }
 0x32c   :  { %v6435_v55 = vadd.f32 %v9607_v40, %v851_v61  ;;  %v6433_v24 = vadd.f32 %v9608_v13, %v851_v61  ;;  %v6436_v62 = vadd.f32 %v9609_v17, %v851_v61  ;;  %v6434_v34 = vadd.f32 %v9610_v19, %v851_v61  ;;  %v9620_v17 = vld [vmem:[#allocation43_spill] sm:$0xff] }
 0x32d   :  { %v6439_v56 = vadd.f32 %v9611_v48, %v851_v61  ;;  %v6437_v30 = vadd.f32 %v9612_v43, %v851_v61  ;;  %v6440_v18 = vadd.f32 %v9613_v14, %v851_v61  ;;  %v6438_v0 = vadd.f32 %v9614_v47, %v851_v61 }
 0x32e   :  { %v6443_v60 = vadd.f32 %v9615_v1, %v851_v61  ;;  %v6444_v2 = vadd.f32 %v9617_v16, %v851_v61  ;;  %v6442_v23 = vadd.f32 %v9618_v21, %v851_v61 }
 0x32f   :  { %6378 = vmatmul.mubr.bf16.vlgmr.msra.gmra.mrb[64].mxu1 %v6134_v29  ;;  %v6441_v29 = vadd.f32 %v9616_v10, %v851_v61 }
 0x330   :  { %6381 = vmatprep.mubr.bf16.mxu1 %v6135_v44 }
 0x337   :  { %6382 = vmatmul.mubr.bf16.gmra.mrb[68].mxu1 %v6136_v37 }
 0x35d   :  { %v6243_v53 = vpop.f32.mrb[32].mxu0 }
 0x35e   :  { %v4098_v28 = vadd.f32 %v6435_v55, %v6243_v53  ;;  %v4033_v35 = vpop.f32.mrb[33].mxu0 }
 0x35f   :  { %v4096_v33 = vadd.f32 %v6433_v24, %v4033_v35  ;;  %v6244_v20 = vpop.f32.mrb[34].mxu0  ;;  %v9619_v24 = vld [vmem:[#allocation47_spill] sm:$0xff]  ;;  %v9621_v35 = vld [vmem:[#allocation49_spill] sm:$0xff] }
 0x360   :  { %v4099_v63 = vadd.f32 %v6436_v62, %v6244_v20  ;;  %v4036_v8 = vpop.f32.mrb[35].mxu0  ;;  %v6447_v53 = vadd.f32 %v9619_v24, %v851_v61  ;;  %v6445_v62 = vadd.f32 %v9620_v17, %v851_v61  ;;  %v6448_v19 = vadd.f32 %v9621_v35, %v851_v61  ;;  %v9622_v20 = vld [vmem:[#allocation45_spill] sm:$0xff]  ;;  %v9626_v35 = vld [vmem:[#allocation20_spill] sm:$0xff] }
 0x361   :  { %v4097_v12 = vadd.f32 %v6434_v34, %v4036_v8 }
 0x382   :  { %v6247_v6 = vpop.f32.mrb[36].mxu0 }
 0x383   :  { %v6275_v26 = vpop.f32.mrb[32].mxu1  ;;  %v4102_v38 = vadd.f32 %v6439_v56, %v6247_v6  ;;  %v4049_v32 = vpop.f32.mrb[37].mxu0 }
 0x384   :  { %v4580_v9 = vadd.f32 %v6275_v26, %v4098_v28  ;;  %v4515_v39 = vpop.f32.mrb[33].mxu1  ;;  %v4100_v57 = vadd.f32 %v6437_v30, %v4049_v32  ;;  %v6248_v41 = vpop.f32.mrb[38].mxu0 }
 0x385   :  { %v4578_v7 = vadd.f32 %v4515_v39, %v4096_v33  ;;  %v6276_v54 = vpop.f32.mrb[34].mxu1  ;;  %v4103_v15 = vadd.f32 %v6440_v18, %v6248_v41  ;;  %v4052_v59 = vpop.f32.mrb[39].mxu0 }
 0x386   :  { %v4581_v49 = vadd.f32 %v6276_v54, %v4099_v63  ;;  %v4518_v31 = vpop.f32.mrb[35].mxu1  ;;  %v4101_v4 = vadd.f32 %v6438_v0, %v4052_v59  ;;  %v6446_v63 = vadd.f32 %v9622_v20, %v851_v61 }
 0x387   :  { %v4579_v27 = vadd.f32 %v4518_v31, %v4097_v12 }
 0x396   :  { %v6251_v11 = vpop.f32.mrb[40].mxu0 }
 0x397   :  { %v4106_v25 = vadd.f32 %v6443_v60, %v6251_v11  ;;  %v4065_v22 = vpop.f32.mrb[41].mxu0 }
 0x398   :  { %v4104_v50 = vadd.f32 %v6441_v29, %v4065_v22  ;;  %v6252_v36 = vpop.f32.mrb[42].mxu0 }
 0x399   :  { %v6279_v45 = vpop.f32.mrb[36].mxu1  ;;  %v4107_v37 = vadd.f32 %v6444_v2, %v6252_v36  ;;  %v4068_v42 = vpop.f32.mrb[43].mxu0 }
 0x39a   :  { %v4584_v5 = vadd.f32 %v6279_v45, %v4102_v38  ;;  %v4531_v51 = vpop.f32.mrb[37].mxu1  ;;  %v4105_v58 = vadd.f32 %v6442_v23, %v4068_v42 }
 0x39b   :  { %v4582_v3 = vadd.f32 %v4531_v51, %v4100_v57  ;;  %v6280_v44 = vpop.f32.mrb[38].mxu1 }
 0x39c   :  { %v4585_v40 = vadd.f32 %v6280_v44, %v4103_v15  ;;  %v4534_v55 = vpop.f32.mrb[39].mxu1 }
 0x39d   :  { %v4583_v13 = vadd.f32 %v4534_v55, %v4101_v4  ;;  %v9624_v55 = vld [vmem:[#allocation16_spill] sm:$0xff] }
 0x3a5   :  { %v6255_v28 = vpop.f32.mrb[44].mxu0 }
 0x3a6   :  { %v4110_v34 = vadd.f32 %v6447_v53, %v6255_v28  ;;  %v4081_v33 = vpop.f32.mrb[45].mxu0  ;;  %v9625_v53 = vld [vmem:[#allocation18_spill] sm:$0xff] }
 0x3a7   :  { %v4108_v8 = vadd.f32 %v6445_v62, %v4081_v33  ;;  %v6256_v12 = vpop.f32.mrb[46].mxu0 }
 0x3a8   :  { %v4111_v48 = vadd.f32 %v6448_v19, %v6256_v12  ;;  %v4084_v56 = vpop.f32.mrb[47].mxu0 }
 0x3a9   :  { %v6283_v43 = vpop.f32.mrb[40].mxu1  ;;  %v4109_v30 = vadd.f32 %v6446_v63, %v4084_v56 }
 0x3aa   :  { %v4588_v26 = vadd.f32 %v6283_v43, %v4106_v25  ;;  %v4547_v6 = vpop.f32.mrb[41].mxu1 }
 0x3ab   :  { %v4586_v14 = vadd.f32 %v4547_v6, %v4104_v50  ;;  %v6284_v18 = vpop.f32.mrb[42].mxu1 }
 0x3ac   :  { %v4589_v39 = vadd.f32 %v6284_v18, %v4107_v37  ;;  %v4550_v38 = vpop.f32.mrb[43].mxu1 }
 0x3ad   :  { %v4587_v32 = vadd.f32 %v4550_v38, %v4105_v58 }
 0x3af   :  { %v6307_v47 = vpop.f32.mrb[48].mxu0 }
 0x3b0   :  { %v4854_v0 = vadd.f32 %v6307_v47, %v4580_v9  ;;  %v4789_v54 = vpop.f32.mrb[49].mxu0 }
 0x3b1   :  { %v4852_v57 = vadd.f32 %v4789_v54, %v4578_v7  ;;  %v6308_v41 = vpop.f32.mrb[50].mxu0 }
 0x3b2   :  { %v4855_v31 = vadd.f32 %v6308_v41, %v4581_v49  ;;  %v4792_v61 = vpop.f32.mrb[51].mxu0  ;;  %v842_v49 = vsub.s32 0, %v9606_v46 }
 0x3b3   :  { %v4853_v15 = vadd.f32 %v4792_v61, %v4579_v27 }
 0x3b4   :  { %v9136_v27 = vrot.slane %v9115_v52, %v842_v49 }
 0x3b6   :  { %v6403_v46 = vadd.f32 %v9624_v55, %v9136_v27  ;;  %v6405_v17 = vadd.f32 %v9625_v53, %v9136_v27  ;;  %v6407_v19 = vadd.f32 %v9626_v35, %v9136_v27 }
 0x3b8   :  { %v3649_v12 = vmul.f32 0.5, %v6405_v17 }
 0x3bb   :  { %v6287_v59 = vpop.f32.mrb[44].mxu1 }
 0x3bc   :  { %v4592_v4 = vadd.f32 %v6287_v59, %v4110_v34  ;;  %v4563_v1 = vpop.f32.mrb[45].mxu1 }
 0x3bd   :  { %v4590_v60 = vadd.f32 %v4563_v1, %v4108_v8  ;;  %v6288_v10 = vpop.f32.mrb[46].mxu1  ;;  %v3648_v8 = vmul.f32 0.5, %v6403_v46  ;;  %v9630_v1 = vld [vmem:[#allocation34_spill] sm:$0xff] }
 0x3be   :  { %v6311_v29 = vpop.f32.mrb[52].mxu0  ;;  %v4593_v11 = vadd.f32 %v6288_v10, %v4111_v48  ;;  %v4566_v16 = vpop.f32.mrb[47].mxu1  ;;  %v3650_v48 = vmul.f32 0.5, %v6407_v19  ;;  %v6415_v10 = vadd.f32 %v9630_v1, %v9136_v27 }
 0x3bf   :  { %v4858_v2 = vadd.f32 %v6311_v29, %v4584_v5  ;;  %v4805_v25 = vpop.f32.mrb[53].mxu0  ;;  %v4591_v22 = vadd.f32 %v4566_v16, %v4109_v30  ;;  %v9623_v5 = vld [vmem:[#allocation26_spill] sm:$0xff] }
 0x3c0   :  { %v4856_v21 = vadd.f32 %v4805_v25, %v4582_v3  ;;  %v6312_v23 = vpop.f32.mrb[54].mxu0  ;;  %v6401_v44 = vadd.f32 %v9623_v5, %v9136_v27 }
 0x3c1   :  { %v4859_v9 = vadd.f32 %v6312_v23, %v4585_v40  ;;  %v4808_v45 = vpop.f32.mrb[55].mxu0 }
 0x3c2   :  { %v4857_v7 = vadd.f32 %v4808_v45, %v4583_v13  ;;  %v3647_v20 = vmul.f32 0.5, %v6401_v44 }
 0x3c4   :  { %6990 = vtanh.f32 %v3647_v20 }
 0x3c5   :  { %6992 = vtanh.f32 %v3648_v8 }
 0x3c6   :  { %6994 = vtanh.f32 %v3649_v12 }
 0x3c7   :  { %6996 = vtanh.f32 %v3650_v48  ;;  %v9634_v48 = vld [vmem:[#allocation38_spill] sm:$0xff] }
 0x3ca   :  { %v6339_v50 = vpop.f32.mrb[48].mxu1 }
 0x3cb   :  { %v9138_v36 = vadd.f32 %v6339_v50, %v4854_v0  ;;  %v5159_v51 = vpop.f32.mrb[49].mxu1  ;;  %v9628_v0 = vld [vmem:[#allocation24_spill] sm:$0xff] }
 0x3cc   :  { %v9140_v37 = vadd.f32 %v5159_v51, %v4852_v57  ;;  %v6340_v42 = vpop.f32.mrb[50].mxu1  ;;  %v6411_v54 = vadd.f32 %v9628_v0, %v9136_v27 }
 0x3cd   :  { %v9144_v3 = vadd.f32 %v6340_v42, %v4855_v31  ;;  %v5162_v58 = vpop.f32.mrb[51].mxu1  ;;  %v9629_v31 = vld [vmem:[#allocation29_spill] sm:$0xff]  ;;  %v3654_v42 = vmul.f32 0.5, %v6415_v10 }
 0x3ce   :  { %v6315_v40 = vpop.f32.mrb[56].mxu0  ;;  %v9148_v13 = vadd.f32 %v5162_v58, %v4853_v15  ;;  %v6413_v61 = vadd.f32 %v9629_v31, %v9136_v27 }
 0x3cf   :  { %v4862_v52 = vadd.f32 %v6315_v40, %v4588_v26  ;;  %v4821_v24 = vpop.f32.mrb[57].mxu0 }
 0x3d0   :  { %v4860_v62 = vadd.f32 %v4821_v24, %v4586_v14  ;;  %v6316_v28 = vpop.f32.mrb[58].mxu0  ;;  %v3653_v49 = vmul.f32 0.5, %v6413_v61 }
 0x3d1   :  { %v4863_v34 = vadd.f32 %v6316_v28, %v4589_v39  ;;  %v4824_v33 = vpop.f32.mrb[59].mxu0  ;;  %v9627_v39 = vld [vmem:[#allocation21_spill] sm:$0xff] }
 0x3d2   :  { %v4861_v63 = vadd.f32 %v4824_v33, %v4587_v32  ;;  %v6409_v38 = vadd.f32 %v9627_v39, %v9136_v27 }
 0x3d4   :  { %v3651_v25 = vmul.f32 0.5, %v6409_v38 }
 0x3d6   :  { %6998 = vtanh.f32 %v3651_v25 }
 0x3da   :  { %v6343_v56 = vpop.f32.mrb[52].mxu1 }
 0x3db   :  { %v9154_v43 = vadd.f32 %v6343_v56, %v4858_v2  ;;  %v5175_v30 = vpop.f32.mrb[53].mxu1  ;;  %v6991_v2 = vpop.eup %6990  ;;  %v6419_v56 = vadd.f32 %v9634_v48, %v9136_v27 }
 0x3dc   :  { %v9156_v26 = vadd.f32 %v5175_v30, %v4856_v21  ;;  %v6344_v6 = vpop.f32.mrb[54].mxu1  ;;  %v6993_v23 = vpop.eup %6992  ;;  %v3679_v44 = vmul.f32 0.5, %v6991_v2 }
 0x3dd   :  { %v9158_v14 = vadd.f32 %v6344_v6, %v4859_v9  ;;  %v5178_v18 = vpop.f32.mrb[55].mxu1  ;;  %v9631_v9 = vld [vmem:[#allocation36_spill] sm:$0xff]  ;;  %v3680_v58 = vmul.f32 0.5, %v6993_v23 }
 0x3de   :  { %v9162_v32 = vadd.f32 %v5178_v18, %v4857_v7  ;;  %v6319_v47 = vpop.f32.mrb[60].mxu0  ;;  %v6417_v45 = vadd.f32 %v9631_v9, %v9136_v27  ;;  %v6995_v7 = vpop.eup %6994  ;;  %v9188_v33 = vadd.f32 0.5, %v3679_v44 }
 0x3df   :  { %v9166_v57 = vadd.f32 %v6319_v47, %v4592_v4  ;;  %v4837_v41 = vpop.f32.mrb[61].mxu0  ;;  %v3652_v4 = vmul.f32 0.5, %v6411_v54  ;;  %v6997_v51 = vpop.eup %6996  ;;  %v9192_v12 = vadd.f32 0.5, %v3680_v58  ;;  %v9638_v58 = vld [vmem:[#allocation46_spill] sm:$0xff] }
 0x3e0   :  { %v9170_v15 = vadd.f32 %v4837_v41, %v4590_v60  ;;  %v6320_v59 = vpop.f32.mrb[62].mxu0  ;;  %v9632_v60 = vld [vmem:[#allocation40_spill] sm:$0xff]  ;;  %v3655_v40 = vmul.f32 0.5, %v6417_v45  ;;  %v3682_v46 = vmul.f32 0.5, %v6997_v51  ;;  %v5528_v54 = vsub.f32 1.0, %v9188_v33 }
 0x3e1   :  { %v9174_v29 = vadd.f32 %v6320_v59, %v4593_v11  ;;  %v4840_v16 = vpop.f32.mrb[63].mxu0  ;;  %v6421_v50 = vadd.f32 %v9632_v60, %v9136_v27  ;;  %v9633_v11 = vld [vmem:[#allocation42_spill] sm:$0xff]  ;;  %7000 = vtanh.f32 %v3652_v4  ;;  %v3656_v59 = vmul.f32 0.5, %v6419_v56 }
 0x3e2   :  { %v9176_v21 = vadd.f32 %v4840_v16, %v4591_v22  ;;  %v6423_v5 = vadd.f32 %v9633_v11, %v9136_v27  ;;  %v3681_v22 = vmul.f32 0.5, %v6995_v7  ;;  %7002 = vtanh.f32 %v3653_v49  ;;  %v6999_v16 = vpop.eup %6998  ;;  %v7071_v7 = vld [vmem:[#allocation2] sm:$0xff] }
 0x3e3   :  { %v3657_v24 = vmul.f32 0.5, %v6421_v50  ;;  %7004 = vtanh.f32 %v3654_v42  ;;  %v9200_v18 = vadd.f32 0.5, %v3682_v46  ;;  %v5544_v49 = vmul.f32 %v7071_v7, %v5528_v54  ;;  %v7073_v42 = vld [vmem:[#allocation2 + $0x10] sm:$0xff] }
 0x3e4   :  { %v3658_v28 = vmul.f32 0.5, %v6423_v5  ;;  %7006 = vtanh.f32 %v3655_v40  ;;  %v9198_v6 = vadd.f32 0.5, %v3681_v22  ;;  %v3683_v60 = vmul.f32 0.5, %v6999_v16  ;;  %v7074_v5 = vld [vmem:[#allocation2 + $0x18] sm:$0xff] }
 0x3e5   :  { %7008 = vtanh.f32 %v3657_v24  ;;  %v5531_v25 = vsub.f32 1.0, %v9200_v18  ;;  %v6427_v22 = vadd.f32 %v9638_v58, %v9136_v27 }
 0x3e6   :  { %7010 = vtanh.f32 %v3658_v28  ;;  %v5530_v2 = vsub.f32 1.0, %v9198_v6 }
 0x3e7   :  { %v5547_v44 = vmul.f32 %v7074_v5, %v5531_v25 }
 0x3e8   :  { %v5546_v11 = vmul.f32 %v7073_v42, %v5530_v2 }
 0x3ea   :  { %v6347_v55 = vpop.f32.mrb[56].mxu1 }
 0x3eb   :  { %v9184_v53 = vadd.f32 %v6347_v55, %v4862_v52  ;;  %v5191_v17 = vpop.f32.mrb[57].mxu1  ;;  %v7001_v23 = vpop.eup %7000 }
 0x3ec   :  { %v9186_v35 = vadd.f32 %v5191_v17, %v4860_v62  ;;  %v6348_v19 = vpop.f32.mrb[58].mxu1  ;;  %v3684_v46 = vmul.f32 0.5, %v7001_v23 }
 0x3ed   :  { %v9190_v20 = vadd.f32 %v6348_v19, %v4863_v34  ;;  %v5194_v8 = vpop.f32.mrb[59].mxu1  ;;  %v9635_v34 = vld [vmem:[#allocation44_spill] sm:$0xff] }
 0x3ee   :  { %v9196_v30 = vadd.f32 %v5194_v8, %v4861_v63  ;;  %v6371_v52 = vpop.f32.mrb[64].mxu0  ;;  %v6425_v38 = vadd.f32 %v9635_v34, %v9136_v27  ;;  %v9636_v63 = vld [vmem:[#allocation48_spill] sm:$0xff]  ;;  %v9227_v34 = vadd.f32 0.5, %v3683_v60 }
 0x3ef   :  { %v5498_v62 = vadd.f32 %v6371_v52, %v9138_v36  ;;  %v5433_v39 = vpop.f32.mrb[65].mxu0  ;;  %v6429_v41 = vadd.f32 %v9636_v63, %v9136_v27  ;;  %v9637_v36 = vld [vmem:[#allocation50_spill] sm:$0xff]  ;;  %v3660_v63 = vmul.f32 0.5, %v6427_v22 }
 0x3f0   :  { %v5496_v47 = vadd.f32 %v5433_v39, %v9140_v37  ;;  %v6372_v0 = vpop.f32.mrb[66].mxu0  ;;  %v6431_v1 = vadd.f32 %v9637_v36, %v9136_v27  ;;  %v5529_v37 = vsub.f32 1.0, %v9192_v12  ;;  %v3659_v4 = vmul.f32 0.5, %v6425_v38 }
 0x3f1   :  { %7012 = vtanh.f32 %v5498_v62  ;;  %v5499_v31 = vadd.f32 %v6372_v0, %v9144_v3  ;;  %v5436_v61 = vpop.f32.mrb[67].mxu0  ;;  %v7003_v3 = vpop.eup %7002  ;;  %v3661_v9 = vmul.f32 0.5, %v6429_v41 }
 0x3f2   :  { %7014 = vtanh.f32 %v5496_v47  ;;  %v5497_v10 = vadd.f32 %v5436_v61, %v9148_v13  ;;  %v7005_v45 = vpop.eup %7004  ;;  %v3662_v50 = vmul.f32 0.5, %v6431_v1  ;;  %v7072_v13 = vld [vmem:[#allocation2 + $0x8] sm:$0xff]  ;;  %v3685_v24 = vmul.f32 0.5, %v7003_v3 }
 0x3f3   :  { %7016 = vtanh.f32 %v5499_v31  ;;  %v9216_v51 = vmul.f32 %v7072_v13, %v5529_v37  ;;  %v7007_v55 = vpop.eup %7006  ;;  %v3686_v48 = vmul.f32 0.5, %v7005_v45  ;;  %v9237_v61 = vadd.f32 0.5, %v3684_v46 }
 0x3f4   :  { %7018 = vtanh.f32 %v5497_v10  ;;  %v7009_v8 = vpop.eup %7008  ;;  %v3687_v16 = vmul.f32 0.5, %v7007_v55  ;;  %v7075_v55 = vld [vmem:[#allocation2 + $0x20] sm:$0xff] }
 0x3f5   :  { %7020 = vtanh.f32 %v3656_v59  ;;  %v7011_v39 = vpop.eup %7010  ;;  %v9241_v1 = vadd.f32 0.5, %v3686_v48  ;;  %v3689_v2 = vmul.f32 0.5, %v7009_v8  ;;  %v5533_v7 = vsub.f32 1.0, %v9237_v61  ;;  %v7078_v48 = vld [vmem:[#allocation2 + $0x38] sm:$0xff] }
 0x3f6   :  { %7022 = vtanh.f32 %v3659_v4  ;;  %v5532_v4 = vsub.f32 1.0, %v9227_v34  ;;  %v3690_v3 = vmul.f32 0.5, %v7011_v39  ;;  %v9252_v42 = vadd.f32 0.5, %v3687_v16 }
 0x3f7   :  { %7024 = vtanh.f32 %v3661_v9  ;;  %v5535_v13 = vsub.f32 1.0, %v9241_v1  ;;  %v3705_v58 = vadd.f32 0.5, %v3689_v2 }
 0x3f8   :  { %7026 = vtanh.f32 %v3662_v50  ;;  %v5548_v46 = vmul.f32 %v7075_v55, %v5532_v4  ;;  %v5536_v39 = vsub.f32 1.0, %v9252_v42 }
 0x3fa   :  { %v6351_v40 = vpop.f32.mrb[60].mxu1  ;;  %v6375_v19 = vpop.f32.mrb[68].mxu0 }
 0x3fb   :  { %v9221_v17 = vadd.f32 %v6351_v40, %v9166_v57  ;;  %v5207_v28 = vpop.f32.mrb[61].mxu1  ;;  %v5502_v62 = vadd.f32 %v6375_v19, %v9154_v43  ;;  %v5449_v27 = vpop.f32.mrb[69].mxu0 }
 0x3fc   :  { %v9224_v56 = vadd.f32 %v5207_v28, %v9170_v15  ;;  %v6352_v52 = vpop.f32.mrb[62].mxu1  ;;  %v5500_v47 = vadd.f32 %v5449_v27, %v9156_v26  ;;  %v6376_v0 = vpop.f32.mrb[70].mxu0  ;;  %v3701_v26 = vadd.f32 0.5, %v3685_v24  ;;  %v7076_v28 = vld [vmem:[#allocation2 + $0x28] sm:$0xff] }
 0x3fd   :  { %v9230_v38 = vadd.f32 %v6352_v52, %v9174_v29  ;;  %v5210_v57 = vpop.f32.mrb[63].mxu1  ;;  %v7013_v54 = vpop.eup %7012  ;;  %7028 = vtanh.f32 %v5502_v62  ;;  %v5503_v43 = vadd.f32 %v6376_v0, %v9158_v14  ;;  %v5549_v19 = vmul.f32 %v7076_v28, %v5533_v7 }
 0x3fe   :  { %v9234_v15 = vadd.f32 %v5210_v57, %v9176_v21  ;;  %v5452_v41 = vpop.f32.mrb[71].mxu0  ;;  %v7015_v31 = vpop.eup %7014  ;;  %v5562_v59 = vmul.f32 %v7013_v54, %v9198_v6  ;;  %7030 = vtanh.f32 %v5500_v47  ;;  %v5534_v60 = vsub.f32 1.0, %v3701_v26 }
 0x3ff   :  { %v5501_v29 = vadd.f32 %v5452_v41, %v9162_v32  ;;  %v7017_v36 = vpop.eup %7016  ;;  %v5560_v10 = vmul.f32 %v7015_v31, %v9188_v33  ;;  %7032 = vtanh.f32 %v5503_v43  ;;  %v5551_v52 = vmul.f32 %v7078_v48, %v5535_v13  ;;  %v7084_v48 = vld [vmem:[#allocation2 + $0x60] sm:$0xff] }
 0x400   :  { %v7019_v21 = vpop.eup %7018  ;;  %v5578_v37 = vadd.f32 %v5562_v59, %v5546_v11  ;;  %v5563_v14 = vmul.f32 %v7017_v36, %v9200_v18  ;;  %v5538_v57 = vsub.f32 1.0, %v3705_v58 }
 0x401   :  { %7034 = vtanh.f32 %v5501_v29  ;;  %v5576_v25 = vadd.f32 %v5560_v10, %v5544_v49  ;;  %v5561_v6 = vmul.f32 %v7019_v21, %v9192_v12  ;;  %v7021_v32 = vpop.eup %7020 }
 0x402   :  { %7036 = vtanh.f32 %v3660_v63  ;;  %v6379_v23 = vpop.f32.mrb[64].mxu1  ;;  %5594 = vst [vmem:[#allocation11 + $0x10] sm:$0xff] %v5578_v37  ;;  %v5579_v9 = vadd.f32 %v5563_v14, %v5547_v44  ;;  %v7023_v12 = vpop.eup %7022  ;;  %v3688_v44 = vmul.f32 0.5, %v7021_v32 }
 0x403   :  { %v5506_v33 = vadd.f32 %v6379_v23, %v9184_v53  ;;  %v5465_v45 = vpop.f32.mrb[65].mxu1  ;;  %5592 = vst [vmem:[#allocation11] sm:$0xff] %v5576_v25  ;;  %v5577_v18 = vadd.f32 %v5561_v6, %v9216_v51  ;;  %v7025_v5 = vpop.eup %7024  ;;  %v3691_v37 = vmul.f32 0.5, %v7023_v12 }
 0x404   :  { %v5504_v49 = vadd.f32 %v5465_v45, %v9186_v35  ;;  %v6380_v50 = vpop.f32.mrb[66].mxu1  ;;  %5595 = vst [vmem:[#allocation11 + $0x18] sm:$0xff] %v5579_v9  ;;  %v7027_v22 = vpop.eup %7026  ;;  %v9256_v35 = vadd.f32 0.5, %v3690_v3  ;;  %v3693_v36 = vmul.f32 0.5, %v7025_v5 }
 0x405   :  { %7038 = vtanh.f32 %v5506_v33  ;;  %v5507_v11 = vadd.f32 %v6380_v50, %v9190_v20  ;;  %v5468_v53 = vpop.f32.mrb[67].mxu1  ;;  %5593 = vst [vmem:[#allocation11 + $0x8] sm:$0xff] %v5577_v18  ;;  %v7077_v20 = vld [vmem:[#allocation2 + $0x30] sm:$0xff]  ;;  %v3694_v25 = vmul.f32 0.5, %v7027_v22  ;;  %v7080_v33 = vld [vmem:[#allocation2 + $0x40] sm:$0xff]  ;;  %v3707_v7 = vadd.f32 0.5, %v3691_v37 }
 0x406   :  { %7040 = vtanh.f32 %v5504_v49  ;;  %v5505_v51 = vadd.f32 %v5468_v53, %v9196_v30  ;;  %v5550_v8 = vmul.f32 %v7077_v20, %v5534_v60  ;;  %v3704_v30 = vadd.f32 0.5, %v3688_v44 }
 0x407   :  { %7042 = vtanh.f32 %v5507_v11  ;;  %v7029_v40 = vpop.eup %7028  ;;  %v5539_v63 = vsub.f32 1.0, %v9256_v35  ;;  %v3709_v3 = vadd.f32 0.5, %v3693_v36  ;;  %v5552_v45 = vmul.f32 %v7080_v33, %v5536_v39  ;;  %v7082_v11 = vld [vmem:[#allocation2 + $0x48] sm:$0xff]  ;;  %v7085_v39 = vld [vmem:[#allocation2 + $0x78] sm:$0xff] }
 0x408   :  { %7044 = vtanh.f32 %v5505_v51  ;;  %v7031_v24 = vpop.eup %7030  ;;  %v5566_v62 = vmul.f32 %v7029_v40, %v3701_v26  ;;  %v5537_v23 = vsub.f32 1.0, %v3704_v30  ;;  %v3710_v50 = vadd.f32 0.5, %v3694_v25 }
 0x409   :  { %v7033_v27 = vpop.eup %7032  ;;  %v5564_v47 = vmul.f32 %v7031_v24, %v9227_v34  ;;  %v5540_v40 = vsub.f32 1.0, %v3707_v7 }
 0x40a   :  { %v6383_v0 = vpop.f32.mrb[68].mxu1  ;;  %v5582_v43 = vadd.f32 %v5566_v62, %v5550_v8  ;;  %v5567_v41 = vmul.f32 %v7033_v27, %v9241_v1  ;;  %v5553_v53 = vmul.f32 %v7082_v11, %v5537_v23 }
 0x40b   :  { %v7035_v54 = vpop.eup %7034  ;;  %v5510_v31 = vadd.f32 %v6383_v0, %v9221_v17  ;;  %v5481_v59 = vpop.f32.mrb[69].mxu1  ;;  %v5580_v26 = vadd.f32 %v5564_v47, %v5548_v46  ;;  %v5543_v46 = vsub.f32 1.0, %v3710_v50  ;;  %v7086_v0 = vld [vmem:[#allocation2 + $0x68] sm:$0xff] }
 0x40c   :  { %v7037_v29 = vpop.eup %7036  ;;  %v5565_v10 = vmul.f32 %v7035_v54, %v9237_v61  ;;  %v5508_v21 = vadd.f32 %v5481_v59, %v9224_v56  ;;  %v6384_v16 = vpop.f32.mrb[70].mxu1  ;;  %5598 = vst [vmem:[#allocation11 + $0x30] sm:$0xff] %v5582_v43  ;;  %v5583_v34 = vadd.f32 %v5567_v41, %v5551_v52  ;;  %v7079_v61 = vld [vmem:[#allocation2 + $0x50] sm:$0xff]  ;;  %v5556_v52 = vmul.f32 %v7084_v48, %v5540_v40 }
 0x40d   :  { %7046 = vtanh.f32 %v5510_v31  ;;  %v5511_v14 = vadd.f32 %v6384_v16, %v9230_v38  ;;  %v5484_v2 = vpop.f32.mrb[71].mxu1  ;;  %5596 = vst [vmem:[#allocation11 + $0x20] sm:$0xff] %v5580_v26  ;;  %v3692_v32 = vmul.f32 0.5, %v7037_v29  ;;  %v5554_v4 = vmul.f32 %v7079_v61, %v5538_v57 }
 0x40e   :  { %v5581_v1 = vadd.f32 %v5565_v10, %v5549_v19  ;;  %7048 = vtanh.f32 %v5508_v21  ;;  %v5509_v17 = vadd.f32 %v5484_v2, %v9234_v15  ;;  %5599 = vst [vmem:[#allocation11 + $0x38] sm:$0xff] %v5583_v34  ;;  %v7081_v15 = vld [vmem:[#allocation2 + $0x58] sm:$0xff]  ;;  %v7083_v19 = vld [vmem:[#allocation2 + $0x70] sm:$0xff] }
 0x40f   :  { %v7039_v6 = vpop.eup %7038  ;;  %7050 = vtanh.f32 %v5511_v14  ;;  %v5555_v49 = vmul.f32 %v7081_v15, %v5539_v63  ;;  %v3708_v5 = vadd.f32 0.5, %v3692_v32 }
 0x410   :  { %v7041_v56 = vpop.eup %7040  ;;  %5597 = vst [vmem:[#allocation11 + $0x28] sm:$0xff] %v5581_v1  ;;  %v5570_v9 = vmul.f32 %v7039_v6, %v3705_v58  ;;  %7052 = vtanh.f32 %v5509_v17  ;;  %v5542_v58 = vsub.f32 1.0, %v3709_v3 }
 0x411   :  { %v7043_v38 = vpop.eup %7042  ;;  %v5568_v60 = vmul.f32 %v7041_v56, %v9252_v42  ;;  %v5541_v24 = vsub.f32 1.0, %v3708_v5 }
 0x412   :  { %v7045_v18 = vpop.eup %7044  ;;  %v5586_v12 = vadd.f32 %v5570_v9, %v5554_v4  ;;  %v5571_v13 = vmul.f32 %v7043_v38, %v9256_v35  ;;  %v5558_v20 = vmul.f32 %v7083_v19, %v5542_v58 }
 0x413   :  { %v5584_v44 = vadd.f32 %v5568_v60, %v5552_v45  ;;  %v5569_v51 = vmul.f32 %v7045_v18, %v3704_v30  ;;  %v5559_v30 = vmul.f32 %v7085_v39, %v5543_v46  ;;  %v5557_v54 = vmul.f32 %v7086_v0, %v5541_v24 }
 0x414   :  { %5602 = vst [vmem:[#allocation11 + $0x50] sm:$0xff] %v5586_v12  ;;  %v5587_v22 = vadd.f32 %v5571_v13, %v5555_v49 }
 0x415   :  { %5600 = vst [vmem:[#allocation11 + $0x40] sm:$0xff] %v5584_v44  ;;  %v5585_v55 = vadd.f32 %v5569_v51, %v5553_v53 }
 0x416   :  { %5603 = vst [vmem:[#allocation11 + $0x58] sm:$0xff] %v5587_v22 }
 0x417   :  { %v7047_v42 = vpop.eup %7046  ;;  %5601 = vst [vmem:[#allocation11 + $0x48] sm:$0xff] %v5585_v55 }
 0x418   :  { %v7049_v28 = vpop.eup %7048  ;;  %v5574_v35 = vmul.f32 %v7047_v42, %v3709_v3 }
 0x419   :  { %v7051_v8 = vpop.eup %7050  ;;  %v5572_v62 = vmul.f32 %v7049_v28, %v3707_v7 }
 0x41a   :  { %v7053_v27 = vpop.eup %7052  ;;  %v5590_v57 = vadd.f32 %v5574_v35, %v5558_v20  ;;  %v5575_v47 = vmul.f32 %v7051_v8, %v3710_v50 }
 0x41b   :  { %v5588_v63 = vadd.f32 %v5572_v62, %v5556_v52  ;;  %v5573_v43 = vmul.f32 %v7053_v27, %v3708_v5 }
 0x41c   :  { %5606 = vst [vmem:[#allocation11 + $0x70] sm:$0xff] %v5590_v57  ;;  %v5591_v41 = vadd.f32 %v5575_v47, %v5559_v30 }
 0x41d   :  { %5604 = vst [vmem:[#allocation11 + $0x60] sm:$0xff] %v5588_v63  ;;  %v5589_v31 = vadd.f32 %v5573_v43, %v5557_v54 }
 0x41e   :  { %5607 = vst [vmem:[#allocation11 + $0x78] sm:$0xff] %v5591_v41 }
 0x41f   :  { %5605 = vst [vmem:[#allocation11 + $0x68] sm:$0xff] %v5589_v31 }
 0x420   :  { %7208 = shalt.err (!%p7205_p2)
}
 0x421   :  { %s7209_s12 = scalar_lea.hbm %s9289_s5, 2048 }
 0x422   :  { %p7210_p3 = scmp.ne.s32.totalorder %s9289_s5, %s7209_s12  ;;  %p7213_p4 = scmp.lt.u32.totalorder %s7209_s12, %s9289_s5 }
 0x424   :  { %p7215_p5 = pnand %p7213_p4, %p7210_p3 }
 0x426   :  { %7218 = shalt.err (!%p7215_p5)
}
 0x427   :  { %5619 = dma.vmem_to_hbm [thread:$0]  %s5614_s21, 2048, %s9289_s5, [#allocation4], %s7229_s30, %s7229_s30, %s7230_s6  }
 0x428   :  { %7225 = dma.done.wait [#allocation4], 2048  }
 0x429   :  { %7226 = vsyncadd [#allocation4], 4294965248 }
 0x42a   :  { %5623 = vsyncpa [#allocation3], 1 }
 0x42b   :  { %5624 = vsyncpa [#allocation6], 1 }
 0x42c   :  { %5625 = vsyncpa [#allocation9], 1 }
 0x42d   :  { %5626 = vsyncpa [#allocation4], 1 }

</bundles_post_ra>
